<compile_context>
chip_gen: v7x
topology: tpu7x:2x2x1
jax: 0.10.0
libtpu: 0.0.40
codegen_flags: <defaults>
</compile_context>

<pallas_src>
import functools
import math

import jax
import jax.numpy as jnp
import numpy as np
from jax.experimental import pallas as pl
from jax.experimental.pallas import tpu as pltpu

EPS = 1e-5


def gelu_exact(x):
    # matches torch.nn.GELU() (erf-based)
    return 0.5 * x * (1.0 + jax.lax.erf(x / jnp.float32(math.sqrt(2.0))))


def _mm_nt(a, b):
    # a: (M, K), b: (N, K) -> (M, N)  (== a @ b.T), f32 accumulation on the MXU
    return jax.lax.dot_general(a, b, (((1,), (1,)), ((), ())),
                               preferred_element_type=jnp.float32)


def _layernorm(y, g, b):
    mu = jnp.mean(y, axis=-1, keepdims=True)
    var = jnp.mean(jnp.square(y - mu), axis=-1, keepdims=True)
    return (y - mu) * jax.lax.rsqrt(var + EPS) * g + b


# ----------------------------------------------------------------------------
# Fused kernel: one grid step == one block of Bt batch elements.
# Row layout of the flat activation x (M = Bt * S_tot rows):
#   rows [0, Bt)                 : boost row of batch b            (b = row)
#   rows [Bt + b*S_reco + s]     : reco particle s of batch b
# ----------------------------------------------------------------------------
def fused_kernel(reco_ref, boost_ref, maskr_ref, maskrow_ref,
                 wi_ref, wb_ref, embvec_ref, labr_ref, sel_ref, same_ref,
                 wq_ref, wk_ref, wv_ref, wo_ref, w1_ref, w2_ref,
                 vech_ref, b1_ref, wp_ref, bp_ref,
                 o_ref, *, nhead, head_dim, n_layers):
    f32 = jnp.float32
    H = wi_ref.shape[0]
    M = same_ref.shape[0]

    # ---------------- embedding ----------------
    bi = embvec_ref[0:1, :]          # (1, H)   lin_input bias (aug, last col 0)
    bb = embvec_ref[1:2, :]          # (1, H)   lin_boost bias (aug, last col 0)
    lab4 = embvec_ref[2:3, :]        # (1, H)   label "4" addend for boost row

    reco_lin = _mm_nt(reco_ref[...], wi_ref[...]) + bi               # (Bt*S_reco, H)
    reco_emb = gelu_exact(reco_lin * maskr_ref[...]) + labr_ref[...]
    boost_lin = _mm_nt(boost_ref[...], wb_ref[...]) + bb             # (Bt, H)
    boost_emb = gelu_exact(boost_lin) + lab4

    x = jnp.concatenate([boost_emb, reco_emb], axis=0)               # (M, H)

    # additive attention mask: 0 where (same batch AND key valid) else -1e30
    mask_row = maskrow_ref[0]                                        # (1, M)
    valid = same_ref[...] * mask_row                                 # (M, M) in {0,1}
    attn_bias = (valid - 1.0) * jnp.float32(1e30)

    # per-head column masks, built once and reused across layers
    cols = jax.lax.broadcasted_iota(jnp.int32, (1, H), 1)
    head_masks = [((cols >= h * head_dim) & (cols < (h + 1) * head_dim)).astype(f32)
                  for h in range(nhead)]
    scale = jnp.float32(1.0 / math.sqrt(head_dim))

    # ---------------- transformer encoder layers (post-LN, relu FFN) ----------------
    for l in range(n_layers):
        wq = wq_ref[l]; wk = wk_ref[l]; wv = wv_ref[l]; wo = wo_ref[l]
        w1 = w1_ref[l]; w2 = w2_ref[l]
        bq = vech_ref[l, 0:1, :]; bk = vech_ref[l, 1:2, :]
        bv = vech_ref[l, 2:3, :]; bo = vech_ref[l, 3:4, :]
        b2 = vech_ref[l, 4:5, :]
        g1 = vech_ref[l, 5:6, :]; be1 = vech_ref[l, 6:7, :]
        g2 = vech_ref[l, 7:8, :]; be2 = vech_ref[l, 8:9, :]
        b1 = b1_ref[l]                                               # (1, FF)

        q = _mm_nt(x, wq) + bq                                       # (M, H)
        k = _mm_nt(x, wk) + bk
        v = _mm_nt(x, wv) + bv

        attn = jnp.zeros((M, H), f32)
        for h in range(nhead):
            hm = head_masks[h]
            qh = q * hm                                              # masking q alone is enough
            s = _mm_nt(qh, k) * scale + attn_bias                    # (M, M)
            m = jnp.max(s, axis=-1, keepdims=True)
            e = jnp.exp(s - m)
            p = e / jnp.sum(e, axis=-1, keepdims=True)
            attn = attn + jnp.dot(p, v * hm, preferred_element_type=f32)

        attn = _mm_nt(attn, wo) + bo
        xn = _layernorm(x + attn, g1, be1)
        ff = jnp.maximum(_mm_nt(xn, w1) + b1, 0.0)
        ff = _mm_nt(ff, w2) + b2
        x = _layernorm(xn + ff, g2, be2)

    # ---------------- masked mean pool + output projection ----------------
    masked_sel = sel_ref[...] * mask_row                             # (Bt, M)
    pooled = jnp.dot(masked_sel, x, preferred_element_type=f32)      # (Bt, H)
    n_valid = jnp.sum(masked_sel, axis=-1, keepdims=True)            # (Bt, 1)
    pooled = pooled / n_valid
    o_ref[...] = _mm_nt(gelu_exact(pooled), wp_ref[...]) + bp_ref[...]


# ----------------------------------------------------------------------------
# BlockSpec helpers
# ----------------------------------------------------------------------------
def _const_spec(shape):
    nd = len(shape)
    return pl.BlockSpec(tuple(shape), lambda j, _nd=nd: (0,) * _nd)


def _round_up(x, m):
    return ((x + m - 1) // m) * m


# ----------------------------------------------------------------------------
# Forward pass (single fused Pallas call)
# ----------------------------------------------------------------------------
def conditioning_transformer_forward(params, reco, boost, mask_reco, mask_boost,
                                     *, no_jets, no_lept, nhead, out_features,
                                     block_b=32):
    f32 = jnp.float32
    B, S_reco, F_in = reco.shape
    H = params['lin_input'][0].shape[0] + 1
    S_tot = 1 + S_reco
    head_dim = H // nhead
    out2 = out_features - 2
    layers = params['layers']
    L = len(layers)

    # ---- batch tiling: Bt batch elements per grid step (multiple of 8) ----
    block_b = max(8, (block_b // 8) * 8)
    Bt = min(block_b, _round_up(B, 8))
    Bpad = _round_up(B, Bt)
    nblk = Bpad // Bt
    M = Bt * S_tot

    # ---- pad batch (padded rows: zero inputs; mask_boost=1 so N_valid >= 1) ----
    if Bpad != B:
        pad = Bpad - B
        reco_p = jnp.concatenate([reco, jnp.zeros((pad, S_reco, F_in), f32)], axis=0)
        boost_p = jnp.concatenate([boost, jnp.zeros((pad, 1, 4), f32)], axis=0)
        mask_reco_p = jnp.concatenate([mask_reco, jnp.zeros((pad, S_reco), f32)], axis=0)
        mask_boost_p = jnp.concatenate([mask_boost, jnp.ones((pad, 1), f32)], axis=0)
    else:
        reco_p, boost_p, mask_reco_p, mask_boost_p = reco, boost, mask_reco, mask_boost

    # ---- flat, batch-blocked input layouts (no in-kernel reshapes needed) ----
    reco2 = reco_p.reshape(Bpad * S_reco, F_in)
    boost2 = boost_p.reshape(Bpad, 4)
    maskr_flat = mask_reco_p.reshape(Bpad * S_reco, 1)
    mask_rows = jnp.concatenate(
        [mask_boost_p.reshape(nblk, Bt), mask_reco_p.reshape(nblk, Bt * S_reco)],
        axis=1)[:, None, :]                                          # (nblk, 1, M)

    # ---- embedding params (augmented with a zero row so matmul yields H cols) ----
    Wi, bi = params['lin_input']
    Wb, bb = params['lin_boost']
    Wi_aug = jnp.concatenate([Wi, jnp.zeros((1, F_in), f32)], axis=0)     # (H, F_in)
    Wb_aug = jnp.concatenate([Wb, jnp.zeros((1, 4), f32)], axis=0)        # (H, 4)
    bi_aug = jnp.concatenate([bi, jnp.zeros((1,), f32)])
    bb_aug = jnp.concatenate([bb, jnp.zeros((1,), f32)])
    lab4_row = jnp.zeros((H,), f32).at[H - 1].set(4.0)
    embvec = jnp.stack([bi_aug, bb_aug, lab4_row], axis=0)                # (3, H)

    labels = jnp.concatenate([jnp.ones((no_jets,), f32),
                              2.0 * jnp.ones((no_lept,), f32),
                              jnp.array([3.0], f32)])                     # (S_reco,)
    lab_reco = jnp.zeros((S_reco, H), f32).at[:, H - 1].set(labels)
    lab_reco = jnp.tile(lab_reco, (Bt, 1))                                # (Bt*S_reco, H)

    # ---- static row->batch bookkeeping (block-diag attention + pooling selector) ----
    batch_of_row = np.concatenate([np.arange(Bt), np.repeat(np.arange(Bt), S_reco)])
    sel = jnp.asarray(
        (batch_of_row[None, :] == np.arange(Bt)[:, None]).astype(np.float32))  # (Bt, M)
    same = jnp.asarray(
        (batch_of_row[None, :] == batch_of_row[:, None]).astype(np.float32))   # (M, M)

    # ---- stacked per-layer weights / collapsed bias+LN slabs ----
    Wq_all = jnp.stack([lp['Wq'] for lp in layers])                       # (L, H, H)
    Wk_all = jnp.stack([lp['Wk'] for lp in layers])
    Wv_all = jnp.stack([lp['Wv'] for lp in layers])
    Wo_all = jnp.stack([lp['Wo'] for lp in layers])
    W1_all = jnp.stack([lp['W1'] for lp in layers])                       # (L, FF, H)
    W2_all = jnp.stack([lp['W2'] for lp in layers])                       # (L, H, FF)
    vecH_all = jnp.stack([jnp.stack([lp['bq'], lp['bk'], lp['bv'], lp['bo'], lp['b2'],
                                     lp['g1'], lp['be1'], lp['g2'], lp['be2']], axis=0)
                          for lp in layers])                              # (L, 9, H)
    b1_all = jnp.stack([lp['b1'] for lp in layers])[:, None, :]           # (L, 1, FF)

    Wp, bp = params['output_proj']
    bp2 = bp[None, :]                                                     # (1, out2)

    kern = functools.partial(fused_kernel, nhead=nhead, head_dim=head_dim, n_layers=L)

    cond = pl.pallas_call(
        kern,
        out_shape=jax.ShapeDtypeStruct((Bpad, out2), f32),
        grid=(nblk,),
        in_specs=[
            pl.BlockSpec((Bt * S_reco, F_in), lambda j: (j, 0)),
            pl.BlockSpec((Bt, 4), lambda j: (j, 0)),
            pl.BlockSpec((Bt * S_reco, 1), lambda j: (j, 0)),
            pl.BlockSpec((1, 1, M), lambda j: (j, 0, 0)),
            _const_spec(Wi_aug.shape), _const_spec(Wb_aug.shape),
            _const_spec(embvec.shape), _const_spec(lab_reco.shape),
            _const_spec(sel.shape), _const_spec(same.shape),
            _const_spec(Wq_all.shape), _const_spec(Wk_all.shape),
            _const_spec(Wv_all.shape), _const_spec(Wo_all.shape),
            _const_spec(W1_all.shape), _const_spec(W2_all.shape),
            _const_spec(vecH_all.shape), _const_spec(b1_all.shape),
            _const_spec(Wp.shape), _const_spec(bp2.shape),
        ],
        out_specs=pl.BlockSpec((Bt, out2), lambda j: (j, 0)),
        compiler_params=pltpu.CompilerParams(
            dimension_semantics=("parallel",),            # megacore-shard batch blocks
            vmem_limit_bytes=32 * 1024 * 1024),           # footprint << limit at these dims
    )(reco2, boost2, maskr_flat, mask_rows,
      Wi_aug, Wb_aug, embvec, lab_reco, sel, same,
      Wq_all, Wk_all, Wv_all, Wo_all, W1_all, W2_all, vecH_all, b1_all, Wp, bp2)

    cond = cond[:B]
    x1 = (boost[:, :, 3] + boost[:, :, 2]) / 13000.0
    x2 = (boost[:, :, 3] - boost[:, :, 2]) / 13000.0
    return jnp.concatenate([x1, x2, cond], axis=1)


# ----------------------------------------------------------------------------
# Pure-JAX reference (standard multi-head formulation) for a correctness check
# ----------------------------------------------------------------------------
def reference_forward(params, reco, boost, mask_reco, mask_boost,
                      *, no_jets, no_lept, nhead):
    f32 = jnp.float32
    HI = jax.lax.Precision.HIGHEST
    B = reco.shape[0]
    Wi, bi = params['lin_input']
    Wb, bb = params['lin_boost']
    inp = gelu_exact((jnp.einsum('bsf,hf->bsh', reco, Wi, precision=HI) + bi)
                     * mask_reco[:, :, None])
    bst = gelu_exact(jnp.einsum('bsf,hf->bsh', boost, Wb, precision=HI) + bb)
    labels = jnp.concatenate([jnp.ones((no_jets, 1), f32),
                              2.0 * jnp.ones((no_lept, 1), f32),
                              3.0 * jnp.ones((1, 1), f32)], axis=0)
    labels = jnp.broadcast_to(labels[None], (B,) + labels.shape)
    reco_l = jnp.concatenate([inp, labels], axis=-1)
    bst_l = jnp.concatenate([bst, 4.0 * jnp.ones((B, 1, 1), f32)], axis=-1)
    x = jnp.concatenate([bst_l, reco_l], axis=1)
    mask = jnp.concatenate([mask_boost, mask_reco], axis=1)

    H = x.shape[-1]
    d = H // nhead
    for lp in params['layers']:
        S = x.shape[1]
        q = jnp.einsum('bsh,oh->bso', x, lp['Wq'], precision=HI) + lp['bq']
        k = jnp.einsum('bsh,oh->bso', x, lp['Wk'], precision=HI) + lp['bk']
        v = jnp.einsum('bsh,oh->bso', x, lp['Wv'], precision=HI) + lp['bv']
        q = q.reshape(B, S, nhead, d).transpose(0, 2, 1, 3)
        k = k.reshape(B, S, nhead, d).transpose(0, 2, 1, 3)
        v = v.reshape(B, S, nhead, d).transpose(0, 2, 1, 3)
        s = jnp.einsum('bhqd,bhkd->bhqk', q, k, precision=HI) / jnp.float32(math.sqrt(d))
        s = jnp.where(mask[:, None, None, :] > 0, s, -jnp.inf)
        p = jax.nn.softmax(s, axis=-1)
        o = jnp.einsum('bhqk,bhkd->bhqd', p, v, precision=HI)
        o = o.transpose(0, 2, 1, 3).reshape(B, S, H)
        o = jnp.einsum('bsh,oh->bso', o, lp['Wo'], precision=HI) + lp['bo']
        x = _layernorm(x + o, lp['g1'], lp['be1'])
        ff = jnp.maximum(jnp.einsum('bsh,fh->bsf', x, lp['W1'], precision=HI) + lp['b1'], 0.0)
        ff = jnp.einsum('bsf,hf->bsh', ff, lp['W2'], precision=HI) + lp['b2']
        x = _layernorm(x + ff, lp['g2'], lp['be2'])

    pooled = jnp.sum(x * mask[:, :, None], axis=1) / jnp.sum(mask, axis=1, keepdims=True)
    Wp, bp = params['output_proj']
    cond = jnp.einsum('bh,oh->bo', gelu_exact(pooled), Wp, precision=HI) + bp
    x1 = (boost[:, :, 3] + boost[:, :, 2]) / 13000.0
    x2 = (boost[:, :, 3] - boost[:, :, 2]) / 13000.0
    return jnp.concatenate([x1, x2, cond], axis=1)


# ----------------------------------------------------------------------------
# Deterministic parameter initialization (shapes mirror the PyTorch __init__)
# ----------------------------------------------------------------------------
def linear_init(key, out_f, in_f):
    kw, kb = jax.random.split(key)
    bound = 1.0 / math.sqrt(in_f)
    W = jax.random.uniform(kw, (out_f, in_f), jnp.float32, -bound, bound)
    b = jax.random.uniform(kb, (out_f,), jnp.float32, -bound, bound)
    return W, b


def init_params(key, *, input_features, hidden_features, out_features,
                dim_feedforward, no_layers_encoder):
    H = hidden_features
    keys = jax.random.split(key, 4 + no_layers_encoder)
    params = {
        'lin_input': linear_init(keys[0], H - 1, input_features),
        'lin_boost': linear_init(keys[1], H - 1, 4),
        'output_proj': linear_init(keys[2], out_features - 2, H),
        'layers': [],
    }
    for i in range(no_layers_encoder):
        lk = jax.random.split(keys[4 + i - 1], 4)
        Wqkv, bqkv = linear_init(lk[0], 3 * H, H)   # self_attn.in_proj
        Wo, bo = linear_init(lk[1], H, H)           # self_attn.out_proj
        W1, b1 = linear_init(lk[2], dim_feedforward, H)
        W2, b2 = linear_init(lk[3], H, dim_feedforward)
        params['layers'].append({
            'Wq': Wqkv[:H], 'bq': bqkv[:H],
            'Wk': Wqkv[H:2 * H], 'bk': bqkv[H:2 * H],
            'Wv': Wqkv[2 * H:], 'bv': bqkv[2 * H:],
            'Wo': Wo, 'bo': bo,
            'W1': W1, 'b1': b1, 'W2': W2, 'b2': b2,
            'g1': jnp.ones((H,), jnp.float32), 'be1': jnp.zeros((H,), jnp.float32),
            'g2': jnp.ones((H,), jnp.float32), 'be2': jnp.zeros((H,), jnp.float32),
        })
    return params


if __name__ == "__main__":
    # small, module-consistent config
    no_jets, no_lept = 6, 2
    input_features = 5
    hidden_features = 32
    out_features = 10
    nhead_encoder = 4
    no_layers_encoder = 2
    dim_feedforward = 64

    S_reco = no_jets + no_lept + 1     # labels = [1]*no_jets + [2]*no_lept + [3]
    B = 16                             # with block_b=8 -> 2 batch blocks on the grid

    key = jax.random.PRNGKey(0)
    kp, k1, k2, k3 = jax.random.split(key, 4)
    params = init_params(kp, input_features=input_features,
                         hidden_features=hidden_features,
                         out_features=out_features,
                         dim_feedforward=dim_feedforward,
                         no_layers_encoder=no_layers_encoder)

    batch_recoParticles = jax.random.normal(k1, (B, S_reco, input_features), jnp.float32)
    batch_boost = jax.random.normal(k2, (B, 1, 4), jnp.float32) * 100.0
    mask_recoParticles = (jax.random.uniform(k3, (B, S_reco)) > 0.3).astype(jnp.float32)
    mask_boost = jnp.ones((B, 1), jnp.float32)

    out = conditioning_transformer_forward(
        params, batch_recoParticles, batch_boost, mask_recoParticles, mask_boost,
        no_jets=no_jets, no_lept=no_lept, nhead=nhead_encoder,
        out_features=out_features, block_b=8)
    out = jax.block_until_ready(out)

    ref = reference_forward(params, batch_recoParticles, batch_boost,
                            mask_recoParticles, mask_boost,
                            no_jets=no_jets, no_lept=no_lept, nhead=nhead_encoder)
    ref = jax.block_until_ready(ref)

    assert out.shape == (B, out_features)
    np.testing.assert_allclose(np.asarray(out), np.asarray(ref), rtol=1e-2, atol=1e-2)
    print("KERNEL_OK")
</pallas_src>

<mosaic_0001>
module attributes {stable_mosaic.version = 11 : i64} {
  func.func @fused_kernel(%arg0: i32, %arg1: memref<72x5xf32, #tpu.memory_space<vmem>>, %arg2: memref<8x4xf32, #tpu.memory_space<vmem>>, %arg3: memref<72x1xf32, #tpu.memory_space<vmem>>, %arg4: memref<1x1x80xf32, #tpu.memory_space<vmem>>, %arg5: memref<32x5xf32, #tpu.memory_space<vmem>>, %arg6: memref<32x4xf32, #tpu.memory_space<vmem>>, %arg7: memref<3x32xf32, #tpu.memory_space<vmem>>, %arg8: memref<72x32xf32, #tpu.memory_space<vmem>>, %arg9: memref<8x80xf32, #tpu.memory_space<vmem>>, %arg10: memref<80x80xf32, #tpu.memory_space<vmem>>, %arg11: memref<2x32x32xf32, #tpu.memory_space<vmem>>, %arg12: memref<2x32x32xf32, #tpu.memory_space<vmem>>, %arg13: memref<2x32x32xf32, #tpu.memory_space<vmem>>, %arg14: memref<2x32x32xf32, #tpu.memory_space<vmem>>, %arg15: memref<2x64x32xf32, #tpu.memory_space<vmem>>, %arg16: memref<2x32x64xf32, #tpu.memory_space<vmem>>, %arg17: memref<2x9x32xf32, #tpu.memory_space<vmem>>, %arg18: memref<2x1x64xf32, #tpu.memory_space<vmem>>, %arg19: memref<8x32xf32, #tpu.memory_space<vmem>>, %arg20: memref<1x8xf32, #tpu.memory_space<vmem>>, %arg21: memref<8x8xf32, #tpu.memory_space<vmem>>) attributes {dimension_semantics = [#tpu.dimension_semantics<parallel>], iteration_bounds = array<i64: 2>, scalar_prefetch = 0 : i64, scratch_operands = 0 : i64, tpu.core_type = #tpu.core_type<tc>, window_params = [{transform_indices = @transform_0, window_bounds = array<i64: 72, 5>}, {transform_indices = @transform_1, window_bounds = array<i64: 8, 4>}, {transform_indices = @transform_2, window_bounds = array<i64: 72, 1>}, {transform_indices = @transform_3, window_bounds = array<i64: 1, 1, 80>}, {pipeline_mode = #tpu.pipeline_mode<synchronous>, transform_indices = @transform_4, window_bounds = array<i64: 32, 5>}, {pipeline_mode = #tpu.pipeline_mode<synchronous>, transform_indices = @transform_5, window_bounds = array<i64: 32, 4>}, {pipeline_mode = #tpu.pipeline_mode<synchronous>, transform_indices = @transform_6, window_bounds = array<i64: 3, 32>}, {pipeline_mode = #tpu.pipeline_mode<synchronous>, transform_indices = @transform_7, window_bounds = array<i64: 72, 32>}, {pipeline_mode = #tpu.pipeline_mode<synchronous>, transform_indices = @transform_8, window_bounds = array<i64: 8, 80>}, {pipeline_mode = #tpu.pipeline_mode<synchronous>, transform_indices = @transform_9, window_bounds = array<i64: 80, 80>}, {pipeline_mode = #tpu.pipeline_mode<synchronous>, transform_indices = @transform_10, window_bounds = array<i64: 2, 32, 32>}, {pipeline_mode = #tpu.pipeline_mode<synchronous>, transform_indices = @transform_11, window_bounds = array<i64: 2, 32, 32>}, {pipeline_mode = #tpu.pipeline_mode<synchronous>, transform_indices = @transform_12, window_bounds = array<i64: 2, 32, 32>}, {pipeline_mode = #tpu.pipeline_mode<synchronous>, transform_indices = @transform_13, window_bounds = array<i64: 2, 32, 32>}, {pipeline_mode = #tpu.pipeline_mode<synchronous>, transform_indices = @transform_14, window_bounds = array<i64: 2, 64, 32>}, {pipeline_mode = #tpu.pipeline_mode<synchronous>, transform_indices = @transform_15, window_bounds = array<i64: 2, 32, 64>}, {pipeline_mode = #tpu.pipeline_mode<synchronous>, transform_indices = @transform_16, window_bounds = array<i64: 2, 9, 32>}, {pipeline_mode = #tpu.pipeline_mode<synchronous>, transform_indices = @transform_17, window_bounds = array<i64: 2, 1, 64>}, {pipeline_mode = #tpu.pipeline_mode<synchronous>, transform_indices = @transform_18, window_bounds = array<i64: 8, 32>}, {pipeline_mode = #tpu.pipeline_mode<synchronous>, transform_indices = @transform_19, window_bounds = array<i64: 1, 8>}, {transform_indices = @transform_20, window_bounds = array<i64: 8, 8>}]} {
    %c0 = arith.constant 0 : index
    %c0_0 = arith.constant 0 : index
    %0 = vector.load %arg7[%c0, %c0_0] : memref<3x32xf32, #tpu.memory_space<vmem>>, vector<1x32xf32>
    %c1 = arith.constant 1 : index
    %c0_1 = arith.constant 0 : index
    %1 = vector.load %arg7[%c1, %c0_1] : memref<3x32xf32, #tpu.memory_space<vmem>>, vector<1x32xf32>
    %c2 = arith.constant 2 : index
    %c0_2 = arith.constant 0 : index
    %2 = vector.load %arg7[%c2, %c0_2] : memref<3x32xf32, #tpu.memory_space<vmem>>, vector<1x32xf32>
    %c0_3 = arith.constant 0 : index
    %c0_4 = arith.constant 0 : index
    %3 = vector.load %arg1[%c0_3, %c0_4] : memref<72x5xf32, #tpu.memory_space<vmem>>, vector<72x5xf32>
    %c0_5 = arith.constant 0 : index
    %c0_6 = arith.constant 0 : index
    %4 = vector.load %arg5[%c0_5, %c0_6] : memref<32x5xf32, #tpu.memory_space<vmem>>, vector<32x5xf32>
    %cst = arith.constant dense<0.000000e+00> : vector<72x32xf32>
    %5 = tpu.matmul %3, %4, %cst {dimension_numbers = #tpu.dot_dimension_numbers<[1], [1], [0], [0], [0, 0, 1, 0], [], []>} : vector<72x5xf32>, vector<32x5xf32>, vector<72x32xf32> -> vector<72x32xf32>
    %6 = vector.broadcast %0 : vector<1x32xf32> to vector<72x32xf32>
    %7 = arith.addf %5, %6 : vector<72x32xf32>
    %c0_7 = arith.constant 0 : index
    %c0_8 = arith.constant 0 : index
    %8 = vector.load %arg3[%c0_7, %c0_8] : memref<72x1xf32, #tpu.memory_space<vmem>>, vector<72x1xf32>
    %9 = vector.broadcast %8 : vector<72x1xf32> to vector<72x32xf32>
    %10 = arith.mulf %7, %9 : vector<72x32xf32>
    %cst_9 = arith.constant 5.000000e-01 : f32
    %11 = vector.broadcast %cst_9 : f32 to vector<72x32xf32>
    %12 = arith.mulf %11, %10 : vector<72x32xf32>
    %cst_10 = arith.constant 1.41421354 : f32
    %13 = vector.broadcast %cst_10 : f32 to vector<72x32xf32>
    %14 = arith.divf %10, %13 : vector<72x32xf32>
    %15 = math.erf %14 : vector<72x32xf32>
    %cst_11 = arith.constant 1.000000e+00 : f32
    %16 = vector.broadcast %cst_11 : f32 to vector<72x32xf32>
    %17 = arith.addf %16, %15 : vector<72x32xf32>
    %18 = arith.mulf %12, %17 : vector<72x32xf32>
    %c0_12 = arith.constant 0 : index
    %c0_13 = arith.constant 0 : index
    %19 = vector.load %arg8[%c0_12, %c0_13] : memref<72x32xf32, #tpu.memory_space<vmem>>, vector<72x32xf32>
    %20 = arith.addf %18, %19 : vector<72x32xf32>
    %c0_14 = arith.constant 0 : index
    %c0_15 = arith.constant 0 : index
    %21 = vector.load %arg2[%c0_14, %c0_15] : memref<8x4xf32, #tpu.memory_space<vmem>>, vector<8x4xf32>
    %c0_16 = arith.constant 0 : index
    %c0_17 = arith.constant 0 : index
    %22 = vector.load %arg6[%c0_16, %c0_17] : memref<32x4xf32, #tpu.memory_space<vmem>>, vector<32x4xf32>
    %cst_18 = arith.constant dense<0.000000e+00> : vector<8x32xf32>
    %23 = tpu.matmul %21, %22, %cst_18 {dimension_numbers = #tpu.dot_dimension_numbers<[1], [1], [0], [0], [0, 0, 1, 0], [], []>} : vector<8x4xf32>, vector<32x4xf32>, vector<8x32xf32> -> vector<8x32xf32>
    %24 = vector.broadcast %1 : vector<1x32xf32> to vector<8x32xf32>
    %25 = arith.addf %23, %24 : vector<8x32xf32>
    %cst_19 = arith.constant 5.000000e-01 : f32
    %26 = vector.broadcast %cst_19 : f32 to vector<8x32xf32>
    %27 = arith.mulf %26, %25 : vector<8x32xf32>
    %cst_20 = arith.constant 1.41421354 : f32
    %28 = vector.broadcast %cst_20 : f32 to vector<8x32xf32>
    %29 = arith.divf %25, %28 : vector<8x32xf32>
    %30 = math.erf %29 : vector<8x32xf32>
    %cst_21 = arith.constant 1.000000e+00 : f32
    %31 = vector.broadcast %cst_21 : f32 to vector<8x32xf32>
    %32 = arith.addf %31, %30 : vector<8x32xf32>
    %33 = arith.mulf %27, %32 : vector<8x32xf32>
    %34 = vector.broadcast %2 : vector<1x32xf32> to vector<8x32xf32>
    %35 = arith.addf %33, %34 : vector<8x32xf32>
    %36 = tpu.concatenate %35, %20 in 0 : vector<8x32xf32>, vector<72x32xf32> -> vector<80x32xf32>
    %c0_22 = arith.constant 0 : index
    %c0_23 = arith.constant 0 : index
    %c0_24 = arith.constant 0 : index
    %37 = vector.load %arg4[%c0_22, %c0_23, %c0_24] : memref<1x1x80xf32, #tpu.memory_space<vmem>>, vector<1x1x80xf32>
    %38 = vector.shape_cast %37 : vector<1x1x80xf32> to vector<1x80xf32>
    %c0_25 = arith.constant 0 : index
    %c0_26 = arith.constant 0 : index
    %39 = vector.load %arg10[%c0_25, %c0_26] : memref<80x80xf32, #tpu.memory_space<vmem>>, vector<80x80xf32>
    %40 = vector.broadcast %38 : vector<1x80xf32> to vector<80x80xf32>
    %41 = arith.mulf %39, %40 : vector<80x80xf32>
    %cst_27 = arith.constant 1.000000e+00 : f32
    %42 = vector.broadcast %cst_27 : f32 to vector<80x80xf32>
    %43 = arith.subf %41, %42 : vector<80x80xf32>
    %cst_28 = arith.constant 1.000000e+30 : f32
    %44 = vector.broadcast %cst_28 : f32 to vector<80x80xf32>
    %45 = arith.mulf %43, %44 : vector<80x80xf32>
    %46 = tpu.iota {dimensions = array<i32: 1>} : vector<1x32xi32>
    %c0_i32 = arith.constant 0 : i32
    %47 = vector.broadcast %c0_i32 : i32 to vector<1x32xi32>
    %48 = arith.cmpi sge, %46, %47 : vector<1x32xi32>
    %c8_i32 = arith.constant 8 : i32
    %49 = vector.broadcast %c8_i32 : i32 to vector<1x32xi32>
    %50 = arith.cmpi slt, %46, %49 : vector<1x32xi32>
    %51 = arith.andi %48, %50 : vector<1x32xi1>
    %52 = arith.extui %51 : vector<1x32xi1> to vector<1x32xi32>
    %53 = arith.sitofp %52 : vector<1x32xi32> to vector<1x32xf32>
    %c8_i32_29 = arith.constant 8 : i32
    %54 = vector.broadcast %c8_i32_29 : i32 to vector<1x32xi32>
    %55 = arith.cmpi sge, %46, %54 : vector<1x32xi32>
    %c16_i32 = arith.constant 16 : i32
    %56 = vector.broadcast %c16_i32 : i32 to vector<1x32xi32>
    %57 = arith.cmpi slt, %46, %56 : vector<1x32xi32>
    %58 = arith.andi %55, %57 : vector<1x32xi1>
    %59 = arith.extui %58 : vector<1x32xi1> to vector<1x32xi32>
    %60 = arith.sitofp %59 : vector<1x32xi32> to vector<1x32xf32>
    %c16_i32_30 = arith.constant 16 : i32
    %61 = vector.broadcast %c16_i32_30 : i32 to vector<1x32xi32>
    %62 = arith.cmpi sge, %46, %61 : vector<1x32xi32>
    %c24_i32 = arith.constant 24 : i32
    %63 = vector.broadcast %c24_i32 : i32 to vector<1x32xi32>
    %64 = arith.cmpi slt, %46, %63 : vector<1x32xi32>
    %65 = arith.andi %62, %64 : vector<1x32xi1>
    %66 = arith.extui %65 : vector<1x32xi1> to vector<1x32xi32>
    %67 = arith.sitofp %66 : vector<1x32xi32> to vector<1x32xf32>
    %c24_i32_31 = arith.constant 24 : i32
    %68 = vector.broadcast %c24_i32_31 : i32 to vector<1x32xi32>
    %69 = arith.cmpi sge, %46, %68 : vector<1x32xi32>
    %c32_i32 = arith.constant 32 : i32
    %70 = vector.broadcast %c32_i32 : i32 to vector<1x32xi32>
    %71 = arith.cmpi slt, %46, %70 : vector<1x32xi32>
    %72 = arith.andi %69, %71 : vector<1x32xi1>
    %73 = arith.extui %72 : vector<1x32xi1> to vector<1x32xi32>
    %74 = arith.sitofp %73 : vector<1x32xi32> to vector<1x32xf32>
    %c0_32 = arith.constant 0 : index
    %c0_33 = arith.constant 0 : index
    %c0_34 = arith.constant 0 : index
    %75 = vector.load %arg11[%c0_32, %c0_33, %c0_34] : memref<2x32x32xf32, #tpu.memory_space<vmem>>, vector<1x32x32xf32>
    %76 = vector.shape_cast %75 : vector<1x32x32xf32> to vector<32x32xf32>
    %c0_35 = arith.constant 0 : index
    %c0_36 = arith.constant 0 : index
    %c0_37 = arith.constant 0 : index
    %77 = vector.load %arg12[%c0_35, %c0_36, %c0_37] : memref<2x32x32xf32, #tpu.memory_space<vmem>>, vector<1x32x32xf32>
    %78 = vector.shape_cast %77 : vector<1x32x32xf32> to vector<32x32xf32>
    %c0_38 = arith.constant 0 : index
    %c0_39 = arith.constant 0 : index
    %c0_40 = arith.constant 0 : index
    %79 = vector.load %arg13[%c0_38, %c0_39, %c0_40] : memref<2x32x32xf32, #tpu.memory_space<vmem>>, vector<1x32x32xf32>
    %80 = vector.shape_cast %79 : vector<1x32x32xf32> to vector<32x32xf32>
    %c0_41 = arith.constant 0 : index
    %c0_42 = arith.constant 0 : index
    %c0_43 = arith.constant 0 : index
    %81 = vector.load %arg14[%c0_41, %c0_42, %c0_43] : memref<2x32x32xf32, #tpu.memory_space<vmem>>, vector<1x32x32xf32>
    %82 = vector.shape_cast %81 : vector<1x32x32xf32> to vector<32x32xf32>
    %c0_44 = arith.constant 0 : index
    %c0_45 = arith.constant 0 : index
    %c0_46 = arith.constant 0 : index
    %83 = vector.load %arg15[%c0_44, %c0_45, %c0_46] : memref<2x64x32xf32, #tpu.memory_space<vmem>>, vector<1x64x32xf32>
    %84 = vector.shape_cast %83 : vector<1x64x32xf32> to vector<64x32xf32>
    %c0_47 = arith.constant 0 : index
    %c0_48 = arith.constant 0 : index
    %c0_49 = arith.constant 0 : index
    %85 = vector.load %arg16[%c0_47, %c0_48, %c0_49] : memref<2x32x64xf32, #tpu.memory_space<vmem>>, vector<1x32x64xf32>
    %86 = vector.shape_cast %85 : vector<1x32x64xf32> to vector<32x64xf32>
    %c0_50 = arith.constant 0 : index
    %c0_51 = arith.constant 0 : index
    %c0_52 = arith.constant 0 : index
    %87 = vector.load %arg17[%c0_50, %c0_51, %c0_52] : memref<2x9x32xf32, #tpu.memory_space<vmem>>, vector<1x1x32xf32>
    %88 = vector.shape_cast %87 : vector<1x1x32xf32> to vector<1x32xf32>
    %c0_53 = arith.constant 0 : index
    %c1_54 = arith.constant 1 : index
    %c0_55 = arith.constant 0 : index
    %89 = vector.load %arg17[%c0_53, %c1_54, %c0_55] : memref<2x9x32xf32, #tpu.memory_space<vmem>>, vector<1x1x32xf32>
    %90 = vector.shape_cast %89 : vector<1x1x32xf32> to vector<1x32xf32>
    %c0_56 = arith.constant 0 : index
    %c2_57 = arith.constant 2 : index
    %c0_58 = arith.constant 0 : index
    %91 = vector.load %arg17[%c0_56, %c2_57, %c0_58] : memref<2x9x32xf32, #tpu.memory_space<vmem>>, vector<1x1x32xf32>
    %92 = vector.shape_cast %91 : vector<1x1x32xf32> to vector<1x32xf32>
    %c0_59 = arith.constant 0 : index
    %c3 = arith.constant 3 : index
    %c0_60 = arith.constant 0 : index
    %93 = vector.load %arg17[%c0_59, %c3, %c0_60] : memref<2x9x32xf32, #tpu.memory_space<vmem>>, vector<1x1x32xf32>
    %94 = vector.shape_cast %93 : vector<1x1x32xf32> to vector<1x32xf32>
    %c0_61 = arith.constant 0 : index
    %c4 = arith.constant 4 : index
    %c0_62 = arith.constant 0 : index
    %95 = vector.load %arg17[%c0_61, %c4, %c0_62] : memref<2x9x32xf32, #tpu.memory_space<vmem>>, vector<1x1x32xf32>
    %96 = vector.shape_cast %95 : vector<1x1x32xf32> to vector<1x32xf32>
    %c0_63 = arith.constant 0 : index
    %c5 = arith.constant 5 : index
    %c0_64 = arith.constant 0 : index
    %97 = vector.load %arg17[%c0_63, %c5, %c0_64] : memref<2x9x32xf32, #tpu.memory_space<vmem>>, vector<1x1x32xf32>
    %98 = vector.shape_cast %97 : vector<1x1x32xf32> to vector<1x32xf32>
    %c0_65 = arith.constant 0 : index
    %c6 = arith.constant 6 : index
    %c0_66 = arith.constant 0 : index
    %99 = vector.load %arg17[%c0_65, %c6, %c0_66] : memref<2x9x32xf32, #tpu.memory_space<vmem>>, vector<1x1x32xf32>
    %100 = vector.shape_cast %99 : vector<1x1x32xf32> to vector<1x32xf32>
    %c0_67 = arith.constant 0 : index
    %c7 = arith.constant 7 : index
    %c0_68 = arith.constant 0 : index
    %101 = vector.load %arg17[%c0_67, %c7, %c0_68] : memref<2x9x32xf32, #tpu.memory_space<vmem>>, vector<1x1x32xf32>
    %102 = vector.shape_cast %101 : vector<1x1x32xf32> to vector<1x32xf32>
    %c0_69 = arith.constant 0 : index
    %c8 = arith.constant 8 : index
    %c0_70 = arith.constant 0 : index
    %103 = vector.load %arg17[%c0_69, %c8, %c0_70] : memref<2x9x32xf32, #tpu.memory_space<vmem>>, vector<1x1x32xf32>
    %104 = vector.shape_cast %103 : vector<1x1x32xf32> to vector<1x32xf32>
    %c0_71 = arith.constant 0 : index
    %c0_72 = arith.constant 0 : index
    %c0_73 = arith.constant 0 : index
    %105 = vector.load %arg18[%c0_71, %c0_72, %c0_73] : memref<2x1x64xf32, #tpu.memory_space<vmem>>, vector<1x1x64xf32>
    %106 = vector.shape_cast %105 : vector<1x1x64xf32> to vector<1x64xf32>
    %cst_74 = arith.constant dense<0.000000e+00> : vector<80x32xf32>
    %107 = tpu.matmul %36, %76, %cst_74 {dimension_numbers = #tpu.dot_dimension_numbers<[1], [1], [0], [0], [0, 0, 1, 0], [], []>} : vector<80x32xf32>, vector<32x32xf32>, vector<80x32xf32> -> vector<80x32xf32>
    %108 = vector.broadcast %88 : vector<1x32xf32> to vector<80x32xf32>
    %109 = arith.addf %107, %108 : vector<80x32xf32>
    %cst_75 = arith.constant dense<0.000000e+00> : vector<80x32xf32>
    %110 = tpu.matmul %36, %78, %cst_75 {dimension_numbers = #tpu.dot_dimension_numbers<[1], [1], [0], [0], [0, 0, 1, 0], [], []>} : vector<80x32xf32>, vector<32x32xf32>, vector<80x32xf32> -> vector<80x32xf32>
    %111 = vector.broadcast %90 : vector<1x32xf32> to vector<80x32xf32>
    %112 = arith.addf %110, %111 : vector<80x32xf32>
    %cst_76 = arith.constant dense<0.000000e+00> : vector<80x32xf32>
    %113 = tpu.matmul %36, %80, %cst_76 {dimension_numbers = #tpu.dot_dimension_numbers<[1], [1], [0], [0], [0, 0, 1, 0], [], []>} : vector<80x32xf32>, vector<32x32xf32>, vector<80x32xf32> -> vector<80x32xf32>
    %114 = vector.broadcast %92 : vector<1x32xf32> to vector<80x32xf32>
    %115 = arith.addf %113, %114 : vector<80x32xf32>
    %cst_77 = arith.constant 0.000000e+00 : f32
    %116 = vector.broadcast %cst_77 : f32 to vector<80x32xf32>
    %117 = vector.broadcast %53 : vector<1x32xf32> to vector<80x32xf32>
    %118 = arith.mulf %109, %117 : vector<80x32xf32>
    %cst_78 = arith.constant dense<0.000000e+00> : vector<80x80xf32>
    %119 = tpu.matmul %118, %112, %cst_78 {dimension_numbers = #tpu.dot_dimension_numbers<[1], [1], [0], [0], [0, 0, 1, 0], [], []>} : vector<80x32xf32>, vector<80x32xf32>, vector<80x80xf32> -> vector<80x80xf32>
    %cst_79 = arith.constant 0.353553385 : f32
    %120 = vector.broadcast %cst_79 : f32 to vector<80x80xf32>
    %121 = arith.mulf %119, %120 : vector<80x80xf32>
    %122 = arith.addf %121, %45 : vector<80x80xf32>
    %cst_80 = arith.constant dense<0xFF800000> : vector<80xf32>
    %123 = vector.multi_reduction <maximumf>, %122, %cst_80 [1] : vector<80x80xf32> to vector<80xf32>
    %124 = vector.shape_cast %123 : vector<80xf32> to vector<80x1xf32>
    %125 = vector.broadcast %124 : vector<80x1xf32> to vector<80x80xf32>
    %126 = arith.subf %122, %125 : vector<80x80xf32>
    %127 = math.exp %126 : vector<80x80xf32>
    %cst_81 = arith.constant dense<0.000000e+00> : vector<80xf32>
    %128 = vector.multi_reduction <add>, %127, %cst_81 [1] : vector<80x80xf32> to vector<80xf32>
    %129 = vector.shape_cast %128 : vector<80xf32> to vector<80x1xf32>
    %130 = vector.broadcast %129 : vector<80x1xf32> to vector<80x80xf32>
    %131 = arith.divf %127, %130 : vector<80x80xf32>
    %132 = vector.broadcast %53 : vector<1x32xf32> to vector<80x32xf32>
    %133 = arith.mulf %115, %132 : vector<80x32xf32>
    %cst_82 = arith.constant dense<0.000000e+00> : vector<80x32xf32>
    %134 = tpu.matmul %131, %133, %cst_82 {dimension_numbers = #tpu.dot_dimension_numbers<[1], [0], [0], [1], [0, 0, 1, 1], [], []>} : vector<80x80xf32>, vector<80x32xf32>, vector<80x32xf32> -> vector<80x32xf32>
    %135 = arith.addf %116, %134 : vector<80x32xf32>
    %136 = vector.broadcast %60 : vector<1x32xf32> to vector<80x32xf32>
    %137 = arith.mulf %109, %136 : vector<80x32xf32>
    %cst_83 = arith.constant dense<0.000000e+00> : vector<80x80xf32>
    %138 = tpu.matmul %137, %112, %cst_83 {dimension_numbers = #tpu.dot_dimension_numbers<[1], [1], [0], [0], [0, 0, 1, 0], [], []>} : vector<80x32xf32>, vector<80x32xf32>, vector<80x80xf32> -> vector<80x80xf32>
    %cst_84 = arith.constant 0.353553385 : f32
    %139 = vector.broadcast %cst_84 : f32 to vector<80x80xf32>
    %140 = arith.mulf %138, %139 : vector<80x80xf32>
    %141 = arith.addf %140, %45 : vector<80x80xf32>
    %cst_85 = arith.constant dense<0xFF800000> : vector<80xf32>
    %142 = vector.multi_reduction <maximumf>, %141, %cst_85 [1] : vector<80x80xf32> to vector<80xf32>
    %143 = vector.shape_cast %142 : vector<80xf32> to vector<80x1xf32>
    %144 = vector.broadcast %143 : vector<80x1xf32> to vector<80x80xf32>
    %145 = arith.subf %141, %144 : vector<80x80xf32>
    %146 = math.exp %145 : vector<80x80xf32>
    %cst_86 = arith.constant dense<0.000000e+00> : vector<80xf32>
    %147 = vector.multi_reduction <add>, %146, %cst_86 [1] : vector<80x80xf32> to vector<80xf32>
    %148 = vector.shape_cast %147 : vector<80xf32> to vector<80x1xf32>
    %149 = vector.broadcast %148 : vector<80x1xf32> to vector<80x80xf32>
    %150 = arith.divf %146, %149 : vector<80x80xf32>
    %151 = vector.broadcast %60 : vector<1x32xf32> to vector<80x32xf32>
    %152 = arith.mulf %115, %151 : vector<80x32xf32>
    %cst_87 = arith.constant dense<0.000000e+00> : vector<80x32xf32>
    %153 = tpu.matmul %150, %152, %cst_87 {dimension_numbers = #tpu.dot_dimension_numbers<[1], [0], [0], [1], [0, 0, 1, 1], [], []>} : vector<80x80xf32>, vector<80x32xf32>, vector<80x32xf32> -> vector<80x32xf32>
    %154 = arith.addf %135, %153 : vector<80x32xf32>
    %155 = vector.broadcast %67 : vector<1x32xf32> to vector<80x32xf32>
    %156 = arith.mulf %109, %155 : vector<80x32xf32>
    %cst_88 = arith.constant dense<0.000000e+00> : vector<80x80xf32>
    %157 = tpu.matmul %156, %112, %cst_88 {dimension_numbers = #tpu.dot_dimension_numbers<[1], [1], [0], [0], [0, 0, 1, 0], [], []>} : vector<80x32xf32>, vector<80x32xf32>, vector<80x80xf32> -> vector<80x80xf32>
    %cst_89 = arith.constant 0.353553385 : f32
    %158 = vector.broadcast %cst_89 : f32 to vector<80x80xf32>
    %159 = arith.mulf %157, %158 : vector<80x80xf32>
    %160 = arith.addf %159, %45 : vector<80x80xf32>
    %cst_90 = arith.constant dense<0xFF800000> : vector<80xf32>
    %161 = vector.multi_reduction <maximumf>, %160, %cst_90 [1] : vector<80x80xf32> to vector<80xf32>
    %162 = vector.shape_cast %161 : vector<80xf32> to vector<80x1xf32>
    %163 = vector.broadcast %162 : vector<80x1xf32> to vector<80x80xf32>
    %164 = arith.subf %160, %163 : vector<80x80xf32>
    %165 = math.exp %164 : vector<80x80xf32>
    %cst_91 = arith.constant dense<0.000000e+00> : vector<80xf32>
    %166 = vector.multi_reduction <add>, %165, %cst_91 [1] : vector<80x80xf32> to vector<80xf32>
    %167 = vector.shape_cast %166 : vector<80xf32> to vector<80x1xf32>
    %168 = vector.broadcast %167 : vector<80x1xf32> to vector<80x80xf32>
    %169 = arith.divf %165, %168 : vector<80x80xf32>
    %170 = vector.broadcast %67 : vector<1x32xf32> to vector<80x32xf32>
    %171 = arith.mulf %115, %170 : vector<80x32xf32>
    %cst_92 = arith.constant dense<0.000000e+00> : vector<80x32xf32>
    %172 = tpu.matmul %169, %171, %cst_92 {dimension_numbers = #tpu.dot_dimension_numbers<[1], [0], [0], [1], [0, 0, 1, 1], [], []>} : vector<80x80xf32>, vector<80x32xf32>, vector<80x32xf32> -> vector<80x32xf32>
    %173 = arith.addf %154, %172 : vector<80x32xf32>
    %174 = vector.broadcast %74 : vector<1x32xf32> to vector<80x32xf32>
    %175 = arith.mulf %109, %174 : vector<80x32xf32>
    %cst_93 = arith.constant dense<0.000000e+00> : vector<80x80xf32>
    %176 = tpu.matmul %175, %112, %cst_93 {dimension_numbers = #tpu.dot_dimension_numbers<[1], [1], [0], [0], [0, 0, 1, 0], [], []>} : vector<80x32xf32>, vector<80x32xf32>, vector<80x80xf32> -> vector<80x80xf32>
    %cst_94 = arith.constant 0.353553385 : f32
    %177 = vector.broadcast %cst_94 : f32 to vector<80x80xf32>
    %178 = arith.mulf %176, %177 : vector<80x80xf32>
    %179 = arith.addf %178, %45 : vector<80x80xf32>
    %cst_95 = arith.constant dense<0xFF800000> : vector<80xf32>
    %180 = vector.multi_reduction <maximumf>, %179, %cst_95 [1] : vector<80x80xf32> to vector<80xf32>
    %181 = vector.shape_cast %180 : vector<80xf32> to vector<80x1xf32>
    %182 = vector.broadcast %181 : vector<80x1xf32> to vector<80x80xf32>
    %183 = arith.subf %179, %182 : vector<80x80xf32>
    %184 = math.exp %183 : vector<80x80xf32>
    %cst_96 = arith.constant dense<0.000000e+00> : vector<80xf32>
    %185 = vector.multi_reduction <add>, %184, %cst_96 [1] : vector<80x80xf32> to vector<80xf32>
    %186 = vector.shape_cast %185 : vector<80xf32> to vector<80x1xf32>
    %187 = vector.broadcast %186 : vector<80x1xf32> to vector<80x80xf32>
    %188 = arith.divf %184, %187 : vector<80x80xf32>
    %189 = vector.broadcast %74 : vector<1x32xf32> to vector<80x32xf32>
    %190 = arith.mulf %115, %189 : vector<80x32xf32>
    %cst_97 = arith.constant dense<0.000000e+00> : vector<80x32xf32>
    %191 = tpu.matmul %188, %190, %cst_97 {dimension_numbers = #tpu.dot_dimension_numbers<[1], [0], [0], [1], [0, 0, 1, 1], [], []>} : vector<80x80xf32>, vector<80x32xf32>, vector<80x32xf32> -> vector<80x32xf32>
    %192 = arith.addf %173, %191 : vector<80x32xf32>
    %cst_98 = arith.constant dense<0.000000e+00> : vector<80x32xf32>
    %193 = tpu.matmul %192, %82, %cst_98 {dimension_numbers = #tpu.dot_dimension_numbers<[1], [1], [0], [0], [0, 0, 1, 0], [], []>} : vector<80x32xf32>, vector<32x32xf32>, vector<80x32xf32> -> vector<80x32xf32>
    %194 = vector.broadcast %94 : vector<1x32xf32> to vector<80x32xf32>
    %195 = arith.addf %193, %194 : vector<80x32xf32>
    %196 = arith.addf %36, %195 : vector<80x32xf32>
    %cst_99 = arith.constant dense<0.000000e+00> : vector<80xf32>
    %197 = vector.multi_reduction <add>, %196, %cst_99 [1] : vector<80x32xf32> to vector<80xf32>
    %198 = vector.shape_cast %197 : vector<80xf32> to vector<80x1xf32>
    %cst_100 = arith.constant 3.200000e+01 : f32
    %199 = vector.broadcast %cst_100 : f32 to vector<80x1xf32>
    %200 = arith.divf %198, %199 : vector<80x1xf32>
    %201 = vector.broadcast %200 : vector<80x1xf32> to vector<80x32xf32>
    %202 = arith.subf %196, %201 : vector<80x32xf32>
    %203 = arith.mulf %202, %202 : vector<80x32xf32>
    %cst_101 = arith.constant dense<0.000000e+00> : vector<80xf32>
    %204 = vector.multi_reduction <add>, %203, %cst_101 [1] : vector<80x32xf32> to vector<80xf32>
    %205 = vector.shape_cast %204 : vector<80xf32> to vector<80x1xf32>
    %cst_102 = arith.constant 3.200000e+01 : f32
    %206 = vector.broadcast %cst_102 : f32 to vector<80x1xf32>
    %207 = arith.divf %205, %206 : vector<80x1xf32>
    %208 = vector.broadcast %200 : vector<80x1xf32> to vector<80x32xf32>
    %209 = arith.subf %196, %208 : vector<80x32xf32>
    %cst_103 = arith.constant 9.99999974E-6 : f32
    %210 = vector.broadcast %cst_103 : f32 to vector<80x1xf32>
    %211 = arith.addf %207, %210 : vector<80x1xf32>
    %212 = math.rsqrt %211 : vector<80x1xf32>
    %213 = vector.broadcast %212 : vector<80x1xf32> to vector<80x32xf32>
    %214 = arith.mulf %209, %213 : vector<80x32xf32>
    %215 = vector.broadcast %98 : vector<1x32xf32> to vector<80x32xf32>
    %216 = arith.mulf %214, %215 : vector<80x32xf32>
    %217 = vector.broadcast %100 : vector<1x32xf32> to vector<80x32xf32>
    %218 = arith.addf %216, %217 : vector<80x32xf32>
    %cst_104 = arith.constant dense<0.000000e+00> : vector<80x64xf32>
    %219 = tpu.matmul %218, %84, %cst_104 {dimension_numbers = #tpu.dot_dimension_numbers<[1], [1], [0], [0], [0, 0, 1, 0], [], []>} : vector<80x32xf32>, vector<64x32xf32>, vector<80x64xf32> -> vector<80x64xf32>
    %220 = vector.broadcast %106 : vector<1x64xf32> to vector<80x64xf32>
    %221 = arith.addf %219, %220 : vector<80x64xf32>
    %cst_105 = arith.constant 0.000000e+00 : f32
    %222 = vector.broadcast %cst_105 : f32 to vector<80x64xf32>
    %223 = arith.maximumf %221, %222 : vector<80x64xf32>
    %cst_106 = arith.constant dense<0.000000e+00> : vector<80x32xf32>
    %224 = tpu.matmul %223, %86, %cst_106 {dimension_numbers = #tpu.dot_dimension_numbers<[1], [1], [0], [0], [0, 0, 1, 0], [], []>} : vector<80x64xf32>, vector<32x64xf32>, vector<80x32xf32> -> vector<80x32xf32>
    %225 = vector.broadcast %96 : vector<1x32xf32> to vector<80x32xf32>
    %226 = arith.addf %224, %225 : vector<80x32xf32>
    %227 = arith.addf %218, %226 : vector<80x32xf32>
    %cst_107 = arith.constant dense<0.000000e+00> : vector<80xf32>
    %228 = vector.multi_reduction <add>, %227, %cst_107 [1] : vector<80x32xf32> to vector<80xf32>
    %229 = vector.shape_cast %228 : vector<80xf32> to vector<80x1xf32>
    %cst_108 = arith.constant 3.200000e+01 : f32
    %230 = vector.broadcast %cst_108 : f32 to vector<80x1xf32>
    %231 = arith.divf %229, %230 : vector<80x1xf32>
    %232 = vector.broadcast %231 : vector<80x1xf32> to vector<80x32xf32>
    %233 = arith.subf %227, %232 : vector<80x32xf32>
    %234 = arith.mulf %233, %233 : vector<80x32xf32>
    %cst_109 = arith.constant dense<0.000000e+00> : vector<80xf32>
    %235 = vector.multi_reduction <add>, %234, %cst_109 [1] : vector<80x32xf32> to vector<80xf32>
    %236 = vector.shape_cast %235 : vector<80xf32> to vector<80x1xf32>
    %cst_110 = arith.constant 3.200000e+01 : f32
    %237 = vector.broadcast %cst_110 : f32 to vector<80x1xf32>
    %238 = arith.divf %236, %237 : vector<80x1xf32>
    %239 = vector.broadcast %231 : vector<80x1xf32> to vector<80x32xf32>
    %240 = arith.subf %227, %239 : vector<80x32xf32>
    %cst_111 = arith.constant 9.99999974E-6 : f32
    %241 = vector.broadcast %cst_111 : f32 to vector<80x1xf32>
    %242 = arith.addf %238, %241 : vector<80x1xf32>
    %243 = math.rsqrt %242 : vector<80x1xf32>
    %244 = vector.broadcast %243 : vector<80x1xf32> to vector<80x32xf32>
    %245 = arith.mulf %240, %244 : vector<80x32xf32>
    %246 = vector.broadcast %102 : vector<1x32xf32> to vector<80x32xf32>
    %247 = arith.mulf %245, %246 : vector<80x32xf32>
    %248 = vector.broadcast %104 : vector<1x32xf32> to vector<80x32xf32>
    %249 = arith.addf %247, %248 : vector<80x32xf32>
    %c1_112 = arith.constant 1 : index
    %c0_113 = arith.constant 0 : index
    %c0_114 = arith.constant 0 : index
    %250 = vector.load %arg11[%c1_112, %c0_113, %c0_114] : memref<2x32x32xf32, #tpu.memory_space<vmem>>, vector<1x32x32xf32>
    %251 = vector.shape_cast %250 : vector<1x32x32xf32> to vector<32x32xf32>
    %c1_115 = arith.constant 1 : index
    %c0_116 = arith.constant 0 : index
    %c0_117 = arith.constant 0 : index
    %252 = vector.load %arg12[%c1_115, %c0_116, %c0_117] : memref<2x32x32xf32, #tpu.memory_space<vmem>>, vector<1x32x32xf32>
    %253 = vector.shape_cast %252 : vector<1x32x32xf32> to vector<32x32xf32>
    %c1_118 = arith.constant 1 : index
    %c0_119 = arith.constant 0 : index
    %c0_120 = arith.constant 0 : index
    %254 = vector.load %arg13[%c1_118, %c0_119, %c0_120] : memref<2x32x32xf32, #tpu.memory_space<vmem>>, vector<1x32x32xf32>
    %255 = vector.shape_cast %254 : vector<1x32x32xf32> to vector<32x32xf32>
    %c1_121 = arith.constant 1 : index
    %c0_122 = arith.constant 0 : index
    %c0_123 = arith.constant 0 : index
    %256 = vector.load %arg14[%c1_121, %c0_122, %c0_123] : memref<2x32x32xf32, #tpu.memory_space<vmem>>, vector<1x32x32xf32>
    %257 = vector.shape_cast %256 : vector<1x32x32xf32> to vector<32x32xf32>
    %c1_124 = arith.constant 1 : index
    %c0_125 = arith.constant 0 : index
    %c0_126 = arith.constant 0 : index
    %258 = vector.load %arg15[%c1_124, %c0_125, %c0_126] : memref<2x64x32xf32, #tpu.memory_space<vmem>>, vector<1x64x32xf32>
    %259 = vector.shape_cast %258 : vector<1x64x32xf32> to vector<64x32xf32>
    %c1_127 = arith.constant 1 : index
    %c0_128 = arith.constant 0 : index
    %c0_129 = arith.constant 0 : index
    %260 = vector.load %arg16[%c1_127, %c0_128, %c0_129] : memref<2x32x64xf32, #tpu.memory_space<vmem>>, vector<1x32x64xf32>
    %261 = vector.shape_cast %260 : vector<1x32x64xf32> to vector<32x64xf32>
    %c1_130 = arith.constant 1 : index
    %c0_131 = arith.constant 0 : index
    %c0_132 = arith.constant 0 : index
    %262 = vector.load %arg17[%c1_130, %c0_131, %c0_132] : memref<2x9x32xf32, #tpu.memory_space<vmem>>, vector<1x1x32xf32>
    %263 = vector.shape_cast %262 : vector<1x1x32xf32> to vector<1x32xf32>
    %c1_133 = arith.constant 1 : index
    %c1_134 = arith.constant 1 : index
    %c0_135 = arith.constant 0 : index
    %264 = vector.load %arg17[%c1_133, %c1_134, %c0_135] : memref<2x9x32xf32, #tpu.memory_space<vmem>>, vector<1x1x32xf32>
    %265 = vector.shape_cast %264 : vector<1x1x32xf32> to vector<1x32xf32>
    %c1_136 = arith.constant 1 : index
    %c2_137 = arith.constant 2 : index
    %c0_138 = arith.constant 0 : index
    %266 = vector.load %arg17[%c1_136, %c2_137, %c0_138] : memref<2x9x32xf32, #tpu.memory_space<vmem>>, vector<1x1x32xf32>
    %267 = vector.shape_cast %266 : vector<1x1x32xf32> to vector<1x32xf32>
    %c1_139 = arith.constant 1 : index
    %c3_140 = arith.constant 3 : index
    %c0_141 = arith.constant 0 : index
    %268 = vector.load %arg17[%c1_139, %c3_140, %c0_141] : memref<2x9x32xf32, #tpu.memory_space<vmem>>, vector<1x1x32xf32>
    %269 = vector.shape_cast %268 : vector<1x1x32xf32> to vector<1x32xf32>
    %c1_142 = arith.constant 1 : index
    %c4_143 = arith.constant 4 : index
    %c0_144 = arith.constant 0 : index
    %270 = vector.load %arg17[%c1_142, %c4_143, %c0_144] : memref<2x9x32xf32, #tpu.memory_space<vmem>>, vector<1x1x32xf32>
    %271 = vector.shape_cast %270 : vector<1x1x32xf32> to vector<1x32xf32>
    %c1_145 = arith.constant 1 : index
    %c5_146 = arith.constant 5 : index
    %c0_147 = arith.constant 0 : index
    %272 = vector.load %arg17[%c1_145, %c5_146, %c0_147] : memref<2x9x32xf32, #tpu.memory_space<vmem>>, vector<1x1x32xf32>
    %273 = vector.shape_cast %272 : vector<1x1x32xf32> to vector<1x32xf32>
    %c1_148 = arith.constant 1 : index
    %c6_149 = arith.constant 6 : index
    %c0_150 = arith.constant 0 : index
    %274 = vector.load %arg17[%c1_148, %c6_149, %c0_150] : memref<2x9x32xf32, #tpu.memory_space<vmem>>, vector<1x1x32xf32>
    %275 = vector.shape_cast %274 : vector<1x1x32xf32> to vector<1x32xf32>
    %c1_151 = arith.constant 1 : index
    %c7_152 = arith.constant 7 : index
    %c0_153 = arith.constant 0 : index
    %276 = vector.load %arg17[%c1_151, %c7_152, %c0_153] : memref<2x9x32xf32, #tpu.memory_space<vmem>>, vector<1x1x32xf32>
    %277 = vector.shape_cast %276 : vector<1x1x32xf32> to vector<1x32xf32>
    %c1_154 = arith.constant 1 : index
    %c8_155 = arith.constant 8 : index
    %c0_156 = arith.constant 0 : index
    %278 = vector.load %arg17[%c1_154, %c8_155, %c0_156] : memref<2x9x32xf32, #tpu.memory_space<vmem>>, vector<1x1x32xf32>
    %279 = vector.shape_cast %278 : vector<1x1x32xf32> to vector<1x32xf32>
    %c1_157 = arith.constant 1 : index
    %c0_158 = arith.constant 0 : index
    %c0_159 = arith.constant 0 : index
    %280 = vector.load %arg18[%c1_157, %c0_158, %c0_159] : memref<2x1x64xf32, #tpu.memory_space<vmem>>, vector<1x1x64xf32>
    %281 = vector.shape_cast %280 : vector<1x1x64xf32> to vector<1x64xf32>
    %cst_160 = arith.constant dense<0.000000e+00> : vector<80x32xf32>
    %282 = tpu.matmul %249, %251, %cst_160 {dimension_numbers = #tpu.dot_dimension_numbers<[1], [1], [0], [0], [0, 0, 1, 0], [], []>} : vector<80x32xf32>, vector<32x32xf32>, vector<80x32xf32> -> vector<80x32xf32>
    %283 = vector.broadcast %263 : vector<1x32xf32> to vector<80x32xf32>
    %284 = arith.addf %282, %283 : vector<80x32xf32>
    %cst_161 = arith.constant dense<0.000000e+00> : vector<80x32xf32>
    %285 = tpu.matmul %249, %253, %cst_161 {dimension_numbers = #tpu.dot_dimension_numbers<[1], [1], [0], [0], [0, 0, 1, 0], [], []>} : vector<80x32xf32>, vector<32x32xf32>, vector<80x32xf32> -> vector<80x32xf32>
    %286 = vector.broadcast %265 : vector<1x32xf32> to vector<80x32xf32>
    %287 = arith.addf %285, %286 : vector<80x32xf32>
    %cst_162 = arith.constant dense<0.000000e+00> : vector<80x32xf32>
    %288 = tpu.matmul %249, %255, %cst_162 {dimension_numbers = #tpu.dot_dimension_numbers<[1], [1], [0], [0], [0, 0, 1, 0], [], []>} : vector<80x32xf32>, vector<32x32xf32>, vector<80x32xf32> -> vector<80x32xf32>
    %289 = vector.broadcast %267 : vector<1x32xf32> to vector<80x32xf32>
    %290 = arith.addf %288, %289 : vector<80x32xf32>
    %cst_163 = arith.constant 0.000000e+00 : f32
    %291 = vector.broadcast %cst_163 : f32 to vector<80x32xf32>
    %292 = vector.broadcast %53 : vector<1x32xf32> to vector<80x32xf32>
    %293 = arith.mulf %284, %292 : vector<80x32xf32>
    %cst_164 = arith.constant dense<0.000000e+00> : vector<80x80xf32>
    %294 = tpu.matmul %293, %287, %cst_164 {dimension_numbers = #tpu.dot_dimension_numbers<[1], [1], [0], [0], [0, 0, 1, 0], [], []>} : vector<80x32xf32>, vector<80x32xf32>, vector<80x80xf32> -> vector<80x80xf32>
    %cst_165 = arith.constant 0.353553385 : f32
    %295 = vector.broadcast %cst_165 : f32 to vector<80x80xf32>
    %296 = arith.mulf %294, %295 : vector<80x80xf32>
    %297 = arith.addf %296, %45 : vector<80x80xf32>
    %cst_166 = arith.constant dense<0xFF800000> : vector<80xf32>
    %298 = vector.multi_reduction <maximumf>, %297, %cst_166 [1] : vector<80x80xf32> to vector<80xf32>
    %299 = vector.shape_cast %298 : vector<80xf32> to vector<80x1xf32>
    %300 = vector.broadcast %299 : vector<80x1xf32> to vector<80x80xf32>
    %301 = arith.subf %297, %300 : vector<80x80xf32>
    %302 = math.exp %301 : vector<80x80xf32>
    %cst_167 = arith.constant dense<0.000000e+00> : vector<80xf32>
    %303 = vector.multi_reduction <add>, %302, %cst_167 [1] : vector<80x80xf32> to vector<80xf32>
    %304 = vector.shape_cast %303 : vector<80xf32> to vector<80x1xf32>
    %305 = vector.broadcast %304 : vector<80x1xf32> to vector<80x80xf32>
    %306 = arith.divf %302, %305 : vector<80x80xf32>
    %307 = vector.broadcast %53 : vector<1x32xf32> to vector<80x32xf32>
    %308 = arith.mulf %290, %307 : vector<80x32xf32>
    %cst_168 = arith.constant dense<0.000000e+00> : vector<80x32xf32>
    %309 = tpu.matmul %306, %308, %cst_168 {dimension_numbers = #tpu.dot_dimension_numbers<[1], [0], [0], [1], [0, 0, 1, 1], [], []>} : vector<80x80xf32>, vector<80x32xf32>, vector<80x32xf32> -> vector<80x32xf32>
    %310 = arith.addf %291, %309 : vector<80x32xf32>
    %311 = vector.broadcast %60 : vector<1x32xf32> to vector<80x32xf32>
    %312 = arith.mulf %284, %311 : vector<80x32xf32>
    %cst_169 = arith.constant dense<0.000000e+00> : vector<80x80xf32>
    %313 = tpu.matmul %312, %287, %cst_169 {dimension_numbers = #tpu.dot_dimension_numbers<[1], [1], [0], [0], [0, 0, 1, 0], [], []>} : vector<80x32xf32>, vector<80x32xf32>, vector<80x80xf32> -> vector<80x80xf32>
    %cst_170 = arith.constant 0.353553385 : f32
    %314 = vector.broadcast %cst_170 : f32 to vector<80x80xf32>
    %315 = arith.mulf %313, %314 : vector<80x80xf32>
    %316 = arith.addf %315, %45 : vector<80x80xf32>
    %cst_171 = arith.constant dense<0xFF800000> : vector<80xf32>
    %317 = vector.multi_reduction <maximumf>, %316, %cst_171 [1] : vector<80x80xf32> to vector<80xf32>
    %318 = vector.shape_cast %317 : vector<80xf32> to vector<80x1xf32>
    %319 = vector.broadcast %318 : vector<80x1xf32> to vector<80x80xf32>
    %320 = arith.subf %316, %319 : vector<80x80xf32>
    %321 = math.exp %320 : vector<80x80xf32>
    %cst_172 = arith.constant dense<0.000000e+00> : vector<80xf32>
    %322 = vector.multi_reduction <add>, %321, %cst_172 [1] : vector<80x80xf32> to vector<80xf32>
    %323 = vector.shape_cast %322 : vector<80xf32> to vector<80x1xf32>
    %324 = vector.broadcast %323 : vector<80x1xf32> to vector<80x80xf32>
    %325 = arith.divf %321, %324 : vector<80x80xf32>
    %326 = vector.broadcast %60 : vector<1x32xf32> to vector<80x32xf32>
    %327 = arith.mulf %290, %326 : vector<80x32xf32>
    %cst_173 = arith.constant dense<0.000000e+00> : vector<80x32xf32>
    %328 = tpu.matmul %325, %327, %cst_173 {dimension_numbers = #tpu.dot_dimension_numbers<[1], [0], [0], [1], [0, 0, 1, 1], [], []>} : vector<80x80xf32>, vector<80x32xf32>, vector<80x32xf32> -> vector<80x32xf32>
    %329 = arith.addf %310, %328 : vector<80x32xf32>
    %330 = vector.broadcast %67 : vector<1x32xf32> to vector<80x32xf32>
    %331 = arith.mulf %284, %330 : vector<80x32xf32>
    %cst_174 = arith.constant dense<0.000000e+00> : vector<80x80xf32>
    %332 = tpu.matmul %331, %287, %cst_174 {dimension_numbers = #tpu.dot_dimension_numbers<[1], [1], [0], [0], [0, 0, 1, 0], [], []>} : vector<80x32xf32>, vector<80x32xf32>, vector<80x80xf32> -> vector<80x80xf32>
    %cst_175 = arith.constant 0.353553385 : f32
    %333 = vector.broadcast %cst_175 : f32 to vector<80x80xf32>
    %334 = arith.mulf %332, %333 : vector<80x80xf32>
    %335 = arith.addf %334, %45 : vector<80x80xf32>
    %cst_176 = arith.constant dense<0xFF800000> : vector<80xf32>
    %336 = vector.multi_reduction <maximumf>, %335, %cst_176 [1] : vector<80x80xf32> to vector<80xf32>
    %337 = vector.shape_cast %336 : vector<80xf32> to vector<80x1xf32>
    %338 = vector.broadcast %337 : vector<80x1xf32> to vector<80x80xf32>
    %339 = arith.subf %335, %338 : vector<80x80xf32>
    %340 = math.exp %339 : vector<80x80xf32>
    %cst_177 = arith.constant dense<0.000000e+00> : vector<80xf32>
    %341 = vector.multi_reduction <add>, %340, %cst_177 [1] : vector<80x80xf32> to vector<80xf32>
    %342 = vector.shape_cast %341 : vector<80xf32> to vector<80x1xf32>
    %343 = vector.broadcast %342 : vector<80x1xf32> to vector<80x80xf32>
    %344 = arith.divf %340, %343 : vector<80x80xf32>
    %345 = vector.broadcast %67 : vector<1x32xf32> to vector<80x32xf32>
    %346 = arith.mulf %290, %345 : vector<80x32xf32>
    %cst_178 = arith.constant dense<0.000000e+00> : vector<80x32xf32>
    %347 = tpu.matmul %344, %346, %cst_178 {dimension_numbers = #tpu.dot_dimension_numbers<[1], [0], [0], [1], [0, 0, 1, 1], [], []>} : vector<80x80xf32>, vector<80x32xf32>, vector<80x32xf32> -> vector<80x32xf32>
    %348 = arith.addf %329, %347 : vector<80x32xf32>
    %349 = vector.broadcast %74 : vector<1x32xf32> to vector<80x32xf32>
    %350 = arith.mulf %284, %349 : vector<80x32xf32>
    %cst_179 = arith.constant dense<0.000000e+00> : vector<80x80xf32>
    %351 = tpu.matmul %350, %287, %cst_179 {dimension_numbers = #tpu.dot_dimension_numbers<[1], [1], [0], [0], [0, 0, 1, 0], [], []>} : vector<80x32xf32>, vector<80x32xf32>, vector<80x80xf32> -> vector<80x80xf32>
    %cst_180 = arith.constant 0.353553385 : f32
    %352 = vector.broadcast %cst_180 : f32 to vector<80x80xf32>
    %353 = arith.mulf %351, %352 : vector<80x80xf32>
    %354 = arith.addf %353, %45 : vector<80x80xf32>
    %cst_181 = arith.constant dense<0xFF800000> : vector<80xf32>
    %355 = vector.multi_reduction <maximumf>, %354, %cst_181 [1] : vector<80x80xf32> to vector<80xf32>
    %356 = vector.shape_cast %355 : vector<80xf32> to vector<80x1xf32>
    %357 = vector.broadcast %356 : vector<80x1xf32> to vector<80x80xf32>
    %358 = arith.subf %354, %357 : vector<80x80xf32>
    %359 = math.exp %358 : vector<80x80xf32>
    %cst_182 = arith.constant dense<0.000000e+00> : vector<80xf32>
    %360 = vector.multi_reduction <add>, %359, %cst_182 [1] : vector<80x80xf32> to vector<80xf32>
    %361 = vector.shape_cast %360 : vector<80xf32> to vector<80x1xf32>
    %362 = vector.broadcast %361 : vector<80x1xf32> to vector<80x80xf32>
    %363 = arith.divf %359, %362 : vector<80x80xf32>
    %364 = vector.broadcast %74 : vector<1x32xf32> to vector<80x32xf32>
    %365 = arith.mulf %290, %364 : vector<80x32xf32>
    %cst_183 = arith.constant dense<0.000000e+00> : vector<80x32xf32>
    %366 = tpu.matmul %363, %365, %cst_183 {dimension_numbers = #tpu.dot_dimension_numbers<[1], [0], [0], [1], [0, 0, 1, 1], [], []>} : vector<80x80xf32>, vector<80x32xf32>, vector<80x32xf32> -> vector<80x32xf32>
    %367 = arith.addf %348, %366 : vector<80x32xf32>
    %cst_184 = arith.constant dense<0.000000e+00> : vector<80x32xf32>
    %368 = tpu.matmul %367, %257, %cst_184 {dimension_numbers = #tpu.dot_dimension_numbers<[1], [1], [0], [0], [0, 0, 1, 0], [], []>} : vector<80x32xf32>, vector<32x32xf32>, vector<80x32xf32> -> vector<80x32xf32>
    %369 = vector.broadcast %269 : vector<1x32xf32> to vector<80x32xf32>
    %370 = arith.addf %368, %369 : vector<80x32xf32>
    %371 = arith.addf %249, %370 : vector<80x32xf32>
    %cst_185 = arith.constant dense<0.000000e+00> : vector<80xf32>
    %372 = vector.multi_reduction <add>, %371, %cst_185 [1] : vector<80x32xf32> to vector<80xf32>
    %373 = vector.shape_cast %372 : vector<80xf32> to vector<80x1xf32>
    %cst_186 = arith.constant 3.200000e+01 : f32
    %374 = vector.broadcast %cst_186 : f32 to vector<80x1xf32>
    %375 = arith.divf %373, %374 : vector<80x1xf32>
    %376 = vector.broadcast %375 : vector<80x1xf32> to vector<80x32xf32>
    %377 = arith.subf %371, %376 : vector<80x32xf32>
    %378 = arith.mulf %377, %377 : vector<80x32xf32>
    %cst_187 = arith.constant dense<0.000000e+00> : vector<80xf32>
    %379 = vector.multi_reduction <add>, %378, %cst_187 [1] : vector<80x32xf32> to vector<80xf32>
    %380 = vector.shape_cast %379 : vector<80xf32> to vector<80x1xf32>
    %cst_188 = arith.constant 3.200000e+01 : f32
    %381 = vector.broadcast %cst_188 : f32 to vector<80x1xf32>
    %382 = arith.divf %380, %381 : vector<80x1xf32>
    %383 = vector.broadcast %375 : vector<80x1xf32> to vector<80x32xf32>
    %384 = arith.subf %371, %383 : vector<80x32xf32>
    %cst_189 = arith.constant 9.99999974E-6 : f32
    %385 = vector.broadcast %cst_189 : f32 to vector<80x1xf32>
    %386 = arith.addf %382, %385 : vector<80x1xf32>
    %387 = math.rsqrt %386 : vector<80x1xf32>
    %388 = vector.broadcast %387 : vector<80x1xf32> to vector<80x32xf32>
    %389 = arith.mulf %384, %388 : vector<80x32xf32>
    %390 = vector.broadcast %273 : vector<1x32xf32> to vector<80x32xf32>
    %391 = arith.mulf %389, %390 : vector<80x32xf32>
    %392 = vector.broadcast %275 : vector<1x32xf32> to vector<80x32xf32>
    %393 = arith.addf %391, %392 : vector<80x32xf32>
    %cst_190 = arith.constant dense<0.000000e+00> : vector<80x64xf32>
    %394 = tpu.matmul %393, %259, %cst_190 {dimension_numbers = #tpu.dot_dimension_numbers<[1], [1], [0], [0], [0, 0, 1, 0], [], []>} : vector<80x32xf32>, vector<64x32xf32>, vector<80x64xf32> -> vector<80x64xf32>
    %395 = vector.broadcast %281 : vector<1x64xf32> to vector<80x64xf32>
    %396 = arith.addf %394, %395 : vector<80x64xf32>
    %cst_191 = arith.constant 0.000000e+00 : f32
    %397 = vector.broadcast %cst_191 : f32 to vector<80x64xf32>
    %398 = arith.maximumf %396, %397 : vector<80x64xf32>
    %cst_192 = arith.constant dense<0.000000e+00> : vector<80x32xf32>
    %399 = tpu.matmul %398, %261, %cst_192 {dimension_numbers = #tpu.dot_dimension_numbers<[1], [1], [0], [0], [0, 0, 1, 0], [], []>} : vector<80x64xf32>, vector<32x64xf32>, vector<80x32xf32> -> vector<80x32xf32>
    %400 = vector.broadcast %271 : vector<1x32xf32> to vector<80x32xf32>
    %401 = arith.addf %399, %400 : vector<80x32xf32>
    %402 = arith.addf %393, %401 : vector<80x32xf32>
    %cst_193 = arith.constant dense<0.000000e+00> : vector<80xf32>
    %403 = vector.multi_reduction <add>, %402, %cst_193 [1] : vector<80x32xf32> to vector<80xf32>
    %404 = vector.shape_cast %403 : vector<80xf32> to vector<80x1xf32>
    %cst_194 = arith.constant 3.200000e+01 : f32
    %405 = vector.broadcast %cst_194 : f32 to vector<80x1xf32>
    %406 = arith.divf %404, %405 : vector<80x1xf32>
    %407 = vector.broadcast %406 : vector<80x1xf32> to vector<80x32xf32>
    %408 = arith.subf %402, %407 : vector<80x32xf32>
    %409 = arith.mulf %408, %408 : vector<80x32xf32>
    %cst_195 = arith.constant dense<0.000000e+00> : vector<80xf32>
    %410 = vector.multi_reduction <add>, %409, %cst_195 [1] : vector<80x32xf32> to vector<80xf32>
    %411 = vector.shape_cast %410 : vector<80xf32> to vector<80x1xf32>
    %cst_196 = arith.constant 3.200000e+01 : f32
    %412 = vector.broadcast %cst_196 : f32 to vector<80x1xf32>
    %413 = arith.divf %411, %412 : vector<80x1xf32>
    %414 = vector.broadcast %406 : vector<80x1xf32> to vector<80x32xf32>
    %415 = arith.subf %402, %414 : vector<80x32xf32>
    %cst_197 = arith.constant 9.99999974E-6 : f32
    %416 = vector.broadcast %cst_197 : f32 to vector<80x1xf32>
    %417 = arith.addf %413, %416 : vector<80x1xf32>
    %418 = math.rsqrt %417 : vector<80x1xf32>
    %419 = vector.broadcast %418 : vector<80x1xf32> to vector<80x32xf32>
    %420 = arith.mulf %415, %419 : vector<80x32xf32>
    %421 = vector.broadcast %277 : vector<1x32xf32> to vector<80x32xf32>
    %422 = arith.mulf %420, %421 : vector<80x32xf32>
    %423 = vector.broadcast %279 : vector<1x32xf32> to vector<80x32xf32>
    %424 = arith.addf %422, %423 : vector<80x32xf32>
    %c0_198 = arith.constant 0 : index
    %c0_199 = arith.constant 0 : index
    %425 = vector.load %arg9[%c0_198, %c0_199] : memref<8x80xf32, #tpu.memory_space<vmem>>, vector<8x80xf32>
    %426 = vector.broadcast %38 : vector<1x80xf32> to vector<8x80xf32>
    %427 = arith.mulf %425, %426 : vector<8x80xf32>
    %cst_200 = arith.constant dense<0.000000e+00> : vector<8x32xf32>
    %428 = tpu.matmul %427, %424, %cst_200 {dimension_numbers = #tpu.dot_dimension_numbers<[1], [0], [0], [1], [0, 0, 1, 1], [], []>} : vector<8x80xf32>, vector<80x32xf32>, vector<8x32xf32> -> vector<8x32xf32>
    %cst_201 = arith.constant dense<0.000000e+00> : vector<8xf32>
    %429 = vector.multi_reduction <add>, %427, %cst_201 [1] : vector<8x80xf32> to vector<8xf32>
    %430 = vector.shape_cast %429 : vector<8xf32> to vector<8x1xf32>
    %431 = vector.broadcast %430 : vector<8x1xf32> to vector<8x32xf32>
    %432 = arith.divf %428, %431 : vector<8x32xf32>
    %cst_202 = arith.constant 5.000000e-01 : f32
    %433 = vector.broadcast %cst_202 : f32 to vector<8x32xf32>
    %434 = arith.mulf %433, %432 : vector<8x32xf32>
    %cst_203 = arith.constant 1.41421354 : f32
    %435 = vector.broadcast %cst_203 : f32 to vector<8x32xf32>
    %436 = arith.divf %432, %435 : vector<8x32xf32>
    %437 = math.erf %436 : vector<8x32xf32>
    %cst_204 = arith.constant 1.000000e+00 : f32
    %438 = vector.broadcast %cst_204 : f32 to vector<8x32xf32>
    %439 = arith.addf %438, %437 : vector<8x32xf32>
    %440 = arith.mulf %434, %439 : vector<8x32xf32>
    %c0_205 = arith.constant 0 : index
    %c0_206 = arith.constant 0 : index
    %441 = vector.load %arg19[%c0_205, %c0_206] : memref<8x32xf32, #tpu.memory_space<vmem>>, vector<8x32xf32>
    %cst_207 = arith.constant dense<0.000000e+00> : vector<8x8xf32>
    %442 = tpu.matmul %440, %441, %cst_207 {dimension_numbers = #tpu.dot_dimension_numbers<[1], [1], [0], [0], [0, 0, 1, 0], [], []>} : vector<8x32xf32>, vector<8x32xf32>, vector<8x8xf32> -> vector<8x8xf32>
    %c0_208 = arith.constant 0 : index
    %c0_209 = arith.constant 0 : index
    %443 = vector.load %arg20[%c0_208, %c0_209] : memref<1x8xf32, #tpu.memory_space<vmem>>, vector<1x8xf32>
    %444 = vector.broadcast %443 : vector<1x8xf32> to vector<8x8xf32>
    %445 = arith.addf %442, %444 : vector<8x8xf32>
    %c0_210 = arith.constant 0 : index
    %c0_211 = arith.constant 0 : index
    %446 = vector.load %arg21[%c0_210, %c0_211] : memref<8x8xf32, #tpu.memory_space<vmem>>, vector<8x8xf32>
    tpu.vector_store %arg21[%c0_210, %c0_211], %445 {strides = array<i32>} : memref<8x8xf32, #tpu.memory_space<vmem>>, vector<8x8xf32>,
    return
  }
  func.func @transform_0(%arg0: i32) -> (i32, i32) {
    %c0_i32 = arith.constant 0 : i32
    %c0_i32_0 = arith.constant 0 : i32
    return %arg0, %c0_i32 : i32, i32
  }
  func.func @transform_1(%arg0: i32) -> (i32, i32) {
    %c0_i32 = arith.constant 0 : i32
    %c0_i32_0 = arith.constant 0 : i32
    return %arg0, %c0_i32 : i32, i32
  }
  func.func @transform_2(%arg0: i32) -> (i32, i32) {
    %c0_i32 = arith.constant 0 : i32
    %c0_i32_0 = arith.constant 0 : i32
    return %arg0, %c0_i32 : i32, i32
  }
  func.func @transform_3(%arg0: i32) -> (i32, i32, i32) {
    %c0_i32 = arith.constant 0 : i32
    %c0_i32_0 = arith.constant 0 : i32
    %c0_i32_1 = arith.constant 0 : i32
    return %arg0, %c0_i32, %c0_i32_0 : i32, i32, i32
  }
  func.func @transform_4(%arg0: i32) -> (i32, i32) {
    %c0_i32 = arith.constant 0 : i32
    %c0_i32_0 = arith.constant 0 : i32
    %c0_i32_1 = arith.constant 0 : i32
    return %c0_i32, %c0_i32_0 : i32, i32
  }
  func.func @transform_5(%arg0: i32) -> (i32, i32) {
    %c0_i32 = arith.constant 0 : i32
    %c0_i32_0 = arith.constant 0 : i32
    %c0_i32_1 = arith.constant 0 : i32
    return %c0_i32, %c0_i32_0 : i32, i32
  }
  func.func @transform_6(%arg0: i32) -> (i32, i32) {
    %c0_i32 = arith.constant 0 : i32
    %c0_i32_0 = arith.constant 0 : i32
    %c0_i32_1 = arith.constant 0 : i32
    return %c0_i32, %c0_i32_0 : i32, i32
  }
  func.func @transform_7(%arg0: i32) -> (i32, i32) {
    %c0_i32 = arith.constant 0 : i32
    %c0_i32_0 = arith.constant 0 : i32
    %c0_i32_1 = arith.constant 0 : i32
    return %c0_i32, %c0_i32_0 : i32, i32
  }
  func.func @transform_8(%arg0: i32) -> (i32, i32) {
    %c0_i32 = arith.constant 0 : i32
    %c0_i32_0 = arith.constant 0 : i32
    %c0_i32_1 = arith.constant 0 : i32
    return %c0_i32, %c0_i32_0 : i32, i32
  }
  func.func @transform_9(%arg0: i32) -> (i32, i32) {
    %c0_i32 = arith.constant 0 : i32
    %c0_i32_0 = arith.constant 0 : i32
    %c0_i32_1 = arith.constant 0 : i32
    return %c0_i32, %c0_i32_0 : i32, i32
  }
  func.func @transform_10(%arg0: i32) -> (i32, i32, i32) {
    %c0_i32 = arith.constant 0 : i32
    %c0_i32_0 = arith.constant 0 : i32
    %c0_i32_1 = arith.constant 0 : i32
    %c0_i32_2 = arith.constant 0 : i32
    return %c0_i32, %c0_i32_0, %c0_i32_1 : i32, i32, i32
  }
  func.func @transform_11(%arg0: i32) -> (i32, i32, i32) {
    %c0_i32 = arith.constant 0 : i32
    %c0_i32_0 = arith.constant 0 : i32
    %c0_i32_1 = arith.constant 0 : i32
    %c0_i32_2 = arith.constant 0 : i32
    return %c0_i32, %c0_i32_0, %c0_i32_1 : i32, i32, i32
  }
  func.func @transform_12(%arg0: i32) -> (i32, i32, i32) {
    %c0_i32 = arith.constant 0 : i32
    %c0_i32_0 = arith.constant 0 : i32
    %c0_i32_1 = arith.constant 0 : i32
    %c0_i32_2 = arith.constant 0 : i32
    return %c0_i32, %c0_i32_0, %c0_i32_1 : i32, i32, i32
  }
  func.func @transform_13(%arg0: i32) -> (i32, i32, i32) {
    %c0_i32 = arith.constant 0 : i32
    %c0_i32_0 = arith.constant 0 : i32
    %c0_i32_1 = arith.constant 0 : i32
    %c0_i32_2 = arith.constant 0 : i32
    return %c0_i32, %c0_i32_0, %c0_i32_1 : i32, i32, i32
  }
  func.func @transform_14(%arg0: i32) -> (i32, i32, i32) {
    %c0_i32 = arith.constant 0 : i32
    %c0_i32_0 = arith.constant 0 : i32
    %c0_i32_1 = arith.constant 0 : i32
    %c0_i32_2 = arith.constant 0 : i32
    return %c0_i32, %c0_i32_0, %c0_i32_1 : i32, i32, i32
  }
  func.func @transform_15(%arg0: i32) -> (i32, i32, i32) {
    %c0_i32 = arith.constant 0 : i32
    %c0_i32_0 = arith.constant 0 : i32
    %c0_i32_1 = arith.constant 0 : i32
    %c0_i32_2 = arith.constant 0 : i32
    return %c0_i32, %c0_i32_0, %c0_i32_1 : i32, i32, i32
  }
  func.func @transform_16(%arg0: i32) -> (i32, i32, i32) {
    %c0_i32 = arith.constant 0 : i32
    %c0_i32_0 = arith.constant 0 : i32
    %c0_i32_1 = arith.constant 0 : i32
    %c0_i32_2 = arith.constant 0 : i32
    return %c0_i32, %c0_i32_0, %c0_i32_1 : i32, i32, i32
  }
  func.func @transform_17(%arg0: i32) -> (i32, i32, i32) {
    %c0_i32 = arith.constant 0 : i32
    %c0_i32_0 = arith.constant 0 : i32
    %c0_i32_1 = arith.constant 0 : i32
    %c0_i32_2 = arith.constant 0 : i32
    return %c0_i32, %c0_i32_0, %c0_i32_1 : i32, i32, i32
  }
  func.func @transform_18(%arg0: i32) -> (i32, i32) {
    %c0_i32 = arith.constant 0 : i32
    %c0_i32_0 = arith.constant 0 : i32
    %c0_i32_1 = arith.constant 0 : i32
    return %c0_i32, %c0_i32_0 : i32, i32
  }
  func.func @transform_19(%arg0: i32) -> (i32, i32) {
    %c0_i32 = arith.constant 0 : i32
    %c0_i32_0 = arith.constant 0 : i32
    %c0_i32_1 = arith.constant 0 : i32
    return %c0_i32, %c0_i32_0 : i32, i32
  }
  func.func @transform_20(%arg0: i32) -> (i32, i32) {
    %c0_i32 = arith.constant 0 : i32
    %c0_i32_0 = arith.constant 0 : i32
    return %arg0, %c0_i32 : i32, i32
  }
}

</mosaic_0001>

<bundles_post_ra>
// kernel: tpu_custom_call.1
= control target key start
LH: loop header
LB: loop body
LE: loop exit
PB: predicated region body
PF: predicated region fallthrough
CT: control target
= control target key end

     0   :  { %s14019_s0 = inlined_call_operand.vmem [shape: f32[144,5], index: 0, kind: input, shape index: {}]   ;;  %s14020_s1 = inlined_call_operand.vmem [shape: f32[16,4], index: 1, kind: input, shape index: {}]   ;;  %s14021_s2 = inlined_call_operand.vmem [shape: f32[144,1], index: 2, kind: input, shape index: {}]   ;;  %s14022_s3 = inlined_call_operand.vmem [shape: f32[2,1,80], index: 3, kind: input, shape index: {}]   ;;  %s14023_s4 = inlined_call_operand.vmem [shape: f32[32,5], index: 4, kind: input, shape index: {}]   ;;  %s14024_s5 = inlined_call_operand.vmem [shape: f32[32,4], index: 5, kind: input, shape index: {}]   ;;  %s14025_s6 = inlined_call_operand.vmem [shape: f32[3,32], index: 6, kind: input, shape index: {}]   ;;  %s14026_s7 = inlined_call_operand.vmem [shape: f32[72,32], index: 7, kind: input, shape index: {}]   ;;  %s14027_s8 = inlined_call_operand.vmem [shape: f32[8,80], index: 8, kind: input, shape index: {}]   ;;  %s14028_s9 = inlined_call_operand.vmem [shape: f32[80,80], index: 9, kind: input, shape index: {}]   ;;  %s14029_s10 = inlined_call_operand.vmem [shape: f32[2,32,32], index: 10, kind: input, shape index: {}]   ;;  %s14030_s11 = inlined_call_operand.vmem [shape: f32[2,32,32], index: 11, kind: input, shape index: {}]   ;;  %s14031_s12 = inlined_call_operand.vmem [shape: f32[2,32,32], index: 12, kind: input, shape index: {}]   ;;  %s14032_s13 = inlined_call_operand.vmem [shape: f32[2,32,32], index: 13, kind: input, shape index: {}]   ;;  %s14033_s14 = inlined_call_operand.vmem [shape: f32[2,64,32], index: 14, kind: input, shape index: {}]   ;;  %s14034_s15 = inlined_call_operand.vmem [shape: f32[2,32,64], index: 15, kind: input, shape index: {}]   ;;  %s14035_s16 = inlined_call_operand.vmem [shape: f32[2,9,32], index: 16, kind: input, shape index: {}]   ;;  %s14036_s17 = inlined_call_operand.vmem [shape: f32[2,1,64], index: 17, kind: input, shape index: {}]   ;;  %s14037_s18 = inlined_call_operand.vmem [shape: f32[8,32], index: 18, kind: input, shape index: {}]   ;;  %s14038_s19 = inlined_call_operand.vmem [shape: f32[1,8], index: 19, kind: input, shape index: {}]   ;;  %s14039_s20 = inlined_call_operand.vmem [shape: f32[16,8], index: 20, kind: output, shape index: {}]  }
   0x1   :  { %14109 = sst [smem:[#allocation33_spill]] %s14019_s0 }
   0x2   :  { %14110 = sst [smem:[#allocation34_spill]] %s14020_s1  ;;  %s10844_s1 = smov 0  }
   0x3   :  { %14111 = sst [smem:[#allocation35_spill]] %s14021_s2 }
   0x4   :  { %14112 = sst [smem:[#allocation36_spill]] %s14022_s3 }
   0x5   :  { %14113 = sst [smem:[#allocation37_spill]] %s14023_s4 }
   0x6 LB: > { %s10850_s22 = sadd.s32 4294967295, %s10733_s1   ;;  %p7655_p0 = scmp.ge.s32.totalorder %s10733_s1, 1  ;;  %s10733_s1 = sphi %s10844_s1, %s30_s1  }
   0x7   : > { %p591_p1 = scmp.lt.s32.totalorder %s10733_s1, 3 }
   0x9   : > { %p592_p2 = pnand %p7655_p0, %p591_p1 }
   0xb   : > { %595 = sbr.rel (%p592_p2) target bundleno = 5519 (0x158f), region = 100 }
  0x12   : > { %s14114_s2 = sld [smem:[#allocation37_spill]]  ;;  %vm703_vm0 = vcmask 39936   ;;  %v981_v2 = vld [vmem:[%s14024_s5] sm:$0xff]  ;;  %vm989_vm1 = vcmask 31744   ;;  %v14043_v3 = vmov 0.0|0.0   ;;  %v982_v6 = vld [vmem:[%s14024_s5 + $0x8] sm:$0xff] }
  0x13   : > { %9629 = vmatprep.subr.bf16.mxu0 %v14043_v3  ;;  %9637 = vmatprep.subr.bf16.mxu1 %v14043_v3  ;;  %vm10867_vm2 = vmpackc.low %vm703_vm0, %vm703_vm0  ;;  %s660_s29 = smul.u32 9, %s10850_s22  ;;  %v9638_v7 = vpack.c.bf16 %v982_v6, %v981_v2  ;;  %vm10736_vm4 = vmmov 0   ;;  %v14041_v9 = vmov 0.0   ;;  %p666_p3 = scmp.lt.s32.totalorder %s10850_s22, 1  ;;  %v10738_v10 = vmov 0   ;;  %v983_v13 = vld [vmem:[%s14024_s5 + $0x10] sm:$0xff] }
  0x14   : > { %vm10877_vm3 = vmpackc.low %vm989_vm1, %vm989_vm1  ;;  %8711 = vmatprep.mubr.msk.f32.mxu0 %vm10736_vm4, %v14041_v9  ;;  %8746 = vmatprep.mubr.msk.f32.mxu1 %vm10736_vm4, %v14041_v9  ;;  %v984_v14 = vld [vmem:[%s14024_s5 + $0x18] sm:$0xff]  ;;  %s14119_s30 = sld [smem:[#allocation35_spill]]  ;;  %s14120_s25 = sld [smem:[#allocation33_spill]]  ;;  %vm1196_vm5 = vcmask 261120   ;;  %v1158_v22 = vld [vmem:[%s14030_s11] sm:$0xff]  ;;  %v14122_v26 = vmov 0 }
  0x15   : > { %p661_p4 = scmp.lt.s32.totalorder %s660_s29, 17  ;;  %10300 = vset.pattern.permute.xlu0 %v10738_v10  ;;  %9640 = vmatpush3.bf16.xpose.msk.msra.mxu1 %vm10877_vm3, %v9638_v7  ;;  %s14229_s22 = smov (!%p666_p3, %s10850_s22), 1  ;;  %v9642_v16 = vpack.c.bf16 %v984_v14, %v983_v13  ;;  %v1159_v23 = vld [vmem:[%s14030_s11 + $0x8] sm:$0xff]  ;;  %vm10942_vm6 = vmpackc.low %vm1196_vm5, %vm1196_vm5  ;;  %v1154_v40 = vld [vmem:[%s14029_s10] sm:$0xff] }
  0x16   : > { %9641 = vmatprep.subr.bf16.mxu1 %v14043_v3  ;;  %10301 = vset.pattern.permute.xlu1 %v10738_v10  ;;  %s7657_s21 = sshll.u32 %s14229_s22, 3  ;;  %s14121_s28 = sld [smem:[#allocation34_spill]]  ;;  %v9657_v25 = vpack.c.bf16 %v1159_v23, %v1158_v22  ;;  %v14123_v26 = vsel %vm10942_vm6, 4294967295, %v14122_v26  ;;  %v1155_v41 = vld [vmem:[%s14029_s10 + $0x8] sm:$0xff]  ;;  %v1160_v43 = vld [vmem:[%s14030_s11 + $0x10] sm:$0xff]  ;;  %v1161_v44 = vld [vmem:[%s14030_s11 + $0x18] sm:$0xff] }
  0x17   : > { %s14227_s29 = smov (!%p661_p4, %s660_s29), 17  ;;  %14124 = vst [vmem:[#allocation2_spill] sm:$0xff] %v14123_v26  ;;  %v9645_v42 = vpack.c.bf16 %v1155_v41, %v1154_v40  ;;  %v1156_v45 = vld [vmem:[%s14029_s10 + $0x10] sm:$0xff]  ;;  %v9663_v46 = vpack.c.bf16 %v1161_v44, %v1160_v43  ;;  %v1157_v47 = vld [vmem:[%s14029_s10 + $0x18] sm:$0xff]  ;;  %v1162_v49 = vld [vmem:[%s14031_s12] sm:$0xff] }
  0x18   : > { %v695_v0 = vld [vmem:[%s14114_s2] sm:$0xff]  ;;  %v696_v1 = vld [vmem:[%s14114_s2 + $0x8] sm:$0xff]  ;;  %v697_v11 = vld [vmem:[%s14114_s2 + $0x10] sm:$0xff]  ;;  %s7656_s27 = sshll.u32 %s14227_s29, 3  ;;  %v9651_v48 = vpack.c.bf16 %v1157_v47, %v1156_v45 }
  0x19   : > { %v9630_v4 = vpack.c.bf16 %v696_v1, %v695_v0  ;;  %v698_v12 = vld [vmem:[%s14114_s2 + $0x18] sm:$0xff]  ;;  %v1163_v50 = vld [vmem:[%s14031_s12 + $0x8] sm:$0xff]  ;;  %v11033_v52 = vld [vmem:[%s14025_s6] ss:$0 sm:$0xff] }
  0x1a   : > { %v9634_v15 = vpack.c.bf16 %v698_v12, %v697_v11  ;;  %s10912_s0 = scalar_lea.vmem %s14119_s30, %s7656_s27  ;;  %s10920_s3 = scalar_lea.vmem %s14120_s25, %s7656_s27  ;;  %v11025_v51 = vpack.c.bf16 %v1163_v50, %v1162_v49  ;;  %v7674_v53 = vld [vmem:[%s14025_s6 + $0x1] ss:$0 sm:$0xff]  ;;  %v963_v50 = vld [vmem:[%s14026_s7 + $0x8] sm:$0xff] }
  0x1b   : > { %9632 = vmatpush3.bf16.xpose.msk.msra.mxu0 %vm10867_vm2, %v9630_v4  ;;  %v853_v17 = vld [vmem:[%s10912_s0] sm:$0xff]  ;;  %v855_v18 = vld [vmem:[%s10912_s0 + $0x10] sm:$0xff]  ;;  %v854_v20 = vld [vmem:[%s10912_s0 + $0x8] sm:$0xff]  ;;  %s14146_s30 = sld [smem:[#allocation36_spill]] }
  0x1c   : > { %9633 = vmatprep.subr.bf16.mxu0 %v14043_v3  ;;  %s669_s4 = scalar_lea.vmem %s14121_s28, %s7657_s21  ;;  %864 = vperm.xlu0 %10300, %v853_v17   ;;  %v686_v19 = vld [vmem:[%s10920_s3] sm:$0xff]  ;;  %v856_v21 = vld [vmem:[%s10912_s0 + $0x18] sm:$0xff]  ;;  %v687_v28 = vld [vmem:[%s10920_s3 + $0x8] sm:$0xff] }
  0x1d   : > { %9644 = vmatpush3.bf16.xpose.msk.msra.mxu1 %vm10877_vm3, %v9642_v16  ;;  %874 = vperm.xlu1 %10301, %v855_v18   ;;  %v980_v24 = vld [vmem:[%s669_s4] sm:$0xff]  ;;  %v858_v29 = vld [vmem:[%s10912_s0 + $0x28] sm:$0xff]  ;;  %v859_v30 = vld [vmem:[%s10912_s0 + $0x30] sm:$0xff] }
  0x1e   : > { %v857_v27 = vld [vmem:[%s10912_s0 + $0x20] sm:$0xff]  ;;  %v688_v31 = vld [vmem:[%s10920_s3 + $0x10] sm:$0xff]  ;;  %v860_v32 = vld [vmem:[%s10912_s0 + $0x38] sm:$0xff]  ;;  %9647 = vmatprep.subr.msk.bf16.mxu1 %vm10942_vm6, %v9645_v42 }
  0x1f   : > { %v861_v33 = vld [vmem:[%s10912_s0 + $0x40] sm:$0xff]  ;;  %v689_v34 = vld [vmem:[%s10920_s3 + $0x18] sm:$0xff]  ;;  %v691_v36 = vld [vmem:[%s10920_s3 + $0x28] sm:$0xff] }
  0x20   : > { %869 = vperm.xlu0 %10300, %v854_v20   ;;  %v690_v35 = vld [vmem:[%s10920_s3 + $0x20] sm:$0xff]  ;;  %v692_v37 = vld [vmem:[%s10920_s3 + $0x30] sm:$0xff]  ;;  %v693_v38 = vld [vmem:[%s10920_s3 + $0x38] sm:$0xff] }
  0x21   : > { %879 = vperm.xlu1 %10301, %v856_v21   ;;  %v694_v39 = vld [vmem:[%s10920_s3 + $0x40] sm:$0xff]  ;;  %s11633_s23 = scalar_lea.vmem %s14146_s30, %s14229_s22  ;;  %s682_s30 = scalar_lea.vmem %s14039_s20, %s7657_s21 }
  0x23   : > { %9636 = vmatpush3.bf16.xpose.msk.msra.mxu0 %vm10867_vm2, %v9634_v15  ;;  %vm3946_vm2 = vcmask 523264  }
  0x24   : > { %8747 = vmatmul.mubr.msk.f32.vlgmr.msra.gmra.mrb[0].mxu1 %vm989_vm1, %v980_v24  ;;  %9659 = vmatprep.subr.msk.bf16.mxu0 %vm10942_vm6, %v9657_v25  ;;  %vm1821_vm1 = vcmask 654336   ;;  %vm12370_vm3 = vmpackc.low %vm3946_vm2, %vm3946_vm2 }
  0x25   : > { %884 = vperm.xlu0 %10300, %v857_v27   ;;  %889 = vperm.xlu1 %10301, %v858_v29  }
  0x26   : > { %9650 = vmatpush3.bf16.xpose.msk.msra.mxu1 %vm10942_vm6, %v9645_v42 }
  0x27   : > { %9653 = vmatprep.subr.msk.bf16.mxu1 %vm10942_vm6, %v9651_v48 }
  0x29   : > { %894 = vperm.xlu0 %10300, %v859_v30   ;;  %899 = vperm.xlu1 %10301, %v860_v32   ;;  %v962_v32 = vld [vmem:[%s14026_s7] sm:$0xff] }
  0x2a   : > { %8712 = vmatmul.mubr.msk.f32.vlgmr.msra.gmra.mrb[0].mxu0 %vm703_vm0, %v686_v19 }
  0x2b   : > { %8714 = vmatprep.mubr.msk.f32.mxu0 %vm10736_vm4, %v14041_v9  ;;  %9662 = vmatpush3.bf16.xpose.msk.msra.mxu0 %vm10942_vm6, %v9657_v25 }
  0x2c   : > { %9665 = vmatprep.subr.msk.bf16.mxu0 %vm10942_vm6, %v9663_v46 }
  0x2d   : > { %904 = vperm.xlu0 %10300, %v861_v33  }
  0x2e   : > { %8715 = vmatmul.mubr.msk.f32.gmra.mrb[2].mxu0 %vm703_vm0, %v687_v28  ;;  %9656 = vmatpush3.bf16.xpose.msk.msra.mxu1 %vm10942_vm6, %v9651_v48 }
  0x2f   : > { %8717 = vmatprep.mubr.msk.f32.mxu0 %vm10736_vm4, %v14041_v9  ;;  %9671 = vmatprep.subr.msk.bf16.mxu1 %vm10942_vm6, %v11025_v51 }
  0x32   : > { %8718 = vmatmul.mubr.msk.f32.gmra.mrb[4].mxu0 %vm703_vm0, %v688_v31  ;;  %v7680_v31 = vld [vmem:[%s14025_s6 + $0x2] ss:$0 sm:$0xff] }
  0x33   : > { %8720 = vmatprep.mubr.msk.f32.mxu0 %vm10736_vm4, %v14041_v9  ;;  %9668 = vmatpush3.bf16.xpose.msk.msra.mxu0 %vm10942_vm6, %v9663_v46 }
  0x36   : > { %8721 = vmatmul.mubr.msk.f32.gmra.mrb[6].mxu0 %vm703_vm0, %v689_v34 }
  0x37   : > { %8723 = vmatprep.mubr.msk.f32.mxu0 %vm10736_vm4, %v14041_v9 }
  0x3a   : > { %8724 = vmatmul.mubr.msk.f32.gmra.mrb[8].mxu0 %vm703_vm0, %v690_v35  ;;  %v1164_v35 = vld [vmem:[%s14031_s12 + $0x10] sm:$0xff] }
  0x3b   : > { %8726 = vmatprep.mubr.msk.f32.mxu0 %vm10736_vm4, %v14041_v9 }
  0x3e   : > { %8727 = vmatmul.mubr.msk.f32.gmra.mrb[10].mxu0 %vm703_vm0, %v691_v36  ;;  %v1165_v36 = vld [vmem:[%s14031_s12 + $0x18] sm:$0xff] }
  0x3f   : > { %8729 = vmatprep.mubr.msk.f32.mxu0 %vm10736_vm4, %v14041_v9  ;;  %v9675_v48 = vpack.c.bf16 %v1165_v36, %v1164_v35 }
  0x42   : > { %8730 = vmatmul.mubr.msk.f32.gmra.mrb[12].mxu0 %vm703_vm0, %v692_v37 }
  0x43   : > { %8732 = vmatprep.mubr.msk.f32.mxu0 %vm10736_vm4, %v14041_v9 }
  0x46   : > { %8733 = vmatmul.mubr.msk.f32.gmra.mrb[14].mxu0 %vm703_vm0, %v693_v38 }
  0x47   : > { %8735 = vmatprep.mubr.msk.f32.mxu0 %vm10736_vm4, %v14041_v9 }
  0x4a   : > { %8736 = vmatmul.mubr.msk.f32.gmra.mrb[16].mxu0 %vm703_vm0, %v694_v39 }
  0x9b   : > { %v865_v54 = vpop.permute.xlu0 %864 }
  0x9c   : > { %v875_v6 = vpop.permute.xlu1 %874 }
  0x9f   : > { %v870_v4 = vpop.permute.xlu0 %869 }
  0xa0   : > { %v880_v17 = vpop.permute.xlu1 %879 }
  0xa4   : > { %v885_v28 = vpop.permute.xlu0 %884  ;;  %v890_v47 = vpop.permute.xlu1 %889 }
  0xf7   : > { %v1071_v57 = vpop.f32.mrb[0].mxu1 }
  0xf8   : > { %v1072_v59 = vadd.f32 %v7674_v53, %v1071_v57  ;;  %v8748_v60 = vpop.f32.mrb[1].mxu1 }
  0xfa   : > { %v1076_v62 = vmul.f32 0.70710677, %v1072_v59  ;;  %v1075_v22 = vmul.f32 0.5, %v1072_v59  ;;  %v895_v59 = vpop.permute.xlu0 %894 }
  0xfc   : > { %10302 = verf.f32 %v1076_v62 }
  0xfd   : > { %v809_v55 = vpop.f32.mrb[0].mxu0 }
  0xfe   : > { %v810_v56 = vadd.f32 %v11033_v52, %v809_v55  ;;  %v8713_v58 = vpop.f32.mrb[1].mxu0 }
 0x100   : > { %v907_v61 = vmul.f32 %v865_v54, %v810_v56 }
 0x101   : > { %v814_v63 = vpop.f32.mrb[2].mxu0 }
 0x102   : > { %v926_v0 = vmul.f32 0.70710677, %v907_v61  ;;  %v815_v1 = vadd.f32 %v11033_v52, %v814_v63  ;;  %v8716_v2 = vpop.f32.mrb[3].mxu0  ;;  %v916_v29 = vmul.f32 0.5, %v907_v61 }
 0x104   : > { %10304 = verf.f32 %v926_v0  ;;  %v908_v5 = vmul.f32 %v870_v4, %v815_v1  ;;  %v964_v0 = vld [vmem:[%s14026_s7 + $0x10] sm:$0xff] }
 0x105   : > { %v819_v7 = vpop.f32.mrb[4].mxu0 }
 0x106   : > { %v927_v8 = vmul.f32 0.70710677, %v908_v5  ;;  %v820_v10 = vadd.f32 %v11033_v52, %v819_v7  ;;  %v8719_v11 = vpop.f32.mrb[5].mxu0  ;;  %v10303_v19 = vpop.eup %10302  ;;  %v917_v45 = vmul.f32 0.5, %v908_v5 }
 0x107   : > { %v1078_v23 = vadd.f32 1.0, %v10303_v19  ;;  %v900_v7 = vpop.permute.xlu1 %899 }
 0x108   : > { %10306 = verf.f32 %v927_v8  ;;  %v909_v12 = vmul.f32 %v875_v6, %v820_v10 }
 0x109   : > { %v824_v13 = vpop.f32.mrb[6].mxu0  ;;  %v1079_v33 = vmul.f32 %v1078_v23, %v1075_v22 }
 0x10a   : > { %v928_v14 = vmul.f32 0.70710677, %v909_v12  ;;  %v825_v15 = vadd.f32 %v11033_v52, %v824_v13  ;;  %v8722_v16 = vpop.f32.mrb[7].mxu0  ;;  %v918_v60 = vmul.f32 0.5, %v909_v12  ;;  %v965_v13 = vld [vmem:[%s14026_s7 + $0x18] sm:$0xff] }
 0x10b   : > { %v11055_v40 = vadd.f32 %v7680_v31, %v1079_v33 }
 0x10c   : > { %10308 = verf.f32 %v928_v14  ;;  %v910_v18 = vmul.f32 %v880_v17, %v825_v15 }
 0x10d   : > { %v829_v20 = vpop.f32.mrb[8].mxu0  ;;  %14125 = vst [vmem:[#allocation3_spill] sm:$0xff] %v11055_v40  ;;  %8757 = vmatprep.mubr.msk.f32.mxu1 %vm1196_vm5, %v11055_v40  ;;  %8780 = vmatprep.mubr.msk.f32.mxu0 %vm1196_vm5, %v11055_v40 }
 0x10e   : > { %v10305_v21 = vpop.eup %10304  ;;  %v929_v24 = vmul.f32 0.70710677, %v910_v18  ;;  %v830_v25 = vadd.f32 %v11033_v52, %v829_v20  ;;  %v8725_v27 = vpop.f32.mrb[9].mxu0  ;;  %v919_v8 = vmul.f32 0.5, %v910_v18 }
 0x10f   : > { %v944_v30 = vadd.f32 1.0, %v10305_v21  ;;  %v905_v20 = vpop.permute.xlu0 %904 }
 0x110   : > { %10310 = verf.f32 %v929_v24  ;;  %v911_v34 = vmul.f32 %v885_v28, %v830_v25  ;;  %v966_v25 = vld [vmem:[%s14026_s7 + $0x20] sm:$0xff] }
 0x111   : > { %v953_v37 = vmul.f32 %v944_v30, %v916_v29  ;;  %v834_v38 = vpop.f32.mrb[10].mxu0 }
 0x112   : > { %v10307_v39 = vpop.eup %10306  ;;  %v930_v41 = vmul.f32 0.70710677, %v911_v34  ;;  %v835_v42 = vadd.f32 %v11033_v52, %v834_v38  ;;  %v8728_v43 = vpop.f32.mrb[11].mxu0  ;;  %v920_v21 = vmul.f32 0.5, %v911_v34  ;;  %v968_v38 = vld [vmem:[%s14026_s7 + $0x30] sm:$0xff] }
 0x113   : > { %v11058_v44 = vadd.f32 %v962_v32, %v953_v37  ;;  %v945_v46 = vadd.f32 1.0, %v10307_v39  ;;  %v967_v32 = vld [vmem:[%s14026_s7 + $0x28] sm:$0xff] }
 0x114   : > { %10312 = verf.f32 %v930_v41  ;;  %v912_v49 = vmul.f32 %v890_v47, %v835_v42 }
 0x115   : > { %14126 = vst [vmem:[#allocation4_spill] sm:$0xff] %v11058_v44  ;;  %v954_v53 = vmul.f32 %v945_v46, %v917_v45  ;;  %v839_v54 = vpop.f32.mrb[12].mxu0  ;;  %8758 = vmatmul.mubr.msk.f32.vlgmr.msra.gmra.mrb[2].mxu1 %vm1196_vm5, %v11058_v44  ;;  %8781 = vmatmul.mubr.msk.f32.vlgmr.msra.gmra.mrb[18].mxu0 %vm1196_vm5, %v11058_v44  ;;  %v969_v46 = vld [vmem:[%s14026_s7 + $0x38] sm:$0xff] }
 0x116   : > { %v10309_v55 = vpop.eup %10308  ;;  %v931_v56 = vmul.f32 0.70710677, %v912_v49  ;;  %v840_v57 = vadd.f32 %v11033_v52, %v839_v54  ;;  %v8731_v58 = vpop.f32.mrb[13].mxu0  ;;  %9674 = vmatpush3.bf16.xpose.msk.msra.mxu1 %vm10942_vm6, %v11025_v51  ;;  %v921_v29 = vmul.f32 0.5, %v912_v49  ;;  %v970_v54 = vld [vmem:[%s14026_s7 + $0x40] sm:$0xff] }
 0x117   : > { %v946_v61 = vadd.f32 1.0, %v10309_v55  ;;  %v11075_v62 = vadd.f32 %v963_v50, %v954_v53  ;;  %9677 = vmatprep.subr.msk.bf16.mxu1 %vm10942_vm6, %v9675_v48 }
 0x118   : > { %10314 = verf.f32 %v931_v56  ;;  %v913_v63 = vmul.f32 %v895_v59, %v840_v57  ;;  %v1132_v57 = vlaneseq  ;;  %v11178_v59 = vld [vmem:[%s14035_s16 + $0x1] ss:$0 sm:$0xff] }
 0x119   : > { %14127 = vst [vmem:[#allocation5_spill] sm:$0xff] %v11075_v62  ;;  %v955_v1 = vmul.f32 %v946_v61, %v918_v60  ;;  %v844_v2 = vpop.f32.mrb[14].mxu0  ;;  %8760 = vmatprep.mubr.msk.f32.mxu1 %vm1196_vm5, %v11075_v62  ;;  %8783 = vmatprep.mubr.msk.f32.mxu0 %vm1196_vm5, %v11075_v62  ;;  %v11183_v60 = vld [vmem:[%s14035_s16] ss:$0 sm:$0xff] }
 0x11a   : > { %v10311_v51 = vpop.eup %10310  ;;  %v932_v4 = vmul.f32 0.70710677, %v913_v63  ;;  %v845_v5 = vadd.f32 %v11033_v52, %v844_v2  ;;  %v8734_v6 = vpop.f32.mrb[15].mxu0  ;;  %v922_v35 = vmul.f32 0.5, %v913_v63  ;;  %v11170_v58 = vand.u32 127, %v1132_v57 }
 0x11b   : > { %v947_v10 = vadd.f32 1.0, %v10311_v51  ;;  %v11087_v11 = vadd.f32 %v964_v0, %v955_v1 }
 0x11c   : > { %10316 = verf.f32 %v932_v4  ;;  %v914_v12 = vmul.f32 %v900_v7, %v845_v5  ;;  %vm1139_vm7 = vcmp.ge.s32.totalorder %v11170_v58, 8  ;;  %vm1140_vm8 = vcmp.lt.s32.totalorder %v11170_v58, 16 }
 0x11d   : > { %14128 = vst [vmem:[#allocation6_spill] sm:$0xff] %v11087_v11  ;;  %v956_v14 = vmul.f32 %v947_v10, %v919_v8  ;;  %v849_v15 = vpop.f32.mrb[16].mxu0  ;;  %8761 = vmatmul.mubr.msk.f32.gmra.mrb[4].mxu1 %vm1196_vm5, %v11087_v11  ;;  %8784 = vmatmul.mubr.msk.f32.gmra.mrb[20].mxu0 %vm1196_vm5, %v11087_v11  ;;  %vm1135_vm9 = vcmp.lt.s32.totalorder %v11170_v58, 8  ;;  %vm1141_vm10 = vmand %vm1139_vm7, %vm1140_vm8  ;;  %vm1144_vm11 = vcmp.ge.s32.totalorder %v11170_v58, 16  ;;  %vm1145_vm12 = vcmp.lt.s32.totalorder %v11170_v58, 24 }
 0x11e   : > { %v10313_v16 = vpop.eup %10312  ;;  %v933_v17 = vmul.f32 0.70710677, %v914_v12  ;;  %v850_v18 = vadd.f32 %v11033_v52, %v849_v15  ;;  %v8737_v19 = vpop.f32.mrb[17].mxu0  ;;  %9680 = vmatpush3.bf16.xpose.msk.msra.mxu1 %vm10942_vm6, %v9675_v48  ;;  %v923_v42 = vmul.f32 0.5, %v914_v12  ;;  %v11186_v0 = vsel %vm1135_vm9, 1.0, %v14041_v9  ;;  %vm1146_vm13 = vmand %vm1144_vm11, %vm1145_vm12 }
 0x11f   : > { %v948_v22 = vadd.f32 1.0, %v10313_v16  ;;  %v11099_v23 = vadd.f32 %v965_v13, %v956_v14  ;;  %14135 = vst [vmem:[#allocation13_spill] sm:$0xff] %v11186_v0  ;;  %v11189_v1 = vsel %vm1141_vm10, 1.0, %v14041_v9  ;;  %vm1149_vm14 = vcmp.ge.s32.totalorder %v11170_v58, 24 }
 0x120   : > { %10318 = verf.f32 %v933_v17  ;;  %v915_v24 = vmul.f32 %v905_v20, %v850_v18  ;;  %14136 = vst [vmem:[#allocation14_spill] sm:$0xff] %v11189_v1  ;;  %vm1150_vm15 = vcmp.lt.s32.totalorder %v11170_v58, 32 }
 0x121   : > { %14129 = vst [vmem:[#allocation7_spill] sm:$0xff] %v11099_v23  ;;  %v957_v27 = vmul.f32 %v948_v22, %v920_v21  ;;  %8763 = vmatprep.mubr.msk.f32.mxu1 %vm1196_vm5, %v11099_v23  ;;  %8786 = vmatprep.mubr.msk.f32.mxu0 %vm1196_vm5, %v11099_v23  ;;  %vm1151_vm0 = vmand %vm1149_vm14, %vm1150_vm15 }
 0x122   : > { %v10315_v52 = vpop.eup %10314  ;;  %v934_v28 = vmul.f32 0.70710677, %v915_v24  ;;  %v924_v49 = vmul.f32 0.5, %v915_v24 }
 0x123   : > { %v949_v30 = vadd.f32 1.0, %v10315_v52  ;;  %v11108_v31 = vadd.f32 %v966_v25, %v957_v27 }
 0x124   : > { %10320 = verf.f32 %v934_v28 }
 0x125   : > { %14130 = vst [vmem:[#allocation8_spill] sm:$0xff] %v11108_v31  ;;  %v958_v33 = vmul.f32 %v949_v30, %v921_v29  ;;  %8764 = vmatmul.mubr.msk.f32.gmra.mrb[6].mxu1 %vm1196_vm5, %v11108_v31  ;;  %8787 = vmatmul.mubr.msk.f32.gmra.mrb[22].mxu0 %vm1196_vm5, %v11108_v31 }
 0x126   : > { %v10317_v34 = vpop.eup %10316 }
 0x127   : > { %v950_v36 = vadd.f32 1.0, %v10317_v34  ;;  %v11117_v37 = vadd.f32 %v967_v32, %v958_v33 }
 0x129   : > { %14131 = vst [vmem:[#allocation9_spill] sm:$0xff] %v11117_v37  ;;  %v959_v39 = vmul.f32 %v950_v36, %v922_v35  ;;  %8766 = vmatprep.mubr.msk.f32.mxu1 %vm1196_vm5, %v11117_v37  ;;  %8789 = vmatprep.mubr.msk.f32.mxu0 %vm1196_vm5, %v11117_v37 }
 0x12a   : > { %v10319_v41 = vpop.eup %10318 }
 0x12b   : > { %v951_v43 = vadd.f32 1.0, %v10319_v41  ;;  %v11126_v45 = vadd.f32 %v968_v38, %v959_v39 }
 0x12d   : > { %14132 = vst [vmem:[#allocation10_spill] sm:$0xff] %v11126_v45  ;;  %v960_v47 = vmul.f32 %v951_v43, %v923_v42  ;;  %8767 = vmatmul.mubr.msk.f32.gmra.mrb[8].mxu1 %vm1196_vm5, %v11126_v45  ;;  %8790 = vmatmul.mubr.msk.f32.gmra.mrb[24].mxu0 %vm1196_vm5, %v11126_v45 }
 0x12e   : > { %v10321_v48 = vpop.eup %10320 }
 0x12f   : > { %v952_v50 = vadd.f32 1.0, %v10321_v48  ;;  %v11135_v53 = vadd.f32 %v969_v46, %v960_v47  ;;  %v11284_v46 = vsel %vm1146_vm13, 1.0, %v14041_v9 }
 0x130   : > { %14137 = vst [vmem:[#allocation15_spill] sm:$0xff] %v11284_v46 }
 0x131   : > { %14133 = vst [vmem:[#allocation11_spill] sm:$0xff] %v11135_v53  ;;  %v961_v55 = vmul.f32 %v952_v50, %v924_v49  ;;  %8769 = vmatprep.mubr.msk.f32.mxu1 %vm1196_vm5, %v11135_v53  ;;  %8792 = vmatprep.mubr.msk.f32.mxu0 %vm1196_vm5, %v11135_v53 }
 0x133   : > { %v11144_v56 = vadd.f32 %v970_v54, %v961_v55 }
 0x135   : > { %14134 = vst [vmem:[#allocation12_spill] sm:$0xff] %v11144_v56  ;;  %8770 = vmatmul.mubr.msk.f32.gmra.mrb[10].mxu1 %vm1196_vm5, %v11144_v56  ;;  %8793 = vmatmul.mubr.msk.f32.gmra.mrb[26].mxu0 %vm1196_vm5, %v11144_v56 }
 0x136   : > { %8803 = vmatprep.mubr.msk.f32.mxu1 %vm1196_vm5, %v11055_v40 }
 0x139   : > { %8804 = vmatmul.mubr.msk.f32.vlgmr.msra.gmra.mrb[12].mxu1 %vm1196_vm5, %v11058_v44 }
 0x13a   : > { %8806 = vmatprep.mubr.msk.f32.mxu1 %vm1196_vm5, %v11075_v62 }
 0x13d   : > { %8807 = vmatmul.mubr.msk.f32.gmra.mrb[14].mxu1 %vm1196_vm5, %v11087_v11 }
 0x13e   : > { %8809 = vmatprep.mubr.msk.f32.mxu1 %vm1196_vm5, %v11099_v23 }
 0x141   : > { %8810 = vmatmul.mubr.msk.f32.gmra.mrb[16].mxu1 %vm1196_vm5, %v11108_v31 }
 0x142   : > { %8812 = vmatprep.mubr.msk.f32.mxu1 %vm1196_vm5, %v11117_v37 }
 0x145   : > { %8813 = vmatmul.mubr.msk.f32.gmra.mrb[18].mxu1 %vm1196_vm5, %v11126_v45 }
 0x146   : > { %8815 = vmatprep.mubr.msk.f32.mxu1 %vm1196_vm5, %v11135_v53 }
 0x149   : > { %8816 = vmatmul.mubr.msk.f32.gmra.mrb[20].mxu1 %vm1196_vm5, %v11144_v56 }
 0x1e8   : > { %v8759_v61 = vpop.f32.mrb[2].mxu1  ;;  %v8782_v63 = vpop.f32.mrb[18].mxu0 }
 0x1e9   : > { %v1442_v2 = vadd.f32 %v8782_v63, %v11178_v59  ;;  %v1305_v51 = vpop.f32.mrb[3].mxu1  ;;  %v1436_v4 = vpop.f32.mrb[19].mxu0  ;;  %v11255_v35 = vadd.f32 %v8759_v61, %v11183_v60  ;;  %v11305_v63 = vld [vmem:[%s14035_s16 + $0x2] ss:$0 sm:$0xff] }
 0x1ea   : > { %v11193_v5 = vadd.f32 %v11183_v60, %v1305_v51  ;;  %v1437_v6 = vadd.f32 %v11178_v59, %v1436_v4 }
 0x1eb   : > { %v11292_v54 = vmul.f32 %v11186_v0, %v11255_v35  ;;  %v11296_v55 = vmul.f32 %v11189_v1, %v11255_v35 }
 0x1ec   : > { %v11196_v7 = vpack.c.bf16 %v1442_v2, %v1437_v6  ;;  %v1616_v8 = vmul.f32 %v11186_v0, %v11193_v5  ;;  %v1942_v10 = vmul.f32 %v11189_v1, %v11193_v5 }
 0x1ee   : > { %9683 = vmatprep.subr.msk.bf16.mxu0 %vm10942_vm6, %v11196_v7  ;;  %8838 = vmatprep.mubr.msk.f32.mxu0 %vm1196_vm5, %v1616_v8 }
 0x1ef   : > { %9713 = vmatprep.subr.msk.bf16.mxu1 %vm10942_vm6, %v11196_v7  ;;  %8873 = vmatprep.mubr.msk.f32.mxu1 %vm1196_vm5, %v1942_v10 }
 0x1f0   : > { %9686 = vmatpush3.bf16.xpose.msk.msra.mxu0 %vm10942_vm6, %v11196_v7  ;;  %9716 = vmatpush3.bf16.xpose.msk.msra.mxu1 %vm10942_vm6, %v11196_v7  ;;  %v8762_v12 = vpop.f32.mrb[4].mxu1  ;;  %v8785_v13 = vpop.f32.mrb[20].mxu0 }
 0x1f1   : > { %v1452_v14 = vadd.f32 %v8785_v13, %v11178_v59  ;;  %v1315_v15 = vpop.f32.mrb[5].mxu1  ;;  %v1446_v16 = vpop.f32.mrb[21].mxu0  ;;  %v11264_v36 = vadd.f32 %v8762_v12, %v11183_v60 }
 0x1f2   : > { %v1447_v17 = vadd.f32 %v11178_v59, %v1446_v16  ;;  %v11267_v38 = vadd.f32 %v11183_v60, %v1315_v15 }
 0x1f3   : > { %v11325_v4 = vmul.f32 %v11189_v1, %v11264_v36 }
 0x1f4   : > { %v11218_v18 = vpack.c.bf16 %v1452_v14, %v1447_v17  ;;  %v11313_v2 = vmul.f32 %v11186_v0, %v11267_v38  ;;  %v11317_v51 = vmul.f32 %v11189_v1, %v11267_v38 }
 0x1f6   : > { %9689 = vmatprep.subr.msk.bf16.mxu0 %vm10942_vm6, %v11218_v18  ;;  %9719 = vmatprep.subr.msk.bf16.mxu1 %vm10942_vm6, %v11218_v18 }
 0x1f8   : > { %9692 = vmatpush3.bf16.xpose.msk.msra.mxu0 %vm10942_vm6, %v11218_v18  ;;  %9722 = vmatpush3.bf16.xpose.msk.msra.mxu1 %vm10942_vm6, %v11218_v18  ;;  %v8765_v19 = vpop.f32.mrb[6].mxu1  ;;  %v8788_v20 = vpop.f32.mrb[22].mxu0 }
 0x1f9   : > { %v1462_v21 = vadd.f32 %v8788_v20, %v11178_v59  ;;  %v1325_v22 = vpop.f32.mrb[7].mxu1  ;;  %v1456_v24 = vpop.f32.mrb[23].mxu0  ;;  %v11272_v39 = vadd.f32 %v8765_v19, %v11183_v60  ;;  %v11355_v19 = vsel %vm1151_vm0, 1.0, %v14041_v9 }
 0x1fa   : > { %v1457_v25 = vadd.f32 %v11178_v59, %v1456_v24  ;;  %v11275_v41 = vadd.f32 %v11183_v60, %v1325_v22  ;;  %14138 = vst [vmem:[#allocation16_spill] sm:$0xff] %v11355_v19 }
 0x1fb   : > { %v11335_v10 = vmul.f32 %v11186_v0, %v11272_v39  ;;  %v11339_v12 = vmul.f32 %v11189_v1, %v11272_v39 }
 0x1fc   : > { %v11234_v27 = vpack.c.bf16 %v1462_v21, %v1457_v25  ;;  %v11331_v8 = vmul.f32 %v11186_v0, %v11275_v41  ;;  %v11344_v15 = vmul.f32 %v11189_v1, %v11275_v41 }
 0x1fe   : > { %9695 = vmatprep.subr.msk.bf16.mxu0 %vm10942_vm6, %v11234_v27  ;;  %9725 = vmatprep.subr.msk.bf16.mxu1 %vm10942_vm6, %v11234_v27 }
 0x200   : > { %9698 = vmatpush3.bf16.xpose.msk.msra.mxu0 %vm10942_vm6, %v11234_v27  ;;  %9728 = vmatpush3.bf16.xpose.msk.msra.mxu1 %vm10942_vm6, %v11234_v27  ;;  %v8768_v52 = vpop.f32.mrb[8].mxu1  ;;  %v8791_v28 = vpop.f32.mrb[24].mxu0 }
 0x201   : > { %v1472_v29 = vadd.f32 %v8791_v28, %v11178_v59  ;;  %v1335_v30 = vpop.f32.mrb[9].mxu1  ;;  %v1466_v32 = vpop.f32.mrb[25].mxu0  ;;  %v11287_v47 = vadd.f32 %v8768_v52, %v11183_v60 }
 0x202   : > { %v1467_v33 = vadd.f32 %v11178_v59, %v1466_v32  ;;  %v11299_v57 = vadd.f32 %v11183_v60, %v1335_v30 }
 0x203   : > { %v11348_v16 = vmul.f32 %v11186_v0, %v11287_v47  ;;  %v11352_v17 = vmul.f32 %v11189_v1, %v11287_v47 }
 0x204   : > { %v11252_v34 = vpack.c.bf16 %v1472_v29, %v1467_v33  ;;  %v11369_v22 = vmul.f32 %v11186_v0, %v11299_v57 }
 0x206   : > { %9701 = vmatprep.subr.msk.bf16.mxu0 %vm10942_vm6, %v11252_v34  ;;  %9731 = vmatprep.subr.msk.bf16.mxu1 %vm10942_vm6, %v11252_v34 }
 0x208   : > { %9704 = vmatpush3.bf16.xpose.msk.msra.mxu0 %vm10942_vm6, %v11252_v34  ;;  %9734 = vmatpush3.bf16.xpose.msk.msra.mxu1 %vm10942_vm6, %v11252_v34  ;;  %v8771_v42 = vpop.f32.mrb[10].mxu1  ;;  %v8794_v43 = vpop.f32.mrb[26].mxu0 }
 0x209   : > { %v1482_v48 = vadd.f32 %v8794_v43, %v11178_v59  ;;  %v1345_v49 = vpop.f32.mrb[11].mxu1  ;;  %v1476_v50 = vpop.f32.mrb[27].mxu0  ;;  %v11385_v43 = vadd.f32 %v8771_v42, %v11183_v60 }
 0x20a   : > { %v1477_v61 = vadd.f32 %v11178_v59, %v1476_v50  ;;  %v11321_v59 = vmul.f32 %v11186_v0, %v11264_v36  ;;  %v11358_v20 = vadd.f32 %v11183_v60, %v1345_v49  ;;  %v11393_v50 = vmul.f32 %v11189_v1, %v11299_v57 }
 0x20c   : > { %v11327_v6 = vpack.c.bf16 %v1482_v48, %v1477_v61  ;;  %v8805_v58 = vpop.f32.mrb[12].mxu1 }
 0x20d   : > { %v1573_v13 = vadd.f32 %v8805_v58, %v11305_v63  ;;  %v1567_v14 = vpop.f32.mrb[13].mxu1 }
 0x20e   : > { %v1568_v21 = vadd.f32 %v11305_v63, %v1567_v14  ;;  %9707 = vmatprep.subr.msk.bf16.mxu0 %vm10942_vm6, %v11327_v6  ;;  %9737 = vmatprep.subr.msk.bf16.mxu1 %vm10942_vm6, %v11327_v6 }
 0x20f   : > { %v2228_v24 = vmul.f32 %v11189_v1, %v1573_v13  ;;  %v1933_v25 = vmul.f32 %v11186_v0, %v1573_v13  ;;  %v2813_v52 = vmul.f32 %v11284_v46, %v1573_v13  ;;  %v3263_v28 = vmul.f32 %v11355_v19, %v1573_v13 }
 0x210   : > { %9710 = vmatpush3.bf16.xpose.msk.msra.mxu0 %vm10942_vm6, %v11327_v6  ;;  %9740 = vmatpush3.bf16.xpose.msk.msra.mxu1 %vm10942_vm6, %v11327_v6  ;;  %v8808_v29 = vpop.f32.mrb[14].mxu1  ;;  %v2227_v30 = vmul.f32 %v11189_v1, %v1568_v21  ;;  %v1932_v32 = vmul.f32 %v11186_v0, %v1568_v21  ;;  %v2812_v33 = vmul.f32 %v11284_v46, %v1568_v21 }
 0x211   : > { %v1583_v48 = vadd.f32 %v8808_v29, %v11305_v63  ;;  %9783 = vmatprep.subr.msk.bf16.mxu1 %vm10942_vm6, %v11196_v7  ;;  %v1577_v49 = vpop.f32.mrb[15].mxu1  ;;  %v3262_v61 = vmul.f32 %v11355_v19, %v1568_v21  ;;  %v11409_v21 = vmul.f32 %v11186_v0, %v11358_v20 }
 0x212   : > { %v1578_v58 = vadd.f32 %v11305_v63, %v1577_v49  ;;  %v9741_v13 = vpack.c.bf16 %v2228_v24, %v2227_v30  ;;  %v11397_v14 = vpack.c.bf16 %v1933_v25, %v1932_v32  ;;  %v11399_v60 = vpack.c.bf16 %v2813_v52, %v2812_v33 }
 0x213   : > { %v2230_v42 = vmul.f32 %v11189_v1, %v1583_v48  ;;  %v1935_v29 = vmul.f32 %v11186_v0, %v1583_v48  ;;  %v2815_v9 = vmul.f32 %v11284_v46, %v1583_v48  ;;  %v11404_v3 = vpack.c.bf16 %v3263_v28, %v3262_v61 }
 0x214   : > { %v8811_v53 = vpop.f32.mrb[16].mxu1  ;;  %9742 = vmatprep.subr.bf16.mxu0 %v9741_v13  ;;  %v2229_v56 = vmul.f32 %v11189_v1, %v1578_v58  ;;  %v1934_v24 = vmul.f32 %v11186_v0, %v1578_v58  ;;  %v2814_v25 = vmul.f32 %v11284_v46, %v1578_v58  ;;  %v11416_v32 = vmul.f32 %v11189_v1, %v11358_v20 }
 0x215   : > { %14139 = vst [vmem:[#allocation17_spill] sm:$0xff] %v11404_v3  ;;  %v1593_v52 = vadd.f32 %v8811_v53, %v11305_v63  ;;  %v1587_v30 = vpop.f32.mrb[17].mxu1  ;;  %v3264_v28 = vmul.f32 %v11355_v19, %v1578_v58  ;;  %v3265_v33 = vmul.f32 %v11355_v19, %v1583_v48 }
 0x216   : > { %v1588_v49 = vadd.f32 %v11305_v63, %v1587_v30  ;;  %v9745_v61 = vpack.c.bf16 %v2230_v42, %v2229_v56  ;;  %v11421_v37 = vpack.c.bf16 %v1935_v29, %v1934_v24  ;;  %v11423_v45 = vpack.c.bf16 %v2815_v9, %v2814_v25 }
 0x217   : > { %8839 = vmatmul.mubr.msk.f32.vlgmr.msra.gmra.mrb[28].mxu0 %vm1196_vm5, %v11292_v54  ;;  %8874 = vmatmul.mubr.msk.f32.vlgmr.msra.gmra.mrb[22].mxu1 %vm1196_vm5, %v11296_v55  ;;  %v2232_v53 = vmul.f32 %v11189_v1, %v1593_v52  ;;  %v1937_v23 = vmul.f32 %v11186_v0, %v1593_v52  ;;  %v2817_v58 = vmul.f32 %v11284_v46, %v1593_v52 }
 0x218   : > { %8841 = vmatprep.mubr.msk.f32.mxu0 %vm1196_vm5, %v11313_v2  ;;  %8876 = vmatprep.mubr.msk.f32.mxu1 %vm1196_vm5, %v11317_v51  ;;  %v8814_v9 = vpop.f32.mrb[18].mxu1  ;;  %v2231_v56 = vmul.f32 %v11189_v1, %v1588_v49  ;;  %v1936_v54 = vmul.f32 %v11186_v0, %v1588_v49  ;;  %v2816_v48 = vmul.f32 %v11284_v46, %v1588_v49 }
 0x219   : > { %9744 = vmatpush3.bf16.msra.mxu0 %v9741_v13  ;;  %9786 = vmatpush3.bf16.xpose.msk.msra.mxu1 %vm10942_vm6, %v11196_v7  ;;  %v1603_v55 = vadd.f32 %v8814_v9, %v11305_v63  ;;  %v1597_v42 = vpop.f32.mrb[19].mxu1  ;;  %v11443_v29 = vpack.c.bf16 %v3265_v33, %v3264_v28  ;;  %v3266_v2 = vmul.f32 %v11355_v19, %v1588_v49 }
 0x21a   : > { %9746 = vmatprep.subr.bf16.mxu0 %v9745_v61  ;;  %9789 = vmatprep.subr.msk.bf16.mxu1 %vm10942_vm6, %v11218_v18  ;;  %v1598_v51 = vadd.f32 %v11305_v63, %v1597_v42  ;;  %v9749_v24 = vpack.c.bf16 %v2232_v53, %v2231_v56  ;;  %v11450_v13 = vpack.c.bf16 %v1937_v23, %v1936_v54 }
 0x21b   : > { %14140 = vst [vmem:[#allocation18_spill] sm:$0xff] %v11443_v29  ;;  %8842 = vmatmul.mubr.msk.f32.gmra.mrb[30].mxu0 %vm1196_vm5, %v11321_v59  ;;  %8877 = vmatmul.mubr.msk.f32.gmra.mrb[24].mxu1 %vm1196_vm5, %v11325_v4  ;;  %v2234_v25 = vmul.f32 %v11189_v1, %v1603_v55  ;;  %v1939_v30 = vmul.f32 %v11186_v0, %v1603_v55 }
 0x21c   : > { %v11458_v28 = vpack.c.bf16 %v2817_v58, %v2816_v48  ;;  %8844 = vmatprep.mubr.msk.f32.mxu0 %vm1196_vm5, %v11331_v8  ;;  %8879 = vmatprep.mubr.msk.f32.mxu1 %vm1196_vm5, %v11344_v15  ;;  %v8817_v23 = vpop.f32.mrb[20].mxu1  ;;  %v2233_v33 = vmul.f32 %v11189_v1, %v1598_v51  ;;  %v1938_v59 = vmul.f32 %v11186_v0, %v1598_v51 }
 0x21d   : > { %v2818_v49 = vmul.f32 %v11284_v46, %v1598_v51  ;;  %9748 = vmatpush3.bf16.msra.mxu0 %v9745_v61  ;;  %v1613_v4 = vadd.f32 %v8817_v23, %v11305_v63  ;;  %v1607_v53 = vpop.f32.mrb[21].mxu1  ;;  %v2819_v58 = vmul.f32 %v11284_v46, %v1603_v55  ;;  %v3267_v9 = vmul.f32 %v11355_v19, %v1593_v52 }
 0x21e   : > { %v3268_v8 = vmul.f32 %v11355_v19, %v1598_v51  ;;  %9750 = vmatprep.subr.bf16.mxu0 %v9749_v24  ;;  %v1608_v15 = vadd.f32 %v11305_v63, %v1607_v53  ;;  %v9753_v56 = vpack.c.bf16 %v2234_v25, %v2233_v33  ;;  %v11472_v54 = vpack.c.bf16 %v1939_v30, %v1938_v59 }
 0x21f   : > { %v3269_v48 = vmul.f32 %v11355_v19, %v1603_v55  ;;  %8845 = vmatmul.mubr.msk.f32.gmra.mrb[32].mxu0 %vm1196_vm5, %v11335_v10  ;;  %8880 = vmatmul.mubr.msk.f32.gmra.mrb[26].mxu1 %vm1196_vm5, %v11339_v12  ;;  %v2236_v61 = vmul.f32 %v11189_v1, %v1613_v4  ;;  %v1941_v52 = vmul.f32 %v11186_v0, %v1613_v4 }
 0x220   : > { %v11481_v42 = vpack.c.bf16 %v2819_v58, %v2818_v49  ;;  %8847 = vmatprep.mubr.msk.f32.mxu0 %vm1196_vm5, %v11369_v22  ;;  %8882 = vmatprep.mubr.msk.f32.mxu1 %vm1196_vm5, %v11393_v50  ;;  %v2235_v63 = vmul.f32 %v11189_v1, %v1608_v15  ;;  %v1940_v55 = vmul.f32 %v11186_v0, %v1608_v15 }
 0x221   : > { %v2820_v10 = vmul.f32 %v11284_v46, %v1608_v15  ;;  %9752 = vmatpush3.bf16.msra.mxu0 %v9749_v24  ;;  %9792 = vmatpush3.bf16.xpose.msk.msra.mxu1 %vm10942_vm6, %v11218_v18  ;;  %v2821_v12 = vmul.f32 %v11284_v46, %v1613_v4  ;;  %v11494_v51 = vpack.c.bf16 %v3267_v9, %v3266_v2 }
 0x222   : > { %14141 = vst [vmem:[#allocation19_spill] sm:$0xff] %v11481_v42  ;;  %v11496_v25 = vpack.c.bf16 %v3269_v48, %v3268_v8  ;;  %9754 = vmatprep.subr.bf16.mxu0 %v9753_v56  ;;  %9795 = vmatprep.subr.msk.bf16.mxu1 %vm10942_vm6, %v11234_v27  ;;  %v9757_v22 = vpack.c.bf16 %v2236_v61, %v2235_v63 }
 0x223   : > { %14142 = vst [vmem:[#allocation20_spill] sm:$0xff] %v11494_v51  ;;  %v11501_v50 = vpack.c.bf16 %v1941_v52, %v1940_v55  ;;  %v3270_v24 = vmul.f32 %v11355_v19, %v1608_v15  ;;  %8848 = vmatmul.mubr.msk.f32.gmra.mrb[34].mxu0 %vm1196_vm5, %v11348_v16  ;;  %8883 = vmatmul.mubr.msk.f32.gmra.mrb[28].mxu1 %vm1196_vm5, %v11352_v17  ;;  %v1091_v55 = vld [vmem:[%s14028_s9 + $0x28] sm:$0xff] }
 0x224   : > { %14143 = vst [vmem:[#allocation21_spill] sm:$0xff] %v11496_v25  ;;  %v11508_v2 = vpack.c.bf16 %v2821_v12, %v2820_v10  ;;  %v3271_v30 = vmul.f32 %v11355_v19, %v1613_v4  ;;  %8850 = vmatprep.mubr.msk.f32.mxu0 %vm1196_vm5, %v11409_v21  ;;  %8885 = vmatprep.mubr.msk.f32.mxu1 %vm1196_vm5, %v11416_v32  ;;  %v1090_v10 = vld [vmem:[%s14028_s9 + $0x20] sm:$0xff] }
 0x225   : > { %9756 = vmatpush3.bf16.msra.mxu0 %v9753_v56  ;;  %v1625_v23 = vmul.f32 %v11186_v0, %v11385_v43  ;;  %v1951_v16 = vmul.f32 %v11189_v1, %v11385_v43  ;;  %v2527_v17 = vmul.f32 %v11284_v46, %v11193_v5  ;;  %v2528_v21 = vmul.f32 %v11284_v46, %v11255_v35  ;;  %v1088_v56 = vld [vmem:[%s14028_s9 + $0x10] sm:$0xff] }
 0x226   : > { %14144 = vst [vmem:[#allocation22_spill] sm:$0xff] %v11508_v2  ;;  %v11519_v33 = vpack.c.bf16 %v3271_v30, %v3270_v24  ;;  %9758 = vmatprep.subr.bf16.mxu0 %v9757_v22  ;;  %v2529_v32 = vmul.f32 %v11284_v46, %v11267_v38  ;;  %v2530_v59 = vmul.f32 %v11284_v46, %v11264_v36 }
 0x227   : > { %8851 = vmatmul.mubr.msk.f32.gmra.mrb[36].mxu0 %vm1196_vm5, %v1625_v23  ;;  %8886 = vmatmul.mubr.msk.f32.gmra.mrb[30].mxu1 %vm1196_vm5, %v1951_v16  ;;  %v2531_v49 = vmul.f32 %v11284_v46, %v11275_v41  ;;  %v2532_v4 = vmul.f32 %v11284_v46, %v11272_v39  ;;  %v2534_v53 = vmul.f32 %v11284_v46, %v11287_v47 }
 0x228   : > { %14145 = vst [vmem:[#allocation23_spill] sm:$0xff] %v11519_v33  ;;  %8978 = vmatprep.mubr.msk.f32.mxu1 %vm1196_vm5, %v2527_v17  ;;  %v2535_v58 = vmul.f32 %v11284_v46, %v11358_v20  ;;  %v2536_v9 = vmul.f32 %v11284_v46, %v11385_v43  ;;  %v2981_v8 = vmul.f32 %v11355_v19, %v11275_v41 }
 0x229   : > { %9760 = vmatpush3.bf16.msra.mxu0 %v9757_v22  ;;  %9798 = vmatpush3.bf16.xpose.msk.msra.mxu1 %vm10942_vm6, %v11234_v27  ;;  %v2985_v41 = vmul.f32 %v11355_v19, %v11358_v20 }
 0x22a   : > { %9762 = vmatprep.subr.bf16.mxu0 %v11397_v14  ;;  %9801 = vmatprep.subr.msk.bf16.mxu1 %vm10942_vm6, %v11252_v34 }
 0x231   : > { %9804 = vmatpush3.bf16.xpose.msk.msra.mxu1 %vm10942_vm6, %v11252_v34 }
 0x232   : > { %9807 = vmatprep.subr.msk.bf16.mxu1 %vm10942_vm6, %v11327_v6 }
 0x239   : > { %9810 = vmatpush3.bf16.xpose.msk.msra.mxu1 %vm10942_vm6, %v11327_v6 }
 0x23a   : > { %9833 = vmatprep.subr.msk.bf16.mxu1 %vm10942_vm6, %v11196_v7 }
 0x240   : > { %8979 = vmatmul.mubr.msk.f32.vlgmr.msra.gmra.mrb[32].mxu1 %vm1196_vm5, %v2528_v21 }
 0x241   : > { %8981 = vmatprep.mubr.msk.f32.mxu1 %vm1196_vm5, %v2529_v32  ;;  %9836 = vmatpush3.bf16.xpose.msk.msra.mxu1 %vm10942_vm6, %v11196_v7  ;;  %v2533_v7 = vmul.f32 %v11284_v46, %v11299_v57  ;;  %v1093_v32 = vld [vmem:[%s14028_s9 + $0x38] sm:$0xff] }
 0x242   : > { %9839 = vmatprep.subr.msk.bf16.mxu1 %vm10942_vm6, %v11218_v18 }
 0x244   : > { %8982 = vmatmul.mubr.msk.f32.gmra.mrb[34].mxu1 %vm1196_vm5, %v2530_v59 }
 0x245   : > { %8984 = vmatprep.mubr.msk.f32.mxu1 %vm1196_vm5, %v2531_v49 }
 0x248   : > { %8985 = vmatmul.mubr.msk.f32.gmra.mrb[36].mxu1 %vm1196_vm5, %v2532_v4 }
 0x249   : > { %8987 = vmatprep.mubr.msk.f32.mxu1 %vm1196_vm5, %v2533_v7  ;;  %9842 = vmatpush3.bf16.xpose.msk.msra.mxu1 %vm10942_vm6, %v11218_v18  ;;  %v2977_v18 = vmul.f32 %v11355_v19, %v11193_v5  ;;  %v2978_v5 = vmul.f32 %v11355_v19, %v11255_v35  ;;  %v2982_v35 = vmul.f32 %v11355_v19, %v11272_v39  ;;  %v1092_v7 = vld [vmem:[%s14028_s9 + $0x30] sm:$0xff] }
 0x24a   : > { %9845 = vmatprep.subr.msk.bf16.mxu1 %vm10942_vm6, %v11234_v27  ;;  %v2986_v39 = vmul.f32 %v11355_v19, %v11385_v43  ;;  %v1089_v43 = vld [vmem:[%s14028_s9 + $0x18] sm:$0xff] }
 0x24c   : > { %8988 = vmatmul.mubr.msk.f32.gmra.mrb[38].mxu1 %vm1196_vm5, %v2534_v53 }
 0x24d   : > { %8990 = vmatprep.mubr.msk.f32.mxu1 %vm1196_vm5, %v2535_v58 }
 0x250   : > { %8991 = vmatmul.mubr.msk.f32.gmra.mrb[40].mxu1 %vm1196_vm5, %v2536_v9 }
 0x251   : > { %9848 = vmatpush3.bf16.xpose.msk.msra.mxu1 %vm10942_vm6, %v11234_v27  ;;  %9048 = vmatprep.mubr.msk.f32.mxu1 %vm1196_vm5, %v2977_v18  ;;  %v2979_v27 = vmul.f32 %v11355_v19, %v11267_v38  ;;  %v2983_v38 = vmul.f32 %v11355_v19, %v11299_v57  ;;  %v7681_v57 = vld [vmem:[%s11633_s23] ss:$0 sm:$0xff] }
 0x252   : > { %9851 = vmatprep.subr.msk.bf16.mxu1 %vm10942_vm6, %v11252_v34  ;;  %v1105_v61 = vmul.f32 %v7681_v57, %v1089_v43  ;;  %v1104_v63 = vmul.f32 %v7681_v57, %v1088_v56  ;;  %v1107_v24 = vmul.f32 %v7681_v57, %v1091_v55  ;;  %v1106_v21 = vmul.f32 %v7681_v57, %v1090_v10 }
 0x254   : > { %v7685_v22 = vadd.f32 -1.0, %v1105_v61  ;;  %v7684_v17 = vadd.f32 -1.0, %v1104_v63  ;;  %v7687_v18 = vadd.f32 -1.0, %v1107_v24 }
 0x256   : > { %v11671_v9 = vmul.f32 1e+30, %v7685_v22  ;;  %v11693_v61 = vmul.f32 1e+30, %v7687_v18 }
 0x258   : > { %14149 = vst [vmem:[#allocation26_spill] sm:$0xff] %v11671_v9  ;;  %14151 = vst [vmem:[#allocation28_spill] sm:$0xff] %v11693_v61 }
 0x259   : > { %9854 = vmatpush3.bf16.xpose.msk.msra.mxu1 %vm10942_vm6, %v11252_v34  ;;  %v2980_v34 = vmul.f32 %v11355_v19, %v11264_v36  ;;  %v2984_v36 = vmul.f32 %v11355_v19, %v11287_v47  ;;  %v1087_v47 = vld [vmem:[%s14028_s9 + $0x8] sm:$0xff] }
 0x25a   : > { %9857 = vmatprep.subr.msk.bf16.mxu1 %vm10942_vm6, %v11327_v6  ;;  %v1103_v20 = vmul.f32 %v7681_v57, %v1087_v47 }
 0x25c   : > { %v7683_v48 = vadd.f32 -1.0, %v1103_v20  ;;  %v1094_v20 = vld [vmem:[%s14028_s9 + $0x40] sm:$0xff] }
 0x25e   : > { %v11654_v12 = vmul.f32 1e+30, %v7683_v48 }
 0x260   : > { %14147 = vst [vmem:[#allocation24_spill] sm:$0xff] %v11654_v12 }
 0x261   : > { %9860 = vmatpush3.bf16.xpose.msk.msra.mxu1 %vm10942_vm6, %v11327_v6  ;;  %v1086_v6 = vld [vmem:[%s14028_s9] sm:$0xff] }
 0x262   : > { %v1102_v15 = vmul.f32 %v7681_v57, %v1086_v6 }
 0x264   : > { %v7682_v52 = vadd.f32 -1.0, %v1102_v15 }
 0x266   : > { %v11658_v16 = vmul.f32 1e+30, %v7682_v52 }
 0x268   : > { %9049 = vmatmul.mubr.msk.f32.vlgmr.msra.gmra.mrb[42].mxu1 %vm1196_vm5, %v2978_v5  ;;  %14148 = vst [vmem:[#allocation25_spill] sm:$0xff] %v11658_v16  ;;  %v1109_v5 = vmul.f32 %v7681_v57, %v1093_v32 }
 0x269   : > { %9051 = vmatprep.mubr.msk.f32.mxu1 %vm1196_vm5, %v2979_v27 }
 0x26a   : > { %v7689_v52 = vadd.f32 -1.0, %v1109_v5 }
 0x26c   : > { %9052 = vmatmul.mubr.msk.f32.gmra.mrb[44].mxu1 %vm1196_vm5, %v2980_v34  ;;  %v11707_v5 = vmul.f32 1e+30, %v7689_v52 }
 0x26d   : > { %9054 = vmatprep.mubr.msk.f32.mxu1 %vm1196_vm5, %v2981_v8 }
 0x26e   : > { %14153 = vst [vmem:[#allocation30_spill] sm:$0xff] %v11707_v5 }
 0x270   : > { %9055 = vmatmul.mubr.msk.f32.gmra.mrb[46].mxu1 %vm1196_vm5, %v2982_v35  ;;  %v11678_v35 = vmul.f32 1e+30, %v7684_v17  ;;  %v1110_v17 = vmul.f32 %v7681_v57, %v1094_v20 }
 0x271   : > { %9057 = vmatprep.mubr.msk.f32.mxu1 %vm1196_vm5, %v2983_v38  ;;  %v7686_v38 = vadd.f32 -1.0, %v1106_v21 }
 0x272   : > { %14150 = vst [vmem:[#allocation27_spill] sm:$0xff] %v11678_v35 }
 0x273   : > { %v11698_v24 = vmul.f32 1e+30, %v7686_v38 }
 0x274   : > { %9058 = vmatmul.mubr.msk.f32.gmra.mrb[48].mxu1 %vm1196_vm5, %v2984_v36  ;;  %v1108_v36 = vmul.f32 %v7681_v57, %v1092_v7 }
 0x275   : > { %9060 = vmatprep.mubr.msk.f32.mxu1 %vm1196_vm5, %v2985_v41  ;;  %v1095_v41 = vld [vmem:[%s14028_s9 + $0x48] sm:$0xff]  ;;  %14152 = vst [vmem:[#allocation29_spill] sm:$0xff] %v11698_v24 }
 0x276   : > { %v1111_v63 = vmul.f32 %v7681_v57, %v1095_v41 }
 0x278   : > { %9061 = vmatmul.mubr.msk.f32.gmra.mrb[50].mxu1 %vm1196_vm5, %v2986_v39 }
 0x2ea   : > { %v11656_v30 = vpop.f32.mrb[28].mxu0  ;;  %v8875_v23 = vpop.f32.mrb[22].mxu1 }
 0x2eb   : > { %v2098_v59 = vmul.f32 0.35355338, %v8875_v23  ;;  %v11663_v49 = vpop.f32.mrb[29].mxu0  ;;  %v2048_v4 = vpop.f32.mrb[23].mxu1  ;;  %v7688_v23 = vadd.f32 -1.0, %v1108_v36 }
 0x2ec   : > { %v2097_v53 = vmul.f32 0.35355338, %v2048_v4 }
 0x2ed   : > { %v11669_v58 = vadd.f32 %v2098_v59, %v11654_v12  ;;  %v11712_v41 = vmul.f32 1e+30, %v7688_v23 }
 0x2ee   : > { %v11673_v27 = vpop.f32.mrb[30].mxu0  ;;  %v8878_v34 = vpop.f32.mrb[24].mxu1  ;;  %v11676_v8 = vadd.f32 %v2097_v53, %v11658_v16 }
 0x2ef   : > { %v2100_v39 = vmul.f32 0.35355338, %v8878_v34  ;;  %v1762_v47 = vpop.f32.mrb[31].mxu0  ;;  %v2058_v6 = vpop.f32.mrb[25].mxu1  ;;  %v2120_v43 = vsel %vm1821_vm1, %v11669_v58, -inf  ;;  %v7691_v34 = vadd.f32 -1.0, %v1111_v63 }
 0x2f0   : > { %v2099_v15 = vmul.f32 0.35355338, %v2058_v6  ;;  %v2117_v56 = vsel %vm1821_vm1, %v11676_v8, -inf  ;;  %2121 = vmax.xlane.f32.xlu0 %v2120_v43  ;;  %14154 = vst [vmem:[#allocation31_spill] sm:$0xff] %v11712_v41 }
 0x2f1   : > { %2118 = vmax.xlane.f32.xlu1 %v2117_v56  ;;  %v11691_v48 = vadd.f32 %v2100_v39, %v11671_v9  ;;  %v7690_v39 = vadd.f32 -1.0, %v1110_v17 }
 0x2f2   : > { %v8846_v55 = vpop.f32.mrb[32].mxu0  ;;  %v8881_v10 = vpop.f32.mrb[26].mxu1  ;;  %v11696_v22 = vadd.f32 %v2099_v15, %v11678_v35 }
 0x2f3   : > { %v2102_v21 = vmul.f32 0.35355338, %v8881_v10  ;;  %v1772_v32 = vpop.f32.mrb[33].mxu0  ;;  %v2068_v59 = vpop.f32.mrb[27].mxu1  ;;  %v2126_v7 = vsel %vm1821_vm1, %v11691_v48, -inf }
 0x2f4   : > { %v2101_v4 = vmul.f32 0.35355338, %v2068_v59  ;;  %v2123_v53 = vsel %vm1821_vm1, %v11696_v22, -inf  ;;  %v11721_v10 = vmul.f32 1e+30, %v7691_v34 }
 0x2f5   : > { %2127 = vmax.xlane.f32.xlu1 %v2126_v7  ;;  %2124 = vmax.xlane.f32.xlu0 %v2123_v53  ;;  %v11705_v18 = vadd.f32 %v2102_v21, %v11693_v61  ;;  %v11726_v59 = vmul.f32 1e+30, %v7690_v39 }
 0x2f6   : > { %v8849_v38 = vpop.f32.mrb[34].mxu0  ;;  %v8884_v57 = vpop.f32.mrb[28].mxu1  ;;  %v11710_v36 = vadd.f32 %v2101_v4, %v11698_v24  ;;  %v1802_v4 = vmul.f32 0.35355338, %v11656_v30 }
 0x2f7   : > { %v2104_v6 = vmul.f32 0.35355338, %v8884_v57  ;;  %v1782_v20 = vpop.f32.mrb[35].mxu0  ;;  %v2078_v15 = vpop.f32.mrb[29].mxu1  ;;  %v2132_v56 = vsel %vm1821_vm1, %v11705_v18, -inf  ;;  %14155 = vst [vmem:[#allocation32_spill] sm:$0xff] %v11726_v59 }
 0x2f8   : > { %v2103_v43 = vmul.f32 0.35355338, %v2078_v15  ;;  %v2129_v52 = vsel %vm1821_vm1, %v11710_v36, -inf  ;;  %v1801_v15 = vmul.f32 0.35355338, %v11663_v49  ;;  %v11743_v49 = vadd.f32 %v1802_v4, %v11654_v12 }
 0x2f9   : > { %2133 = vmax.xlane.f32.xlu1 %v2132_v56  ;;  %2130 = vmax.xlane.f32.xlu0 %v2129_v52  ;;  %v11719_v63 = vadd.f32 %v2104_v6, %v11707_v5  ;;  %v1804_v52 = vmul.f32 0.35355338, %v11673_v27 }
 0x2fa   : > { %v8852_v23 = vpop.f32.mrb[36].mxu0  ;;  %v8887_v21 = vpop.f32.mrb[30].mxu1  ;;  %v11724_v17 = vadd.f32 %v2103_v43, %v11712_v41 }
 0x2fb   : > { %v2106_v7 = vmul.f32 0.35355338, %v8887_v21  ;;  %v1792_v53 = vpop.f32.mrb[37].mxu0  ;;  %v2088_v57 = vpop.f32.mrb[31].mxu1  ;;  %v2138_v6 = vsel %vm1821_vm1, %v11719_v63, -inf  ;;  %v11756_v19 = vadd.f32 %v1804_v52, %v11671_v9 }
 0x2fc   : > { %v2105_v56 = vmul.f32 0.35355338, %v2088_v57  ;;  %v2135_v34 = vsel %vm1821_vm1, %v11724_v17, -inf  ;;  %v1803_v21 = vmul.f32 0.35355338, %v1762_v47 }
 0x2fd   : > { %2139 = vmax.xlane.f32.xlu1 %v2138_v6  ;;  %2136 = vmax.xlane.f32.xlu0 %v2135_v34  ;;  %v11735_v43 = vadd.f32 %v2106_v7, %v11721_v10  ;;  %v11749_v6 = vadd.f32 %v1801_v15, %v11658_v16  ;;  %v1806_v7 = vmul.f32 0.35355338, %v8846_v55  ;;  %v1825_v34 = vsel %vm1821_vm1, %v11743_v49, -inf }
 0x2fe   : > { %v11738_v39 = vadd.f32 %v2105_v56, %v11726_v59  ;;  %v1805_v56 = vmul.f32 0.35355338, %v1772_v32  ;;  %v11759_v27 = vadd.f32 %v1803_v21, %v11678_v35  ;;  %v1808_v32 = vmul.f32 0.35355338, %v8849_v38 }
 0x2ff   : > { %v2144_v30 = vsel %vm1821_vm1, %v11735_v43, -inf  ;;  %v1822_v4 = vsel %vm1821_vm1, %v11749_v6, -inf  ;;  %v11762_v47 = vadd.f32 %v1806_v7, %v11693_v61  ;;  %v1807_v15 = vmul.f32 0.35355338, %v1782_v20 }
 0x300   : > { %v2141_v57 = vsel %vm1821_vm1, %v11738_v39, -inf  ;;  %v11765_v55 = vadd.f32 %v1805_v56, %v11698_v24  ;;  %v1828_v52 = vsel %vm1821_vm1, %v11759_v27, -inf  ;;  %v1810_v7 = vmul.f32 0.35355338, %v8852_v23 }
 0x301   : > { %2145 = vmax.xlane.f32.xlu1 %v2144_v30  ;;  %2142 = vmax.xlane.f32.xlu0 %v2141_v57  ;;  %v1831_v30 = vsel %vm1821_vm1, %v11756_v19, -inf  ;;  %v1837_v21 = vsel %vm1821_vm1, %v11762_v47, -inf  ;;  %v11776_v56 = vadd.f32 %v1808_v32, %v11707_v5  ;;  %v11779_v38 = vadd.f32 %v1807_v15, %v11712_v41 }
 0x302   : > { %v1834_v57 = vsel %vm1821_vm1, %v11765_v55, -inf }
 0x303   : > { %v1843_v20 = vsel %vm1821_vm1, %v11776_v56, -inf }
 0x305   : > { %1826 = vmax.xlane.f32.xlu1 %v1825_v34  ;;  %1823 = vmax.xlane.f32.xlu0 %v1822_v4  ;;  %v1809_v34 = vmul.f32 0.35355338, %v1792_v53  ;;  %v1840_v4 = vsel %vm1821_vm1, %v11779_v38, -inf }
 0x307   : > { %v11789_v23 = vadd.f32 %v1809_v34, %v11726_v59 }
 0x309   : > { %1832 = vmax.xlane.f32.xlu1 %v1831_v30  ;;  %1829 = vmax.xlane.f32.xlu0 %v1828_v52  ;;  %v11786_v30 = vadd.f32 %v1810_v7, %v11721_v10 }
 0x30b   : > { %v1849_v52 = vsel %vm1821_vm1, %v11786_v30, -inf }
 0x30d   : > { %1838 = vmax.xlane.f32.xlu1 %v1837_v21  ;;  %1835 = vmax.xlane.f32.xlu0 %v1834_v57  ;;  %v1846_v21 = vsel %vm1821_vm1, %v11789_v23, -inf }
 0x311   : > { %1844 = vmax.xlane.f32.xlu1 %v1843_v20  ;;  %1841 = vmax.xlane.f32.xlu0 %v1840_v4 }
 0x313   : > { %v8980_v53 = vpop.f32.mrb[32].mxu1 }
 0x314   : > { %v2683_v32 = vmul.f32 0.35355338, %v8980_v53  ;;  %v2633_v15 = vpop.f32.mrb[33].mxu1 }
 0x315   : > { %v2682_v57 = vmul.f32 0.35355338, %v2633_v15  ;;  %1850 = vmax.xlane.f32.xlu1 %v1849_v52  ;;  %1847 = vmax.xlane.f32.xlu0 %v1846_v21 }
 0x316   : > { %v11796_v7 = vadd.f32 %v2683_v32, %v11654_v12 }
 0x317   : > { %v8983_v46 = vpop.f32.mrb[34].mxu1  ;;  %v11799_v34 = vadd.f32 %v2682_v57, %v11658_v16 }
 0x318   : > { %v2685_v20 = vmul.f32 0.35355338, %v8983_v46  ;;  %v2643_v4 = vpop.f32.mrb[35].mxu1  ;;  %v2705_v53 = vsel %vm1821_vm1, %v11796_v7, -inf }
 0x319   : > { %v2684_v1 = vmul.f32 0.35355338, %v2643_v4  ;;  %2706 = vmax.xlane.f32.xlu1 %v2705_v53  ;;  %v2702_v0 = vsel %vm1821_vm1, %v11799_v34, -inf }
 0x31a   : > { %2703 = vmax.xlane.f32.xlu0 %v2702_v0  ;;  %v11806_v15 = vadd.f32 %v2685_v20, %v11671_v9 }
 0x31b   : > { %v8986_v32 = vpop.f32.mrb[36].mxu1  ;;  %v11809_v52 = vadd.f32 %v2684_v1, %v11678_v35 }
 0x31c   : > { %v2687_v21 = vmul.f32 0.35355338, %v8986_v32  ;;  %v2653_v57 = vpop.f32.mrb[37].mxu1  ;;  %v2711_v46 = vsel %vm1821_vm1, %v11806_v15, -inf }
 0x31d   : > { %v2686_v31 = vmul.f32 0.35355338, %v2653_v57  ;;  %2712 = vmax.xlane.f32.xlu1 %v2711_v46  ;;  %v2708_v4 = vsel %vm1821_vm1, %v11809_v52, -inf }
 0x31e   : > { %2709 = vmax.xlane.f32.xlu0 %v2708_v4  ;;  %v11816_v0 = vadd.f32 %v2687_v21, %v11693_v61 }
 0x31f   : > { %v8989_v20 = vpop.f32.mrb[38].mxu1  ;;  %v11819_v53 = vadd.f32 %v2686_v31, %v11698_v24 }
 0x320   : > { %v2689_v1 = vmul.f32 0.35355338, %v8989_v20  ;;  %v2663_v62 = vpop.f32.mrb[39].mxu1  ;;  %v2717_v32 = vsel %vm1821_vm1, %v11816_v0, -inf }
 0x321   : > { %v2688_v11 = vmul.f32 0.35355338, %v2663_v62  ;;  %2718 = vmax.xlane.f32.xlu1 %v2717_v32  ;;  %v2714_v57 = vsel %vm1821_vm1, %v11819_v53, -inf }
 0x322   : > { %2715 = vmax.xlane.f32.xlu0 %v2714_v57  ;;  %v11826_v46 = vadd.f32 %v2689_v1, %v11707_v5 }
 0x323   : > { %v8992_v21 = vpop.f32.mrb[40].mxu1  ;;  %v11829_v4 = vadd.f32 %v2688_v11, %v11712_v41 }
 0x324   : > { %v2691_v31 = vmul.f32 0.35355338, %v8992_v21  ;;  %v2673_v40 = vpop.f32.mrb[41].mxu1  ;;  %v2723_v20 = vsel %vm1821_vm1, %v11826_v46, -inf }
 0x325   : > { %v2690_v44 = vmul.f32 0.35355338, %v2673_v40  ;;  %2724 = vmax.xlane.f32.xlu1 %v2723_v20  ;;  %v2720_v62 = vsel %vm1821_vm1, %v11829_v4, -inf }
 0x326   : > { %2721 = vmax.xlane.f32.xlu0 %v2720_v62  ;;  %v11836_v32 = vadd.f32 %v2691_v31, %v11721_v10 }
 0x327   : > { %v11839_v1 = vadd.f32 %v2690_v44, %v11726_v59 }
 0x328   : > { %v2729_v11 = vsel %vm1821_vm1, %v11836_v32, -inf }
 0x329   : > { %2730 = vmax.xlane.f32.xlu1 %v2729_v11  ;;  %v2726_v57 = vsel %vm1821_vm1, %v11839_v1, -inf }
 0x32a   : > { %2727 = vmax.xlane.f32.xlu0 %v2726_v57 }
 0x33b   : > { %v9050_v40 = vpop.f32.mrb[42].mxu1 }
 0x33c   : > { %v3133_v21 = vmul.f32 0.35355338, %v9050_v40  ;;  %v3083_v20 = vpop.f32.mrb[43].mxu1 }
 0x33d   : > { %v3132_v26 = vmul.f32 0.35355338, %v3083_v20 }
 0x33e   : > { %v11846_v62 = vadd.f32 %v3133_v21, %v11654_v12 }
 0x33f   : > { %v9053_v31 = vpop.f32.mrb[44].mxu1  ;;  %v11849_v33 = vadd.f32 %v3132_v26, %v11658_v16 }
 0x340   : > { %v3135_v44 = vmul.f32 0.35355338, %v9053_v31  ;;  %v3093_v25 = vpop.f32.mrb[45].mxu1  ;;  %v3155_v11 = vsel %vm1821_vm1, %v11846_v62, -inf }
 0x341   : > { %v3134_v51 = vmul.f32 0.35355338, %v3093_v25  ;;  %3156 = vmax.xlane.f32.xlu1 %v3155_v11  ;;  %v3152_v57 = vsel %vm1821_vm1, %v11849_v33, -inf }
 0x342   : > { %3153 = vmax.xlane.f32.xlu0 %v3152_v57  ;;  %v11856_v40 = vadd.f32 %v3135_v44, %v11671_v9 }
 0x343   : > { %v9056_v21 = vpop.f32.mrb[46].mxu1  ;;  %v11859_v20 = vadd.f32 %v3134_v51, %v11678_v35 }
 0x344   : > { %v3137_v26 = vmul.f32 0.35355338, %v9056_v21  ;;  %v3103_v16 = vpop.f32.mrb[47].mxu1  ;;  %v3161_v31 = vsel %vm1821_vm1, %v11856_v40, -inf }
 0x345   : > { %v3136_v12 = vmul.f32 0.35355338, %v3103_v16  ;;  %3162 = vmax.xlane.f32.xlu1 %v3161_v31  ;;  %v3158_v25 = vsel %vm1821_vm1, %v11859_v20, -inf }
 0x346   : > { %3159 = vmax.xlane.f32.xlu0 %v3158_v25  ;;  %v11866_v11 = vadd.f32 %v3137_v26, %v11693_v61 }
 0x347   : > { %v9059_v44 = vpop.f32.mrb[48].mxu1  ;;  %v11869_v57 = vadd.f32 %v3136_v12, %v11698_v24 }
 0x348   : > { %v3139_v51 = vmul.f32 0.35355338, %v9059_v44  ;;  %v3113_v35 = vpop.f32.mrb[49].mxu1  ;;  %v3167_v21 = vsel %vm1821_vm1, %v11866_v11, -inf }
 0x349   : > { %v3138_v9 = vmul.f32 0.35355338, %v3113_v35  ;;  %3168 = vmax.xlane.f32.xlu1 %v3167_v21  ;;  %v3164_v16 = vsel %vm1821_vm1, %v11869_v57, -inf }
 0x34a   : > { %3165 = vmax.xlane.f32.xlu0 %v3164_v16  ;;  %v11876_v31 = vadd.f32 %v3139_v51, %v11707_v5 }
 0x34b   : > { %v9062_v26 = vpop.f32.mrb[50].mxu1  ;;  %v11879_v25 = vadd.f32 %v3138_v9, %v11712_v41 }
 0x34c   : > { %v3123_v12 = vpop.f32.mrb[51].mxu1  ;;  %v3173_v44 = vsel %vm1821_vm1, %v11876_v31, -inf }
 0x34d   : > { %v3140_v24 = vmul.f32 0.35355338, %v3123_v12  ;;  %3174 = vmax.xlane.f32.xlu1 %v3173_v44  ;;  %v3170_v35 = vsel %vm1821_vm1, %v11879_v25, -inf }
 0x34e   : > { %3171 = vmax.xlane.f32.xlu0 %v3170_v35 }
 0x34f   : > { %v11886_v21 = vadd.f32 %v3140_v24, %v11726_v59 }
 0x351   : > { %v3176_v51 = vsel %vm1821_vm1, %v11886_v21, -inf }
 0x352   : > { %3177 = vmax.xlane.f32.xlu1 %v3176_v51 }
 0x37d   : > { %v2122_v16 = vpop.xlane.xlu0 %2121 }
 0x37e   : > { %v2119_v9 = vpop.xlane.xlu1 %2118  ;;  %v2148_v41 = vsub.f32 %v11669_v58, %v2122_v16 }
 0x37f   : > { %v2147_v5 = vsub.f32 %v11676_v8, %v2119_v9 }
 0x380   : > { %v2159_v61 = vmul.f32 1.442695, %v2148_v41  ;;  %v3141_v41 = vmul.f32 0.35355338, %v9062_v26 }
 0x381   : > { %v2157_v12 = vmul.f32 1.442695, %v2147_v5 }
 0x382   : > { %v2128_v44 = vpop.xlane.xlu1 %2127  ;;  %v2125_v29 = vpop.xlane.xlu0 %2124  ;;  %10322 = vpow2.f32 %v2159_v61 }
 0x383   : > { %v2150_v35 = vsub.f32 %v11691_v48, %v2128_v44  ;;  %v2149_v24 = vsub.f32 %v11696_v22, %v2125_v29  ;;  %10324 = vpow2.f32 %v2157_v12 }
 0x385   : > { %v2163_v59 = vmul.f32 1.442695, %v2150_v35  ;;  %v2161_v3 = vmul.f32 1.442695, %v2149_v24 }
 0x386   : > { %v2134_v2 = vpop.xlane.xlu1 %2133  ;;  %v2131_v51 = vpop.xlane.xlu0 %2130 }
 0x387   : > { %10326 = vpow2.f32 %v2163_v59  ;;  %v2152_v42 = vsub.f32 %v11705_v18, %v2134_v2  ;;  %v2151_v58 = vsub.f32 %v11710_v36, %v2131_v51 }
 0x388   : > { %10328 = vpow2.f32 %v2161_v3 }
 0x389   : > { %v2167_v8 = vmul.f32 1.442695, %v2152_v42  ;;  %v2165_v5 = vmul.f32 1.442695, %v2151_v58  ;;  %v11905_v42 = vadd.f32 %v3141_v41, %v11721_v10 }
 0x38a   : > { %v2140_v16 = vpop.xlane.xlu1 %2139  ;;  %v2137_v61 = vpop.xlane.xlu0 %2136 }
 0x38b   : > { %10330 = vpow2.f32 %v2167_v8  ;;  %v2154_v48 = vsub.f32 %v11719_v63, %v2140_v16  ;;  %v2153_v29 = vsub.f32 %v11724_v17, %v2137_v61  ;;  %v3179_v58 = vsel %vm1821_vm1, %v11905_v42, -inf }
 0x38c   : > { %v11898_v22 = vpop.eup %10322  ;;  %10332 = vpow2.f32 %v2165_v5 }
 0x38d   : > { %v2171_v9 = vmul.f32 1.442695, %v2154_v48  ;;  %v11900_v12 = vpop.eup %10324  ;;  %v2169_v2 = vmul.f32 1.442695, %v2153_v29  ;;  %v2180_v3 = vsel %vm1821_vm1, %v11898_v22, 0.0 }
 0x38e   : > { %v2146_v18 = vpop.xlane.xlu1 %2145  ;;  %v2143_v36 = vpop.xlane.xlu0 %2142  ;;  %2181 = vadd.xlane.f32.xlu1 %v2180_v3  ;;  %v2177_v59 = vsel %vm1821_vm1, %v11900_v12, 0.0 }
 0x38f   : > { %10334 = vpow2.f32 %v2171_v9  ;;  %v2156_v63 = vsub.f32 %v11735_v43, %v2146_v18  ;;  %v2155_v17 = vsub.f32 %v11738_v39, %v2143_v36  ;;  %2178 = vadd.xlane.f32.xlu0 %v2177_v59 }
 0x390   : > { %10336 = vpow2.f32 %v2169_v2 }
 0x391   : > { %v11911_v26 = vpop.eup %10326  ;;  %v2175_v44 = vmul.f32 1.442695, %v2156_v63  ;;  %v2173_v35 = vmul.f32 1.442695, %v2155_v17 }
 0x392   : > { %v1827_v24 = vpop.xlane.xlu1 %1826  ;;  %v1824_v51 = vpop.xlane.xlu0 %1823  ;;  %v2186_v43 = vsel %vm1821_vm1, %v11911_v26, 0.0  ;;  %3180 = vmax.xlane.f32.xlu1 %v3179_v58 }
 0x393   : > { %10338 = vpow2.f32 %v2175_v44  ;;  %v1853_v39 = vsub.f32 %v11743_v49, %v1827_v24  ;;  %v1852_v8 = vsub.f32 %v11749_v6, %v1824_v51  ;;  %v11919_v41 = vpop.eup %10328  ;;  %2187 = vadd.xlane.f32.xlu0 %v2186_v43 }
 0x394   : > { %10340 = vpow2.f32 %v2173_v35  ;;  %v2183_v6 = vsel %vm1821_vm1, %v11919_v41, 0.0 }
 0x395   : > { %v11921_v5 = vpop.eup %10330  ;;  %v1864_v16 = vmul.f32 1.442695, %v1853_v39  ;;  %v1862_v61 = vmul.f32 1.442695, %v1852_v8 }
 0x396   : > { %v1833_v48 = vpop.xlane.xlu1 %1832  ;;  %v1830_v29 = vpop.xlane.xlu0 %1829  ;;  %v2192_v9 = vsel %vm1821_vm1, %v11921_v5, 0.0 }
 0x397   : > { %10342 = vpow2.f32 %v1864_v16  ;;  %v1855_v2 = vsub.f32 %v11756_v19, %v1833_v48  ;;  %v1854_v49 = vsub.f32 %v11759_v27, %v1830_v29  ;;  %2193 = vadd.xlane.f32.xlu1 %v2192_v9  ;;  %v11929_v18 = vpop.eup %10332  ;;  %2184 = vadd.xlane.f32.xlu0 %v2183_v6 }
 0x398   : > { %10344 = vpow2.f32 %v1862_v61  ;;  %v2189_v35 = vsel %vm1821_vm1, %v11929_v18, 0.0 }
 0x399   : > { %v11931_v36 = vpop.eup %10334  ;;  %v1868_v3 = vmul.f32 1.442695, %v1855_v2  ;;  %v1866_v63 = vmul.f32 1.442695, %v1854_v49 }
 0x39a   : > { %v1839_v17 = vpop.xlane.xlu1 %1838  ;;  %v1836_v59 = vpop.xlane.xlu0 %1835  ;;  %v2198_v44 = vsel %vm1821_vm1, %v11931_v36, 0.0 }
 0x39b   : > { %10346 = vpow2.f32 %v1868_v3  ;;  %v1857_v19 = vsub.f32 %v11762_v47, %v1839_v17  ;;  %v1856_v27 = vsub.f32 %v11765_v55, %v1836_v59  ;;  %2199 = vadd.xlane.f32.xlu1 %v2198_v44  ;;  %v11939_v24 = vpop.eup %10336  ;;  %2190 = vadd.xlane.f32.xlu0 %v2189_v35 }
 0x39c   : > { %10348 = vpow2.f32 %v1866_v63  ;;  %v2195_v61 = vsel %vm1821_vm1, %v11939_v24, 0.0 }
 0x39d   : > { %v11941_v51 = vpop.eup %10338  ;;  %v1872_v58 = vmul.f32 1.442695, %v1857_v19  ;;  %v1870_v43 = vmul.f32 1.442695, %v1856_v27 }
 0x39e   : > { %v1845_v39 = vpop.xlane.xlu1 %1844  ;;  %v1842_v8 = vpop.xlane.xlu0 %1841  ;;  %v2204_v16 = vsel %vm1821_vm1, %v11941_v51, 0.0 }
 0x39f   : > { %10350 = vpow2.f32 %v1872_v58  ;;  %v1859_v47 = vsub.f32 %v11776_v56, %v1845_v39  ;;  %v1858_v55 = vsub.f32 %v11779_v38, %v1842_v8  ;;  %2205 = vadd.xlane.f32.xlu1 %v2204_v16  ;;  %v11949_v48 = vpop.eup %10340  ;;  %2196 = vadd.xlane.f32.xlu0 %v2195_v61 }
 0x3a0   : > { %10352 = vpow2.f32 %v1870_v43  ;;  %v2201_v63 = vsel %vm1821_vm1, %v11949_v48, 0.0 }
 0x3a1   : > { %v11951_v29 = vpop.eup %10342  ;;  %v1876_v9 = vmul.f32 1.442695, %v1859_v47  ;;  %v1874_v2 = vmul.f32 1.442695, %v1858_v55 }
 0x3a2   : > { %v1851_v49 = vpop.xlane.xlu1 %1850  ;;  %v1848_v6 = vpop.xlane.xlu0 %1847  ;;  %v1885_v3 = vsel %vm1821_vm1, %v11951_v29, 0.0 }
 0x3a3   : > { %10354 = vpow2.f32 %v1876_v9  ;;  %v1861_v56 = vsub.f32 %v11786_v30, %v1851_v49  ;;  %v1860_v38 = vsub.f32 %v11789_v23, %v1848_v6  ;;  %1886 = vadd.xlane.f32.xlu1 %v1885_v3  ;;  %v11959_v17 = vpop.eup %10344  ;;  %2202 = vadd.xlane.f32.xlu0 %v2201_v63 }
 0x3a4   : > { %10356 = vpow2.f32 %v1874_v2  ;;  %v1882_v58 = vsel %vm1821_vm1, %v11959_v17, 0.0 }
 0x3a5   : > { %v11961_v59 = vpop.eup %10346  ;;  %v1880_v44 = vmul.f32 1.442695, %v1861_v56  ;;  %v1878_v19 = vmul.f32 1.442695, %v1860_v38 }
 0x3a6   : > { %v2707_v27 = vpop.xlane.xlu1 %2706  ;;  %v1891_v35 = vsel %vm1821_vm1, %v11961_v59, 0.0  ;;  %v11968_v43 = vpop.eup %10348 }
 0x3a7   : > { %10358 = vpow2.f32 %v1880_v44  ;;  %v2733_v30 = vsub.f32 %v11796_v7, %v2707_v27  ;;  %v2704_v23 = vpop.xlane.xlu0 %2703  ;;  %1892 = vadd.xlane.f32.xlu1 %v1891_v35  ;;  %1883 = vadd.xlane.f32.xlu0 %v1882_v58  ;;  %v1888_v2 = vsel %vm1821_vm1, %v11968_v43, 0.0 }
 0x3a8   : > { %v2732_v39 = vsub.f32 %v11799_v34, %v2704_v23  ;;  %10360 = vpow2.f32 %v1878_v19 }
 0x3a9   : > { %v11971_v8 = vpop.eup %10350  ;;  %v2744_v16 = vmul.f32 1.442695, %v2733_v30 }
 0x3aa   : > { %v2742_v47 = vmul.f32 1.442695, %v2732_v39  ;;  %v2713_v55 = vpop.xlane.xlu1 %2712  ;;  %v1897_v61 = vsel %vm1821_vm1, %v11971_v8, 0.0  ;;  %v11978_v49 = vpop.eup %10352 }
 0x3ab   : > { %10362 = vpow2.f32 %v2744_v16  ;;  %v2735_v7 = vsub.f32 %v11806_v15, %v2713_v55  ;;  %v2710_v9 = vpop.xlane.xlu0 %2709  ;;  %1898 = vadd.xlane.f32.xlu1 %v1897_v61  ;;  %1889 = vadd.xlane.f32.xlu0 %v1888_v2  ;;  %v1894_v19 = vsel %vm1821_vm1, %v11978_v49, 0.0 }
 0x3ac   : > { %v2734_v34 = vsub.f32 %v11809_v52, %v2710_v9  ;;  %10364 = vpow2.f32 %v2742_v47 }
 0x3ad   : > { %v11981_v6 = vpop.eup %10354  ;;  %v2748_v3 = vmul.f32 1.442695, %v2735_v7 }
 0x3ae   : > { %v2746_v56 = vmul.f32 1.442695, %v2734_v34  ;;  %v2719_v38 = vpop.xlane.xlu1 %2718  ;;  %v1903_v63 = vsel %vm1821_vm1, %v11981_v6, 0.0  ;;  %v11988_v27 = vpop.eup %10356 }
 0x3af   : > { %10366 = vpow2.f32 %v2748_v3  ;;  %v2737_v15 = vsub.f32 %v11816_v0, %v2719_v38  ;;  %v2716_v44 = vpop.xlane.xlu0 %2715  ;;  %1904 = vadd.xlane.f32.xlu1 %v1903_v63  ;;  %1895 = vadd.xlane.f32.xlu0 %v1894_v19  ;;  %v1900_v47 = vsel %vm1821_vm1, %v11988_v27, 0.0 }
 0x3b0   : > { %v2736_v52 = vsub.f32 %v11819_v53, %v2716_v44  ;;  %10368 = vpow2.f32 %v2746_v56 }
 0x3b1   : > { %v11991_v35 = vpop.eup %10358  ;;  %v2752_v30 = vmul.f32 1.442695, %v2737_v15 }
 0x3b2   : > { %v2750_v23 = vmul.f32 1.442695, %v2736_v52  ;;  %v2725_v58 = vpop.xlane.xlu1 %2724  ;;  %v1909_v39 = vsel %vm1821_vm1, %v11991_v35, 0.0  ;;  %v11998_v55 = vpop.eup %10360 }
 0x3b3   : > { %10370 = vpow2.f32 %v2752_v30  ;;  %v2739_v0 = vsub.f32 %v11826_v46, %v2725_v58  ;;  %v2722_v16 = vpop.xlane.xlu0 %2721  ;;  %1910 = vadd.xlane.f32.xlu1 %v1909_v39  ;;  %1901 = vadd.xlane.f32.xlu0 %v1900_v47  ;;  %v1906_v56 = vsel %vm1821_vm1, %v11998_v55, 0.0 }
 0x3b4   : > { %v2738_v53 = vsub.f32 %v11829_v4, %v2722_v16  ;;  %10372 = vpow2.f32 %v2750_v23 }
 0x3b5   : > { %v12001_v61 = vpop.eup %10362  ;;  %v2756_v7 = vmul.f32 1.442695, %v2739_v0 }
 0x3b6   : > { %v2754_v9 = vmul.f32 1.442695, %v2738_v53  ;;  %v2731_v2 = vpop.xlane.xlu1 %2730  ;;  %v2765_v34 = vsel %vm1821_vm1, %v12001_v61, 0.0  ;;  %v12008_v38 = vpop.eup %10364 }
 0x3b7   : > { %10374 = vpow2.f32 %v2756_v7  ;;  %v2741_v46 = vsub.f32 %v11836_v32, %v2731_v2  ;;  %v2728_v3 = vpop.xlane.xlu0 %2727  ;;  %2766 = vadd.xlane.f32.xlu1 %v2765_v34  ;;  %1907 = vadd.xlane.f32.xlu0 %v1906_v56  ;;  %v2762_v32 = vsel %vm1821_vm1, %v12008_v38, 0.0 }
 0x3b8   : > { %v2740_v4 = vsub.f32 %v11839_v1, %v2728_v3  ;;  %10376 = vpow2.f32 %v2754_v9 }
 0x3b9   : > { %v12011_v63 = vpop.eup %10366  ;;  %v2760_v15 = vmul.f32 1.442695, %v2741_v46 }
 0x3ba   : > { %v2758_v44 = vmul.f32 1.442695, %v2740_v4  ;;  %v2771_v19 = vsel %vm1821_vm1, %v12011_v63, 0.0  ;;  %v12017_v52 = vpop.eup %10368 }
 0x3bb   : > { %10378 = vpow2.f32 %v2760_v15  ;;  %2772 = vadd.xlane.f32.xlu1 %v2771_v19  ;;  %2763 = vadd.xlane.f32.xlu0 %v2762_v32  ;;  %v2768_v23 = vsel %vm1821_vm1, %v12017_v52, 0.0 }
 0x3bc   : > { %10380 = vpow2.f32 %v2758_v44 }
 0x3bd   : > { %v12019_v30 = vpop.eup %10370 }
 0x3be   : > { %v2777_v1 = vsel %vm1821_vm1, %v12019_v30, 0.0  ;;  %v12025_v58 = vpop.eup %10372 }
 0x3bf   : > { %2778 = vadd.xlane.f32.xlu1 %v2777_v1  ;;  %2769 = vadd.xlane.f32.xlu0 %v2768_v23  ;;  %v2774_v16 = vsel %vm1821_vm1, %v12025_v58, 0.0 }
 0x3c1   : > { %v12027_v39 = vpop.eup %10374 }
 0x3c2   : > { %v2783_v0 = vsel %vm1821_vm1, %v12027_v39, 0.0  ;;  %v12033_v47 = vpop.eup %10376 }
 0x3c3   : > { %2784 = vadd.xlane.f32.xlu1 %v2783_v0  ;;  %2775 = vadd.xlane.f32.xlu0 %v2774_v16  ;;  %v2780_v9 = vsel %vm1821_vm1, %v12033_v47, 0.0 }
 0x3c5   : > { %v12035_v53 = vpop.eup %10378 }
 0x3c6   : > { %v2789_v7 = vsel %vm1821_vm1, %v12035_v53, 0.0  ;;  %v12041_v2 = vpop.eup %10380 }
 0x3c7   : > { %2790 = vadd.xlane.f32.xlu1 %v2789_v7  ;;  %2781 = vadd.xlane.f32.xlu0 %v2780_v9  ;;  %v2786_v34 = vsel %vm1821_vm1, %v12041_v2, 0.0 }
 0x3cb   : > { %2787 = vadd.xlane.f32.xlu0 %v2786_v34 }
 0x3ce   : > { %v3157_v46 = vpop.xlane.xlu1 %3156 }
 0x3cf   : > { %v3183_v3 = vsub.f32 %v11846_v62, %v3157_v46  ;;  %v3154_v56 = vpop.xlane.xlu0 %3153 }
 0x3d0   : > { %v3182_v4 = vsub.f32 %v11849_v33, %v3154_v56 }
 0x3d1   : > { %v3194_v15 = vmul.f32 1.442695, %v3183_v3 }
 0x3d2   : > { %v3192_v44 = vmul.f32 1.442695, %v3182_v4  ;;  %v3163_v19 = vpop.xlane.xlu1 %3162 }
 0x3d3   : > { %10382 = vpow2.f32 %v3194_v15  ;;  %v3185_v32 = vsub.f32 %v11856_v40, %v3163_v19  ;;  %v3160_v1 = vpop.xlane.xlu0 %3159 }
 0x3d4   : > { %10384 = vpow2.f32 %v3192_v44  ;;  %v3184_v23 = vsub.f32 %v11859_v20, %v3160_v1 }
 0x3d5   : > { %v3198_v0 = vmul.f32 1.442695, %v3185_v32 }
 0x3d6   : > { %v3196_v16 = vmul.f32 1.442695, %v3184_v23  ;;  %v3169_v7 = vpop.xlane.xlu1 %3168 }
 0x3d7   : > { %10386 = vpow2.f32 %v3198_v0  ;;  %v3187_v9 = vsub.f32 %v11866_v11, %v3169_v7  ;;  %v3166_v62 = vpop.xlane.xlu0 %3165 }
 0x3d8   : > { %10388 = vpow2.f32 %v3196_v16  ;;  %v3186_v33 = vsub.f32 %v11869_v57, %v3166_v62 }
 0x3d9   : > { %v3202_v34 = vmul.f32 1.442695, %v3187_v9 }
 0x3da   : > { %v3200_v46 = vmul.f32 1.442695, %v3186_v33  ;;  %v3175_v3 = vpop.xlane.xlu1 %3174 }
 0x3db   : > { %10390 = vpow2.f32 %v3202_v34  ;;  %v3189_v40 = vsub.f32 %v11876_v31, %v3175_v3  ;;  %v3172_v56 = vpop.xlane.xlu0 %3171 }
 0x3dc   : > { %10392 = vpow2.f32 %v3200_v46  ;;  %v3188_v20 = vsub.f32 %v11879_v25, %v3172_v56 }
 0x3dd   : > { %v12053_v4 = vpop.eup %10382  ;;  %v3206_v15 = vmul.f32 1.442695, %v3189_v40 }
 0x3de   : > { %v12055_v44 = vpop.eup %10384  ;;  %v3204_v11 = vmul.f32 1.442695, %v3188_v20  ;;  %v3215_v19 = vsel %vm1821_vm1, %v12053_v4, 0.0 }
 0x3df   : > { %10394 = vpow2.f32 %v3206_v15  ;;  %3216 = vadd.xlane.f32.xlu1 %v3215_v19  ;;  %v3178_v57 = vpop.xlane.xlu1 %3177  ;;  %v3212_v32 = vsel %vm1821_vm1, %v12055_v44, 0.0 }
 0x3e0   : > { %10396 = vpow2.f32 %v3204_v11  ;;  %v3190_v31 = vsub.f32 %v11886_v21, %v3178_v57  ;;  %3213 = vadd.xlane.f32.xlu0 %v3212_v32 }
 0x3e1   : > { %v12062_v25 = vpop.eup %10386 }
 0x3e2   : > { %v12064_v1 = vpop.eup %10388  ;;  %v3208_v23 = vmul.f32 1.442695, %v3190_v31  ;;  %v3221_v0 = vsel %vm1821_vm1, %v12062_v25, 0.0 }
 0x3e3   : > { %3222 = vadd.xlane.f32.xlu1 %v3221_v0  ;;  %v3218_v16 = vsel %vm1821_vm1, %v12064_v1, 0.0 }
 0x3e4   : > { %10398 = vpow2.f32 %v3208_v23  ;;  %3219 = vadd.xlane.f32.xlu0 %v3218_v16 }
 0x3e5   : > { %v12070_v7 = vpop.eup %10390 }
 0x3e6   : > { %v12072_v9 = vpop.eup %10392  ;;  %v3227_v21 = vsel %vm1821_vm1, %v12070_v7, 0.0 }
 0x3e7   : > { %3228 = vadd.xlane.f32.xlu1 %v3227_v21  ;;  %v3224_v62 = vsel %vm1821_vm1, %v12072_v9, 0.0 }
 0x3e8   : > { %3225 = vadd.xlane.f32.xlu0 %v3224_v62 }
 0x3e9   : > { %v12078_v33 = vpop.eup %10394 }
 0x3ea   : > { %v12080_v34 = vpop.eup %10396  ;;  %v3233_v46 = vsel %vm1821_vm1, %v12078_v33, 0.0 }
 0x3eb   : > { %3234 = vadd.xlane.f32.xlu1 %v3233_v46  ;;  %v3230_v3 = vsel %vm1821_vm1, %v12080_v34, 0.0 }
 0x3ec   : > { %3231 = vadd.xlane.f32.xlu0 %v3230_v3 }
 0x3ee   : > { %v12086_v40 = vpop.eup %10398 }
 0x3ef   : > { %v3236_v56 = vsel %vm1821_vm1, %v12086_v40, 0.0 }
 0x3f0   : > { %3237 = vadd.xlane.f32.xlu0 %v3236_v56 }
 0x41b   : > { %v2182_v20 = vpop.xlane.xlu1 %2181 }
 0x41c   : > { %10400 = vrcp.f32 %v2182_v20  ;;  %v2179_v15 = vpop.xlane.xlu0 %2178 }
 0x41d   : > { %10402 = vrcp.f32 %v2179_v15 }
 0x41f   : > { %v3181_v11 = vpop.xlane.xlu1 %3180 }
 0x420   : > { %v3191_v19 = vsub.f32 %v11905_v42, %v3181_v11  ;;  %v2188_v57 = vpop.xlane.xlu0 %2187 }
 0x422   : > { %v3210_v32 = vmul.f32 1.442695, %v3191_v19 }
 0x424   : > { %v2194_v31 = vpop.xlane.xlu1 %2193  ;;  %10404 = vpow2.f32 %v3210_v32  ;;  %v2185_v23 = vpop.xlane.xlu0 %2184 }
 0x425   : > { %10406 = vrcp.f32 %v2188_v57 }
 0x426   : > { %v10401_v0 = vpop.eup %10400  ;;  %10408 = vrcp.f32 %v2185_v23 }
 0x427   : > { %v10403_v16 = vpop.eup %10402  ;;  %10410 = vrcp.f32 %v2194_v31  ;;  %v2210_v3 = vmul.f32 %v10401_v0, %v11898_v22 }
 0x428   : > { %v2200_v21 = vpop.xlane.xlu1 %2199  ;;  %v2191_v62 = vpop.xlane.xlu0 %2190  ;;  %v2208_v46 = vmul.f32 %v10403_v16, %v11900_v12 }
 0x429   : > { %10412 = vrcp.f32 %v2191_v62 }
 0x42a   : > { %8908 = vmatprep.mubr.msk.f32.mxu0 %vm1821_vm1, %v2208_v46  ;;  %10414 = vrcp.f32 %v2200_v21 }
 0x42b   : > { %8909 = vmatmul.mubr.msk.f32.vlgmr.msra.gmra.mrb[38].mxu0 %vm1821_vm1, %v2210_v3 }
 0x42c   : > { %v2206_v42 = vpop.xlane.xlu1 %2205  ;;  %9764 = vmatpush3.bf16.msra.mxu0 %v11397_v14  ;;  %v2197_v56 = vpop.xlane.xlu0 %2196 }
 0x42d   : > { %9766 = vmatprep.subr.bf16.mxu0 %v11421_v37  ;;  %10416 = vrcp.f32 %v2197_v56 }
 0x42e   : > { %v12097_v20 = vpop.eup %10404  ;;  %10418 = vrcp.f32 %v2206_v42 }
 0x42f   : > { %v10407_v15 = vpop.eup %10406  ;;  %v3239_v12 = vsel %vm1821_vm1, %v12097_v20, 0.0 }
 0x430   : > { %v1887_v22 = vpop.xlane.xlu1 %1886  ;;  %v10409_v11 = vpop.eup %10408  ;;  %9768 = vmatpush3.bf16.msra.mxu0 %v11421_v37  ;;  %3240 = vadd.xlane.f32.xlu1 %v3239_v12  ;;  %v2214_v32 = vmul.f32 %v10407_v15, %v11911_v26 }
 0x431   : > { %v2203_v19 = vpop.xlane.xlu0 %2202  ;;  %9770 = vmatprep.subr.bf16.mxu0 %v11450_v13  ;;  %v2212_v14 = vmul.f32 %v10409_v11, %v11919_v41  ;;  %v10411_v57 = vpop.eup %10410 }
 0x432   : > { %10420 = vrcp.f32 %v2203_v19  ;;  %v2218_v26 = vmul.f32 %v10411_v57, %v11921_v5 }
 0x433   : > { %v10413_v31 = vpop.eup %10412  ;;  %8911 = vmatprep.mubr.msk.f32.mxu0 %vm1821_vm1, %v2212_v14  ;;  %10422 = vrcp.f32 %v1887_v22 }
 0x434   : > { %v1893_v23 = vpop.xlane.xlu1 %1892  ;;  %8912 = vmatmul.mubr.msk.f32.gmra.mrb[40].mxu0 %vm1821_vm1, %v2214_v32  ;;  %v2216_v37 = vmul.f32 %v10413_v31, %v11929_v18  ;;  %v10415_v16 = vpop.eup %10414 }
 0x435   : > { %v1884_v0 = vpop.xlane.xlu0 %1883  ;;  %9772 = vmatpush3.bf16.msra.mxu0 %v11450_v13  ;;  %v2222_v18 = vmul.f32 %v10415_v16, %v11931_v36 }
 0x436   : > { %10424 = vrcp.f32 %v1884_v0  ;;  %9774 = vmatprep.subr.bf16.mxu0 %v11472_v54  ;;  %8914 = vmatprep.mubr.msk.f32.mxu0 %vm1821_vm1, %v2216_v37 }
 0x437   : > { %v10417_v41 = vpop.eup %10416  ;;  %10426 = vrcp.f32 %v1893_v23 }
 0x438   : > { %v1899_v21 = vpop.xlane.xlu1 %1898  ;;  %8915 = vmatmul.mubr.msk.f32.gmra.mrb[42].mxu0 %vm1821_vm1, %v2218_v26  ;;  %v2220_v46 = vmul.f32 %v10417_v41, %v11939_v24  ;;  %v10419_v13 = vpop.eup %10418 }
 0x439   : > { %v1890_v62 = vpop.xlane.xlu0 %1889  ;;  %9776 = vmatpush3.bf16.msra.mxu0 %v11472_v54  ;;  %v2226_v24 = vmul.f32 %v10419_v13, %v11941_v51 }
 0x43a   : > { %10428 = vrcp.f32 %v1890_v62  ;;  %9778 = vmatprep.subr.bf16.mxu0 %v11501_v50  ;;  %8917 = vmatprep.mubr.msk.f32.mxu0 %vm1821_vm1, %v2220_v46 }
 0x43b   : > { %10430 = vrcp.f32 %v1899_v21 }
 0x43c   : > { %v10421_v3 = vpop.eup %10420  ;;  %v1905_v5 = vpop.xlane.xlu1 %1904  ;;  %8918 = vmatmul.mubr.msk.f32.gmra.mrb[44].mxu0 %vm1821_vm1, %v2222_v18 }
 0x43d   : > { %v1896_v42 = vpop.xlane.xlu0 %1895  ;;  %v2224_v56 = vmul.f32 %v10421_v3, %v11949_v48  ;;  %9780 = vmatpush3.bf16.msra.mxu0 %v11501_v50  ;;  %v10423_v54 = vpop.eup %10422 }
 0x43e   : > { %10432 = vrcp.f32 %v1896_v42  ;;  %9812 = vmatprep.subr.bf16.mxu0 %v11399_v60  ;;  %v1915_v50 = vmul.f32 %v10423_v54, %v11951_v29  ;;  %v14158_v42 = vld [vmem:[#allocation17_spill] sm:$0xff] }
 0x43f   : > { %8920 = vmatprep.mubr.msk.f32.mxu0 %vm1821_vm1, %v2224_v56  ;;  %10434 = vrcp.f32 %v1905_v5 }
 0x440   : > { %v10425_v15 = vpop.eup %10424  ;;  %v1911_v36 = vpop.xlane.xlu1 %1910  ;;  %8921 = vmatmul.mubr.msk.f32.gmra.mrb[46].mxu0 %vm1821_vm1, %v2226_v24  ;;  %v14159_v24 = vld [vmem:[#allocation18_spill] sm:$0xff] }
 0x441   : > { %v1902_v12 = vpop.xlane.xlu0 %1901  ;;  %v1913_v22 = vmul.f32 %v10425_v15, %v11959_v17  ;;  %v10427_v48 = vpop.eup %10426 }
 0x442   : > { %10436 = vrcp.f32 %v1902_v12  ;;  %v1919_v29 = vmul.f32 %v10427_v48, %v11961_v59 }
 0x443   : > { %8943 = vmatprep.mubr.msk.f32.mxu0 %vm1821_vm1, %v1913_v22  ;;  %10438 = vrcp.f32 %v1911_v36  ;;  %v14160_v22 = vld [vmem:[#allocation20_spill] sm:$0xff] }
 0x444   : > { %v10429_v11 = vpop.eup %10428  ;;  %v2767_v19 = vpop.xlane.xlu1 %2766  ;;  %8944 = vmatmul.mubr.msk.f32.vlgmr.msra.gmra.mrb[38].mxu0 %vm1821_vm1, %v1915_v50 }
 0x445   : > { %v1908_v51 = vpop.xlane.xlu0 %1907  ;;  %v1917_v14 = vmul.f32 %v10429_v11, %v11968_v43  ;;  %9814 = vmatpush3.bf16.msra.mxu0 %v11399_v60  ;;  %v10431_v57 = vpop.eup %10430  ;;  %v14161_v11 = vld [vmem:[#allocation21_spill] sm:$0xff] }
 0x446   : > { %10440 = vrcp.f32 %v1908_v51  ;;  %9816 = vmatprep.subr.bf16.mxu0 %v11423_v45  ;;  %v1923_v43 = vmul.f32 %v10431_v57, %v11971_v8  ;;  %v1166_v51 = vld [vmem:[%s14032_s13] sm:$0xff] }
 0x447   : > { %8946 = vmatprep.mubr.msk.f32.mxu0 %vm1821_vm1, %v1917_v14  ;;  %10442 = vrcp.f32 %v2767_v19  ;;  %v14162_v14 = vld [vmem:[#allocation23_spill] sm:$0xff] }
 0x448   : > { %v10433_v17 = vpop.eup %10432  ;;  %v2773_v32 = vpop.xlane.xlu1 %2772  ;;  %8947 = vmatmul.mubr.msk.f32.gmra.mrb[40].mxu0 %vm1821_vm1, %v1919_v29 }
 0x449   : > { %v2764_v31 = vpop.xlane.xlu0 %2763  ;;  %v1921_v23 = vmul.f32 %v10433_v17, %v11978_v49  ;;  %9818 = vmatpush3.bf16.msra.mxu0 %v11423_v45  ;;  %v10435_v60 = vpop.eup %10434  ;;  %v14156_v49 = vld [vmem:[#allocation19_spill] sm:$0xff] }
 0x44a   : > { %10444 = vrcp.f32 %v2764_v31  ;;  %9820 = vmatprep.subr.bf16.mxu0 %v11458_v28  ;;  %v1927_v26 = vmul.f32 %v10435_v60, %v11981_v6 }
 0x44b   : > { %8949 = vmatprep.mubr.msk.f32.mxu0 %vm1821_vm1, %v1921_v23  ;;  %10446 = vrcp.f32 %v2773_v32 }
 0x44c   : > { %v10437_v0 = vpop.eup %10436  ;;  %v2779_v59 = vpop.xlane.xlu1 %2778  ;;  %8950 = vmatmul.mubr.msk.f32.gmra.mrb[42].mxu0 %vm1821_vm1, %v1923_v43  ;;  %v1168_v43 = vld [vmem:[%s14032_s13 + $0x10] sm:$0xff] }
 0x44d   : > { %v2770_v37 = vpop.xlane.xlu0 %2769  ;;  %v1925_v16 = vmul.f32 %v10437_v0, %v11988_v27  ;;  %9822 = vmatpush3.bf16.msra.mxu0 %v11458_v28  ;;  %v10439_v45 = vpop.eup %10438  ;;  %v14157_v27 = vld [vmem:[#allocation22_spill] sm:$0xff]  ;;  %v1169_v0 = vld [vmem:[%s14032_s13 + $0x18] sm:$0xff] }
 0x44e   : > { %10448 = vrcp.f32 %v2770_v37  ;;  %9824 = vmatprep.subr.bf16.mxu0 %v14156_v49  ;;  %v1931_v46 = vmul.f32 %v10439_v45, %v11991_v35 }
 0x44f   : > { %8952 = vmatprep.mubr.msk.f32.mxu0 %vm1821_vm1, %v1925_v16  ;;  %10450 = vrcp.f32 %v2779_v59 }
 0x450   : > { %v10441_v41 = vpop.eup %10440  ;;  %v2785_v8 = vpop.xlane.xlu1 %2784  ;;  %8953 = vmatmul.mubr.msk.f32.gmra.mrb[44].mxu0 %vm1821_vm1, %v1927_v26  ;;  %v9887_v26 = vpack.c.bf16 %v1169_v0, %v1168_v43 }
 0x451   : > { %v2776_v21 = vpop.xlane.xlu0 %2775  ;;  %v1929_v62 = vmul.f32 %v10441_v41, %v11998_v55  ;;  %9826 = vmatpush3.bf16.msra.mxu0 %v14156_v49  ;;  %v10443_v28 = vpop.eup %10442 }
 0x452   : > { %10452 = vrcp.f32 %v2776_v21  ;;  %9828 = vmatprep.subr.bf16.mxu0 %v14157_v27  ;;  %v2795_v5 = vmul.f32 %v10443_v28, %v12001_v61 }
 0x453   : > { %8955 = vmatprep.mubr.msk.f32.mxu0 %vm1821_vm1, %v1929_v62  ;;  %10454 = vrcp.f32 %v2785_v8 }
 0x454   : > { %v10445_v13 = vpop.eup %10444  ;;  %8956 = vmatmul.mubr.msk.f32.gmra.mrb[46].mxu0 %vm1821_vm1, %v1931_v46  ;;  %v2791_v55 = vpop.xlane.xlu1 %2790 }
 0x455   : > { %v2782_v6 = vpop.xlane.xlu0 %2781  ;;  %v2793_v18 = vmul.f32 %v10445_v13, %v12008_v38  ;;  %9830 = vmatpush3.bf16.msra.mxu0 %v14157_v27  ;;  %v10447_v3 = vpop.eup %10446 }
 0x456   : > { %10456 = vrcp.f32 %v2782_v6  ;;  %9862 = vmatprep.subr.bf16.mxu0 %v14158_v42  ;;  %v2799_v61 = vmul.f32 %v10447_v3, %v12011_v63 }
 0x457   : > { %9013 = vmatprep.mubr.msk.f32.mxu0 %vm1821_vm1, %v2793_v18  ;;  %10458 = vrcp.f32 %v2791_v55 }
 0x458   : > { %v10449_v56 = vpop.eup %10448  ;;  %9014 = vmatmul.mubr.msk.f32.vlgmr.msra.gmra.mrb[38].mxu0 %vm1821_vm1, %v2795_v5 }
 0x459   : > { %v2788_v35 = vpop.xlane.xlu0 %2787  ;;  %v2797_v54 = vmul.f32 %v10449_v56, %v12017_v52  ;;  %9864 = vmatpush3.bf16.msra.mxu0 %v14158_v42  ;;  %v10451_v38 = vpop.eup %10450 }
 0x45a   : > { %10460 = vrcp.f32 %v2788_v35  ;;  %9866 = vmatprep.subr.bf16.mxu0 %v14159_v24  ;;  %v2803_v52 = vmul.f32 %v10451_v38, %v12019_v30  ;;  %v1167_v30 = vld [vmem:[%s14032_s13 + $0x8] sm:$0xff] }
 0x45b   : > { %9016 = vmatprep.mubr.msk.f32.mxu0 %vm1821_vm1, %v2797_v54  ;;  %v9881_v57 = vpack.c.bf16 %v1167_v30, %v1166_v51 }
 0x45c   : > { %v10453_v15 = vpop.eup %10452  ;;  %9017 = vmatmul.mubr.msk.f32.gmra.mrb[40].mxu0 %vm1821_vm1, %v2799_v61 }
 0x45d   : > { %v2801_v36 = vmul.f32 %v10453_v15, %v12025_v58  ;;  %9868 = vmatpush3.bf16.msra.mxu0 %v14159_v24  ;;  %v10455_v12 = vpop.eup %10454  ;;  %v7861_v24 = vld [vmem:[%s14035_s16 + $0x3] ss:$0 sm:$0xff] }
 0x45e   : > { %9870 = vmatprep.subr.bf16.mxu0 %v14160_v22  ;;  %v2807_v58 = vmul.f32 %v10455_v12, %v12027_v39 }
 0x45f   : > { %9019 = vmatprep.mubr.msk.f32.mxu0 %vm1821_vm1, %v2801_v36 }
 0x460   : > { %v10457_v48 = vpop.eup %10456  ;;  %9020 = vmatmul.mubr.msk.f32.gmra.mrb[42].mxu0 %vm1821_vm1, %v2803_v52 }
 0x461   : > { %v2805_v50 = vmul.f32 %v10457_v48, %v12033_v47  ;;  %9872 = vmatpush3.bf16.msra.mxu0 %v14160_v22  ;;  %v10459_v63 = vpop.eup %10458  ;;  %v14164_v22 = vld [vmem:[#allocation4_spill] sm:$0xff] }
 0x462   : > { %9874 = vmatprep.subr.bf16.mxu0 %v14161_v11  ;;  %v2811_v39 = vmul.f32 %v10459_v63, %v12035_v53 }
 0x463   : > { %9022 = vmatprep.mubr.msk.f32.mxu0 %vm1821_vm1, %v2805_v50  ;;  %v14165_v50 = vld [vmem:[#allocation3_spill] sm:$0xff] }
 0x464   : > { %v10461_v19 = vpop.eup %10460  ;;  %9023 = vmatmul.mubr.msk.f32.gmra.mrb[44].mxu0 %vm1821_vm1, %v2807_v58 }
 0x465   : > { %v2809_v47 = vmul.f32 %v10461_v19, %v12041_v2  ;;  %9876 = vmatpush3.bf16.msra.mxu0 %v14161_v11 }
 0x466   : > { %9878 = vmatprep.subr.bf16.mxu0 %v14162_v14 }
 0x467   : > { %9025 = vmatprep.mubr.msk.f32.mxu0 %vm1821_vm1, %v2809_v47  ;;  %v14166_v47 = vld [vmem:[#allocation6_spill] sm:$0xff] }
 0x468   : > { %9026 = vmatmul.mubr.msk.f32.gmra.mrb[46].mxu0 %vm1821_vm1, %v2811_v39 }
 0x469   : > { %9880 = vmatpush3.bf16.msra.mxu0 %v14162_v14 }
 0x46a   : > { %9883 = vmatprep.subr.msk.bf16.mxu0 %vm10942_vm6, %v9881_v57 }
 0x46c   : > { %v3217_v17 = vpop.xlane.xlu1 %3216 }
 0x46d   : > { %10462 = vrcp.f32 %v3217_v17  ;;  %v3214_v32 = vpop.xlane.xlu0 %3213 }
 0x46e   : > { %10464 = vrcp.f32 %v3214_v32 }
 0x470   : > { %v3223_v2 = vpop.xlane.xlu1 %3222 }
 0x471   : > { %10466 = vrcp.f32 %v3223_v2  ;;  %v3220_v31 = vpop.xlane.xlu0 %3219 }
 0x472   : > { %10468 = vrcp.f32 %v3220_v31 }
 0x474   : > { %v3229_v23 = vpop.xlane.xlu1 %3228 }
 0x475   : > { %10470 = vrcp.f32 %v3229_v23  ;;  %v3226_v60 = vpop.xlane.xlu0 %3225 }
 0x476   : > { %10472 = vrcp.f32 %v3226_v60 }
 0x477   : > { %v10463_v53 = vpop.eup %10462 }
 0x478   : > { %v10465_v59 = vpop.eup %10464  ;;  %v3235_v37 = vpop.xlane.xlu1 %3234  ;;  %v3245_v49 = vmul.f32 %v10463_v53, %v12053_v4  ;;  %v14168_v53 = vld [vmem:[#allocation8_spill] sm:$0xff] }
 0x479   : > { %10474 = vrcp.f32 %v3235_v37  ;;  %v3232_v16 = vpop.xlane.xlu0 %3231  ;;  %v3243_v45 = vmul.f32 %v10465_v59, %v12055_v44  ;;  %v14169_v59 = vld [vmem:[#allocation7_spill] sm:$0xff] }
 0x47a   : > { %10476 = vrcp.f32 %v3232_v16 }
 0x47b   : > { %v10467_v41 = vpop.eup %10466  ;;  %9083 = vmatprep.mubr.msk.f32.mxu0 %vm1821_vm1, %v3243_v45 }
 0x47c   : > { %v10469_v8 = vpop.eup %10468  ;;  %9084 = vmatmul.mubr.msk.f32.vlgmr.msra.gmra.mrb[38].mxu0 %vm1821_vm1, %v3245_v49  ;;  %v3249_v28 = vmul.f32 %v10467_v41, %v12062_v25 }
 0x47d   : > { %v3238_v21 = vpop.xlane.xlu0 %3237  ;;  %v3247_v62 = vmul.f32 %v10469_v8, %v12064_v1  ;;  %9886 = vmatpush3.bf16.xpose.msk.msra.mxu0 %vm10942_vm6, %v9881_v57  ;;  %v14167_v57 = vld [vmem:[#allocation5_spill] sm:$0xff]  ;;  %v14170_v8 = vld [vmem:[#allocation10_spill] sm:$0xff] }
 0x47e   : > { %10478 = vrcp.f32 %v3238_v21  ;;  %9889 = vmatprep.subr.msk.bf16.mxu0 %vm10942_vm6, %v9887_v26 }
 0x47f   : > { %v10471_v4 = vpop.eup %10470  ;;  %9086 = vmatprep.mubr.msk.f32.mxu0 %vm1821_vm1, %v3247_v62  ;;  %v14171_v62 = vld [vmem:[#allocation9_spill] sm:$0xff] }
 0x480   : > { %v10473_v44 = vpop.eup %10472  ;;  %9087 = vmatmul.mubr.msk.f32.gmra.mrb[40].mxu0 %vm1821_vm1, %v3249_v28  ;;  %v3253_v46 = vmul.f32 %v10471_v4, %v12070_v7 }
 0x481   : > { %v3251_v27 = vmul.f32 %v10473_v44, %v12072_v9 }
 0x483   : > { %v10475_v1 = vpop.eup %10474  ;;  %9089 = vmatprep.mubr.msk.f32.mxu0 %vm1821_vm1, %v3251_v27 }
 0x484   : > { %v10477_v13 = vpop.eup %10476  ;;  %9090 = vmatmul.mubr.msk.f32.gmra.mrb[42].mxu0 %vm1821_vm1, %v3253_v46  ;;  %v3257_v6 = vmul.f32 %v10475_v1, %v12078_v33 }
 0x485   : > { %v3255_v25 = vmul.f32 %v10477_v13, %v12080_v34  ;;  %9892 = vmatpush3.bf16.xpose.msk.msra.mxu0 %vm10942_vm6, %v9887_v26 }
 0x487   : > { %9092 = vmatprep.mubr.msk.f32.mxu0 %vm1821_vm1, %v3255_v25  ;;  %v14172_v25 = vld [vmem:[#allocation12_spill] sm:$0xff] }
 0x488   : > { %v10479_v18 = vpop.eup %10478  ;;  %9093 = vmatmul.mubr.msk.f32.gmra.mrb[44].mxu0 %vm1821_vm1, %v3257_v6 }
 0x489   : > { %v3259_v7 = vmul.f32 %v10479_v18, %v12086_v40  ;;  %v14173_v18 = vld [vmem:[#allocation11_spill] sm:$0xff] }
 0x48b   : > { %9095 = vmatprep.mubr.msk.f32.mxu0 %vm1821_vm1, %v3259_v7 }
 0x4bd   : > { %v3241_v9 = vpop.xlane.xlu1 %3240 }
 0x4be   : > { %10480 = vrcp.f32 %v3241_v9 }
 0x4c8   : > { %v10481_v55 = vpop.eup %10480 }
 0x4c9   : > { %v3261_v3 = vmul.f32 %v10481_v55, %v12097_v20 }
 0x4cb   : > { %9096 = vmatmul.mubr.msk.f32.gmra.mrb[46].mxu0 %vm1821_vm1, %v3261_v3  ;;  %v1170_v3 = vld [vmem:[%s14033_s14] sm:$0xff] }
 0x54f   : > { %v9085_v34 = vpop.f32.mrb[38].mxu0 }
 0x550   : > { %v3368_v5 = vpop.f32.mrb[39].mxu0 }
 0x551   : > { %9106 = vmatprep.mubr.msk.f32.mxu0 %vm1196_vm5, %v3368_v5  ;;  %v1172_v5 = vld [vmem:[%s14033_s14 + $0x10] sm:$0xff] }
 0x552   : > { %9107 = vmatmul.mubr.msk.f32.vlgmr.msra.gmra.mrb[48].mxu0 %vm1196_vm5, %v9085_v34  ;;  %v1171_v34 = vld [vmem:[%s14033_s14 + $0x8] sm:$0xff] }
 0x553   : > { %v9088_v33 = vpop.f32.mrb[40].mxu0 }
 0x554   : > { %v3378_v42 = vpop.f32.mrb[41].mxu0 }
 0x555   : > { %9109 = vmatprep.mubr.msk.f32.mxu0 %vm1196_vm5, %v3378_v42  ;;  %v1173_v42 = vld [vmem:[%s14033_s14 + $0x18] sm:$0xff] }
 0x556   : > { %9110 = vmatmul.mubr.msk.f32.gmra.mrb[50].mxu0 %vm1196_vm5, %v9088_v33  ;;  %v9893_v33 = vpack.c.bf16 %v1171_v34, %v1170_v3 }
 0x557   : > { %v9091_v40 = vpop.f32.mrb[42].mxu0 }
 0x558   : > { %v3388_v56 = vpop.f32.mrb[43].mxu0  ;;  %9895 = vmatprep.subr.msk.bf16.mxu1 %vm10942_vm6, %v9893_v33 }
 0x559   : > { %9112 = vmatprep.mubr.msk.f32.mxu0 %vm1196_vm5, %v3388_v56  ;;  %9898 = vmatpush3.bf16.xpose.msk.msra.mxu1 %vm10942_vm6, %v9893_v33 }
 0x55a   : > { %9113 = vmatmul.mubr.msk.f32.gmra.mrb[52].mxu0 %vm1196_vm5, %v9091_v40  ;;  %v9899_v40 = vpack.c.bf16 %v1173_v42, %v1172_v5  ;;  %v1180_v5 = vld [vmem:[%s14034_s15 + $0x10] sm:$0xff]  ;;  %v14174_v42 = vmov 0 }
 0x55b   : > { %v9094_v20 = vpop.f32.mrb[44].mxu0  ;;  %v14175_v42 = vsel %vm12370_vm3, 4294967295, %v14174_v42 }
 0x55c   : > { %v3398_v35 = vpop.f32.mrb[45].mxu0  ;;  %9901 = vmatprep.subr.msk.bf16.mxu1 %vm10942_vm6, %v9899_v40  ;;  %14176 = vst [vmem:[#allocation19_spill] sm:$0xff] %v14175_v42 }
 0x55d   : > { %9115 = vmatprep.mubr.msk.f32.mxu0 %vm1196_vm5, %v3398_v35 }
 0x55e   : > { %9116 = vmatmul.mubr.msk.f32.gmra.mrb[54].mxu0 %vm1196_vm5, %v9094_v20 }
 0x561   : > { %9904 = vmatpush3.bf16.xpose.msk.msra.mxu1 %vm10942_vm6, %v9899_v40  ;;  %v1181_v40 = vld [vmem:[%s14034_s15 + $0x18] sm:$0xff] }
 0x59e   : > { %v9097_v54 = vpop.f32.mrb[46].mxu0 }
 0x59f   : > { %v3408_v38 = vpop.f32.mrb[47].mxu0 }
 0x5a0   : > { %9118 = vmatprep.mubr.msk.f32.mxu0 %vm1196_vm5, %v3408_v38 }
 0x5a1   : > { %9119 = vmatmul.mubr.msk.f32.gmra.mrb[56].mxu0 %vm1196_vm5, %v9097_v54 }
 0x625   : > { %v9108_v61 = vpop.f32.mrb[48].mxu0 }
 0x626   : > { %v3545_v15 = vadd.f32 %v9108_v61, %v7861_v24  ;;  %v3539_v36 = vpop.f32.mrb[49].mxu0 }
 0x627   : > { %v3540_v12 = vadd.f32 %v7861_v24, %v3539_v36 }
 0x628   : > { %v3589_v52 = vadd.f32 %v3545_v15, %v14164_v22 }
 0x629   : > { %v9111_v48 = vpop.f32.mrb[50].mxu0  ;;  %v3588_v63 = vadd.f32 %v3540_v12, %v14165_v50 }
 0x62a   : > { %v3555_v11 = vadd.f32 %v9111_v48, %v7861_v24  ;;  %v3549_v58 = vpop.f32.mrb[51].mxu0  ;;  %v3601_v19 = vsel %vm1196_vm5, %v3589_v52, 0.0 }
 0x62b   : > { %v3550_v51 = vadd.f32 %v7861_v24, %v3549_v58  ;;  %3602 = vadd.xlane.f32.xlu1 %v3601_v19  ;;  %v3598_v30 = vsel %vm1196_vm5, %v3588_v63, 0.0 }
 0x62c   : > { %3599 = vadd.xlane.f32.xlu0 %v3598_v30  ;;  %v3591_v14 = vadd.f32 %v3555_v11, %v14166_v47 }
 0x62d   : > { %v9114_v39 = vpop.f32.mrb[52].mxu0  ;;  %v3590_v17 = vadd.f32 %v3550_v51, %v14167_v57 }
 0x62e   : > { %v3565_v32 = vadd.f32 %v9114_v39, %v7861_v24  ;;  %v3559_v2 = vpop.f32.mrb[53].mxu0  ;;  %v3607_v31 = vsel %vm1196_vm5, %v3591_v14, 0.0 }
 0x62f   : > { %v3560_v23 = vadd.f32 %v7861_v24, %v3559_v2  ;;  %3608 = vadd.xlane.f32.xlu1 %v3607_v31  ;;  %v3604_v60 = vsel %vm1196_vm5, %v3590_v17, 0.0 }
 0x630   : > { %3605 = vadd.xlane.f32.xlu0 %v3604_v60  ;;  %v3593_v43 = vadd.f32 %v3565_v32, %v14168_v53 }
 0x631   : > { %v9117_v0 = vpop.f32.mrb[54].mxu0  ;;  %v3592_v37 = vadd.f32 %v3560_v23, %v14169_v59 }
 0x632   : > { %v3575_v16 = vadd.f32 %v9117_v0, %v7861_v24  ;;  %v3569_v45 = vpop.f32.mrb[55].mxu0  ;;  %v3613_v49 = vsel %vm1196_vm5, %v3593_v43, 0.0 }
 0x633   : > { %v3570_v26 = vadd.f32 %v7861_v24, %v3569_v45  ;;  %3614 = vadd.xlane.f32.xlu1 %v3613_v49  ;;  %v3610_v41 = vsel %vm1196_vm5, %v3592_v37, 0.0 }
 0x634   : > { %3611 = vadd.xlane.f32.xlu0 %v3610_v41  ;;  %v3595_v21 = vadd.f32 %v3575_v16, %v14170_v8  ;;  %v1174_v8 = vld [vmem:[%s14033_s14 + $0x20] sm:$0xff] }
 0x635   : > { %v12251_v28 = vadd.f32 %v3570_v26, %v14171_v62 }
 0x636   : > { %v3619_v4 = vsel %vm1196_vm5, %v3595_v21, 0.0 }
 0x637   : > { %3620 = vadd.xlane.f32.xlu1 %v3619_v4  ;;  %v3616_v44 = vsel %vm1196_vm5, %v12251_v28, 0.0  ;;  %v1177_v4 = vld [vmem:[%s14033_s14 + $0x38] sm:$0xff] }
 0x638   : > { %3617 = vadd.xlane.f32.xlu0 %v3616_v44 }
 0x674   : > { %v9120_v27 = vpop.f32.mrb[56].mxu0 }
 0x675   : > { %v3585_v46 = vadd.f32 %v9120_v27, %v7861_v24  ;;  %v3579_v1 = vpop.f32.mrb[57].mxu0 }
 0x676   : > { %v3580_v13 = vadd.f32 %v7861_v24, %v3579_v1 }
 0x677   : > { %v12257_v6 = vadd.f32 %v3585_v46, %v14172_v25 }
 0x678   : > { %v12260_v7 = vadd.f32 %v3580_v13, %v14173_v18 }
 0x679   : > { %v3625_v9 = vsel %vm1196_vm5, %v12257_v6, 0.0 }
 0x67a   : > { %3626 = vadd.xlane.f32.xlu1 %v3625_v9  ;;  %v3622_v55 = vsel %vm1196_vm5, %v12260_v7, 0.0 }
 0x67b   : > { %3623 = vadd.xlane.f32.xlu0 %v3622_v55 }
 0x6b8   : > { %v3603_v56 = vpop.xlane.xlu1 %3602 }
 0x6b9   : > { %v3630_v20 = vmul.f32 0.03125, %v3603_v56  ;;  %v3600_v35 = vpop.xlane.xlu0 %3599  ;;  %v9923_v56 = vpack.c.bf16 %v1181_v40, %v1180_v5 }
 0x6ba   : > { %v3629_v54 = vmul.f32 0.03125, %v3600_v35 }
 0x6bb   : > { %v12286_v38 = vsub.f32 %v3589_v52, %v3630_v20 }
 0x6bc   : > { %v12288_v24 = vsub.f32 %v3588_v63, %v3629_v54  ;;  %v3609_v61 = vpop.xlane.xlu1 %3608 }
 0x6bd   : > { %v3632_v15 = vmul.f32 0.03125, %v3609_v61  ;;  %v3606_v36 = vpop.xlane.xlu0 %3605  ;;  %v3650_v12 = vmul.f32 %v12286_v38, %v12286_v38 }
 0x6be   : > { %v3631_v22 = vmul.f32 0.03125, %v3606_v36  ;;  %v3649_v48 = vmul.f32 %v12288_v24, %v12288_v24 }
 0x6bf   : > { %v12294_v50 = vsub.f32 %v3591_v14, %v3632_v15  ;;  %v3662_v11 = vsel %vm1196_vm5, %v3650_v12, 0.0 }
 0x6c0   : > { %v12297_v58 = vsub.f32 %v3590_v17, %v3631_v22  ;;  %v3615_v52 = vpop.xlane.xlu1 %3614  ;;  %3663 = vadd.xlane.f32.xlu1 %v3662_v11  ;;  %v3659_v63 = vsel %vm1196_vm5, %v3649_v48, 0.0 }
 0x6c1   : > { %v3634_v19 = vmul.f32 0.03125, %v3615_v52  ;;  %3660 = vadd.xlane.f32.xlu0 %v3659_v63  ;;  %v3612_v51 = vpop.xlane.xlu0 %3611  ;;  %v3652_v30 = vmul.f32 %v12294_v50, %v12294_v50 }
 0x6c2   : > { %v3633_v47 = vmul.f32 0.03125, %v3612_v51  ;;  %v3651_v39 = vmul.f32 %v12297_v58, %v12297_v58 }
 0x6c3   : > { %v12304_v14 = vsub.f32 %v3593_v43, %v3634_v19  ;;  %v3668_v57 = vsel %vm1196_vm5, %v3652_v30, 0.0 }
 0x6c4   : > { %v12307_v17 = vsub.f32 %v3592_v37, %v3633_v47  ;;  %v3621_v32 = vpop.xlane.xlu1 %3620  ;;  %3669 = vadd.xlane.f32.xlu1 %v3668_v57  ;;  %v3665_v2 = vsel %vm1196_vm5, %v3651_v39, 0.0 }
 0x6c5   : > { %v3636_v31 = vmul.f32 0.03125, %v3621_v32  ;;  %3666 = vadd.xlane.f32.xlu0 %v3665_v2  ;;  %v3618_v23 = vpop.xlane.xlu0 %3617  ;;  %v3654_v60 = vmul.f32 %v12304_v14, %v12304_v14 }
 0x6c6   : > { %v3635_v53 = vmul.f32 0.03125, %v3618_v23  ;;  %v3653_v0 = vmul.f32 %v12307_v17, %v12307_v17 }
 0x6c7   : > { %v12314_v43 = vsub.f32 %v3595_v21, %v3636_v31  ;;  %v3674_v59 = vsel %vm1196_vm5, %v3654_v60, 0.0  ;;  %v1175_v21 = vld [vmem:[%s14033_s14 + $0x28] sm:$0xff] }
 0x6c8   : > { %v12318_v37 = vsub.f32 %v12251_v28, %v3635_v53  ;;  %3675 = vadd.xlane.f32.xlu1 %v3674_v59  ;;  %v3671_v16 = vsel %vm1196_vm5, %v3653_v0, 0.0  ;;  %v9905_v62 = vpack.c.bf16 %v1175_v21, %v1174_v8  ;;  %v1176_v28 = vld [vmem:[%s14033_s14 + $0x30] sm:$0xff]  ;;  %v7876_v53 = vld [vmem:[%s14035_s16 + $0x5] ss:$0 sm:$0xff] }
 0x6c9   : > { %3672 = vadd.xlane.f32.xlu0 %v3671_v16  ;;  %v3656_v45 = vmul.f32 %v12314_v43, %v12314_v43  ;;  %v9911_v44 = vpack.c.bf16 %v1177_v4, %v1176_v28 }
 0x6ca   : > { %v3655_v49 = vmul.f32 %v12318_v37, %v12318_v37  ;;  %9907 = vmatprep.subr.msk.bf16.mxu1 %vm10942_vm6, %v9905_v62 }
 0x6cb   : > { %v3680_v26 = vsel %vm1196_vm5, %v3656_v45, 0.0  ;;  %9910 = vmatpush3.bf16.xpose.msk.msra.mxu1 %vm10942_vm6, %v9905_v62 }
 0x6cc   : > { %3681 = vadd.xlane.f32.xlu1 %v3680_v26  ;;  %v3677_v41 = vsel %vm1196_vm5, %v3655_v49, 0.0  ;;  %9913 = vmatprep.subr.msk.bf16.mxu1 %vm10942_vm6, %v9911_v44 }
 0x6cd   : > { %3678 = vadd.xlane.f32.xlu0 %v3677_v41  ;;  %v7877_v41 = vld [vmem:[%s14035_s16 + $0x6] ss:$0 sm:$0xff] }
 0x6d3   : > { %9916 = vmatpush3.bf16.xpose.msk.msra.mxu1 %vm10942_vm6, %v9911_v44 }
 0x707   : > { %v3627_v27 = vpop.xlane.xlu1 %3626 }
 0x708   : > { %v3638_v46 = vmul.f32 0.03125, %v3627_v27  ;;  %v3624_v1 = vpop.xlane.xlu0 %3623 }
 0x709   : > { %v3637_v13 = vmul.f32 0.03125, %v3624_v1 }
 0x70a   : > { %v12348_v25 = vsub.f32 %v12257_v6, %v3638_v46  ;;  %v1178_v6 = vld [vmem:[%s14034_s15] sm:$0xff] }
 0x70b   : > { %v12351_v18 = vsub.f32 %v12260_v7, %v3637_v13  ;;  %v1179_v7 = vld [vmem:[%s14034_s15 + $0x8] sm:$0xff] }
 0x70c   : > { %v3658_v9 = vmul.f32 %v12348_v25, %v12348_v25  ;;  %v9917_v33 = vpack.c.bf16 %v1179_v7, %v1178_v6 }
 0x70d   : > { %v3657_v55 = vmul.f32 %v12351_v18, %v12351_v18 }
 0x70e   : > { %v3686_v3 = vsel %vm1196_vm5, %v3658_v9, 0.0  ;;  %9919 = vmatprep.subr.msk.bf16.mxu0 %vm12370_vm3, %v9917_v33 }
 0x70f   : > { %3687 = vadd.xlane.f32.xlu1 %v3686_v3  ;;  %v3683_v34 = vsel %vm1196_vm5, %v3657_v55, 0.0  ;;  %9922 = vmatpush3.bf16.xpose.msk.msra.mxu0 %vm12370_vm3, %v9917_v33 }
 0x710   : > { %3684 = vadd.xlane.f32.xlu0 %v3683_v34  ;;  %9925 = vmatprep.subr.msk.bf16.mxu0 %vm12370_vm3, %v9923_v56 }
 0x717   : > { %9928 = vmatpush3.bf16.xpose.msk.msra.mxu0 %vm12370_vm3, %v9923_v56 }
 0x74d   : > { %v3664_v20 = vpop.xlane.xlu1 %3663 }
 0x74e   : > { %v3690_v35 = vmul.f32 0.03125, %v3664_v20  ;;  %v3661_v54 = vpop.xlane.xlu0 %3660 }
 0x74f   : > { %v3689_v61 = vmul.f32 0.03125, %v3661_v54 }
 0x750   : > { %v3700_v15 = vadd.f32 1e-05, %v3690_v35 }
 0x751   : > { %v3699_v36 = vadd.f32 1e-05, %v3689_v61  ;;  %v3670_v12 = vpop.xlane.xlu1 %3669 }
 0x752   : > { %10482 = vrsqrt.f32 %v3700_v15  ;;  %v3692_v22 = vmul.f32 0.03125, %v3670_v12  ;;  %v3667_v48 = vpop.xlane.xlu0 %3666 }
 0x753   : > { %10484 = vrsqrt.f32 %v3699_v36  ;;  %v3691_v11 = vmul.f32 0.03125, %v3667_v48 }
 0x754   : > { %v3702_v52 = vadd.f32 1e-05, %v3692_v22 }
 0x755   : > { %v3701_v63 = vadd.f32 1e-05, %v3691_v11  ;;  %v3676_v19 = vpop.xlane.xlu1 %3675 }
 0x756   : > { %10486 = vrsqrt.f32 %v3702_v52  ;;  %v3694_v51 = vmul.f32 0.03125, %v3676_v19  ;;  %v3673_v30 = vpop.xlane.xlu0 %3672 }
 0x757   : > { %10488 = vrsqrt.f32 %v3701_v63  ;;  %v3693_v47 = vmul.f32 0.03125, %v3673_v30 }
 0x758   : > { %v3704_v39 = vadd.f32 1e-05, %v3694_v51  ;;  %v7878_v51 = vld [vmem:[%s14036_s17] ss:$0 sm:$0xff] }
 0x759   : > { %v3703_v57 = vadd.f32 1e-05, %v3693_v47  ;;  %v3682_v32 = vpop.xlane.xlu1 %3681 }
 0x75a   : > { %10490 = vrsqrt.f32 %v3704_v39  ;;  %v3696_v2 = vmul.f32 0.03125, %v3682_v32  ;;  %v3679_v31 = vpop.xlane.xlu0 %3678 }
 0x75b   : > { %10492 = vrsqrt.f32 %v3703_v57  ;;  %v3695_v23 = vmul.f32 0.03125, %v3679_v31 }
 0x75c   : > { %v10483_v60 = vpop.eup %10482  ;;  %v3706_v0 = vadd.f32 1e-05, %v3696_v2 }
 0x75d   : > { %v10485_v59 = vpop.eup %10484  ;;  %v3720_v16 = vmul.f32 %v10483_v60, %v12286_v38  ;;  %v3705_v45 = vadd.f32 1e-05, %v3695_v23 }
 0x75e   : > { %10494 = vrsqrt.f32 %v3706_v0  ;;  %v3719_v49 = vmul.f32 %v10485_v59, %v12288_v24 }
 0x75f   : > { %v3734_v26 = vmul.f32 %v7876_v53, %v3720_v16  ;;  %10496 = vrsqrt.f32 %v3705_v45 }
 0x760   : > { %v10487_v8 = vpop.eup %10486  ;;  %v3733_v21 = vmul.f32 %v7876_v53, %v3719_v49 }
 0x761   : > { %v10489_v62 = vpop.eup %10488  ;;  %v3722_v28 = vmul.f32 %v10487_v8, %v12294_v50  ;;  %v12397_v38 = vadd.f32 %v7877_v41, %v3734_v26 }
 0x762   : > { %v12394_v4 = vadd.f32 %v7877_v41, %v3733_v21  ;;  %v3721_v44 = vmul.f32 %v10489_v62, %v12297_v58 }
 0x763   : > { %v3736_v27 = vmul.f32 %v7876_v53, %v3722_v28 }
 0x764   : > { %v10491_v46 = vpop.eup %10490  ;;  %9137 = vmatprep.mubr.msk.f32.mxu1 %vm1196_vm5, %v12394_v4  ;;  %v3735_v24 = vmul.f32 %v7876_v53, %v3721_v44 }
 0x765   : > { %v10493_v1 = vpop.eup %10492  ;;  %9138 = vmatmul.mubr.msk.f32.vlgmr.msra.gmra.mrb[52].mxu1 %vm1196_vm5, %v12397_v38  ;;  %v3724_v13 = vmul.f32 %v10491_v46, %v12304_v14  ;;  %v12407_v55 = vadd.f32 %v7877_v41, %v3736_v27 }
 0x766   : > { %v12404_v9 = vadd.f32 %v7877_v41, %v3735_v24  ;;  %v3723_v50 = vmul.f32 %v10493_v1, %v12307_v17 }
 0x767   : > { %v3738_v58 = vmul.f32 %v7876_v53, %v3724_v13 }
 0x768   : > { %v10495_v3 = vpop.eup %10494  ;;  %9140 = vmatprep.mubr.msk.f32.mxu1 %vm1196_vm5, %v12404_v9  ;;  %v3737_v34 = vmul.f32 %v7876_v53, %v3723_v50 }
 0x769   : > { %v10497_v6 = vpop.eup %10496  ;;  %9141 = vmatmul.mubr.msk.f32.gmra.mrb[54].mxu1 %vm1196_vm5, %v12407_v55  ;;  %v3726_v7 = vmul.f32 %v10495_v3, %v12314_v43  ;;  %v12417_v33 = vadd.f32 %v7877_v41, %v3738_v58  ;;  %v7897_v58 = vld [vmem:[%s14035_s16 + $0x4] ss:$0 sm:$0xff] }
 0x76a   : > { %v12414_v5 = vadd.f32 %v7877_v41, %v3737_v34  ;;  %v3725_v14 = vmul.f32 %v10497_v6, %v12318_v37 }
 0x76b   : > { %v3740_v17 = vmul.f32 %v7876_v53, %v3726_v7 }
 0x76c   : > { %9143 = vmatprep.mubr.msk.f32.mxu1 %vm1196_vm5, %v12414_v5  ;;  %v3739_v40 = vmul.f32 %v7876_v53, %v3725_v14 }
 0x76d   : > { %9144 = vmatmul.mubr.msk.f32.gmra.mrb[56].mxu1 %vm1196_vm5, %v12417_v33  ;;  %v12425_v20 = vadd.f32 %v7877_v41, %v3740_v17 }
 0x76e   : > { %v12423_v56 = vadd.f32 %v7877_v41, %v3739_v40 }
 0x770   : > { %9146 = vmatprep.mubr.msk.f32.mxu1 %vm1196_vm5, %v12423_v56 }
 0x771   : > { %9147 = vmatmul.mubr.msk.f32.gmra.mrb[58].mxu1 %vm1196_vm5, %v12425_v20 }
 0x79c   : > { %v3688_v43 = vpop.xlane.xlu1 %3687 }
 0x79d   : > { %v3698_v37 = vmul.f32 0.03125, %v3688_v43  ;;  %v3685_v35 = vpop.xlane.xlu0 %3684 }
 0x79e   : > { %v3697_v54 = vmul.f32 0.03125, %v3685_v35 }
 0x79f   : > { %v3708_v61 = vadd.f32 1e-05, %v3698_v37 }
 0x7a0   : > { %v3707_v15 = vadd.f32 1e-05, %v3697_v54 }
 0x7a1   : > { %10498 = vrsqrt.f32 %v3708_v61 }
 0x7a2   : > { %10500 = vrsqrt.f32 %v3707_v15 }
 0x7ab   : > { %v10499_v36 = vpop.eup %10498 }
 0x7ac   : > { %v10501_v12 = vpop.eup %10500  ;;  %v3728_v22 = vmul.f32 %v10499_v36, %v12348_v25 }
 0x7ad   : > { %v3727_v48 = vmul.f32 %v10501_v12, %v12351_v18 }
 0x7ae   : > { %v3742_v11 = vmul.f32 %v7876_v53, %v3728_v22 }
 0x7af   : > { %v3741_v52 = vmul.f32 %v7876_v53, %v3727_v48 }
 0x7b0   : > { %v12435_v19 = vadd.f32 %v7877_v41, %v3742_v11 }
 0x7b1   : > { %v12433_v63 = vadd.f32 %v7877_v41, %v3741_v52 }
 0x7b3   : > { %9149 = vmatprep.mubr.msk.f32.mxu1 %vm1196_vm5, %v12433_v63 }
 0x7b4   : > { %9150 = vmatmul.mubr.msk.f32.gmra.mrb[60].mxu1 %vm1196_vm5, %v12435_v19 }
 0x838   : > { %v9139_v30 = vpop.f32.mrb[52].mxu1 }
 0x839   : > { %v3889_v25 = vadd.f32 %v9139_v30, %v7878_v51  ;;  %v3883_v47 = vpop.f32.mrb[53].mxu1 }
 0x83a   : > { %v3884_v18 = vadd.f32 %v7878_v51, %v3883_v47 }
 0x83b   : > { %v3933_v32 = vmax.f32 %v3889_v25, 0.0 }
 0x83c   : > { %v3932_v39 = vmax.f32 %v3884_v18, 0.0  ;;  %v9142_v57 = vpop.f32.mrb[54].mxu1 }
 0x83d   : > { %v3899_v2 = vadd.f32 %v9142_v57, %v7878_v51  ;;  %v3893_v31 = vpop.f32.mrb[55].mxu1 }
 0x83e   : > { %v3894_v23 = vadd.f32 %v7878_v51, %v3893_v31  ;;  %9160 = vmatprep.mubr.msk.f32.mxu0 %vm3946_vm2, %v3932_v39 }
 0x83f   : > { %9161 = vmatmul.mubr.msk.f32.vlgmr.msra.gmra.mrb[58].mxu0 %vm3946_vm2, %v3933_v32  ;;  %v3935_v0 = vmax.f32 %v3899_v2, 0.0 }
 0x840   : > { %v3934_v60 = vmax.f32 %v3894_v23, 0.0  ;;  %v9145_v53 = vpop.f32.mrb[56].mxu1 }
 0x841   : > { %v3909_v59 = vadd.f32 %v9145_v53, %v7878_v51  ;;  %v3903_v16 = vpop.f32.mrb[57].mxu1 }
 0x842   : > { %v3904_v45 = vadd.f32 %v7878_v51, %v3903_v16  ;;  %9163 = vmatprep.mubr.msk.f32.mxu0 %vm3946_vm2, %v3934_v60 }
 0x843   : > { %9164 = vmatmul.mubr.msk.f32.gmra.mrb[60].mxu0 %vm3946_vm2, %v3935_v0  ;;  %v3937_v41 = vmax.f32 %v3909_v59, 0.0 }
 0x844   : > { %v3936_v49 = vmax.f32 %v3904_v45, 0.0  ;;  %v9148_v26 = vpop.f32.mrb[58].mxu1 }
 0x845   : > { %v3919_v8 = vadd.f32 %v9148_v26, %v7878_v51  ;;  %v3913_v21 = vpop.f32.mrb[59].mxu1 }
 0x846   : > { %v3914_v62 = vadd.f32 %v7878_v51, %v3913_v21  ;;  %9166 = vmatprep.mubr.msk.f32.mxu0 %vm3946_vm2, %v3936_v49 }
 0x847   : > { %9167 = vmatmul.mubr.msk.f32.gmra.mrb[62].mxu0 %vm3946_vm2, %v3937_v41  ;;  %v3939_v44 = vmax.f32 %v3919_v8, 0.0 }
 0x848   : > { %v3938_v28 = vmax.f32 %v3914_v62, 0.0 }
 0x84a   : > { %9169 = vmatprep.mubr.msk.f32.mxu0 %vm3946_vm2, %v3938_v28 }
 0x84b   : > { %9170 = vmatmul.mubr.msk.f32.gmra.mrb[64].mxu0 %vm3946_vm2, %v3939_v44 }
 0x887   : > { %v9151_v27 = vpop.f32.mrb[60].mxu1 }
 0x888   : > { %v3929_v46 = vadd.f32 %v9151_v27, %v7878_v51  ;;  %v3923_v24 = vpop.f32.mrb[61].mxu1 }
 0x889   : > { %v3924_v1 = vadd.f32 %v7878_v51, %v3923_v24 }
 0x88a   : > { %v3941_v50 = vmax.f32 %v3929_v46, 0.0 }
 0x88b   : > { %v3940_v13 = vmax.f32 %v3924_v1, 0.0 }
 0x88d   : > { %9172 = vmatprep.mubr.msk.f32.mxu0 %vm3946_vm2, %v3940_v13 }
 0x88e   : > { %9173 = vmatmul.mubr.msk.f32.gmra.mrb[66].mxu0 %vm3946_vm2, %v3941_v50 }
 0x912   : > { %v9162_v3 = vpop.f32.mrb[58].mxu0 }
 0x913   : > { %v4061_v34 = vadd.f32 %v9162_v3, %v7897_v58  ;;  %v4055_v6 = vpop.f32.mrb[59].mxu0 }
 0x914   : > { %v4056_v7 = vadd.f32 %v7897_v58, %v4055_v6 }
 0x915   : > { %v4105_v14 = vadd.f32 %v4061_v34, %v12397_v38 }
 0x916   : > { %v4104_v17 = vadd.f32 %v4056_v7, %v12394_v4  ;;  %v9165_v40 = vpop.f32.mrb[60].mxu0 }
 0x917   : > { %v4071_v43 = vadd.f32 %v9165_v40, %v7897_v58  ;;  %v4065_v37 = vpop.f32.mrb[61].mxu0  ;;  %v4117_v35 = vsel %vm1196_vm5, %v4105_v14, 0.0 }
 0x918   : > { %v4066_v54 = vadd.f32 %v7897_v58, %v4065_v37  ;;  %4118 = vadd.xlane.f32.xlu1 %v4117_v35  ;;  %v4114_v61 = vsel %vm1196_vm5, %v4104_v17, 0.0 }
 0x919   : > { %v4107_v15 = vadd.f32 %v4071_v43, %v12407_v55  ;;  %4115 = vadd.xlane.f32.xlu0 %v4114_v61 }
 0x91a   : > { %v4106_v36 = vadd.f32 %v4066_v54, %v12404_v9  ;;  %v9168_v12 = vpop.f32.mrb[62].mxu0 }
 0x91b   : > { %v4081_v22 = vadd.f32 %v9168_v12, %v7897_v58  ;;  %v4075_v48 = vpop.f32.mrb[63].mxu0  ;;  %v4123_v38 = vsel %vm1196_vm5, %v4107_v15, 0.0 }
 0x91c   : > { %v4076_v4 = vadd.f32 %v7897_v58, %v4075_v48  ;;  %4124 = vadd.xlane.f32.xlu1 %v4123_v38  ;;  %v4120_v11 = vsel %vm1196_vm5, %v4106_v36, 0.0 }
 0x91d   : > { %v4109_v52 = vadd.f32 %v4081_v22, %v12417_v33  ;;  %4121 = vadd.xlane.f32.xlu0 %v4120_v11  ;;  %v7914_v11 = vld [vmem:[%s14029_s10 + $0x20] sm:$0xff] }
 0x91e   : > { %v4108_v51 = vadd.f32 %v4076_v4, %v12414_v5  ;;  %v9171_v30 = vpop.f32.mrb[64].mxu0 }
 0x91f   : > { %v4091_v25 = vadd.f32 %v9171_v30, %v7897_v58  ;;  %v4085_v55 = vpop.f32.mrb[65].mxu0  ;;  %v4129_v47 = vsel %vm1196_vm5, %v4109_v52, 0.0 }
 0x920   : > { %v4086_v9 = vadd.f32 %v7897_v58, %v4085_v55  ;;  %4130 = vadd.xlane.f32.xlu1 %v4129_v47  ;;  %v4126_v18 = vsel %vm1196_vm5, %v4108_v51, 0.0  ;;  %v7916_v47 = vld [vmem:[%s14029_s10 + $0x30] sm:$0xff] }
 0x921   : > { %v4111_v39 = vadd.f32 %v4091_v25, %v12425_v20  ;;  %4127 = vadd.xlane.f32.xlu0 %v4126_v18  ;;  %v7919_v25 = vld [vmem:[%s14030_s11 + $0x28] sm:$0xff]  ;;  %v7920_v18 = vld [vmem:[%s14030_s11 + $0x30] sm:$0xff] }
 0x922   : > { %v4110_v57 = vadd.f32 %v4086_v9, %v12423_v56  ;;  %v7917_v9 = vld [vmem:[%s14029_s10 + $0x38] sm:$0xff] }
 0x923   : > { %v4135_v32 = vsel %vm1196_vm5, %v4111_v39, 0.0 }
 0x924   : > { %4136 = vadd.xlane.f32.xlu1 %v4135_v32  ;;  %v4132_v33 = vsel %vm1196_vm5, %v4110_v57, 0.0 }
 0x925   : > { %4133 = vadd.xlane.f32.xlu0 %v4132_v33 }
 0x961   : > { %v9174_v5 = vpop.f32.mrb[66].mxu0 }
 0x962   : > { %v4101_v2 = vadd.f32 %v9174_v5, %v7897_v58  ;;  %v4095_v31 = vpop.f32.mrb[67].mxu0 }
 0x963   : > { %v4096_v23 = vadd.f32 %v7897_v58, %v4095_v31 }
 0x964   : > { %v12474_v60 = vadd.f32 %v4101_v2, %v12435_v19 }
 0x965   : > { %v12477_v53 = vadd.f32 %v4096_v23, %v12433_v63 }
 0x966   : > { %v4141_v20 = vsel %vm1196_vm5, %v12474_v60, 0.0 }
 0x967   : > { %4142 = vadd.xlane.f32.xlu1 %v4141_v20  ;;  %v4138_v56 = vsel %vm1196_vm5, %v12477_v53, 0.0 }
 0x968   : > { %4139 = vadd.xlane.f32.xlu0 %v4138_v56 }
 0x9a5   : > { %v4119_v0 = vpop.xlane.xlu1 %4118 }
 0x9a6   : > { %v4145_v59 = vmul.f32 0.03125, %v4119_v0  ;;  %v4116_v16 = vpop.xlane.xlu0 %4115 }
 0x9a7   : > { %v4144_v45 = vmul.f32 0.03125, %v4116_v16 }
 0x9a8   : > { %v12483_v49 = vsub.f32 %v4105_v14, %v4145_v59 }
 0x9a9   : > { %v12485_v26 = vsub.f32 %v4104_v17, %v4144_v45  ;;  %v4125_v19 = vpop.xlane.xlu1 %4124 }
 0x9aa   : > { %v4147_v41 = vmul.f32 0.03125, %v4125_v19  ;;  %v4122_v63 = vpop.xlane.xlu0 %4121  ;;  %v4165_v8 = vmul.f32 %v12483_v49, %v12483_v49 }
 0x9ab   : > { %v4146_v21 = vmul.f32 0.03125, %v4122_v63  ;;  %v4164_v62 = vmul.f32 %v12485_v26, %v12485_v26 }
 0x9ac   : > { %v12491_v28 = vsub.f32 %v4107_v15, %v4147_v41  ;;  %v4177_v44 = vsel %vm1196_vm5, %v4165_v8, 0.0 }
 0x9ad   : > { %v12494_v27 = vsub.f32 %v4106_v36, %v4146_v21  ;;  %v4131_v46 = vpop.xlane.xlu1 %4130  ;;  %4178 = vadd.xlane.f32.xlu1 %v4177_v44  ;;  %v4174_v24 = vsel %vm1196_vm5, %v4164_v62, 0.0 }
 0x9ae   : > { %v4149_v1 = vmul.f32 0.03125, %v4131_v46  ;;  %4175 = vadd.xlane.f32.xlu0 %v4174_v24  ;;  %v4128_v13 = vpop.xlane.xlu0 %4127  ;;  %v4167_v50 = vmul.f32 %v12491_v28, %v12491_v28 }
 0x9af   : > { %v4148_v58 = vmul.f32 0.03125, %v4128_v13  ;;  %v4166_v3 = vmul.f32 %v12494_v27, %v12494_v27 }
 0x9b0   : > { %v12501_v34 = vsub.f32 %v4109_v52, %v4149_v1  ;;  %v4183_v6 = vsel %vm1196_vm5, %v4167_v50, 0.0  ;;  %v7915_v52 = vld [vmem:[%s14029_s10 + $0x28] sm:$0xff] }
 0x9b1   : > { %v12504_v7 = vsub.f32 %v4108_v51, %v4148_v58  ;;  %v4137_v14 = vpop.xlane.xlu1 %4136  ;;  %4184 = vadd.xlane.f32.xlu1 %v4183_v6  ;;  %v4180_v17 = vsel %vm1196_vm5, %v4166_v3, 0.0  ;;  %v7918_v51 = vld [vmem:[%s14030_s11 + $0x20] sm:$0xff]  ;;  %v9929_v30 = vpack.c.bf16 %v7915_v52, %v7914_v11 }
 0x9b2   : > { %v4151_v40 = vmul.f32 0.03125, %v4137_v14  ;;  %4181 = vadd.xlane.f32.xlu0 %v4180_v17  ;;  %v4134_v43 = vpop.xlane.xlu0 %4133  ;;  %v4169_v37 = vmul.f32 %v12501_v34, %v12501_v34  ;;  %v9941_v55 = vpack.c.bf16 %v7919_v25, %v7918_v51  ;;  %v12594_v51 = vld [vmem:[%s14035_s16 + $0x8] ss:$0 sm:$0xff] }
 0x9b3   : > { %v4150_v35 = vmul.f32 0.03125, %v4134_v43  ;;  %v4168_v54 = vmul.f32 %v12504_v7, %v12504_v7  ;;  %9931 = vmatprep.subr.msk.bf16.mxu1 %vm10942_vm6, %v9929_v30 }
 0x9b4   : > { %v12511_v61 = vsub.f32 %v4111_v39, %v4151_v40  ;;  %v4189_v15 = vsel %vm1196_vm5, %v4169_v37, 0.0  ;;  %9943 = vmatprep.subr.msk.bf16.mxu0 %vm10942_vm6, %v9941_v55  ;;  %9934 = vmatpush3.bf16.xpose.msk.msra.mxu1 %vm10942_vm6, %v9929_v30  ;;  %v9935_v39 = vpack.c.bf16 %v7917_v9, %v7916_v47 }
 0x9b5   : > { %v12514_v36 = vsub.f32 %v4110_v57, %v4150_v35  ;;  %4190 = vadd.xlane.f32.xlu1 %v4189_v15  ;;  %v4186_v12 = vsel %vm1196_vm5, %v4168_v54, 0.0  ;;  %9946 = vmatpush3.bf16.xpose.msk.msra.mxu0 %vm10942_vm6, %v9941_v55  ;;  %v7921_v57 = vld [vmem:[%s14030_s11 + $0x38] sm:$0xff]  ;;  %v7924_v55 = vld [vmem:[%s14031_s12 + $0x30] sm:$0xff] }
 0x9b6   : > { %4187 = vadd.xlane.f32.xlu0 %v4186_v12  ;;  %v4171_v22 = vmul.f32 %v12511_v61, %v12511_v61  ;;  %v9947_v32 = vpack.c.bf16 %v7921_v57, %v7920_v18  ;;  %9937 = vmatprep.subr.msk.bf16.mxu1 %vm10942_vm6, %v9935_v39  ;;  %v12586_v12 = vld [vmem:[%s14035_s16 + $0x7] ss:$0 sm:$0xff] }
 0x9b7   : > { %v4170_v48 = vmul.f32 %v12514_v36, %v12514_v36 }
 0x9b8   : > { %v4195_v38 = vsel %vm1196_vm5, %v4171_v22, 0.0  ;;  %9949 = vmatprep.subr.msk.bf16.mxu0 %vm10942_vm6, %v9947_v32 }
 0x9b9   : > { %4196 = vadd.xlane.f32.xlu1 %v4195_v38  ;;  %v4192_v4 = vsel %vm1196_vm5, %v4170_v48, 0.0 }
 0x9ba   : > { %4193 = vadd.xlane.f32.xlu0 %v4192_v4 }
 0x9bc   : > { %9940 = vmatpush3.bf16.xpose.msk.msra.mxu1 %vm10942_vm6, %v9935_v39 }
 0x9bd   : > { %9952 = vmatpush3.bf16.xpose.msk.msra.mxu0 %vm10942_vm6, %v9947_v32 }
 0x9f4   : > { %v4143_v33 = vpop.xlane.xlu1 %4142 }
 0x9f5   : > { %v4153_v5 = vmul.f32 0.03125, %v4143_v33  ;;  %v4140_v2 = vpop.xlane.xlu0 %4139 }
 0x9f6   : > { %v4152_v31 = vmul.f32 0.03125, %v4140_v2 }
 0x9f7   : > { %v12564_v23 = vsub.f32 %v12474_v60, %v4153_v5  ;;  %v7922_v60 = vld [vmem:[%s14031_s12 + $0x20] sm:$0xff] }
 0x9f8   : > { %v12567_v20 = vsub.f32 %v12477_v53, %v4152_v31  ;;  %v7923_v53 = vld [vmem:[%s14031_s12 + $0x28] sm:$0xff] }
 0x9f9   : > { %v4173_v56 = vmul.f32 %v12564_v23, %v12564_v23  ;;  %v9953_v45 = vpack.c.bf16 %v7923_v53, %v7922_v60 }
 0x9fa   : > { %v4172_v0 = vmul.f32 %v12567_v20, %v12567_v20 }
 0x9fb   : > { %v4201_v59 = vsel %vm1196_vm5, %v4173_v56, 0.0  ;;  %9955 = vmatprep.subr.msk.bf16.mxu1 %vm10942_vm6, %v9953_v45 }
 0x9fc   : > { %4202 = vadd.xlane.f32.xlu1 %v4201_v59  ;;  %v4198_v16 = vsel %vm1196_vm5, %v4172_v0, 0.0 }
 0x9fd   : > { %4199 = vadd.xlane.f32.xlu0 %v4198_v16 }
 0xa3a   : > { %v4179_v19 = vpop.xlane.xlu1 %4178 }
 0xa3b   : > { %v4205_v41 = vmul.f32 0.03125, %v4179_v19  ;;  %v4176_v63 = vpop.xlane.xlu0 %4175 }
 0xa3c   : > { %v4204_v8 = vmul.f32 0.03125, %v4176_v63 }
 0xa3d   : > { %v4215_v21 = vadd.f32 1e-05, %v4205_v41 }
 0xa3e   : > { %v4214_v62 = vadd.f32 1e-05, %v4204_v8  ;;  %v4185_v44 = vpop.xlane.xlu1 %4184 }
 0xa3f   : > { %10502 = vrsqrt.f32 %v4215_v21  ;;  %v4207_v46 = vmul.f32 0.03125, %v4185_v44  ;;  %v4182_v24 = vpop.xlane.xlu0 %4181 }
 0xa40   : > { %10504 = vrsqrt.f32 %v4214_v62  ;;  %v4206_v1 = vmul.f32 0.03125, %v4182_v24 }
 0xa41   : > { %v4217_v13 = vadd.f32 1e-05, %v4207_v46 }
 0xa42   : > { %v4216_v50 = vadd.f32 1e-05, %v4206_v1  ;;  %v4191_v58 = vpop.xlane.xlu1 %4190 }
 0xa43   : > { %10506 = vrsqrt.f32 %v4217_v13  ;;  %v4209_v3 = vmul.f32 0.03125, %v4191_v58  ;;  %v4188_v6 = vpop.xlane.xlu0 %4187 }
 0xa44   : > { %10508 = vrsqrt.f32 %v4216_v50  ;;  %v4208_v14 = vmul.f32 0.03125, %v4188_v6 }
 0xa45   : > { %v4219_v17 = vadd.f32 1e-05, %v4209_v3 }
 0xa46   : > { %v4218_v40 = vadd.f32 1e-05, %v4208_v14  ;;  %v4197_v43 = vpop.xlane.xlu1 %4196 }
 0xa47   : > { %10510 = vrsqrt.f32 %v4219_v17  ;;  %v4211_v37 = vmul.f32 0.03125, %v4197_v43  ;;  %v4194_v35 = vpop.xlane.xlu0 %4193 }
 0xa48   : > { %10512 = vrsqrt.f32 %v4218_v40  ;;  %v4210_v54 = vmul.f32 0.03125, %v4194_v35 }
 0xa49   : > { %v10503_v15 = vpop.eup %10502  ;;  %v4221_v22 = vadd.f32 1e-05, %v4211_v37 }
 0xa4a   : > { %v10505_v48 = vpop.eup %10504  ;;  %v4235_v38 = vmul.f32 %v10503_v15, %v12483_v49  ;;  %v4220_v4 = vadd.f32 1e-05, %v4210_v54  ;;  %v7925_v49 = vld [vmem:[%s14031_s12 + $0x38] sm:$0xff] }
 0xa4b   : > { %10514 = vrsqrt.f32 %v4221_v22  ;;  %v4234_v11 = vmul.f32 %v10505_v48, %v12485_v26  ;;  %v9959_v32 = vpack.c.bf16 %v7925_v49, %v7924_v55 }
 0xa4c   : > { %v4249_v52 = vmul.f32 %v12586_v12, %v4235_v38  ;;  %10516 = vrsqrt.f32 %v4220_v4  ;;  %v14187_v38 = vld [vmem:[#allocation13_spill] sm:$0xff] }
 0xa4d   : > { %v10507_v30 = vpop.eup %10506  ;;  %v4248_v25 = vmul.f32 %v12586_v12, %v4234_v11  ;;  %v14188_v11 = vld [vmem:[#allocation14_spill] sm:$0xff] }
 0xa4e   : > { %v10509_v26 = vpop.eup %10508  ;;  %v4237_v47 = vmul.f32 %v10507_v30, %v12491_v28  ;;  %v12609_v39 = vadd.f32 %v12594_v51, %v4249_v52 }
 0xa4f   : > { %v12605_v9 = vadd.f32 %v12594_v51, %v4248_v25  ;;  %v4236_v18 = vmul.f32 %v10509_v26, %v12494_v27 }
 0xa50   : > { %14178 = vst [vmem:[#allocation17_spill] sm:$0xff] %v12609_v39  ;;  %v4251_v57 = vmul.f32 %v12586_v12, %v4237_v47 }
 0xa51   : > { %14177 = vst [vmem:[#allocation22_spill] sm:$0xff] %v12605_v9  ;;  %v10511_v33 = vpop.eup %10510  ;;  %9183 = vmatprep.mubr.msk.f32.mxu1 %vm1196_vm5, %v12605_v9  ;;  %9206 = vmatprep.mubr.msk.f32.mxu0 %vm1196_vm5, %v12605_v9  ;;  %v4250_v28 = vmul.f32 %v12586_v12, %v4236_v18 }
 0xa52   : > { %v10513_v5 = vpop.eup %10512  ;;  %9184 = vmatmul.mubr.msk.f32.vlgmr.msra.gmra.mrb[62].mxu1 %vm1196_vm5, %v12609_v39  ;;  %9207 = vmatmul.mubr.msk.f32.vlgmr.msra.gmra.mrb[68].mxu0 %vm1196_vm5, %v12609_v39  ;;  %v4239_v27 = vmul.f32 %v10511_v33, %v12501_v34  ;;  %v12629_v56 = vadd.f32 %v12594_v51, %v4251_v57 }
 0xa53   : > { %v12623_v2 = vadd.f32 %v12594_v51, %v4250_v28  ;;  %v4238_v31 = vmul.f32 %v10513_v5, %v12504_v7  ;;  %9958 = vmatpush3.bf16.xpose.msk.msra.mxu1 %vm10942_vm6, %v9953_v45 }
 0xa54   : > { %14180 = vst [vmem:[#allocation20_spill] sm:$0xff] %v12629_v56  ;;  %v4253_v0 = vmul.f32 %v12586_v12, %v4239_v27  ;;  %9961 = vmatprep.subr.msk.bf16.mxu1 %vm10942_vm6, %v9959_v32 }
 0xa55   : > { %14179 = vst [vmem:[#allocation18_spill] sm:$0xff] %v12623_v2  ;;  %v10515_v59 = vpop.eup %10514  ;;  %9186 = vmatprep.mubr.msk.f32.mxu1 %vm1196_vm5, %v12623_v2  ;;  %9209 = vmatprep.mubr.msk.f32.mxu0 %vm1196_vm5, %v12623_v2  ;;  %v4252_v34 = vmul.f32 %v12586_v12, %v4238_v31 }
 0xa56   : > { %v10517_v7 = vpop.eup %10516  ;;  %9187 = vmatmul.mubr.msk.f32.gmra.mrb[64].mxu1 %vm1196_vm5, %v12629_v56  ;;  %9210 = vmatmul.mubr.msk.f32.gmra.mrb[70].mxu0 %vm1196_vm5, %v12629_v56  ;;  %v4241_v16 = vmul.f32 %v10515_v59, %v12511_v61  ;;  %v12649_v45 = vadd.f32 %v12594_v51, %v4253_v0 }
 0xa57   : > { %v12645_v60 = vadd.f32 %v12594_v51, %v4252_v34  ;;  %v4240_v53 = vmul.f32 %v10517_v7, %v12514_v36 }
 0xa58   : > { %14182 = vst [vmem:[#allocation23_spill] sm:$0xff] %v12649_v45  ;;  %v4255_v19 = vmul.f32 %v12586_v12, %v4241_v16 }
 0xa59   : > { %14181 = vst [vmem:[#allocation21_spill] sm:$0xff] %v12645_v60  ;;  %9189 = vmatprep.mubr.msk.f32.mxu1 %vm1196_vm5, %v12645_v60  ;;  %9212 = vmatprep.mubr.msk.f32.mxu0 %vm1196_vm5, %v12645_v60  ;;  %v4254_v41 = vmul.f32 %v12586_v12, %v4240_v53 }
 0xa5a   : > { %9190 = vmatmul.mubr.msk.f32.gmra.mrb[66].mxu1 %vm1196_vm5, %v12649_v45  ;;  %9213 = vmatmul.mubr.msk.f32.gmra.mrb[72].mxu0 %vm1196_vm5, %v12649_v45  ;;  %v12667_v36 = vadd.f32 %v12594_v51, %v4255_v19 }
 0xa5b   : > { %v12662_v61 = vadd.f32 %v12594_v51, %v4254_v41  ;;  %9964 = vmatpush3.bf16.xpose.msk.msra.mxu1 %vm10942_vm6, %v9959_v32 }
 0xa5c   : > { %14184 = vst [vmem:[#allocation3_spill] sm:$0xff] %v12667_v36 }
 0xa5d   : > { %14183 = vst [vmem:[#allocation4_spill] sm:$0xff] %v12662_v61  ;;  %9192 = vmatprep.mubr.msk.f32.mxu1 %vm1196_vm5, %v12662_v61  ;;  %9215 = vmatprep.mubr.msk.f32.mxu0 %vm1196_vm5, %v12662_v61 }
 0xa5e   : > { %9193 = vmatmul.mubr.msk.f32.gmra.mrb[68].mxu1 %vm1196_vm5, %v12667_v36  ;;  %9216 = vmatmul.mubr.msk.f32.gmra.mrb[74].mxu0 %vm1196_vm5, %v12667_v36 }
 0xa89   : > { %v4203_v63 = vpop.xlane.xlu1 %4202 }
 0xa8a   : > { %v4213_v8 = vmul.f32 0.03125, %v4203_v63  ;;  %v4200_v21 = vpop.xlane.xlu0 %4199 }
 0xa8b   : > { %v4212_v62 = vmul.f32 0.03125, %v4200_v21 }
 0xa8c   : > { %v4223_v44 = vadd.f32 1e-05, %v4213_v8 }
 0xa8d   : > { %v4222_v46 = vadd.f32 1e-05, %v4212_v62 }
 0xa8e   : > { %10518 = vrsqrt.f32 %v4223_v44 }
 0xa8f   : > { %10520 = vrsqrt.f32 %v4222_v46 }
 0xa98   : > { %v10519_v24 = vpop.eup %10518 }
 0xa99   : > { %v10521_v1 = vpop.eup %10520  ;;  %v4243_v13 = vmul.f32 %v10519_v24, %v12564_v23  ;;  %v12718_v23 = vld [vmem:[%s14035_s16 + $0x11] ss:$0 sm:$0xff] }
 0xa9a   : > { %v4242_v50 = vmul.f32 %v10521_v1, %v12567_v20  ;;  %v12723_v20 = vld [vmem:[%s14035_s16 + $0x10] ss:$0 sm:$0xff] }
 0xa9b   : > { %v4257_v58 = vmul.f32 %v12586_v12, %v4243_v13 }
 0xa9c   : > { %v4256_v3 = vmul.f32 %v12586_v12, %v4242_v50 }
 0xa9d   : > { %v12685_v14 = vadd.f32 %v12594_v51, %v4257_v58 }
 0xa9e   : > { %v12682_v6 = vadd.f32 %v12594_v51, %v4256_v3  ;;  %v12828_v3 = vld [vmem:[%s14035_s16 + $0x12] ss:$0 sm:$0xff] }
 0xa9f   : > { %14186 = vst [vmem:[#allocation5_spill] sm:$0xff] %v12685_v14 }
 0xaa0   : > { %14185 = vst [vmem:[#allocation6_spill] sm:$0xff] %v12682_v6  ;;  %9195 = vmatprep.mubr.msk.f32.mxu1 %vm1196_vm5, %v12682_v6  ;;  %9218 = vmatprep.mubr.msk.f32.mxu0 %vm1196_vm5, %v12682_v6 }
 0xaa1   : > { %9196 = vmatmul.mubr.msk.f32.gmra.mrb[70].mxu1 %vm1196_vm5, %v12685_v14  ;;  %9219 = vmatmul.mubr.msk.f32.gmra.mrb[76].mxu0 %vm1196_vm5, %v12685_v14 }
 0xaa2   : > { %9229 = vmatprep.mubr.msk.f32.mxu1 %vm1196_vm5, %v12605_v9 }
 0xaa5   : > { %9230 = vmatmul.mubr.msk.f32.vlgmr.msra.gmra.mrb[72].mxu1 %vm1196_vm5, %v12609_v39 }
 0xaa6   : > { %9232 = vmatprep.mubr.msk.f32.mxu1 %vm1196_vm5, %v12623_v2 }
 0xaa9   : > { %9233 = vmatmul.mubr.msk.f32.gmra.mrb[74].mxu1 %vm1196_vm5, %v12629_v56 }
 0xaaa   : > { %9235 = vmatprep.mubr.msk.f32.mxu1 %vm1196_vm5, %v12645_v60 }
 0xaad   : > { %9236 = vmatmul.mubr.msk.f32.gmra.mrb[76].mxu1 %vm1196_vm5, %v12649_v45 }
 0xaae   : > { %9238 = vmatprep.mubr.msk.f32.mxu1 %vm1196_vm5, %v12662_v61 }
 0xab1   : > { %9239 = vmatmul.mubr.msk.f32.gmra.mrb[78].mxu1 %vm1196_vm5, %v12667_v36 }
 0xab2   : > { %9241 = vmatprep.mubr.msk.f32.mxu1 %vm1196_vm5, %v12682_v6 }
 0xab5   : > { %9242 = vmatmul.mubr.msk.f32.gmra.mrb[80].mxu1 %vm1196_vm5, %v12685_v14 }
 0xb25   : > { %v9185_v17 = vpop.f32.mrb[62].mxu1  ;;  %v9208_v40 = vpop.f32.mrb[68].mxu0 }
 0xb26   : > { %v4567_v43 = vadd.f32 %v9208_v40, %v12718_v23  ;;  %v4430_v37 = vpop.f32.mrb[63].mxu1  ;;  %v4561_v35 = vpop.f32.mrb[69].mxu0  ;;  %v12799_v16 = vadd.f32 %v9185_v17, %v12723_v20 }
 0xb27   : > { %v12727_v54 = vadd.f32 %v12723_v20, %v4430_v37  ;;  %v4562_v15 = vadd.f32 %v12718_v23, %v4561_v35 }
 0xb28   : > { %v4742_v1 = vmul.f32 %v14187_v38, %v12799_v16  ;;  %v5067_v13 = vmul.f32 %v14188_v11, %v12799_v16 }
 0xb29   : > { %v12730_v12 = vpack.c.bf16 %v4567_v43, %v4562_v15  ;;  %v9188_v22 = vpop.f32.mrb[64].mxu1  ;;  %v9211_v48 = vpop.f32.mrb[70].mxu0  ;;  %v4741_v4 = vmul.f32 %v14187_v38, %v12727_v54  ;;  %v5066_v52 = vmul.f32 %v14188_v11, %v12727_v54 }
 0xb2a   : > { %v4577_v51 = vadd.f32 %v9211_v48, %v12718_v23  ;;  %v4440_v30 = vpop.f32.mrb[65].mxu1  ;;  %v4571_v25 = vpop.f32.mrb[71].mxu0  ;;  %v12802_v53 = vadd.f32 %v9188_v22, %v12723_v20 }
 0xb2b   : > { %v4572_v55 = vadd.f32 %v12718_v23, %v4571_v25  ;;  %9967 = vmatprep.subr.msk.bf16.mxu0 %vm10942_vm6, %v12730_v12  ;;  %9264 = vmatprep.mubr.msk.f32.mxu0 %vm1196_vm5, %v4741_v4  ;;  %v12805_v19 = vadd.f32 %v12723_v20, %v4440_v30 }
 0xb2c   : > { %9997 = vmatprep.subr.msk.bf16.mxu1 %vm10942_vm6, %v12730_v12  ;;  %9299 = vmatprep.mubr.msk.f32.mxu1 %vm1196_vm5, %v5066_v52  ;;  %v12836_v43 = vmul.f32 %v14187_v38, %v12802_v53  ;;  %v12840_v37 = vmul.f32 %v14188_v11, %v12802_v53 }
 0xb2d   : > { %v12746_v49 = vpack.c.bf16 %v4577_v51, %v4572_v55  ;;  %9970 = vmatpush3.bf16.xpose.msk.msra.mxu0 %vm10942_vm6, %v12730_v12  ;;  %10000 = vmatpush3.bf16.xpose.msk.msra.mxu1 %vm10942_vm6, %v12730_v12  ;;  %v9191_v26 = vpop.f32.mrb[66].mxu1  ;;  %v9214_v47 = vpop.f32.mrb[72].mxu0  ;;  %v4743_v17 = vmul.f32 %v14187_v38, %v12805_v19  ;;  %v5068_v40 = vmul.f32 %v14188_v11, %v12805_v19 }
 0xb2e   : > { %v4587_v18 = vadd.f32 %v9214_v47, %v12718_v23  ;;  %v4450_v57 = vpop.f32.mrb[67].mxu1  ;;  %v4581_v32 = vpop.f32.mrb[73].mxu0  ;;  %v12808_v41 = vadd.f32 %v9191_v26, %v12723_v20 }
 0xb2f   : > { %v4582_v33 = vadd.f32 %v12718_v23, %v4581_v32  ;;  %9973 = vmatprep.subr.msk.bf16.mxu0 %vm10942_vm6, %v12746_v49  ;;  %10003 = vmatprep.subr.msk.bf16.mxu1 %vm10942_vm6, %v12746_v49  ;;  %v12811_v63 = vadd.f32 %v12723_v20, %v4450_v57  ;;  %v14189_v32 = vld [vmem:[#allocation15_spill] sm:$0xff] }
 0xb30   : > { %v12850_v22 = vmul.f32 %v14187_v38, %v12808_v41  ;;  %v12854_v48 = vmul.f32 %v14188_v11, %v12808_v41 }
 0xb31   : > { %v12762_v28 = vpack.c.bf16 %v4587_v18, %v4582_v33  ;;  %v9194_v5 = vpop.f32.mrb[68].mxu1  ;;  %v9217_v27 = vpop.f32.mrb[74].mxu0  ;;  %v12846_v15 = vmul.f32 %v14187_v38, %v12811_v63  ;;  %v12859_v51 = vmul.f32 %v14188_v11, %v12811_v63 }
 0xb32   : > { %v4597_v31 = vadd.f32 %v9217_v27, %v12718_v23  ;;  %v4460_v0 = vpop.f32.mrb[69].mxu1  ;;  %v4591_v59 = vpop.f32.mrb[75].mxu0  ;;  %v12814_v62 = vadd.f32 %v9194_v5, %v12723_v20 }
 0xb33   : > { %v4592_v34 = vadd.f32 %v12718_v23, %v4591_v59  ;;  %v12822_v50 = vadd.f32 %v12723_v20, %v4460_v0  ;;  %v14190_v59 = vld [vmem:[#allocation16_spill] sm:$0xff] }
 0xb34   : > { %v12863_v30 = vmul.f32 %v14187_v38, %v12814_v62  ;;  %v12867_v25 = vmul.f32 %v14188_v11, %v12814_v62 }
 0xb35   : > { %v12766_v7 = vpack.c.bf16 %v4597_v31, %v4592_v34  ;;  %9976 = vmatpush3.bf16.xpose.msk.msra.mxu0 %vm10942_vm6, %v12746_v49  ;;  %10006 = vmatpush3.bf16.xpose.msk.msra.mxu1 %vm10942_vm6, %v12746_v49  ;;  %v12881_v47 = vmul.f32 %v14187_v38, %v12822_v50 }
 0xb36   : > { %9979 = vmatprep.subr.msk.bf16.mxu0 %vm10942_vm6, %v12762_v28  ;;  %10009 = vmatprep.subr.msk.bf16.mxu1 %vm10942_vm6, %v12762_v28 }
 0xb3d   : > { %9982 = vmatpush3.bf16.xpose.msk.msra.mxu0 %vm10942_vm6, %v12762_v28  ;;  %10012 = vmatpush3.bf16.xpose.msk.msra.mxu1 %vm10942_vm6, %v12762_v28 }
 0xb3e   : > { %9985 = vmatprep.subr.msk.bf16.mxu0 %vm10942_vm6, %v12766_v7  ;;  %10015 = vmatprep.subr.msk.bf16.mxu1 %vm10942_vm6, %v12766_v7 }
 0xb45   : > { %9988 = vmatpush3.bf16.xpose.msk.msra.mxu0 %vm10942_vm6, %v12766_v7  ;;  %10018 = vmatpush3.bf16.xpose.msk.msra.mxu1 %vm10942_vm6, %v12766_v7 }
 0xb74   : > { %v9197_v8 = vpop.f32.mrb[70].mxu1  ;;  %v9220_v21 = vpop.f32.mrb[76].mxu0 }
 0xb75   : > { %v4607_v44 = vadd.f32 %v9220_v21, %v12718_v23  ;;  %v4470_v46 = vpop.f32.mrb[71].mxu1  ;;  %v4601_v24 = vpop.f32.mrb[77].mxu0  ;;  %v12900_v21 = vadd.f32 %v9197_v8, %v12723_v20 }
 0xb76   : > { %v4602_v58 = vadd.f32 %v12718_v23, %v4601_v24  ;;  %v12870_v55 = vadd.f32 %v12723_v20, %v4470_v46  ;;  %v12905_v24 = vmul.f32 %v14188_v11, %v12822_v50 }
 0xb78   : > { %v12842_v23 = vpack.c.bf16 %v4607_v44, %v4602_v58  ;;  %v9231_v35 = vpop.f32.mrb[72].mxu1 }
 0xb79   : > { %v4698_v4 = vadd.f32 %v9231_v35, %v12828_v3  ;;  %v4692_v52 = vpop.f32.mrb[73].mxu1 }
 0xb7a   : > { %v4693_v26 = vadd.f32 %v12828_v3, %v4692_v52  ;;  %9991 = vmatprep.subr.msk.bf16.mxu0 %vm10942_vm6, %v12842_v23  ;;  %10021 = vmatprep.subr.msk.bf16.mxu1 %vm10942_vm6, %v12842_v23 }
 0xb7b   : > { %9994 = vmatpush3.bf16.xpose.msk.msra.mxu0 %vm10942_vm6, %v12842_v23  ;;  %10024 = vmatpush3.bf16.xpose.msk.msra.mxu1 %vm10942_vm6, %v12842_v23  ;;  %v5352_v18 = vmul.f32 %v14188_v11, %v4698_v4  ;;  %v5057_v57 = vmul.f32 %v14187_v38, %v4698_v4  ;;  %v5937_v33 = vmul.f32 %v14189_v32, %v4698_v4 }
 0xb7c   : > { %v9234_v5 = vpop.f32.mrb[74].mxu1  ;;  %10067 = vmatprep.subr.msk.bf16.mxu1 %vm10942_vm6, %v12730_v12  ;;  %v5351_v27 = vmul.f32 %v14188_v11, %v4693_v26  ;;  %v5056_v31 = vmul.f32 %v14187_v38, %v4693_v26  ;;  %v5936_v0 = vmul.f32 %v14189_v32, %v4693_v26  ;;  %v6386_v34 = vmul.f32 %v14190_v59, %v4693_v26 }
 0xb7d   : > { %v4708_v44 = vadd.f32 %v9234_v5, %v12828_v3  ;;  %v4702_v46 = vpop.f32.mrb[75].mxu1  ;;  %v6387_v58 = vmul.f32 %v14190_v59, %v4698_v4  ;;  %v12921_v4 = vmul.f32 %v14187_v38, %v12870_v55 }
 0xb7e   : > { %v4703_v35 = vadd.f32 %v12828_v3, %v4702_v46  ;;  %v10025_v52 = vpack.c.bf16 %v5352_v18, %v5351_v27  ;;  %v12909_v42 = vpack.c.bf16 %v5057_v57, %v5056_v31  ;;  %v12911_v6 = vpack.c.bf16 %v5937_v33, %v5936_v0 }
 0xb7f   : > { %v5354_v26 = vmul.f32 %v14188_v11, %v4708_v44  ;;  %v5059_v20 = vmul.f32 %v14187_v38, %v4708_v44  ;;  %v5939_v8 = vmul.f32 %v14189_v32, %v4708_v44  ;;  %v12916_v5 = vpack.c.bf16 %v6387_v58, %v6386_v34 }
 0xb80   : > { %v9237_v14 = vpop.f32.mrb[76].mxu1  ;;  %10026 = vmatprep.subr.bf16.mxu0 %v10025_v52  ;;  %v5353_v61 = vmul.f32 %v14188_v11, %v4703_v35  ;;  %v5058_v18 = vmul.f32 %v14187_v38, %v4703_v35  ;;  %v5938_v57 = vmul.f32 %v14189_v32, %v4703_v35  ;;  %v12928_v31 = vmul.f32 %v14188_v11, %v12870_v55 }
 0xb81   : > { %14191 = vst [vmem:[#allocation8_spill] sm:$0xff] %v12916_v5  ;;  %v4718_v33 = vadd.f32 %v9237_v14, %v12828_v3  ;;  %v4712_v27 = vpop.f32.mrb[77].mxu1  ;;  %v6388_v0 = vmul.f32 %v14190_v59, %v4703_v35  ;;  %v6389_v34 = vmul.f32 %v14190_v59, %v4708_v44 }
 0xb82   : > { %v4713_v46 = vadd.f32 %v12828_v3, %v4712_v27  ;;  %9265 = vmatmul.mubr.msk.f32.vlgmr.msra.gmra.mrb[78].mxu0 %vm1196_vm5, %v4742_v1  ;;  %9300 = vmatmul.mubr.msk.f32.vlgmr.msra.gmra.mrb[82].mxu1 %vm1196_vm5, %v5067_v13  ;;  %v10029_v58 = vpack.c.bf16 %v5354_v26, %v5353_v61  ;;  %v12935_v36 = vpack.c.bf16 %v5059_v20, %v5058_v18 }
 0xb83   : > { %9267 = vmatprep.mubr.msk.f32.mxu0 %vm1196_vm5, %v4743_v17  ;;  %9302 = vmatprep.mubr.msk.f32.mxu1 %vm1196_vm5, %v5068_v40  ;;  %v5356_v14 = vmul.f32 %v14188_v11, %v4718_v33  ;;  %v5061_v60 = vmul.f32 %v14187_v38, %v4718_v33  ;;  %v12941_v35 = vpack.c.bf16 %v5939_v8, %v5938_v57 }
 0xb84   : > { %10028 = vmatpush3.bf16.msra.mxu0 %v10025_v52  ;;  %10070 = vmatpush3.bf16.xpose.msk.msra.mxu1 %vm10942_vm6, %v12730_v12  ;;  %v9240_v1 = vpop.f32.mrb[78].mxu1  ;;  %v5355_v61 = vmul.f32 %v14188_v11, %v4713_v46  ;;  %v5060_v13 = vmul.f32 %v14187_v38, %v4713_v46  ;;  %v5940_v17 = vmul.f32 %v14189_v32, %v4713_v46 }
 0xb85   : > { %v4728_v40 = vadd.f32 %v9240_v1, %v12828_v3  ;;  %10030 = vmatprep.subr.bf16.mxu0 %v10029_v58  ;;  %10073 = vmatprep.subr.msk.bf16.mxu1 %vm10942_vm6, %v12746_v49  ;;  %v4722_v44 = vpop.f32.mrb[79].mxu1  ;;  %v5941_v52 = vmul.f32 %v14189_v32, %v4718_v33  ;;  %v12954_v26 = vpack.c.bf16 %v6389_v34, %v6388_v0 }
 0xb86   : > { %v4723_v20 = vadd.f32 %v12828_v3, %v4722_v44  ;;  %9268 = vmatmul.mubr.msk.f32.gmra.mrb[80].mxu0 %vm1196_vm5, %v12836_v43  ;;  %9303 = vmatmul.mubr.msk.f32.gmra.mrb[84].mxu1 %vm1196_vm5, %v12840_v37  ;;  %v10033_v8 = vpack.c.bf16 %v5356_v14, %v5355_v61  ;;  %v12961_v18 = vpack.c.bf16 %v5061_v60, %v5060_v13 }
 0xb87   : > { %14192 = vst [vmem:[#allocation7_spill] sm:$0xff] %v12954_v26  ;;  %9270 = vmatprep.mubr.msk.f32.mxu0 %vm1196_vm5, %v12846_v15  ;;  %9305 = vmatprep.mubr.msk.f32.mxu1 %vm1196_vm5, %v12859_v51  ;;  %v5358_v57 = vmul.f32 %v14188_v11, %v4728_v40  ;;  %v5063_v27 = vmul.f32 %v14187_v38, %v4728_v40 }
 0xb88   : > { %v12969_v0 = vpack.c.bf16 %v5941_v52, %v5940_v17  ;;  %10032 = vmatpush3.bf16.msra.mxu0 %v10029_v58  ;;  %v9243_v43 = vpop.f32.mrb[80].mxu1  ;;  %v5357_v34 = vmul.f32 %v14188_v11, %v4723_v20  ;;  %v5062_v37 = vmul.f32 %v14187_v38, %v4723_v20  ;;  %v5942_v60 = vmul.f32 %v14189_v32, %v4723_v20 }
 0xb89   : > { %v5943_v14 = vmul.f32 %v14189_v32, %v4728_v40  ;;  %v4738_v15 = vadd.f32 %v9243_v43, %v12828_v3  ;;  %10034 = vmatprep.subr.bf16.mxu0 %v10033_v8  ;;  %v4732_v51 = vpop.f32.mrb[81].mxu1  ;;  %v6390_v1 = vmul.f32 %v14190_v59, %v4713_v46  ;;  %v6391_v61 = vmul.f32 %v14190_v59, %v4718_v33 }
 0xb8a   : > { %v6392_v13 = vmul.f32 %v14190_v59, %v4723_v20  ;;  %v4733_v58 = vadd.f32 %v12828_v3, %v4732_v51  ;;  %9271 = vmatmul.mubr.msk.f32.gmra.mrb[82].mxu0 %vm1196_vm5, %v12850_v22  ;;  %9306 = vmatmul.mubr.msk.f32.gmra.mrb[86].mxu1 %vm1196_vm5, %v12854_v48  ;;  %v10037_v17 = vpack.c.bf16 %v5358_v57, %v5357_v34 }
 0xb8b   : > { %v12984_v44 = vpack.c.bf16 %v5063_v27, %v5062_v37  ;;  %9273 = vmatprep.mubr.msk.f32.mxu0 %vm1196_vm5, %v12881_v47  ;;  %9308 = vmatprep.mubr.msk.f32.mxu1 %vm1196_vm5, %v12905_v24  ;;  %v5360_v33 = vmul.f32 %v14188_v11, %v4738_v15  ;;  %v5065_v46 = vmul.f32 %v14187_v38, %v4738_v15 }
 0xb8c   : > { %v12992_v3 = vpack.c.bf16 %v5943_v14, %v5942_v60  ;;  %10036 = vmatpush3.bf16.msra.mxu0 %v10033_v8  ;;  %10076 = vmatpush3.bf16.xpose.msk.msra.mxu1 %vm10942_vm6, %v12746_v49  ;;  %v5359_v22 = vmul.f32 %v14188_v11, %v4733_v58  ;;  %v5064_v48 = vmul.f32 %v14187_v38, %v4733_v58 }
 0xb8d   : > { %v5944_v47 = vmul.f32 %v14189_v32, %v4733_v58  ;;  %10038 = vmatprep.subr.bf16.mxu0 %v10037_v17  ;;  %10079 = vmatprep.subr.msk.bf16.mxu1 %vm10942_vm6, %v12762_v28  ;;  %v5945_v24 = vmul.f32 %v14189_v32, %v4738_v15  ;;  %v13004_v52 = vpack.c.bf16 %v6391_v61, %v6390_v1 }
 0xb8e   : > { %v6393_v20 = vmul.f32 %v14190_v59, %v4728_v40  ;;  %9274 = vmatmul.mubr.msk.f32.gmra.mrb[84].mxu0 %vm1196_vm5, %v12863_v30  ;;  %9309 = vmatmul.mubr.msk.f32.gmra.mrb[88].mxu1 %vm1196_vm5, %v12867_v25  ;;  %v10041_v8 = vpack.c.bf16 %v5360_v33, %v5359_v22  ;;  %v13011_v57 = vpack.c.bf16 %v5065_v46, %v5064_v48  ;;  %v14197_v33 = vld [vmem:[#allocation24_spill] sm:$0xff]  ;;  %v14198_v46 = vld [vmem:[#allocation25_spill] sm:$0xff] }
 0xb8f   : > { %14193 = vst [vmem:[#allocation10_spill] sm:$0xff] %v13004_v52  ;;  %v6394_v27 = vmul.f32 %v14190_v59, %v4733_v58  ;;  %9276 = vmatprep.mubr.msk.f32.mxu0 %vm1196_vm5, %v12921_v4  ;;  %9311 = vmatprep.mubr.msk.f32.mxu1 %vm1196_vm5, %v12928_v31  ;;  %v13018_v43 = vpack.c.bf16 %v5945_v24, %v5944_v47 }
 0xb90   : > { %v13020_v40 = vpack.c.bf16 %v6393_v20, %v6392_v13  ;;  %v6395_v30 = vmul.f32 %v14190_v59, %v4738_v15  ;;  %10040 = vmatpush3.bf16.msra.mxu0 %v10037_v17  ;;  %v4750_v25 = vmul.f32 %v14187_v38, %v12900_v21  ;;  %v5075_v34 = vmul.f32 %v14188_v11, %v12900_v21 }
 0xb91   : > { %14194 = vst [vmem:[#allocation9_spill] sm:$0xff] %v13018_v43  ;;  %10042 = vmatprep.subr.bf16.mxu0 %v10041_v8  ;;  %v5651_v4 = vmul.f32 %v14189_v32, %v12727_v54  ;;  %v5652_v38 = vmul.f32 %v14189_v32, %v12799_v16  ;;  %v5653_v11 = vmul.f32 %v14189_v32, %v12805_v19 }
 0xb92   : > { %14195 = vst [vmem:[#allocation12_spill] sm:$0xff] %v13020_v40  ;;  %v13029_v37 = vpack.c.bf16 %v6395_v30, %v6394_v27  ;;  %9277 = vmatmul.mubr.msk.f32.gmra.mrb[86].mxu0 %vm1196_vm5, %v4750_v25  ;;  %9312 = vmatmul.mubr.msk.f32.gmra.mrb[90].mxu1 %vm1196_vm5, %v5075_v34  ;;  %v5654_v31 = vmul.f32 %v14189_v32, %v12802_v53  ;;  %v14199_v27 = vld [vmem:[#allocation26_spill] sm:$0xff]  ;;  %v14200_v25 = vld [vmem:[#allocation27_spill] sm:$0xff] }
 0xb93   : > { %9404 = vmatprep.mubr.msk.f32.mxu1 %vm1196_vm5, %v5651_v4  ;;  %v5655_v60 = vmul.f32 %v14189_v32, %v12811_v63  ;;  %v5656_v14 = vmul.f32 %v14189_v32, %v12808_v41  ;;  %v5658_v15 = vmul.f32 %v14189_v32, %v12814_v62  ;;  %v5659_v51 = vmul.f32 %v14189_v32, %v12870_v55 }
 0xb94   : > { %14196 = vst [vmem:[#allocation11_spill] sm:$0xff] %v13029_v37  ;;  %10044 = vmatpush3.bf16.msra.mxu0 %v10041_v8  ;;  %10082 = vmatpush3.bf16.xpose.msk.msra.mxu1 %vm10942_vm6, %v12762_v28  ;;  %v5660_v1 = vmul.f32 %v14189_v32, %v12900_v21 }
 0xb95   : > { %10046 = vmatprep.subr.bf16.mxu0 %v12909_v42  ;;  %10085 = vmatprep.subr.msk.bf16.mxu1 %vm10942_vm6, %v12766_v7 }
 0xb9c   : > { %10088 = vmatpush3.bf16.xpose.msk.msra.mxu1 %vm10942_vm6, %v12766_v7 }
 0xb9d   : > { %10091 = vmatprep.subr.msk.bf16.mxu1 %vm10942_vm6, %v12842_v23 }
 0xba4   : > { %10094 = vmatpush3.bf16.xpose.msk.msra.mxu1 %vm10942_vm6, %v12842_v23 }
 0xba5   : > { %10117 = vmatprep.subr.msk.bf16.mxu1 %vm10942_vm6, %v12730_v12 }
 0xbab   : > { %9405 = vmatmul.mubr.msk.f32.vlgmr.msra.gmra.mrb[92].mxu1 %vm1196_vm5, %v5652_v38 }
 0xbac   : > { %9407 = vmatprep.mubr.msk.f32.mxu1 %vm1196_vm5, %v5653_v11  ;;  %10120 = vmatpush3.bf16.xpose.msk.msra.mxu1 %vm10942_vm6, %v12730_v12  ;;  %v5657_v12 = vmul.f32 %v14189_v32, %v12822_v50  ;;  %v6105_v32 = vmul.f32 %v14190_v59, %v12811_v63  ;;  %v6109_v63 = vmul.f32 %v14190_v59, %v12870_v55 }
 0xbad   : > { %10123 = vmatprep.subr.msk.bf16.mxu1 %vm10942_vm6, %v12746_v49 }
 0xbaf   : > { %9408 = vmatmul.mubr.msk.f32.gmra.mrb[94].mxu1 %vm1196_vm5, %v5654_v31 }
 0xbb0   : > { %9410 = vmatprep.mubr.msk.f32.mxu1 %vm1196_vm5, %v5655_v60 }
 0xbb3   : > { %9411 = vmatmul.mubr.msk.f32.gmra.mrb[96].mxu1 %vm1196_vm5, %v5656_v14 }
 0xbb4   : > { %9413 = vmatprep.mubr.msk.f32.mxu1 %vm1196_vm5, %v5657_v12  ;;  %10126 = vmatpush3.bf16.xpose.msk.msra.mxu1 %vm10942_vm6, %v12746_v49  ;;  %v6101_v49 = vmul.f32 %v14190_v59, %v12727_v54  ;;  %v6102_v54 = vmul.f32 %v14190_v59, %v12799_v16  ;;  %v6106_v16 = vmul.f32 %v14190_v59, %v12808_v41 }
 0xbb5   : > { %10129 = vmatprep.subr.msk.bf16.mxu1 %vm10942_vm6, %v12762_v28  ;;  %v6110_v41 = vmul.f32 %v14190_v59, %v12900_v21 }
 0xbb7   : > { %9414 = vmatmul.mubr.msk.f32.gmra.mrb[98].mxu1 %vm1196_vm5, %v5658_v15 }
 0xbb8   : > { %9416 = vmatprep.mubr.msk.f32.mxu1 %vm1196_vm5, %v5659_v51  ;;  %v14201_v51 = vld [vmem:[#allocation28_spill] sm:$0xff] }
 0xbbb   : > { %9417 = vmatmul.mubr.msk.f32.gmra.mrb[100].mxu1 %vm1196_vm5, %v5660_v1 }
 0xbbc   : > { %10132 = vmatpush3.bf16.xpose.msk.msra.mxu1 %vm10942_vm6, %v12762_v28  ;;  %9474 = vmatprep.mubr.msk.f32.mxu1 %vm1196_vm5, %v6101_v49  ;;  %v6103_v28 = vmul.f32 %v14190_v59, %v12805_v19  ;;  %v6107_v19 = vmul.f32 %v14190_v59, %v12822_v50  ;;  %v14202_v49 = vld [vmem:[#allocation29_spill] sm:$0xff] }
 0xbbd   : > { %10135 = vmatprep.subr.msk.bf16.mxu1 %vm10942_vm6, %v12766_v7 }
 0xbc4   : > { %10138 = vmatpush3.bf16.xpose.msk.msra.mxu1 %vm10942_vm6, %v12766_v7  ;;  %v6104_v7 = vmul.f32 %v14190_v59, %v12802_v53  ;;  %v6108_v53 = vmul.f32 %v14190_v59, %v12814_v62 }
 0xbc5   : > { %10141 = vmatprep.subr.msk.bf16.mxu1 %vm10942_vm6, %v12842_v23 }
 0xbcc   : > { %10144 = vmatpush3.bf16.xpose.msk.msra.mxu1 %vm10942_vm6, %v12842_v23 }
 0xbd3   : > { %9475 = vmatmul.mubr.msk.f32.vlgmr.msra.gmra.mrb[102].mxu1 %vm1196_vm5, %v6102_v54 }
 0xbd4   : > { %9477 = vmatprep.mubr.msk.f32.mxu1 %vm1196_vm5, %v6103_v28 }
 0xbd7   : > { %9478 = vmatmul.mubr.msk.f32.gmra.mrb[104].mxu1 %vm1196_vm5, %v6104_v7 }
 0xbd8   : > { %9480 = vmatprep.mubr.msk.f32.mxu1 %vm1196_vm5, %v6105_v32 }
 0xbdb   : > { %9481 = vmatmul.mubr.msk.f32.gmra.mrb[106].mxu1 %vm1196_vm5, %v6106_v16 }
 0xbdc   : > { %9483 = vmatprep.mubr.msk.f32.mxu1 %vm1196_vm5, %v6107_v19 }
 0xbdf   : > { %9484 = vmatmul.mubr.msk.f32.gmra.mrb[108].mxu1 %vm1196_vm5, %v6108_v53 }
 0xbe0   : > { %9486 = vmatprep.mubr.msk.f32.mxu1 %vm1196_vm5, %v6109_v63 }
 0xbe3   : > { %9487 = vmatmul.mubr.msk.f32.gmra.mrb[110].mxu1 %vm1196_vm5, %v6110_v41 }
 0xc55   : > { %v9266_v50 = vpop.f32.mrb[78].mxu0  ;;  %v9301_v23 = vpop.f32.mrb[82].mxu1 }
 0xc56   : > { %v5222_v61 = vmul.f32 0.35355338, %v9301_v23  ;;  %v4877_v13 = vpop.f32.mrb[79].mxu0  ;;  %v5172_v58 = vpop.f32.mrb[83].mxu1  ;;  %v14203_v23 = vld [vmem:[#allocation30_spill] sm:$0xff] }
 0xc57   : > { %v5221_v17 = vmul.f32 0.35355338, %v5172_v58  ;;  %v14204_v58 = vld [vmem:[#allocation31_spill] sm:$0xff] }
 0xc58   : > { %v13138_v62 = vadd.f32 %v5222_v61, %v14197_v33 }
 0xc59   : > { %v13141_v55 = vadd.f32 %v5221_v17, %v14198_v46  ;;  %v9269_v22 = vpop.f32.mrb[80].mxu0  ;;  %v9304_v48 = vpop.f32.mrb[84].mxu1 }
 0xc5a   : > { %v5224_v47 = vmul.f32 0.35355338, %v9304_v48  ;;  %v4887_v24 = vpop.f32.mrb[81].mxu0  ;;  %v5182_v20 = vpop.f32.mrb[85].mxu1  ;;  %v5244_v21 = vsel %vm1821_vm1, %v13138_v62, -inf }
 0xc5b   : > { %v5223_v59 = vmul.f32 0.35355338, %v5182_v20  ;;  %v5241_v8 = vsel %vm1821_vm1, %v13141_v55, -inf  ;;  %5245 = vmax.xlane.f32.xlu1 %v5244_v21  ;;  %v4927_v20 = vmul.f32 0.35355338, %v9266_v50 }
 0xc5c   : > { %v13148_v30 = vadd.f32 %v5224_v47, %v14199_v27  ;;  %5242 = vmax.xlane.f32.xlu0 %v5241_v8  ;;  %v4929_v50 = vmul.f32 0.35355338, %v9269_v22 }
 0xc5d   : > { %v13151_v34 = vadd.f32 %v5223_v59, %v14200_v25  ;;  %v9272_v4 = vpop.f32.mrb[82].mxu0  ;;  %v9307_v38 = vpop.f32.mrb[86].mxu1 }
 0xc5e   : > { %v5226_v11 = vmul.f32 0.35355338, %v9307_v38  ;;  %v4897_v31 = vpop.f32.mrb[83].mxu0  ;;  %v5192_v60 = vpop.f32.mrb[87].mxu1  ;;  %v5250_v12 = vsel %vm1821_vm1, %v13148_v30, -inf }
 0xc5f   : > { %v5225_v14 = vmul.f32 0.35355338, %v5192_v60  ;;  %v5247_v15 = vsel %vm1821_vm1, %v13151_v34, -inf  ;;  %5251 = vmax.xlane.f32.xlu1 %v5250_v12  ;;  %v4926_v38 = vmul.f32 0.35355338, %v4877_v13  ;;  %v13186_v13 = vadd.f32 %v4927_v20, %v14197_v33 }
 0xc60   : > { %v13158_v1 = vadd.f32 %v5226_v11, %v14201_v51  ;;  %5248 = vmax.xlane.f32.xlu0 %v5247_v15  ;;  %v14205_v15 = vld [vmem:[#allocation32_spill] sm:$0xff] }
 0xc61   : > { %v13161_v54 = vadd.f32 %v5225_v14, %v14202_v49  ;;  %v9275_v28 = vpop.f32.mrb[84].mxu0  ;;  %v9310_v7 = vpop.f32.mrb[88].mxu1  ;;  %v4949_v20 = vsel %vm1821_vm1, %v13186_v13, -inf }
 0xc62   : > { %v5228_v32 = vmul.f32 0.35355338, %v9310_v7  ;;  %v4907_v16 = vpop.f32.mrb[85].mxu0  ;;  %v5202_v19 = vpop.f32.mrb[89].mxu1  ;;  %v5256_v63 = vsel %vm1821_vm1, %v13158_v1, -inf }
 0xc63   : > { %v5227_v53 = vmul.f32 0.35355338, %v5202_v19  ;;  %v5253_v41 = vsel %vm1821_vm1, %v13161_v54, -inf  ;;  %5257 = vmax.xlane.f32.xlu1 %v5256_v63  ;;  %v13189_v19 = vadd.f32 %v4926_v38, %v14198_v46  ;;  %v4933_v38 = vmul.f32 0.35355338, %v9275_v28 }
 0xc64   : > { %v13168_v61 = vadd.f32 %v5228_v32, %v14203_v23  ;;  %5254 = vmax.xlane.f32.xlu0 %v5253_v41  ;;  %v13194_v41 = vadd.f32 %v4929_v50, %v14199_v27 }
 0xc65   : > { %v13171_v17 = vadd.f32 %v5227_v53, %v14204_v58  ;;  %v9278_v48 = vpop.f32.mrb[86].mxu0  ;;  %v9313_v47 = vpop.f32.mrb[90].mxu1  ;;  %v4928_v53 = vmul.f32 0.35355338, %v4887_v24 }
 0xc66   : > { %v5230_v59 = vmul.f32 0.35355338, %v9313_v47  ;;  %v4917_v21 = vpop.f32.mrb[87].mxu0  ;;  %v5212_v8 = vpop.f32.mrb[91].mxu1  ;;  %v5262_v60 = vsel %vm1821_vm1, %v13168_v61, -inf }
 0xc67   : > { %v5229_v11 = vmul.f32 0.35355338, %v5212_v8  ;;  %v5259_v14 = vsel %vm1821_vm1, %v13171_v17, -inf  ;;  %5263 = vmax.xlane.f32.xlu1 %v5262_v60  ;;  %v4931_v47 = vmul.f32 0.35355338, %v9272_v4  ;;  %v13197_v22 = vadd.f32 %v4928_v53, %v14200_v25 }
 0xc68   : > { %v13178_v12 = vadd.f32 %v5230_v59, %v11721_v10  ;;  %5260 = vmax.xlane.f32.xlu0 %v5259_v14  ;;  %v4930_v59 = vmul.f32 0.35355338, %v4897_v31  ;;  %v4946_v8 = vsel %vm1821_vm1, %v13189_v19, -inf  ;;  %v4932_v4 = vmul.f32 0.35355338, %v4907_v16 }
 0xc69   : > { %v13181_v7 = vadd.f32 %v5229_v11, %v14205_v15  ;;  %v13204_v24 = vadd.f32 %v4931_v47, %v14201_v51  ;;  %v4955_v60 = vsel %vm1821_vm1, %v13194_v41, -inf  ;;  %v4952_v31 = vsel %vm1821_vm1, %v13197_v22, -inf }
 0xc6a   : > { %v5268_v32 = vsel %vm1821_vm1, %v13178_v12, -inf  ;;  %v13207_v11 = vadd.f32 %v4930_v59, %v14202_v49  ;;  %v13214_v14 = vadd.f32 %v4933_v38, %v14203_v23  ;;  %v13219_v28 = vadd.f32 %v4932_v4, %v14204_v58 }
 0xc6b   : > { %v5265_v63 = vsel %vm1821_vm1, %v13181_v7, -inf  ;;  %5269 = vmax.xlane.f32.xlu1 %v5268_v32  ;;  %v4961_v50 = vsel %vm1821_vm1, %v13204_v24, -inf  ;;  %v4935_v32 = vmul.f32 0.35355338, %v9278_v48  ;;  %v4934_v53 = vmul.f32 0.35355338, %v4917_v21 }
 0xc6c   : > { %5266 = vmax.xlane.f32.xlu0 %v5265_v63  ;;  %v4958_v16 = vsel %vm1821_vm1, %v13207_v11, -inf  ;;  %v4967_v59 = vsel %vm1821_vm1, %v13214_v14, -inf }
 0xc6d   : > { %v13224_v63 = vadd.f32 %v4935_v32, %v11721_v10  ;;  %v13227_v47 = vadd.f32 %v4934_v53, %v14205_v15 }
 0xc6f   : > { %4950 = vmax.xlane.f32.xlu1 %v4949_v20  ;;  %v4964_v20 = vsel %vm1821_vm1, %v13219_v28, -inf  ;;  %v4973_v38 = vsel %vm1821_vm1, %v13224_v63, -inf  ;;  %v4970_v4 = vsel %vm1821_vm1, %v13227_v47, -inf }
 0xc70   : > { %4947 = vmax.xlane.f32.xlu0 %v4946_v8 }
 0xc73   : > { %4956 = vmax.xlane.f32.xlu1 %v4955_v60 }
 0xc74   : > { %4953 = vmax.xlane.f32.xlu0 %v4952_v31 }
 0xc77   : > { %4962 = vmax.xlane.f32.xlu1 %v4961_v50 }
 0xc78   : > { %4959 = vmax.xlane.f32.xlu0 %v4958_v16 }
 0xc7b   : > { %4968 = vmax.xlane.f32.xlu1 %v4967_v59 }
 0xc7c   : > { %4965 = vmax.xlane.f32.xlu0 %v4964_v20 }
 0xc7e   : > { %v9406_v48 = vpop.f32.mrb[92].mxu1 }
 0xc7f   : > { %v5807_v21 = vmul.f32 0.35355338, %v9406_v48  ;;  %v5757_v8 = vpop.f32.mrb[93].mxu1  ;;  %4974 = vmax.xlane.f32.xlu1 %v4973_v38 }
 0xc80   : > { %v5806_v60 = vmul.f32 0.35355338, %v5757_v8  ;;  %4971 = vmax.xlane.f32.xlu0 %v4970_v4 }
 0xc81   : > { %v13238_v31 = vadd.f32 %v5807_v21, %v14197_v33 }
 0xc82   : > { %v13241_v50 = vadd.f32 %v5806_v60, %v14198_v46  ;;  %v9409_v32 = vpop.f32.mrb[94].mxu1 }
 0xc83   : > { %v5809_v53 = vmul.f32 0.35355338, %v9409_v32  ;;  %v5767_v16 = vpop.f32.mrb[95].mxu1  ;;  %v5829_v59 = vsel %vm1821_vm1, %v13238_v31, -inf }
 0xc84   : > { %v5808_v20 = vmul.f32 0.35355338, %v5767_v16  ;;  %5830 = vmax.xlane.f32.xlu1 %v5829_v59  ;;  %v5826_v48 = vsel %vm1821_vm1, %v13241_v50, -inf }
 0xc85   : > { %v13248_v8 = vadd.f32 %v5809_v53, %v14199_v27  ;;  %5827 = vmax.xlane.f32.xlu0 %v5826_v48 }
 0xc86   : > { %v13251_v21 = vadd.f32 %v5808_v20, %v14200_v25  ;;  %v9412_v38 = vpop.f32.mrb[96].mxu1 }
 0xc87   : > { %v5811_v4 = vmul.f32 0.35355338, %v9412_v38  ;;  %v5777_v60 = vpop.f32.mrb[97].mxu1  ;;  %v5835_v32 = vsel %vm1821_vm1, %v13248_v8, -inf }
 0xc88   : > { %v5810_v45 = vmul.f32 0.35355338, %v5777_v60  ;;  %5836 = vmax.xlane.f32.xlu1 %v5835_v32  ;;  %v5832_v16 = vsel %vm1821_vm1, %v13251_v21, -inf }
 0xc89   : > { %v13258_v59 = vadd.f32 %v5811_v4, %v14201_v51  ;;  %5833 = vmax.xlane.f32.xlu0 %v5832_v16 }
 0xc8a   : > { %v13261_v53 = vadd.f32 %v5810_v45, %v14202_v49  ;;  %v9415_v20 = vpop.f32.mrb[98].mxu1 }
 0xc8b   : > { %v5813_v48 = vmul.f32 0.35355338, %v9415_v20  ;;  %v5787_v2 = vpop.f32.mrb[99].mxu1  ;;  %v5841_v38 = vsel %vm1821_vm1, %v13258_v59, -inf }
 0xc8c   : > { %v5812_v56 = vmul.f32 0.35355338, %v5787_v2  ;;  %5842 = vmax.xlane.f32.xlu1 %v5841_v38  ;;  %v5838_v60 = vsel %vm1821_vm1, %v13261_v53, -inf }
 0xc8d   : > { %v13268_v32 = vadd.f32 %v5813_v48, %v14203_v23  ;;  %5839 = vmax.xlane.f32.xlu0 %v5838_v60 }
 0xc8e   : > { %v13271_v4 = vadd.f32 %v5812_v56, %v14204_v58  ;;  %v9418_v45 = vpop.f32.mrb[100].mxu1 }
 0xc8f   : > { %v5815_v16 = vmul.f32 0.35355338, %v9418_v45  ;;  %v5797_v9 = vpop.f32.mrb[101].mxu1  ;;  %v5847_v20 = vsel %vm1821_vm1, %v13268_v32, -inf }
 0xc90   : > { %v5814_v39 = vmul.f32 0.35355338, %v5797_v9  ;;  %5848 = vmax.xlane.f32.xlu1 %v5847_v20  ;;  %v5844_v2 = vsel %vm1821_vm1, %v13271_v4, -inf }
 0xc91   : > { %v13278_v38 = vadd.f32 %v5815_v16, %v11721_v10  ;;  %5845 = vmax.xlane.f32.xlu0 %v5844_v2 }
 0xc92   : > { %v13281_v48 = vadd.f32 %v5814_v39, %v14205_v15 }
 0xc93   : > { %v5853_v56 = vsel %vm1821_vm1, %v13278_v38, -inf }
 0xc94   : > { %5854 = vmax.xlane.f32.xlu1 %v5853_v56  ;;  %v5850_v60 = vsel %vm1821_vm1, %v13281_v48, -inf }
 0xc95   : > { %5851 = vmax.xlane.f32.xlu0 %v5850_v60 }
 0xca6   : > { %v9476_v9 = vpop.f32.mrb[102].mxu1 }
 0xca7   : > { %v6257_v45 = vmul.f32 0.35355338, %v9476_v9  ;;  %v6207_v20 = vpop.f32.mrb[103].mxu1 }
 0xca8   : > { %v6256_v29 = vmul.f32 0.35355338, %v6207_v20 }
 0xca9   : > { %v13288_v37 = vadd.f32 %v6257_v45, %v14197_v33 }
 0xcaa   : > { %v13291_v16 = vadd.f32 %v6256_v29, %v14198_v46  ;;  %v9479_v39 = vpop.f32.mrb[104].mxu1 }
 0xcab   : > { %v6259_v2 = vmul.f32 0.35355338, %v9479_v39  ;;  %v6217_v40 = vpop.f32.mrb[105].mxu1  ;;  %v6279_v56 = vsel %vm1821_vm1, %v13288_v37, -inf }
 0xcac   : > { %v6258_v52 = vmul.f32 0.35355338, %v6217_v40  ;;  %6280 = vmax.xlane.f32.xlu1 %v6279_v56  ;;  %v6276_v60 = vsel %vm1821_vm1, %v13291_v16, -inf }
 0xcad   : > { %v13298_v9 = vadd.f32 %v6259_v2, %v14199_v27  ;;  %6277 = vmax.xlane.f32.xlu0 %v6276_v60 }
 0xcae   : > { %v13301_v33 = vadd.f32 %v6258_v52, %v14200_v25  ;;  %v9482_v29 = vpop.f32.mrb[106].mxu1 }
 0xcaf   : > { %v6261_v46 = vmul.f32 0.35355338, %v9482_v29  ;;  %v6227_v45 = vpop.f32.mrb[107].mxu1  ;;  %v6285_v20 = vsel %vm1821_vm1, %v13298_v9, -inf }
 0xcb0   : > { %v6260_v39 = vmul.f32 0.35355338, %v6227_v45  ;;  %6286 = vmax.xlane.f32.xlu1 %v6285_v20  ;;  %v6282_v40 = vsel %vm1821_vm1, %v13301_v33, -inf }
 0xcb1   : > { %v13308_v56 = vadd.f32 %v6261_v46, %v14201_v51  ;;  %6283 = vmax.xlane.f32.xlu0 %v6282_v40 }
 0xcb2   : > { %v13311_v27 = vadd.f32 %v6260_v39, %v14202_v49  ;;  %v9485_v52 = vpop.f32.mrb[108].mxu1 }
 0xcb3   : > { %v6263_v25 = vmul.f32 0.35355338, %v9485_v52  ;;  %v6237_v2 = vpop.f32.mrb[109].mxu1  ;;  %v6291_v60 = vsel %vm1821_vm1, %v13308_v56, -inf }
 0xcb4   : > { %v6262_v29 = vmul.f32 0.35355338, %v6237_v2  ;;  %6292 = vmax.xlane.f32.xlu1 %v6291_v60  ;;  %v6288_v45 = vsel %vm1821_vm1, %v13311_v27, -inf }
 0xcb5   : > { %v13318_v20 = vadd.f32 %v6263_v25, %v14203_v23  ;;  %6289 = vmax.xlane.f32.xlu0 %v6288_v45 }
 0xcb6   : > { %v13321_v51 = vadd.f32 %v6262_v29, %v14204_v58  ;;  %v9488_v49 = vpop.f32.mrb[110].mxu1 }
 0xcb7   : > { %v6265_v46 = vmul.f32 0.35355338, %v9488_v49  ;;  %v6247_v39 = vpop.f32.mrb[111].mxu1  ;;  %v6297_v40 = vsel %vm1821_vm1, %v13318_v20, -inf }
 0xcb8   : > { %v6264_v52 = vmul.f32 0.35355338, %v6247_v39  ;;  %6298 = vmax.xlane.f32.xlu1 %v6297_v40  ;;  %v6294_v2 = vsel %vm1821_vm1, %v13321_v51, -inf }
 0xcb9   : > { %v13328_v60 = vadd.f32 %v6265_v46, %v11721_v10  ;;  %6295 = vmax.xlane.f32.xlu0 %v6294_v2 }
 0xcba   : > { %v13331_v23 = vadd.f32 %v6264_v52, %v14205_v15 }
 0xcbb   : > { %v6303_v58 = vsel %vm1821_vm1, %v13328_v60, -inf }
 0xcbc   : > { %6304 = vmax.xlane.f32.xlu1 %v6303_v58  ;;  %v6300_v25 = vsel %vm1821_vm1, %v13331_v23, -inf }
 0xcbd   : > { %6301 = vmax.xlane.f32.xlu0 %v6300_v25 }
 0xce8   : > { %v5246_v29 = vpop.xlane.xlu1 %5245 }
 0xce9   : > { %v5243_v45 = vpop.xlane.xlu0 %5242  ;;  %v5272_v49 = vsub.f32 %v13138_v62, %v5246_v29 }
 0xcea   : > { %v5271_v39 = vsub.f32 %v13141_v55, %v5243_v45 }
 0xceb   : > { %v5283_v10 = vmul.f32 1.442695, %v5272_v49 }
 0xcec   : > { %v5281_v46 = vmul.f32 1.442695, %v5271_v39  ;;  %v5252_v40 = vpop.xlane.xlu1 %5251 }
 0xced   : > { %v5249_v2 = vpop.xlane.xlu0 %5248  ;;  %10522 = vpow2.f32 %v5283_v10  ;;  %v5274_v15 = vsub.f32 %v13148_v30, %v5252_v40 }
 0xcee   : > { %v5273_v52 = vsub.f32 %v13151_v34, %v5249_v2  ;;  %10524 = vpow2.f32 %v5281_v46 }
 0xcef   : > { %v5287_v58 = vmul.f32 1.442695, %v5274_v15 }
 0xcf0   : > { %v5285_v26 = vmul.f32 1.442695, %v5273_v52  ;;  %v5258_v5 = vpop.xlane.xlu1 %5257 }
 0xcf1   : > { %v5255_v25 = vpop.xlane.xlu0 %5254  ;;  %10526 = vpow2.f32 %v5287_v58  ;;  %v5276_v43 = vsub.f32 %v13158_v1, %v5258_v5 }
 0xcf2   : > { %v5275_v62 = vsub.f32 %v13161_v54, %v5255_v25  ;;  %10528 = vpow2.f32 %v5285_v26 }
 0xcf3   : > { %v5291_v55 = vmul.f32 1.442695, %v5276_v43 }
 0xcf4   : > { %v5289_v29 = vmul.f32 1.442695, %v5275_v62  ;;  %v5264_v45 = vpop.xlane.xlu1 %5263 }
 0xcf5   : > { %v5261_v49 = vpop.xlane.xlu0 %5260  ;;  %10530 = vpow2.f32 %v5291_v55  ;;  %v5278_v30 = vsub.f32 %v13168_v61, %v5264_v45 }
 0xcf6   : > { %v5277_v34 = vsub.f32 %v13171_v17, %v5261_v49  ;;  %10532 = vpow2.f32 %v5289_v29 }
 0xcf7   : > { %v13345_v39 = vpop.eup %10522  ;;  %v5295_v10 = vmul.f32 1.442695, %v5278_v30 }
 0xcf8   : > { %v5293_v46 = vmul.f32 1.442695, %v5277_v34  ;;  %v13347_v40 = vpop.eup %10524  ;;  %v5270_v5 = vpop.xlane.xlu1 %5269  ;;  %v5304_v26 = vsel %vm1821_vm1, %v13345_v39, 0.0 }
 0xcf9   : > { %v5267_v1 = vpop.xlane.xlu0 %5266  ;;  %10534 = vpow2.f32 %v5295_v10  ;;  %v5280_v43 = vsub.f32 %v13178_v12, %v5270_v5  ;;  %5305 = vadd.xlane.f32.xlu1 %v5304_v26  ;;  %v5301_v61 = vsel %vm1821_vm1, %v13347_v40, 0.0 }
 0xcfa   : > { %v5279_v54 = vsub.f32 %v13181_v7, %v5267_v1  ;;  %10536 = vpow2.f32 %v5293_v46  ;;  %5302 = vadd.xlane.f32.xlu0 %v5301_v61 }
 0xcfb   : > { %v13355_v17 = vpop.eup %10526  ;;  %v5299_v2 = vmul.f32 1.442695, %v5280_v43 }
 0xcfc   : > { %v5297_v15 = vmul.f32 1.442695, %v5279_v54  ;;  %v13357_v52 = vpop.eup %10528  ;;  %v4951_v58 = vpop.xlane.xlu1 %4950  ;;  %v5310_v62 = vsel %vm1821_vm1, %v13355_v17, 0.0 }
 0xcfd   : > { %v4948_v25 = vpop.xlane.xlu0 %4947  ;;  %10538 = vpow2.f32 %v5299_v2  ;;  %v4977_v12 = vsub.f32 %v13186_v13, %v4951_v58  ;;  %5311 = vadd.xlane.f32.xlu1 %v5310_v62  ;;  %v5307_v55 = vsel %vm1821_vm1, %v13357_v52, 0.0 }
 0xcfe   : > { %v4976_v7 = vsub.f32 %v13189_v19, %v4948_v25  ;;  %10540 = vpow2.f32 %v5297_v15  ;;  %5308 = vadd.xlane.f32.xlu0 %v5307_v55 }
 0xcff   : > { %v13365_v29 = vpop.eup %10530  ;;  %v4988_v45 = vmul.f32 1.442695, %v4977_v12 }
 0xd00   : > { %v4986_v49 = vmul.f32 1.442695, %v4976_v7  ;;  %v13367_v30 = vpop.eup %10532  ;;  %v4957_v34 = vpop.xlane.xlu1 %4956  ;;  %v5316_v46 = vsel %vm1821_vm1, %v13365_v29, 0.0 }
 0xd01   : > { %v4954_v10 = vpop.xlane.xlu0 %4953  ;;  %10542 = vpow2.f32 %v4988_v45  ;;  %v4979_v13 = vsub.f32 %v13194_v41, %v4957_v34  ;;  %5317 = vadd.xlane.f32.xlu1 %v5316_v46  ;;  %v5313_v5 = vsel %vm1821_vm1, %v13367_v30, 0.0 }
 0xd02   : > { %v4978_v19 = vsub.f32 %v13197_v22, %v4954_v10  ;;  %10544 = vpow2.f32 %v4986_v49  ;;  %5314 = vadd.xlane.f32.xlu0 %v5313_v5 }
 0xd03   : > { %v13375_v1 = vpop.eup %10534  ;;  %v4992_v26 = vmul.f32 1.442695, %v4979_v13 }
 0xd04   : > { %v4990_v43 = vmul.f32 1.442695, %v4978_v19  ;;  %v13377_v54 = vpop.eup %10536  ;;  %v4963_v61 = vpop.xlane.xlu1 %4962  ;;  %v5322_v15 = vsel %vm1821_vm1, %v13375_v1, 0.0 }
 0xd05   : > { %v4960_v2 = vpop.xlane.xlu0 %4959  ;;  %10546 = vpow2.f32 %v4992_v26  ;;  %v4981_v41 = vsub.f32 %v13204_v24, %v4963_v61  ;;  %5323 = vadd.xlane.f32.xlu1 %v5322_v15  ;;  %v5319_v58 = vsel %vm1821_vm1, %v13377_v54, 0.0 }
 0xd06   : > { %v4980_v22 = vsub.f32 %v13207_v11, %v4960_v2  ;;  %10548 = vpow2.f32 %v4990_v43  ;;  %5320 = vadd.xlane.f32.xlu0 %v5319_v58 }
 0xd07   : > { %v13385_v25 = vpop.eup %10538  ;;  %v4996_v62 = vmul.f32 1.442695, %v4981_v41 }
 0xd08   : > { %v4994_v12 = vmul.f32 1.442695, %v4980_v22  ;;  %v13387_v7 = vpop.eup %10540  ;;  %v4969_v55 = vpop.xlane.xlu1 %4968  ;;  %v5328_v49 = vsel %vm1821_vm1, %v13385_v25, 0.0 }
 0xd09   : > { %v4966_v45 = vpop.xlane.xlu0 %4965  ;;  %10550 = vpow2.f32 %v4996_v62  ;;  %v4983_v24 = vsub.f32 %v13214_v14, %v4969_v55  ;;  %5329 = vadd.xlane.f32.xlu1 %v5328_v49  ;;  %v5325_v34 = vsel %vm1821_vm1, %v13387_v7, 0.0 }
 0xd0a   : > { %v4982_v11 = vsub.f32 %v13219_v28, %v4966_v45  ;;  %10552 = vpow2.f32 %v4994_v12  ;;  %5326 = vadd.xlane.f32.xlu0 %v5325_v34 }
 0xd0b   : > { %v13395_v10 = vpop.eup %10542  ;;  %v5000_v46 = vmul.f32 1.442695, %v4983_v24 }
 0xd0c   : > { %v4998_v13 = vmul.f32 1.442695, %v4982_v11  ;;  %v13397_v19 = vpop.eup %10544  ;;  %v4975_v5 = vpop.xlane.xlu1 %4974  ;;  %v5009_v26 = vsel %vm1821_vm1, %v13395_v10, 0.0 }
 0xd0d   : > { %v4972_v43 = vpop.xlane.xlu0 %4971  ;;  %10554 = vpow2.f32 %v5000_v46  ;;  %v4985_v14 = vsub.f32 %v13224_v63, %v4975_v5  ;;  %5010 = vadd.xlane.f32.xlu1 %v5009_v26  ;;  %v5006_v61 = vsel %vm1821_vm1, %v13397_v19, 0.0 }
 0xd0e   : > { %v4984_v28 = vsub.f32 %v13227_v47, %v4972_v43  ;;  %10556 = vpow2.f32 %v4998_v13  ;;  %5007 = vadd.xlane.f32.xlu0 %v5006_v61 }
 0xd0f   : > { %v13405_v2 = vpop.eup %10546  ;;  %v5004_v15 = vmul.f32 1.442695, %v4985_v14 }
 0xd10   : > { %v5002_v41 = vmul.f32 1.442695, %v4984_v28  ;;  %v13407_v22 = vpop.eup %10548  ;;  %v5015_v62 = vsel %vm1821_vm1, %v13405_v2, 0.0 }
 0xd11   : > { %v5831_v58 = vpop.xlane.xlu1 %5830  ;;  %10558 = vpow2.f32 %v5004_v15  ;;  %5016 = vadd.xlane.f32.xlu1 %v5015_v62  ;;  %v5012_v12 = vsel %vm1821_vm1, %v13407_v22, 0.0 }
 0xd12   : > { %v5857_v63 = vsub.f32 %v13238_v31, %v5831_v58  ;;  %v5828_v47 = vpop.xlane.xlu0 %5827  ;;  %10560 = vpow2.f32 %v5002_v41  ;;  %5013 = vadd.xlane.f32.xlu0 %v5012_v12 }
 0xd13   : > { %v5856_v55 = vsub.f32 %v13241_v50, %v5828_v47  ;;  %v13415_v45 = vpop.eup %10550 }
 0xd14   : > { %v5868_v49 = vmul.f32 1.442695, %v5857_v63  ;;  %v13417_v24 = vpop.eup %10552  ;;  %v5021_v46 = vsel %vm1821_vm1, %v13415_v45, 0.0 }
 0xd15   : > { %v5866_v11 = vmul.f32 1.442695, %v5856_v55  ;;  %v5837_v34 = vpop.xlane.xlu1 %5836  ;;  %5022 = vadd.xlane.f32.xlu1 %v5021_v46  ;;  %v5018_v5 = vsel %vm1821_vm1, %v13417_v24, 0.0 }
 0xd16   : > { %10562 = vpow2.f32 %v5868_v49  ;;  %v5859_v31 = vsub.f32 %v13248_v8, %v5837_v34  ;;  %v5834_v13 = vpop.xlane.xlu0 %5833  ;;  %5019 = vadd.xlane.f32.xlu0 %v5018_v5 }
 0xd17   : > { %10564 = vpow2.f32 %v5866_v11  ;;  %v5858_v50 = vsub.f32 %v13251_v21, %v5834_v13  ;;  %v13425_v26 = vpop.eup %10554 }
 0xd18   : > { %v5872_v43 = vmul.f32 1.442695, %v5859_v31  ;;  %v13427_v14 = vpop.eup %10556  ;;  %v5027_v15 = vsel %vm1821_vm1, %v13425_v26, 0.0 }
 0xd19   : > { %v5870_v28 = vmul.f32 1.442695, %v5858_v50  ;;  %v5843_v61 = vpop.xlane.xlu1 %5842  ;;  %5028 = vadd.xlane.f32.xlu1 %v5027_v15  ;;  %v5024_v58 = vsel %vm1821_vm1, %v13427_v14, 0.0 }
 0xd1a   : > { %10566 = vpow2.f32 %v5872_v43  ;;  %v5861_v8 = vsub.f32 %v13258_v59, %v5843_v61  ;;  %v5840_v41 = vpop.xlane.xlu0 %5839  ;;  %5025 = vadd.xlane.f32.xlu0 %v5024_v58 }
 0xd1b   : > { %10568 = vpow2.f32 %v5870_v28  ;;  %v5860_v21 = vsub.f32 %v13261_v53, %v5840_v41  ;;  %v13435_v62 = vpop.eup %10558 }
 0xd1c   : > { %v5876_v63 = vmul.f32 1.442695, %v5861_v8  ;;  %v13437_v47 = vpop.eup %10560  ;;  %v5033_v49 = vsel %vm1821_vm1, %v13435_v62, 0.0 }
 0xd1d   : > { %v5874_v12 = vmul.f32 1.442695, %v5860_v21  ;;  %v5849_v55 = vpop.xlane.xlu1 %5848  ;;  %5034 = vadd.xlane.f32.xlu1 %v5033_v49  ;;  %v5030_v34 = vsel %vm1821_vm1, %v13437_v47, 0.0 }
 0xd1e   : > { %10570 = vpow2.f32 %v5876_v63  ;;  %v5863_v59 = vsub.f32 %v13268_v32, %v5849_v55  ;;  %v5846_v11 = vpop.xlane.xlu0 %5845  ;;  %5031 = vadd.xlane.f32.xlu0 %v5030_v34 }
 0xd1f   : > { %10572 = vpow2.f32 %v5874_v12  ;;  %v5862_v53 = vsub.f32 %v13271_v4, %v5846_v11 }
 0xd20   : > { %v13445_v46 = vpop.eup %10562  ;;  %v5880_v31 = vmul.f32 1.442695, %v5863_v59 }
 0xd21   : > { %v13447_v13 = vpop.eup %10564  ;;  %v5878_v5 = vmul.f32 1.442695, %v5862_v53  ;;  %v5855_v50 = vpop.xlane.xlu1 %5854  ;;  %v5889_v43 = vsel %vm1821_vm1, %v13445_v46, 0.0 }
 0xd22   : > { %10574 = vpow2.f32 %v5880_v31  ;;  %v5865_v32 = vsub.f32 %v13278_v38, %v5855_v50  ;;  %5890 = vadd.xlane.f32.xlu1 %v5889_v43  ;;  %v5852_v28 = vpop.xlane.xlu0 %5851  ;;  %v5886_v61 = vsel %vm1821_vm1, %v13447_v13, 0.0 }
 0xd23   : > { %10576 = vpow2.f32 %v5878_v5  ;;  %v5864_v4 = vsub.f32 %v13281_v48, %v5852_v28  ;;  %5887 = vadd.xlane.f32.xlu0 %v5886_v61 }
 0xd24   : > { %v13455_v15 = vpop.eup %10566  ;;  %v5884_v8 = vmul.f32 1.442695, %v5865_v32 }
 0xd25   : > { %v13457_v41 = vpop.eup %10568  ;;  %v5882_v58 = vmul.f32 1.442695, %v5864_v4  ;;  %v5895_v21 = vsel %vm1821_vm1, %v13455_v15, 0.0 }
 0xd26   : > { %10578 = vpow2.f32 %v5884_v8  ;;  %5896 = vadd.xlane.f32.xlu1 %v5895_v21  ;;  %v5892_v38 = vsel %vm1821_vm1, %v13457_v41, 0.0 }
 0xd27   : > { %10580 = vpow2.f32 %v5882_v58  ;;  %5893 = vadd.xlane.f32.xlu0 %v5892_v38 }
 0xd28   : > { %v13463_v63 = vpop.eup %10570 }
 0xd29   : > { %v13465_v48 = vpop.eup %10572  ;;  %v5901_v12 = vsel %vm1821_vm1, %v13463_v63, 0.0 }
 0xd2a   : > { %5902 = vadd.xlane.f32.xlu1 %v5901_v12  ;;  %v5898_v55 = vsel %vm1821_vm1, %v13465_v48, 0.0 }
 0xd2b   : > { %5899 = vadd.xlane.f32.xlu0 %v5898_v55 }
 0xd2c   : > { %v13471_v49 = vpop.eup %10574 }
 0xd2d   : > { %v13473_v59 = vpop.eup %10576  ;;  %v5907_v11 = vsel %vm1821_vm1, %v13471_v49, 0.0 }
 0xd2e   : > { %5908 = vadd.xlane.f32.xlu1 %v5907_v11  ;;  %v5904_v34 = vsel %vm1821_vm1, %v13473_v59, 0.0 }
 0xd2f   : > { %5905 = vadd.xlane.f32.xlu0 %v5904_v34 }
 0xd30   : > { %v13479_v53 = vpop.eup %10578 }
 0xd31   : > { %v13481_v31 = vpop.eup %10580  ;;  %v5913_v5 = vsel %vm1821_vm1, %v13479_v53, 0.0 }
 0xd32   : > { %5914 = vadd.xlane.f32.xlu1 %v5913_v5  ;;  %v5910_v50 = vsel %vm1821_vm1, %v13481_v31, 0.0 }
 0xd33   : > { %5911 = vadd.xlane.f32.xlu0 %v5910_v50 }
 0xd39   : > { %v6281_v43 = vpop.xlane.xlu1 %6280 }
 0xd3a   : > { %v6307_v32 = vsub.f32 %v13288_v37, %v6281_v43  ;;  %v6278_v28 = vpop.xlane.xlu0 %6277 }
 0xd3b   : > { %v6306_v61 = vsub.f32 %v13291_v16, %v6278_v28 }
 0xd3c   : > { %v6318_v4 = vmul.f32 1.442695, %v6307_v32 }
 0xd3d   : > { %v6316_v8 = vmul.f32 1.442695, %v6306_v61  ;;  %v6287_v58 = vpop.xlane.xlu1 %6286 }
 0xd3e   : > { %10582 = vpow2.f32 %v6318_v4  ;;  %v6309_v21 = vsub.f32 %v13298_v9, %v6287_v58  ;;  %v6284_v38 = vpop.xlane.xlu0 %6283 }
 0xd3f   : > { %10584 = vpow2.f32 %v6316_v8  ;;  %v6308_v12 = vsub.f32 %v13301_v33, %v6284_v38 }
 0xd40   : > { %v6322_v55 = vmul.f32 1.442695, %v6309_v21 }
 0xd41   : > { %v6320_v11 = vmul.f32 1.442695, %v6308_v12  ;;  %v6293_v34 = vpop.xlane.xlu1 %6292 }
 0xd42   : > { %10586 = vpow2.f32 %v6322_v55  ;;  %v6311_v5 = vsub.f32 %v13308_v56, %v6293_v34  ;;  %v6290_v37 = vpop.xlane.xlu0 %6289 }
 0xd43   : > { %10588 = vpow2.f32 %v6320_v11  ;;  %v6310_v16 = vsub.f32 %v13311_v27, %v6290_v37 }
 0xd44   : > { %v6326_v50 = vmul.f32 1.442695, %v6311_v5 }
 0xd45   : > { %v6324_v43 = vmul.f32 1.442695, %v6310_v16  ;;  %v6299_v32 = vpop.xlane.xlu1 %6298 }
 0xd46   : > { %10590 = vpow2.f32 %v6326_v50  ;;  %v6313_v9 = vsub.f32 %v13318_v20, %v6299_v32  ;;  %v6296_v28 = vpop.xlane.xlu0 %6295 }
 0xd47   : > { %10592 = vpow2.f32 %v6324_v43  ;;  %v6312_v33 = vsub.f32 %v13321_v51, %v6296_v28 }
 0xd48   : > { %v13495_v61 = vpop.eup %10582  ;;  %v6330_v4 = vmul.f32 1.442695, %v6313_v9 }
 0xd49   : > { %v13497_v8 = vpop.eup %10584  ;;  %v6328_v56 = vmul.f32 1.442695, %v6312_v33  ;;  %v6305_v58 = vpop.xlane.xlu1 %6304  ;;  %v6339_v27 = vsel %vm1821_vm1, %v13495_v61, 0.0 }
 0xd4a   : > { %10594 = vpow2.f32 %v6330_v4  ;;  %v6315_v21 = vsub.f32 %v13328_v60, %v6305_v58  ;;  %6340 = vadd.xlane.f32.xlu1 %v6339_v27  ;;  %v6302_v38 = vpop.xlane.xlu0 %6301  ;;  %v6336_v20 = vsel %vm1821_vm1, %v13497_v8, 0.0 }
 0xd4b   : > { %10596 = vpow2.f32 %v6328_v56  ;;  %v6314_v51 = vsub.f32 %v13331_v23, %v6302_v38  ;;  %6337 = vadd.xlane.f32.xlu0 %v6336_v20 }
 0xd4c   : > { %v13505_v12 = vpop.eup %10586  ;;  %v6334_v55 = vmul.f32 1.442695, %v6315_v21 }
 0xd4d   : > { %v13507_v11 = vpop.eup %10588  ;;  %v6332_v34 = vmul.f32 1.442695, %v6314_v51  ;;  %v6345_v5 = vsel %vm1821_vm1, %v13505_v12, 0.0 }
 0xd4e   : > { %10598 = vpow2.f32 %v6334_v55  ;;  %6346 = vadd.xlane.f32.xlu1 %v6345_v5  ;;  %v6342_v60 = vsel %vm1821_vm1, %v13507_v11, 0.0 }
 0xd4f   : > { %10600 = vpow2.f32 %v6332_v34  ;;  %6343 = vadd.xlane.f32.xlu0 %v6342_v60 }
 0xd50   : > { %v13513_v37 = vpop.eup %10590 }
 0xd51   : > { %v13515_v23 = vpop.eup %10592  ;;  %v6351_v16 = vsel %vm1821_vm1, %v13513_v37, 0.0 }
 0xd52   : > { %6352 = vadd.xlane.f32.xlu1 %v6351_v16  ;;  %v6348_v50 = vsel %vm1821_vm1, %v13515_v23, 0.0 }
 0xd53   : > { %6349 = vadd.xlane.f32.xlu0 %v6348_v50 }
 0xd54   : > { %v13521_v43 = vpop.eup %10594 }
 0xd55   : > { %v13523_v32 = vpop.eup %10596  ;;  %v6357_v9 = vsel %vm1821_vm1, %v13521_v43, 0.0 }
 0xd56   : > { %6358 = vadd.xlane.f32.xlu1 %v6357_v9  ;;  %v6354_v28 = vsel %vm1821_vm1, %v13523_v32, 0.0 }
 0xd57   : > { %6355 = vadd.xlane.f32.xlu0 %v6354_v28 }
 0xd58   : > { %v13529_v33 = vpop.eup %10598 }
 0xd59   : > { %v13531_v4 = vpop.eup %10600  ;;  %v6363_v56 = vsel %vm1821_vm1, %v13529_v33, 0.0 }
 0xd5a   : > { %6364 = vadd.xlane.f32.xlu1 %v6363_v56  ;;  %v6360_v58 = vsel %vm1821_vm1, %v13531_v4, 0.0 }
 0xd5b   : > { %6361 = vadd.xlane.f32.xlu0 %v6360_v58 }
 0xd86   : > { %v5306_v27 = vpop.xlane.xlu1 %5305 }
 0xd87   : > { %10602 = vrcp.f32 %v5306_v27  ;;  %v5303_v21 = vpop.xlane.xlu0 %5302 }
 0xd88   : > { %10604 = vrcp.f32 %v5303_v21 }
 0xd8a   : > { %v5312_v38 = vpop.xlane.xlu1 %5311 }
 0xd8b   : > { %10606 = vrcp.f32 %v5312_v38  ;;  %v5309_v20 = vpop.xlane.xlu0 %5308 }
 0xd8c   : > { %10608 = vrcp.f32 %v5309_v20 }
 0xd8e   : > { %v5318_v51 = vpop.xlane.xlu1 %5317 }
 0xd8f   : > { %10610 = vrcp.f32 %v5318_v51  ;;  %v5315_v55 = vpop.xlane.xlu0 %5314 }
 0xd90   : > { %10612 = vrcp.f32 %v5315_v55 }
 0xd91   : > { %v10603_v34 = vpop.eup %10602 }
 0xd92   : > { %v10605_v5 = vpop.eup %10604  ;;  %v5324_v60 = vpop.xlane.xlu1 %5323  ;;  %v5334_v9 = vmul.f32 %v10603_v34, %v13345_v39 }
 0xd93   : > { %10614 = vrcp.f32 %v5324_v60  ;;  %v5321_v16 = vpop.xlane.xlu0 %5320  ;;  %v5332_v50 = vmul.f32 %v10605_v5, %v13347_v40 }
 0xd94   : > { %10616 = vrcp.f32 %v5321_v16 }
 0xd95   : > { %v10607_v28 = vpop.eup %10606  ;;  %9334 = vmatprep.mubr.msk.f32.mxu0 %vm1821_vm1, %v5332_v50 }
 0xd96   : > { %v10609_v56 = vpop.eup %10608  ;;  %v5330_v58 = vpop.xlane.xlu1 %5329  ;;  %9335 = vmatmul.mubr.msk.f32.vlgmr.msra.gmra.mrb[88].mxu0 %vm1821_vm1, %v5334_v9  ;;  %v5338_v40 = vmul.f32 %v10607_v28, %v13355_v17 }
 0xd97   : > { %10618 = vrcp.f32 %v5330_v58  ;;  %10048 = vmatpush3.bf16.msra.mxu0 %v12909_v42  ;;  %v5327_v27 = vpop.xlane.xlu0 %5326  ;;  %v5336_v21 = vmul.f32 %v10609_v56, %v13357_v52 }
 0xd98   : > { %10050 = vmatprep.subr.bf16.mxu0 %v12935_v36  ;;  %10620 = vrcp.f32 %v5327_v27 }
 0xd99   : > { %v10611_v39 = vpop.eup %10610  ;;  %9337 = vmatprep.mubr.msk.f32.mxu0 %vm1821_vm1, %v5336_v21 }
 0xd9a   : > { %v10613_v38 = vpop.eup %10612  ;;  %v5011_v20 = vpop.xlane.xlu1 %5010  ;;  %9338 = vmatmul.mubr.msk.f32.gmra.mrb[90].mxu0 %vm1821_vm1, %v5338_v40  ;;  %v5342_v52 = vmul.f32 %v10611_v39, %v13365_v29 }
 0xd9b   : > { %10622 = vrcp.f32 %v5011_v20  ;;  %10052 = vmatpush3.bf16.msra.mxu0 %v12935_v36  ;;  %v5008_v51 = vpop.xlane.xlu0 %5007  ;;  %v5340_v42 = vmul.f32 %v10613_v38, %v13367_v30 }
 0xd9c   : > { %10054 = vmatprep.subr.bf16.mxu0 %v12961_v18  ;;  %10624 = vrcp.f32 %v5008_v51 }
 0xd9d   : > { %v10615_v55 = vpop.eup %10614  ;;  %9340 = vmatprep.mubr.msk.f32.mxu0 %vm1821_vm1, %v5340_v42 }
 0xd9e   : > { %v10617_v17 = vpop.eup %10616  ;;  %v5017_v34 = vpop.xlane.xlu1 %5016  ;;  %9341 = vmatmul.mubr.msk.f32.gmra.mrb[92].mxu0 %vm1821_vm1, %v5342_v52  ;;  %v5346_v30 = vmul.f32 %v10615_v55, %v13375_v1 }
 0xd9f   : > { %10626 = vrcp.f32 %v5017_v34  ;;  %10056 = vmatpush3.bf16.msra.mxu0 %v12961_v18  ;;  %v5014_v5 = vpop.xlane.xlu0 %5013  ;;  %v5344_v36 = vmul.f32 %v10617_v17, %v13377_v54  ;;  %v14206_v34 = vld [vmem:[#allocation9_spill] sm:$0xff] }
 0xda0   : > { %10058 = vmatprep.subr.bf16.mxu0 %v12984_v44  ;;  %10628 = vrcp.f32 %v5014_v5 }
 0xda1   : > { %v10619_v60 = vpop.eup %10618  ;;  %9343 = vmatprep.mubr.msk.f32.mxu0 %vm1821_vm1, %v5344_v36 }
 0xda2   : > { %v10621_v29 = vpop.eup %10620  ;;  %v5023_v16 = vpop.xlane.xlu1 %5022  ;;  %9344 = vmatmul.mubr.msk.f32.gmra.mrb[94].mxu0 %vm1821_vm1, %v5346_v30  ;;  %v5350_v54 = vmul.f32 %v10619_v60, %v13385_v25  ;;  %v14207_v60 = vld [vmem:[#allocation8_spill] sm:$0xff] }
 0xda3   : > { %10630 = vrcp.f32 %v5023_v16  ;;  %10060 = vmatpush3.bf16.msra.mxu0 %v12984_v44  ;;  %v5020_v50 = vpop.xlane.xlu0 %5019  ;;  %v5348_v18 = vmul.f32 %v10621_v29, %v13387_v7 }
 0xda4   : > { %10062 = vmatprep.subr.bf16.mxu0 %v13011_v57  ;;  %10632 = vrcp.f32 %v5020_v50 }
 0xda5   : > { %v10623_v9 = vpop.eup %10622  ;;  %9346 = vmatprep.mubr.msk.f32.mxu0 %vm1821_vm1, %v5348_v18 }
 0xda6   : > { %v10625_v1 = vpop.eup %10624  ;;  %v5029_v28 = vpop.xlane.xlu1 %5028  ;;  %9347 = vmatmul.mubr.msk.f32.gmra.mrb[96].mxu0 %vm1821_vm1, %v5350_v54  ;;  %v5039_v7 = vmul.f32 %v10623_v9, %v13395_v10  ;;  %v14208_v54 = vld [vmem:[#allocation7_spill] sm:$0xff] }
 0xda7   : > { %10634 = vrcp.f32 %v5029_v28  ;;  %10064 = vmatpush3.bf16.msra.mxu0 %v13011_v57  ;;  %v5026_v56 = vpop.xlane.xlu0 %5025  ;;  %v5037_v44 = vmul.f32 %v10625_v1, %v13397_v19  ;;  %v14209_v28 = vld [vmem:[#allocation10_spill] sm:$0xff] }
 0xda8   : > { %10096 = vmatprep.subr.bf16.mxu0 %v12911_v6  ;;  %10636 = vrcp.f32 %v5026_v56 }
 0xda9   : > { %v10627_v58 = vpop.eup %10626  ;;  %9369 = vmatprep.mubr.msk.f32.mxu0 %vm1821_vm1, %v5037_v44 }
 0xdaa   : > { %v10629_v25 = vpop.eup %10628  ;;  %v5035_v27 = vpop.xlane.xlu1 %5034  ;;  %9370 = vmatmul.mubr.msk.f32.vlgmr.msra.gmra.mrb[88].mxu0 %vm1821_vm1, %v5039_v7  ;;  %v5043_v10 = vmul.f32 %v10627_v58, %v13405_v2  ;;  %v14210_v7 = vld [vmem:[#allocation12_spill] sm:$0xff] }
 0xdab   : > { %10638 = vrcp.f32 %v5035_v27  ;;  %10098 = vmatpush3.bf16.msra.mxu0 %v12911_v6  ;;  %v5032_v21 = vpop.xlane.xlu0 %5031  ;;  %v5041_v57 = vmul.f32 %v10629_v25, %v13407_v22 }
 0xdac   : > { %10100 = vmatprep.subr.bf16.mxu0 %v12941_v35  ;;  %10640 = vrcp.f32 %v5032_v21  ;;  %v14211_v21 = vld [vmem:[#allocation11_spill] sm:$0xff] }
 0xdad   : > { %v10631_v19 = vpop.eup %10630  ;;  %9372 = vmatprep.mubr.msk.f32.mxu0 %vm1821_vm1, %v5041_v57 }
 0xdae   : > { %v10633_v40 = vpop.eup %10632  ;;  %9373 = vmatmul.mubr.msk.f32.gmra.mrb[90].mxu0 %vm1821_vm1, %v5043_v10  ;;  %v5047_v22 = vmul.f32 %v10631_v19, %v13415_v45 }
 0xdaf   : > { %v5891_v39 = vpop.xlane.xlu1 %5890  ;;  %10102 = vmatpush3.bf16.msra.mxu0 %v12941_v35  ;;  %v5045_v6 = vmul.f32 %v10633_v40, %v13417_v24 }
 0xdb0   : > { %10642 = vrcp.f32 %v5891_v39  ;;  %v5888_v38 = vpop.xlane.xlu0 %5887  ;;  %10104 = vmatprep.subr.bf16.mxu0 %v12969_v0 }
 0xdb1   : > { %10644 = vrcp.f32 %v5888_v38  ;;  %v10635_v20 = vpop.eup %10634  ;;  %9375 = vmatprep.mubr.msk.f32.mxu0 %vm1821_vm1, %v5045_v6 }
 0xdb2   : > { %v10637_v2 = vpop.eup %10636  ;;  %9376 = vmatmul.mubr.msk.f32.gmra.mrb[92].mxu0 %vm1821_vm1, %v5047_v22  ;;  %v5051_v24 = vmul.f32 %v10635_v20, %v13425_v26  ;;  %v7928_v22 = vld [vmem:[%s14032_s13 + $0x30] sm:$0xff]  ;;  %v7929_v20 = vld [vmem:[%s14032_s13 + $0x38] sm:$0xff] }
 0xdb3   : > { %v5897_v51 = vpop.xlane.xlu1 %5896  ;;  %10106 = vmatpush3.bf16.msra.mxu0 %v12969_v0  ;;  %v5049_v35 = vmul.f32 %v10637_v2, %v13427_v14 }
 0xdb4   : > { %10646 = vrcp.f32 %v5897_v51  ;;  %v5894_v42 = vpop.xlane.xlu0 %5893  ;;  %10108 = vmatprep.subr.bf16.mxu0 %v12992_v3 }
 0xdb5   : > { %10648 = vrcp.f32 %v5894_v42  ;;  %v10639_v52 = vpop.eup %10638  ;;  %9378 = vmatprep.mubr.msk.f32.mxu0 %vm1821_vm1, %v5049_v35 }
 0xdb6   : > { %v10641_v45 = vpop.eup %10640  ;;  %9379 = vmatmul.mubr.msk.f32.gmra.mrb[94].mxu0 %vm1821_vm1, %v5051_v24  ;;  %v5055_v14 = vmul.f32 %v10639_v52, %v13435_v62  ;;  %v10171_v52 = vpack.c.bf16 %v7929_v20, %v7928_v22  ;;  %v14218_v22 = vld [vmem:[#allocation21_spill] sm:$0xff] }
 0xdb7   : > { %v5903_v55 = vpop.xlane.xlu1 %5902  ;;  %10110 = vmatpush3.bf16.msra.mxu0 %v12992_v3  ;;  %v5053_v0 = vmul.f32 %v10641_v45, %v13437_v47 }
 0xdb8   : > { %10650 = vrcp.f32 %v5903_v55  ;;  %v5900_v17 = vpop.xlane.xlu0 %5899  ;;  %10112 = vmatprep.subr.bf16.mxu0 %v14206_v34 }
 0xdb9   : > { %10652 = vrcp.f32 %v5900_v17  ;;  %9381 = vmatprep.mubr.msk.f32.mxu0 %vm1821_vm1, %v5053_v0 }
 0xdba   : > { %v10643_v5 = vpop.eup %10642  ;;  %9382 = vmatmul.mubr.msk.f32.gmra.mrb[96].mxu0 %vm1821_vm1, %v5055_v14 }
 0xdbb   : > { %v10645_v26 = vpop.eup %10644  ;;  %v5909_v36 = vpop.xlane.xlu1 %5908  ;;  %10114 = vmatpush3.bf16.msra.mxu0 %v14206_v34  ;;  %v5919_v47 = vmul.f32 %v10643_v5, %v13445_v46 }
 0xdbc   : > { %10654 = vrcp.f32 %v5909_v36  ;;  %v5906_v30 = vpop.xlane.xlu0 %5905  ;;  %v5917_v3 = vmul.f32 %v10645_v26, %v13447_v13  ;;  %10146 = vmatprep.subr.bf16.mxu0 %v14207_v60 }
 0xdbd   : > { %10656 = vrcp.f32 %v5906_v30 }
 0xdbe   : > { %v10647_v29 = vpop.eup %10646  ;;  %9439 = vmatprep.mubr.msk.f32.mxu0 %vm1821_vm1, %v5917_v3 }
 0xdbf   : > { %v10649_v62 = vpop.eup %10648  ;;  %v5915_v16 = vpop.xlane.xlu1 %5914  ;;  %9440 = vmatmul.mubr.msk.f32.vlgmr.msra.gmra.mrb[88].mxu0 %vm1821_vm1, %v5919_v47  ;;  %v5923_v46 = vmul.f32 %v10647_v29, %v13455_v15 }
 0xdc0   : > { %10658 = vrcp.f32 %v5915_v16  ;;  %10148 = vmatpush3.bf16.msra.mxu0 %v14207_v60  ;;  %v5912_v50 = vpop.xlane.xlu0 %5911  ;;  %v5921_v18 = vmul.f32 %v10649_v62, %v13457_v41 }
 0xdc1   : > { %10150 = vmatprep.subr.bf16.mxu0 %v14208_v54  ;;  %10660 = vrcp.f32 %v5912_v50 }
 0xdc2   : > { %v10651_v13 = vpop.eup %10650  ;;  %9442 = vmatprep.mubr.msk.f32.mxu0 %vm1821_vm1, %v5921_v18 }
 0xdc3   : > { %v10653_v9 = vpop.eup %10652  ;;  %9443 = vmatmul.mubr.msk.f32.gmra.mrb[90].mxu0 %vm1821_vm1, %v5923_v46  ;;  %v5927_v56 = vmul.f32 %v10651_v13, %v13463_v63  ;;  %v7926_v63 = vld [vmem:[%s14032_s13 + $0x20] sm:$0xff] }
 0xdc4   : > { %10152 = vmatpush3.bf16.msra.mxu0 %v14208_v54  ;;  %v5925_v1 = vmul.f32 %v10653_v9, %v13465_v48  ;;  %v7927_v48 = vld [vmem:[%s14032_s13 + $0x28] sm:$0xff]  ;;  %v8117_v54 = vld [vmem:[%s14035_s16 + $0x13] ss:$0 sm:$0xff] }
 0xdc5   : > { %10154 = vmatprep.subr.bf16.mxu0 %v14209_v28  ;;  %v10165_v57 = vpack.c.bf16 %v7927_v48, %v7926_v63 }
 0xdc6   : > { %v10655_v41 = vpop.eup %10654  ;;  %9445 = vmatprep.mubr.msk.f32.mxu0 %vm1821_vm1, %v5925_v1 }
 0xdc7   : > { %v10657_v44 = vpop.eup %10656  ;;  %9446 = vmatmul.mubr.msk.f32.gmra.mrb[92].mxu0 %vm1821_vm1, %v5927_v56  ;;  %v5931_v58 = vmul.f32 %v10655_v41, %v13471_v49  ;;  %v14214_v41 = vld [vmem:[#allocation22_spill] sm:$0xff] }
 0xdc8   : > { %10156 = vmatpush3.bf16.msra.mxu0 %v14209_v28  ;;  %v5929_v15 = vmul.f32 %v10657_v44, %v13473_v59  ;;  %v14213_v28 = vld [vmem:[#allocation17_spill] sm:$0xff] }
 0xdc9   : > { %10158 = vmatprep.subr.bf16.mxu0 %v14210_v7 }
 0xdca   : > { %v10659_v25 = vpop.eup %10658  ;;  %9448 = vmatprep.mubr.msk.f32.mxu0 %vm1821_vm1, %v5929_v15 }
 0xdcb   : > { %v10661_v27 = vpop.eup %10660  ;;  %9449 = vmatmul.mubr.msk.f32.gmra.mrb[94].mxu0 %vm1821_vm1, %v5931_v58  ;;  %v5935_v49 = vmul.f32 %v10659_v25, %v13479_v53 }
 0xdcc   : > { %10160 = vmatpush3.bf16.msra.mxu0 %v14210_v7  ;;  %v5933_v59 = vmul.f32 %v10661_v27, %v13481_v31  ;;  %v14215_v27 = vld [vmem:[#allocation20_spill] sm:$0xff] }
 0xdcd   : > { %10162 = vmatprep.subr.bf16.mxu0 %v14211_v21 }
 0xdce   : > { %9451 = vmatprep.mubr.msk.f32.mxu0 %vm1821_vm1, %v5933_v59 }
 0xdcf   : > { %9452 = vmatmul.mubr.msk.f32.gmra.mrb[96].mxu0 %vm1821_vm1, %v5935_v49 }
 0xdd0   : > { %10164 = vmatpush3.bf16.msra.mxu0 %v14211_v21  ;;  %v14216_v21 = vld [vmem:[#allocation18_spill] sm:$0xff] }
 0xdd1   : > { %10167 = vmatprep.subr.msk.bf16.mxu0 %vm10942_vm6, %v10165_v57 }
 0xdd7   : > { %v6341_v19 = vpop.xlane.xlu1 %6340 }
 0xdd8   : > { %10662 = vrcp.f32 %v6341_v19  ;;  %v6338_v40 = vpop.xlane.xlu0 %6337 }
 0xdd9   : > { %10664 = vrcp.f32 %v6338_v40 }
 0xddb   : > { %v6347_v39 = vpop.xlane.xlu1 %6346 }
 0xddc   : > { %10666 = vrcp.f32 %v6347_v39  ;;  %v6344_v31 = vpop.xlane.xlu0 %6343 }
 0xddd   : > { %10668 = vrcp.f32 %v6344_v31 }
 0xddf   : > { %v6353_v38 = vpop.xlane.xlu1 %6352 }
 0xde0   : > { %10670 = vrcp.f32 %v6353_v38  ;;  %v6350_v53 = vpop.xlane.xlu0 %6349 }
 0xde1   : > { %10672 = vrcp.f32 %v6350_v53  ;;  %v14217_v53 = vld [vmem:[#allocation23_spill] sm:$0xff] }
 0xde2   : > { %v10663_v6 = vpop.eup %10662 }
 0xde3   : > { %v10665_v2 = vpop.eup %10664  ;;  %v6359_v51 = vpop.xlane.xlu1 %6358  ;;  %v6369_v24 = vmul.f32 %v10663_v6, %v13495_v61 }
 0xde4   : > { %10674 = vrcp.f32 %v6359_v51  ;;  %v6356_v42 = vpop.xlane.xlu0 %6355  ;;  %v6367_v35 = vmul.f32 %v10665_v2, %v13497_v8 }
 0xde5   : > { %10676 = vrcp.f32 %v6356_v42 }
 0xde6   : > { %v10667_v45 = vpop.eup %10666  ;;  %9509 = vmatprep.mubr.msk.f32.mxu0 %vm1821_vm1, %v6367_v35 }
 0xde7   : > { %v10669_v55 = vpop.eup %10668  ;;  %v6365_v17 = vpop.xlane.xlu1 %6364  ;;  %9510 = vmatmul.mubr.msk.f32.vlgmr.msra.gmra.mrb[88].mxu0 %vm1821_vm1, %v6369_v24  ;;  %v6373_v8 = vmul.f32 %v10667_v45, %v13505_v12  ;;  %v14219_v45 = vld [vmem:[#allocation3_spill] sm:$0xff] }
 0xde8   : > { %10678 = vrcp.f32 %v6365_v17  ;;  %v6362_v0 = vpop.xlane.xlu0 %6361  ;;  %v6371_v34 = vmul.f32 %v10669_v55, %v13507_v11  ;;  %10170 = vmatpush3.bf16.xpose.msk.msra.mxu0 %vm10942_vm6, %v10165_v57  ;;  %v14220_v17 = vld [vmem:[#allocation4_spill] sm:$0xff] }
 0xde9   : > { %10680 = vrcp.f32 %v6362_v0  ;;  %10173 = vmatprep.subr.msk.bf16.mxu0 %vm10942_vm6, %v10171_v52 }
 0xdea   : > { %v10671_v61 = vpop.eup %10670  ;;  %9512 = vmatprep.mubr.msk.f32.mxu0 %vm1821_vm1, %v6371_v34 }
 0xdeb   : > { %v10673_v14 = vpop.eup %10672  ;;  %9513 = vmatmul.mubr.msk.f32.gmra.mrb[90].mxu0 %vm1821_vm1, %v6373_v8  ;;  %v6377_v26 = vmul.f32 %v10671_v61, %v13513_v37 }
 0xdec   : > { %v6375_v5 = vmul.f32 %v10673_v14, %v13515_v23 }
 0xdee   : > { %v10675_v11 = vpop.eup %10674  ;;  %9515 = vmatprep.mubr.msk.f32.mxu0 %vm1821_vm1, %v6375_v5 }
 0xdef   : > { %v10677_v36 = vpop.eup %10676  ;;  %9516 = vmatmul.mubr.msk.f32.gmra.mrb[92].mxu0 %vm1821_vm1, %v6377_v26  ;;  %v6381_v30 = vmul.f32 %v10675_v11, %v13521_v43  ;;  %v14221_v11 = vld [vmem:[#allocation5_spill] sm:$0xff] }
 0xdf0   : > { %v6379_v12 = vmul.f32 %v10677_v36, %v13523_v32  ;;  %10176 = vmatpush3.bf16.xpose.msk.msra.mxu0 %vm10942_vm6, %v10171_v52 }
 0xdf2   : > { %v10679_v3 = vpop.eup %10678  ;;  %9518 = vmatprep.mubr.msk.f32.mxu0 %vm1821_vm1, %v6379_v12  ;;  %v14222_v12 = vld [vmem:[#allocation6_spill] sm:$0xff] }
 0xdf3   : > { %v10681_v47 = vpop.eup %10680  ;;  %9519 = vmatmul.mubr.msk.f32.gmra.mrb[94].mxu0 %vm1821_vm1, %v6381_v30  ;;  %v6385_v23 = vmul.f32 %v10679_v3, %v13529_v33 }
 0xdf4   : > { %v6383_v37 = vmul.f32 %v10681_v47, %v13531_v4 }
 0xdf6   : > { %9521 = vmatprep.mubr.msk.f32.mxu0 %vm1821_vm1, %v6383_v37  ;;  %v7930_v37 = vld [vmem:[%s14033_s14 + $0x40] sm:$0xff] }
 0xdf7   : > { %9522 = vmatmul.mubr.msk.f32.gmra.mrb[96].mxu0 %vm1821_vm1, %v6385_v23  ;;  %v7931_v23 = vld [vmem:[%s14033_s14 + $0x48] sm:$0xff] }
 0xeba   : > { %v9511_v32 = vpop.f32.mrb[88].mxu0 }
 0xebb   : > { %v6492_v60 = vpop.f32.mrb[89].mxu0 }
 0xebc   : > { %9532 = vmatprep.mubr.msk.f32.mxu0 %vm1196_vm5, %v6492_v60  ;;  %v10177_v60 = vpack.c.bf16 %v7931_v23, %v7930_v37  ;;  %v7939_v37 = vld [vmem:[%s14034_s15 + $0x28] sm:$0xff]  ;;  %v7940_v23 = vld [vmem:[%s14034_s15 + $0x30] sm:$0xff] }
 0xebd   : > { %9533 = vmatmul.mubr.msk.f32.vlgmr.msra.gmra.mrb[98].mxu0 %vm1196_vm5, %v9511_v32  ;;  %v7932_v32 = vld [vmem:[%s14033_s14 + $0x50] sm:$0xff] }
 0xebe   : > { %v9514_v43 = vpop.f32.mrb[90].mxu0  ;;  %10179 = vmatprep.subr.msk.bf16.mxu1 %vm10942_vm6, %v10177_v60 }
 0xebf   : > { %v6502_v29 = vpop.f32.mrb[91].mxu0  ;;  %10182 = vmatpush3.bf16.xpose.msk.msra.mxu1 %vm10942_vm6, %v10177_v60  ;;  %v7941_v60 = vld [vmem:[%s14034_s15 + $0x38] sm:$0xff] }
 0xec0   : > { %9535 = vmatprep.mubr.msk.f32.mxu0 %vm1196_vm5, %v6502_v29 }
 0xec1   : > { %9536 = vmatmul.mubr.msk.f32.gmra.mrb[100].mxu0 %vm1196_vm5, %v9514_v43  ;;  %v7933_v43 = vld [vmem:[%s14033_s14 + $0x58] sm:$0xff] }
 0xec2   : > { %v9517_v62 = vpop.f32.mrb[92].mxu0  ;;  %v10183_v29 = vpack.c.bf16 %v7933_v43, %v7932_v32  ;;  %v10207_v43 = vpack.c.bf16 %v7941_v60, %v7940_v23 }
 0xec3   : > { %v6512_v4 = vpop.f32.mrb[93].mxu0 }
 0xec4   : > { %9538 = vmatprep.mubr.msk.f32.mxu0 %vm1196_vm5, %v6512_v4  ;;  %10185 = vmatprep.subr.msk.bf16.mxu1 %vm10942_vm6, %v10183_v29 }
 0xec5   : > { %9539 = vmatmul.mubr.msk.f32.gmra.mrb[102].mxu0 %vm1196_vm5, %v9517_v62 }
 0xec6   : > { %v9520_v33 = vpop.f32.mrb[94].mxu0 }
 0xec7   : > { %v6522_v16 = vpop.f32.mrb[95].mxu0  ;;  %10188 = vmatpush3.bf16.xpose.msk.msra.mxu1 %vm10942_vm6, %v10183_v29  ;;  %v14224_v29 = vmov 0.0|0.0  }
 0xec8   : > { %9541 = vmatprep.mubr.msk.f32.mxu0 %vm1196_vm5, %v6522_v16 }
 0xec9   : > { %9542 = vmatmul.mubr.msk.f32.gmra.mrb[104].mxu0 %vm1196_vm5, %v9520_v33 }
 0xeca   : > { %v9523_v50 = vpop.f32.mrb[96].mxu0 }
 0xecb   : > { %v6532_v18 = vpop.f32.mrb[97].mxu0 }
 0xecc   : > { %9544 = vmatprep.mubr.msk.f32.mxu0 %vm1196_vm5, %v6532_v18 }
 0xecd   : > { %9545 = vmatmul.mubr.msk.f32.gmra.mrb[106].mxu0 %vm1196_vm5, %v9523_v50 }
 0xf90   : > { %v9534_v46 = vpop.f32.mrb[98].mxu0 }
 0xf91   : > { %v6669_v13 = vadd.f32 %v9534_v46, %v8117_v54  ;;  %v6663_v9 = vpop.f32.mrb[99].mxu0 }
 0xf92   : > { %v6664_v1 = vadd.f32 %v8117_v54, %v6663_v9 }
 0xf93   : > { %v6713_v56 = vadd.f32 %v6669_v13, %v14213_v28 }
 0xf94   : > { %v6712_v44 = vadd.f32 %v6664_v1, %v14214_v41  ;;  %v9537_v15 = vpop.f32.mrb[100].mxu0 }
 0xf95   : > { %v6679_v7 = vadd.f32 %v9537_v15, %v8117_v54  ;;  %v6673_v58 = vpop.f32.mrb[101].mxu0  ;;  %v6725_v25 = vsel %vm1196_vm5, %v6713_v56, 0.0 }
 0xf96   : > { %v6674_v63 = vadd.f32 %v8117_v54, %v6673_v58  ;;  %6726 = vadd.xlane.f32.xlu1 %v6725_v25  ;;  %v6722_v48 = vsel %vm1196_vm5, %v6712_v44, 0.0 }
 0xf97   : > { %v6715_v59 = vadd.f32 %v6679_v7, %v14215_v27  ;;  %6723 = vadd.xlane.f32.xlu0 %v6722_v48 }
 0xf98   : > { %v6714_v49 = vadd.f32 %v6674_v63, %v14216_v21  ;;  %v9540_v57 = vpop.f32.mrb[102].mxu0 }
 0xf99   : > { %v6689_v19 = vadd.f32 %v9540_v57, %v8117_v54  ;;  %v6683_v40 = vpop.f32.mrb[103].mxu0  ;;  %v6731_v39 = vsel %vm1196_vm5, %v6715_v59, 0.0 }
 0xf9a   : > { %v6684_v31 = vadd.f32 %v8117_v54, %v6683_v40  ;;  %6732 = vadd.xlane.f32.xlu1 %v6731_v39  ;;  %v6728_v38 = vsel %vm1196_vm5, %v6714_v49, 0.0 }
 0xf9b   : > { %v6717_v6 = vadd.f32 %v6689_v19, %v14217_v53  ;;  %6729 = vadd.xlane.f32.xlu0 %v6728_v38 }
 0xf9c   : > { %v6716_v20 = vadd.f32 %v6684_v31, %v14218_v22  ;;  %v9543_v2 = vpop.f32.mrb[104].mxu0 }
 0xf9d   : > { %v6699_v51 = vadd.f32 %v9543_v2, %v8117_v54  ;;  %v6693_v42 = vpop.f32.mrb[105].mxu0  ;;  %v6737_v35 = vsel %vm1196_vm5, %v6717_v6, 0.0 }
 0xf9e   : > { %v6694_v24 = vadd.f32 %v8117_v54, %v6693_v42  ;;  %6738 = vadd.xlane.f32.xlu1 %v6737_v35  ;;  %v6734_v52 = vsel %vm1196_vm5, %v6716_v20, 0.0 }
 0xf9f   : > { %v13692_v55 = vadd.f32 %v6699_v51, %v14219_v45  ;;  %6735 = vadd.xlane.f32.xlu0 %v6734_v52 }
 0xfa0   : > { %v13695_v0 = vadd.f32 %v6694_v24, %v14220_v17  ;;  %v9546_v34 = vpop.f32.mrb[106].mxu0 }
 0xfa1   : > { %v6709_v8 = vadd.f32 %v9546_v34, %v8117_v54  ;;  %v6703_v61 = vpop.f32.mrb[107].mxu0  ;;  %v6743_v14 = vsel %vm1196_vm5, %v13692_v55, 0.0 }
 0xfa2   : > { %v6704_v5 = vadd.f32 %v8117_v54, %v6703_v61  ;;  %6744 = vadd.xlane.f32.xlu1 %v6743_v14  ;;  %v6740_v26 = vsel %vm1196_vm5, %v13695_v0, 0.0 }
 0xfa3   : > { %v13702_v36 = vadd.f32 %v6709_v8, %v14221_v11  ;;  %6741 = vadd.xlane.f32.xlu0 %v6740_v26  ;;  %v7934_v26 = vld [vmem:[%s14033_s14 + $0x60] sm:$0xff]  ;;  %v7935_v11 = vld [vmem:[%s14033_s14 + $0x68] sm:$0xff] }
 0xfa4   : > { %v13705_v30 = vadd.f32 %v6704_v5, %v14222_v12  ;;  %v7936_v12 = vld [vmem:[%s14033_s14 + $0x70] sm:$0xff] }
 0xfa5   : > { %v6749_v3 = vsel %vm1196_vm5, %v13702_v36, 0.0 }
 0xfa6   : > { %6750 = vadd.xlane.f32.xlu1 %v6749_v3  ;;  %v6746_v47 = vsel %vm1196_vm5, %v13705_v30, 0.0 }
 0xfa7   : > { %6747 = vadd.xlane.f32.xlu0 %v6746_v47  ;;  %v7938_v47 = vld [vmem:[%s14034_s15 + $0x20] sm:$0xff] }
 0xfa8   : > { %v10201_v32 = vpack.c.bf16 %v7939_v37, %v7938_v47 }
 0xfaa   : > { %10203 = vmatprep.subr.msk.bf16.mxu0 %vm12370_vm3, %v10201_v32 }
 0xfab   : > { %10206 = vmatpush3.bf16.xpose.msk.msra.mxu0 %vm12370_vm3, %v10201_v32 }
 0xfac   : > { %10209 = vmatprep.subr.msk.bf16.mxu0 %vm12370_vm3, %v10207_v43 }
 0xfb3   : > { %10212 = vmatpush3.bf16.xpose.msk.msra.mxu0 %vm12370_vm3, %v10207_v43 }
 0xfb4   : > { %10213 = vmatprep.subr.bf16.mxu0 %v14224_v29 }
0x1023   : > { %v6727_v62 = vpop.xlane.xlu1 %6726 }
0x1024   : > { %v6753_v4 = vmul.f32 0.03125, %v6727_v62  ;;  %v6724_v33 = vpop.xlane.xlu0 %6723 }
0x1025   : > { %v6752_v16 = vmul.f32 0.03125, %v6724_v33 }
0x1026   : > { %v13731_v50 = vsub.f32 %v6713_v56, %v6753_v4 }
0x1027   : > { %v13733_v18 = vsub.f32 %v6712_v44, %v6752_v16  ;;  %v6733_v54 = vpop.xlane.xlu1 %6732 }
0x1028   : > { %v6755_v46 = vmul.f32 0.03125, %v6733_v54  ;;  %v6730_v13 = vpop.xlane.xlu0 %6729  ;;  %v6773_v9 = vmul.f32 %v13731_v50, %v13731_v50 }
0x1029   : > { %v6754_v1 = vmul.f32 0.03125, %v6730_v13  ;;  %v6772_v28 = vmul.f32 %v13733_v18, %v13733_v18 }
0x102a   : > { %v13739_v41 = vsub.f32 %v6715_v59, %v6755_v46  ;;  %v6785_v15 = vsel %vm1196_vm5, %v6773_v9, 0.0 }
0x102b   : > { %v13742_v7 = vsub.f32 %v6714_v49, %v6754_v1  ;;  %v6739_v56 = vpop.xlane.xlu1 %6738  ;;  %6786 = vadd.xlane.f32.xlu1 %v6785_v15  ;;  %v6782_v44 = vsel %vm1196_vm5, %v6772_v28, 0.0 }
0x102c   : > { %v6757_v58 = vmul.f32 0.03125, %v6739_v56  ;;  %6783 = vadd.xlane.f32.xlu0 %v6782_v44  ;;  %v6736_v25 = vpop.xlane.xlu0 %6735  ;;  %v6775_v63 = vmul.f32 %v13739_v41, %v13739_v41 }
0x102d   : > { %v6756_v48 = vmul.f32 0.03125, %v6736_v25  ;;  %v6774_v27 = vmul.f32 %v13742_v7, %v13742_v7 }
0x102e   : > { %v13749_v59 = vsub.f32 %v6717_v6, %v6757_v58  ;;  %v6791_v21 = vsel %vm1196_vm5, %v6775_v63, 0.0 }
0x102f   : > { %v13752_v49 = vsub.f32 %v6716_v20, %v6756_v48  ;;  %v6745_v57 = vpop.xlane.xlu1 %6744  ;;  %6792 = vadd.xlane.f32.xlu1 %v6791_v21  ;;  %v6788_v19 = vsel %vm1196_vm5, %v6774_v27, 0.0 }
0x1030   : > { %v6759_v40 = vmul.f32 0.03125, %v6745_v57  ;;  %6789 = vadd.xlane.f32.xlu0 %v6788_v19  ;;  %v6742_v39 = vpop.xlane.xlu0 %6741  ;;  %v6777_v31 = vmul.f32 %v13749_v59, %v13749_v59 }
0x1031   : > { %v6758_v38 = vmul.f32 0.03125, %v6742_v39  ;;  %v6776_v53 = vmul.f32 %v13752_v49, %v13752_v49 }
0x1032   : > { %v13760_v6 = vsub.f32 %v13692_v55, %v6759_v40  ;;  %v6797_v22 = vsel %vm1196_vm5, %v6777_v31, 0.0  ;;  %v8132_v31 = vld [vmem:[%s14035_s16 + $0x15] ss:$0 sm:$0xff] }
0x1033   : > { %v13764_v20 = vsub.f32 %v13695_v0, %v6758_v38  ;;  %6798 = vadd.xlane.f32.xlu1 %v6797_v22  ;;  %v6751_v2 = vpop.xlane.xlu1 %6750  ;;  %v6794_v51 = vsel %vm1196_vm5, %v6776_v53, 0.0 }
0x1034   : > { %v6761_v42 = vmul.f32 0.03125, %v6751_v2  ;;  %6795 = vadd.xlane.f32.xlu0 %v6794_v51  ;;  %v6748_v35 = vpop.xlane.xlu0 %6747  ;;  %v6779_v24 = vmul.f32 %v13760_v6, %v13760_v6 }
0x1035   : > { %v6760_v52 = vmul.f32 0.03125, %v6748_v35  ;;  %v6778_v45 = vmul.f32 %v13764_v20, %v13764_v20 }
0x1036   : > { %v13772_v55 = vsub.f32 %v13702_v36, %v6761_v42  ;;  %v6803_v17 = vsel %vm1196_vm5, %v6779_v24, 0.0  ;;  %v10189_v36 = vpack.c.bf16 %v7935_v11, %v7934_v26 }
0x1037   : > { %v13776_v0 = vsub.f32 %v13705_v30, %v6760_v52  ;;  %6804 = vadd.xlane.f32.xlu1 %v6803_v17  ;;  %v6800_v34 = vsel %vm1196_vm5, %v6778_v45, 0.0  ;;  %v7937_v30 = vld [vmem:[%s14033_s14 + $0x78] sm:$0xff]  ;;  %v8133_v52 = vld [vmem:[%s14035_s16 + $0x16] ss:$0 sm:$0xff] }
0x1038   : > { %6801 = vadd.xlane.f32.xlu0 %v6800_v34  ;;  %v6781_v8 = vmul.f32 %v13772_v55, %v13772_v55  ;;  %10191 = vmatprep.subr.msk.bf16.mxu1 %vm10942_vm6, %v10189_v36  ;;  %v10195_v3 = vpack.c.bf16 %v7937_v30, %v7936_v12 }
0x1039   : > { %v6780_v61 = vmul.f32 %v13776_v0, %v13776_v0  ;;  %10194 = vmatpush3.bf16.xpose.msk.msra.mxu1 %vm10942_vm6, %v10189_v36 }
0x103a   : > { %v6809_v14 = vsel %vm1196_vm5, %v6781_v8, 0.0  ;;  %10197 = vmatprep.subr.msk.bf16.mxu1 %vm10942_vm6, %v10195_v3 }
0x103b   : > { %6810 = vadd.xlane.f32.xlu1 %v6809_v14  ;;  %v6806_v5 = vsel %vm1196_vm5, %v6780_v61, 0.0 }
0x103c   : > { %6807 = vadd.xlane.f32.xlu0 %v6806_v5 }
0x1041   : > { %10200 = vmatpush3.bf16.xpose.msk.msra.mxu1 %vm10942_vm6, %v10195_v3 }
0x10b8   : > { %v6787_v62 = vpop.xlane.xlu1 %6786 }
0x10b9   : > { %v6813_v4 = vmul.f32 0.03125, %v6787_v62  ;;  %v6784_v33 = vpop.xlane.xlu0 %6783 }
0x10ba   : > { %v6812_v16 = vmul.f32 0.03125, %v6784_v33 }
0x10bb   : > { %v6823_v54 = vadd.f32 1e-05, %v6813_v4 }
0x10bc   : > { %v6822_v46 = vadd.f32 1e-05, %v6812_v16  ;;  %v6793_v13 = vpop.xlane.xlu1 %6792 }
0x10bd   : > { %10682 = vrsqrt.f32 %v6823_v54  ;;  %v6815_v9 = vmul.f32 0.03125, %v6793_v13  ;;  %v6790_v1 = vpop.xlane.xlu0 %6789 }
0x10be   : > { %10684 = vrsqrt.f32 %v6822_v46  ;;  %v6814_v28 = vmul.f32 0.03125, %v6790_v1 }
0x10bf   : > { %v6825_v15 = vadd.f32 1e-05, %v6815_v9 }
0x10c0   : > { %v6824_v56 = vadd.f32 1e-05, %v6814_v28  ;;  %v6799_v44 = vpop.xlane.xlu1 %6798 }
0x10c1   : > { %10686 = vrsqrt.f32 %v6825_v15  ;;  %v6817_v58 = vmul.f32 0.03125, %v6799_v44  ;;  %v6796_v25 = vpop.xlane.xlu0 %6795 }
0x10c2   : > { %10688 = vrsqrt.f32 %v6824_v56  ;;  %v6816_v63 = vmul.f32 0.03125, %v6796_v25 }
0x10c3   : > { %v6827_v48 = vadd.f32 1e-05, %v6817_v58 }
0x10c4   : > { %v6826_v27 = vadd.f32 1e-05, %v6816_v63  ;;  %v6805_v21 = vpop.xlane.xlu1 %6804 }
0x10c5   : > { %10690 = vrsqrt.f32 %v6827_v48  ;;  %v6819_v57 = vmul.f32 0.03125, %v6805_v21  ;;  %v6802_v19 = vpop.xlane.xlu0 %6801 }
0x10c6   : > { %10692 = vrsqrt.f32 %v6826_v27  ;;  %v6818_v40 = vmul.f32 0.03125, %v6802_v19 }
0x10c7   : > { %v10683_v39 = vpop.eup %10682  ;;  %v6829_v38 = vadd.f32 1e-05, %v6819_v57 }
0x10c8   : > { %v10685_v53 = vpop.eup %10684  ;;  %v6843_v22 = vmul.f32 %v10683_v39, %v13731_v50  ;;  %v6828_v2 = vadd.f32 1e-05, %v6818_v40  ;;  %v6811_v51 = vpop.xlane.xlu1 %6810 }
0x10c9   : > { %10694 = vrsqrt.f32 %v6829_v38  ;;  %v6821_v42 = vmul.f32 0.03125, %v6811_v51  ;;  %v6808_v35 = vpop.xlane.xlu0 %6807  ;;  %v6842_v24 = vmul.f32 %v10685_v53, %v13733_v18 }
0x10ca   : > { %v6857_v45 = vmul.f32 %v8132_v31, %v6843_v22  ;;  %10696 = vrsqrt.f32 %v6828_v2  ;;  %v6820_v17 = vmul.f32 0.03125, %v6808_v35 }
0x10cb   : > { %v10687_v34 = vpop.eup %10686  ;;  %v6831_v8 = vadd.f32 1e-05, %v6821_v42  ;;  %v6856_v61 = vmul.f32 %v8132_v31, %v6842_v24 }
0x10cc   : > { %v10689_v14 = vpop.eup %10688  ;;  %v6830_v5 = vadd.f32 1e-05, %v6820_v17  ;;  %v6845_v50 = vmul.f32 %v10687_v34, %v13739_v41  ;;  %v13838_v18 = vadd.f32 %v8133_v52, %v6857_v45 }
0x10cd   : > { %10698 = vrsqrt.f32 %v6831_v8  ;;  %v13835_v26 = vadd.f32 %v8133_v52, %v6856_v61  ;;  %v6844_v11 = vmul.f32 %v10689_v14, %v13742_v7 }
0x10ce   : > { %10700 = vrsqrt.f32 %v6830_v5  ;;  %v6859_v36 = vmul.f32 %v8132_v31, %v6845_v50  ;;  %v14225_v50 = vmov 0.0  }
0x10cf   : > { %v10691_v12 = vpop.eup %10690  ;;  %9563 = vmatprep.mubr.msk.f32.mxu1 %vm1196_vm5, %v13835_v26  ;;  %v6858_v30 = vmul.f32 %v8132_v31, %v6844_v11  ;;  %v8153_v11 = vld [vmem:[%s14035_s16 + $0x14] ss:$0 sm:$0xff] }
0x10d0   : > { %v10693_v3 = vpop.eup %10692  ;;  %9564 = vmatmul.mubr.msk.f32.vlgmr.msra.gmra.mrb[112].mxu1 %vm1196_vm5, %v13838_v18  ;;  %v6847_v41 = vmul.f32 %v10691_v12, %v13749_v59  ;;  %v13848_v7 = vadd.f32 %v8133_v52, %v6859_v36 }
0x10d1   : > { %v13845_v47 = vadd.f32 %v8133_v52, %v6858_v30  ;;  %v6846_v37 = vmul.f32 %v10693_v3, %v13752_v49 }
0x10d2   : > { %v6861_v23 = vmul.f32 %v8132_v31, %v6847_v41 }
0x10d3   : > { %v10695_v32 = vpop.eup %10694  ;;  %9566 = vmatprep.mubr.msk.f32.mxu1 %vm1196_vm5, %v13845_v47  ;;  %v6860_v60 = vmul.f32 %v8132_v31, %v6846_v37 }
0x10d4   : > { %v10697_v43 = vpop.eup %10696  ;;  %9567 = vmatmul.mubr.msk.f32.gmra.mrb[114].mxu1 %vm1196_vm5, %v13848_v7  ;;  %v6849_v10 = vmul.f32 %v10695_v32, %v13760_v6  ;;  %v13858_v4 = vadd.f32 %v8133_v52, %v6861_v23 }
0x10d5   : > { %v13855_v62 = vadd.f32 %v8133_v52, %v6860_v60  ;;  %v6848_v59 = vmul.f32 %v10697_v43, %v13764_v20 }
0x10d6   : > { %v6863_v49 = vmul.f32 %v8132_v31, %v6849_v10 }
0x10d7   : > { %v10699_v33 = vpop.eup %10698  ;;  %9569 = vmatprep.mubr.msk.f32.mxu1 %vm1196_vm5, %v13855_v62  ;;  %v6862_v16 = vmul.f32 %v8132_v31, %v6848_v59 }
0x10d8   : > { %v10701_v54 = vpop.eup %10700  ;;  %9570 = vmatmul.mubr.msk.f32.gmra.mrb[116].mxu1 %vm1196_vm5, %v13858_v4  ;;  %v6851_v46 = vmul.f32 %v10699_v33, %v13772_v55  ;;  %v13868_v9 = vadd.f32 %v8133_v52, %v6863_v49  ;;  %v8134_v55 = vld [vmem:[%s14036_s17 + $0x1] ss:$0 sm:$0xff] }
0x10d9   : > { %v13865_v13 = vadd.f32 %v8133_v52, %v6862_v16  ;;  %v6850_v6 = vmul.f32 %v10701_v54, %v13776_v0 }
0x10da   : > { %v6865_v20 = vmul.f32 %v8132_v31, %v6851_v46 }
0x10db   : > { %9572 = vmatprep.mubr.msk.f32.mxu1 %vm1196_vm5, %v13865_v13  ;;  %v6864_v1 = vmul.f32 %v8132_v31, %v6850_v6 }
0x10dc   : > { %9573 = vmatmul.mubr.msk.f32.gmra.mrb[118].mxu1 %vm1196_vm5, %v13868_v9  ;;  %v13876_v15 = vadd.f32 %v8133_v52, %v6865_v20 }
0x10dd   : > { %v13874_v28 = vadd.f32 %v8133_v52, %v6864_v1 }
0x10df   : > { %9575 = vmatprep.mubr.msk.f32.mxu1 %vm1196_vm5, %v13874_v28 }
0x10e0   : > { %9576 = vmatmul.mubr.msk.f32.gmra.mrb[120].mxu1 %vm1196_vm5, %v13876_v15 }
0x11a3   : > { %v9565_v0 = vpop.f32.mrb[112].mxu1 }
0x11a4   : > { %v7012_v56 = vadd.f32 %v9565_v0, %v8134_v55  ;;  %v7006_v44 = vpop.f32.mrb[113].mxu1 }
0x11a5   : > { %v7007_v58 = vadd.f32 %v8134_v55, %v7006_v44 }
0x11a6   : > { %v7056_v48 = vmax.f32 %v7012_v56, 0.0 }
0x11a7   : > { %v7055_v25 = vmax.f32 %v7007_v58, 0.0  ;;  %v9568_v63 = vpop.f32.mrb[114].mxu1 }
0x11a8   : > { %v7022_v27 = vadd.f32 %v9568_v63, %v8134_v55  ;;  %v7016_v21 = vpop.f32.mrb[115].mxu1 }
0x11a9   : > { %v7017_v57 = vadd.f32 %v8134_v55, %v7016_v21  ;;  %9586 = vmatprep.mubr.msk.f32.mxu0 %vm3946_vm2, %v7055_v25 }
0x11aa   : > { %9587 = vmatmul.mubr.msk.f32.vlgmr.msra.gmra.mrb[108].mxu0 %vm3946_vm2, %v7056_v48  ;;  %v7058_v39 = vmax.f32 %v7022_v27, 0.0 }
0x11ab   : > { %v7057_v19 = vmax.f32 %v7017_v57, 0.0  ;;  %v9571_v40 = vpop.f32.mrb[116].mxu1 }
0x11ac   : > { %v7032_v31 = vadd.f32 %v9571_v40, %v8134_v55  ;;  %v7026_v38 = vpop.f32.mrb[117].mxu1 }
0x11ad   : > { %v7027_v53 = vadd.f32 %v8134_v55, %v7026_v38  ;;  %9589 = vmatprep.mubr.msk.f32.mxu0 %vm3946_vm2, %v7057_v19 }
0x11ae   : > { %9590 = vmatmul.mubr.msk.f32.gmra.mrb[110].mxu0 %vm3946_vm2, %v7058_v39  ;;  %v7060_v51 = vmax.f32 %v7032_v31, 0.0 }
0x11af   : > { %v7059_v22 = vmax.f32 %v7027_v53, 0.0  ;;  %v9574_v2 = vpop.f32.mrb[118].mxu1 }
0x11b0   : > { %v7042_v42 = vadd.f32 %v9574_v2, %v8134_v55  ;;  %v7036_v35 = vpop.f32.mrb[119].mxu1 }
0x11b1   : > { %v7037_v24 = vadd.f32 %v8134_v55, %v7036_v35  ;;  %9592 = vmatprep.mubr.msk.f32.mxu0 %vm3946_vm2, %v7059_v22 }
0x11b2   : > { %9593 = vmatmul.mubr.msk.f32.gmra.mrb[112].mxu0 %vm3946_vm2, %v7060_v51  ;;  %v7062_v17 = vmax.f32 %v7042_v42, 0.0 }
0x11b3   : > { %v7061_v52 = vmax.f32 %v7037_v24, 0.0  ;;  %v9577_v45 = vpop.f32.mrb[120].mxu1 }
0x11b4   : > { %v7052_v34 = vadd.f32 %v9577_v45, %v8134_v55  ;;  %v7046_v8 = vpop.f32.mrb[121].mxu1 }
0x11b5   : > { %v7047_v61 = vadd.f32 %v8134_v55, %v7046_v8  ;;  %9595 = vmatprep.mubr.msk.f32.mxu0 %vm3946_vm2, %v7061_v52 }
0x11b6   : > { %9596 = vmatmul.mubr.msk.f32.gmra.mrb[114].mxu0 %vm3946_vm2, %v7062_v17  ;;  %v7064_v5 = vmax.f32 %v7052_v34, 0.0 }
0x11b7   : > { %v7063_v14 = vmax.f32 %v7047_v61, 0.0 }
0x11b9   : > { %9598 = vmatprep.mubr.msk.f32.mxu0 %vm3946_vm2, %v7063_v14 }
0x11ba   : > { %9599 = vmatmul.mubr.msk.f32.gmra.mrb[116].mxu0 %vm3946_vm2, %v7064_v5 }
0x11bb   : > { %9621 = vmatprep.mubr.msk.f32.mxu0 %vm10736_vm4, %v14225_v50 }
0x127d   : > { %v9588_v36 = vpop.f32.mrb[108].mxu0 }
0x127e   : > { %v7183_v12 = vadd.f32 %v9588_v36, %v8153_v11  ;;  %v7177_v30 = vpop.f32.mrb[109].mxu0 }
0x127f   : > { %v7178_v3 = vadd.f32 %v8153_v11, %v7177_v30 }
0x1280   : > { %v7227_v41 = vadd.f32 %v7183_v12, %v13838_v18 }
0x1281   : > { %v7226_v37 = vadd.f32 %v7178_v3, %v13835_v26  ;;  %v9591_v23 = vpop.f32.mrb[110].mxu0 }
0x1282   : > { %v7193_v32 = vadd.f32 %v9591_v23, %v8153_v11  ;;  %v7187_v60 = vpop.f32.mrb[111].mxu0  ;;  %v7239_v43 = vsel %vm1196_vm5, %v7227_v41, 0.0 }
0x1283   : > { %v7188_v10 = vadd.f32 %v8153_v11, %v7187_v60  ;;  %7240 = vadd.xlane.f32.xlu1 %v7239_v43  ;;  %v7236_v59 = vsel %vm1196_vm5, %v7226_v37, 0.0 }
0x1284   : > { %v7229_v49 = vadd.f32 %v7193_v32, %v13848_v7  ;;  %7237 = vadd.xlane.f32.xlu0 %v7236_v59 }
0x1285   : > { %v7228_v33 = vadd.f32 %v7188_v10, %v13845_v47  ;;  %v9594_v16 = vpop.f32.mrb[112].mxu0 }
0x1286   : > { %v7203_v54 = vadd.f32 %v9594_v16, %v8153_v11  ;;  %v7197_v46 = vpop.f32.mrb[113].mxu0  ;;  %v7245_v18 = vsel %vm1196_vm5, %v7229_v49, 0.0 }
0x1287   : > { %v7198_v26 = vadd.f32 %v8153_v11, %v7197_v46  ;;  %7246 = vadd.xlane.f32.xlu1 %v7245_v18  ;;  %v7242_v6 = vsel %vm1196_vm5, %v7228_v33, 0.0 }
0x1288   : > { %v7231_v20 = vadd.f32 %v7203_v54, %v13858_v4  ;;  %7243 = vadd.xlane.f32.xlu0 %v7242_v6 }
0x1289   : > { %v7230_v1 = vadd.f32 %v7198_v26, %v13855_v62  ;;  %v9597_v55 = vpop.f32.mrb[114].mxu0 }
0x128a   : > { %v7213_v0 = vadd.f32 %v9597_v55, %v8153_v11  ;;  %v7207_v7 = vpop.f32.mrb[115].mxu0  ;;  %v7251_v56 = vsel %vm1196_vm5, %v7231_v20, 0.0 }
0x128b   : > { %v7208_v47 = vadd.f32 %v8153_v11, %v7207_v7  ;;  %7252 = vadd.xlane.f32.xlu1 %v7251_v56  ;;  %v7248_v44 = vsel %vm1196_vm5, %v7230_v1, 0.0 }
0x128c   : > { %v7233_v58 = vadd.f32 %v7213_v0, %v13868_v9  ;;  %7249 = vadd.xlane.f32.xlu0 %v7248_v44 }
0x128d   : > { %v7232_v25 = vadd.f32 %v7208_v47, %v13865_v13  ;;  %v9600_v63 = vpop.f32.mrb[116].mxu0 }
0x128e   : > { %v7223_v48 = vadd.f32 %v9600_v63, %v8153_v11  ;;  %v7217_v4 = vpop.f32.mrb[117].mxu0  ;;  %v7257_v27 = vsel %vm1196_vm5, %v7233_v58, 0.0 }
0x128f   : > { %v7218_v62 = vadd.f32 %v8153_v11, %v7217_v4  ;;  %7258 = vadd.xlane.f32.xlu1 %v7257_v27  ;;  %v7254_v21 = vsel %vm1196_vm5, %v7232_v25, 0.0 }
0x1290   : > { %v7235_v57 = vadd.f32 %v7223_v48, %v13876_v15  ;;  %7255 = vadd.xlane.f32.xlu0 %v7254_v21 }
0x1291   : > { %v7234_v19 = vadd.f32 %v7218_v62, %v13874_v28 }
0x1292   : > { %v7263_v40 = vsel %vm1196_vm5, %v7235_v57, 0.0 }
0x1293   : > { %7264 = vadd.xlane.f32.xlu1 %v7263_v40  ;;  %v7260_v9 = vsel %vm1196_vm5, %v7234_v19, 0.0 }
0x1294   : > { %7261 = vadd.xlane.f32.xlu0 %v7260_v9 }
0x1310   : > { %v7241_v13 = vpop.xlane.xlu1 %7240 }
0x1311   : > { %v7267_v39 = vmul.f32 0.03125, %v7241_v13  ;;  %v7238_v31 = vpop.xlane.xlu0 %7237 }
0x1312   : > { %v7266_v38 = vmul.f32 0.03125, %v7238_v31 }
0x1313   : > { %v13920_v53 = vsub.f32 %v7227_v41, %v7267_v39 }
0x1314   : > { %v13922_v22 = vsub.f32 %v7226_v37, %v7266_v38  ;;  %v7247_v2 = vpop.xlane.xlu1 %7246 }
0x1315   : > { %v7269_v51 = vmul.f32 0.03125, %v7247_v2  ;;  %v7244_v15 = vpop.xlane.xlu0 %7243  ;;  %v7287_v28 = vmul.f32 %v13920_v53, %v13920_v53 }
0x1316   : > { %v7268_v42 = vmul.f32 0.03125, %v7244_v15  ;;  %v7286_v35 = vmul.f32 %v13922_v22, %v13922_v22 }
0x1317   : > { %v13928_v24 = vsub.f32 %v7229_v49, %v7269_v51  ;;  %v7299_v52 = vsel %vm1196_vm5, %v7287_v28, 0.0 }
0x1318   : > { %v13931_v45 = vsub.f32 %v7228_v33, %v7268_v42  ;;  %v7253_v17 = vpop.xlane.xlu1 %7252  ;;  %7300 = vadd.xlane.f32.xlu1 %v7299_v52  ;;  %v7296_v34 = vsel %vm1196_vm5, %v7286_v35, 0.0 }
0x1319   : > { %v7271_v8 = vmul.f32 0.03125, %v7253_v17  ;;  %7297 = vadd.xlane.f32.xlu0 %v7296_v34  ;;  %v7250_v61 = vpop.xlane.xlu0 %7249  ;;  %v7289_v14 = vmul.f32 %v13928_v24, %v13928_v24 }
0x131a   : > { %v7270_v5 = vmul.f32 0.03125, %v7250_v61  ;;  %v7288_v11 = vmul.f32 %v13931_v45, %v13931_v45 }
0x131b   : > { %v13938_v36 = vsub.f32 %v7231_v20, %v7271_v8  ;;  %v7305_v12 = vsel %vm1196_vm5, %v7289_v14, 0.0 }
0x131c   : > { %v13941_v30 = vsub.f32 %v7230_v1, %v7270_v5  ;;  %v7259_v3 = vpop.xlane.xlu1 %7258  ;;  %7306 = vadd.xlane.f32.xlu1 %v7305_v12  ;;  %v7302_v41 = vsel %vm1196_vm5, %v7288_v11, 0.0  ;;  %v8168_v5 = vld [vmem:[%s14035_s16 + $0x17] ss:$0 sm:$0xff] }
0x131d   : > { %v7273_v37 = vmul.f32 0.03125, %v7259_v3  ;;  %7303 = vadd.xlane.f32.xlu0 %v7302_v41  ;;  %v7256_v23 = vpop.xlane.xlu0 %7255  ;;  %v7291_v32 = vmul.f32 %v13938_v36, %v13938_v36 }
0x131e   : > { %v7272_v60 = vmul.f32 0.03125, %v7256_v23  ;;  %v7290_v43 = vmul.f32 %v13941_v30, %v13941_v30 }
0x131f   : > { %v13948_v10 = vsub.f32 %v7233_v58, %v7273_v37  ;;  %v7311_v59 = vsel %vm1196_vm5, %v7291_v32, 0.0  ;;  %v7394_v58 = vld [vmem:[%s14027_s8] sm:$0xff] }
0x1320   : > { %v13951_v49 = vsub.f32 %v7232_v25, %v7272_v60  ;;  %7312 = vadd.xlane.f32.xlu1 %v7311_v59  ;;  %v7265_v33 = vpop.xlane.xlu1 %7264  ;;  %v7308_v16 = vsel %vm1196_vm5, %v7290_v43, 0.0  ;;  %v10726_v25 = vld [vmem:[%s11633_s23] ss:$0 sm:$0xff]  ;;  %v8169_v60 = vld [vmem:[%s14035_s16 + $0x18] ss:$0 sm:$0xff] }
0x1321   : > { %v7275_v54 = vmul.f32 0.03125, %v7265_v33  ;;  %7309 = vadd.xlane.f32.xlu0 %v7308_v16  ;;  %v7262_v46 = vpop.xlane.xlu0 %7261  ;;  %v7293_v18 = vmul.f32 %v13948_v10, %v13948_v10  ;;  %v13974_v63 = vmul.f32 %v10726_v25, %v7394_v58 }
0x1322   : > { %v7274_v26 = vmul.f32 0.03125, %v7262_v46  ;;  %v7292_v6 = vmul.f32 %v13951_v49, %v13951_v49 }
0x1323   : > { %v13958_v20 = vsub.f32 %v7235_v57, %v7275_v54  ;;  %v7317_v1 = vsel %vm1196_vm5, %v7293_v18, 0.0  ;;  %v7469_v48 = vsel %vm1821_vm1, %v13974_v63, 0.0 }
0x1324   : > { %v13961_v55 = vsub.f32 %v7234_v19, %v7274_v26  ;;  %7318 = vadd.xlane.f32.xlu1 %v7317_v1  ;;  %v7314_v0 = vsel %vm1196_vm5, %v7292_v6, 0.0 }
0x1325   : > { %7315 = vadd.xlane.f32.xlu0 %v7314_v0  ;;  %v7295_v7 = vmul.f32 %v13958_v20, %v13958_v20 }
0x1326   : > { %v7294_v56 = vmul.f32 %v13961_v55, %v13961_v55 }
0x1327   : > { %v7323_v47 = vsel %vm1196_vm5, %v7295_v7, 0.0 }
0x1328   : > { %7324 = vadd.xlane.f32.xlu1 %v7323_v47  ;;  %v7320_v44 = vsel %vm1196_vm5, %v7294_v56, 0.0 }
0x1329   : > { %7321 = vadd.xlane.f32.xlu0 %v7320_v44 }
0x132d   : > { %7470 = vadd.xlane.f32.xlu0 %v7469_v48 }
0x13a5   : > { %v7301_v4 = vpop.xlane.xlu1 %7300 }
0x13a6   : > { %v7327_v27 = vmul.f32 0.03125, %v7301_v4  ;;  %v7298_v62 = vpop.xlane.xlu0 %7297 }
0x13a7   : > { %v7326_v21 = vmul.f32 0.03125, %v7298_v62 }
0x13a8   : > { %v7337_v57 = vadd.f32 1e-05, %v7327_v27 }
0x13a9   : > { %v7336_v19 = vadd.f32 1e-05, %v7326_v21  ;;  %v7307_v40 = vpop.xlane.xlu1 %7306 }
0x13aa   : > { %10702 = vrsqrt.f32 %v7337_v57  ;;  %v7329_v9 = vmul.f32 0.03125, %v7307_v40  ;;  %v7304_v13 = vpop.xlane.xlu0 %7303 }
0x13ab   : > { %10704 = vrsqrt.f32 %v7336_v19  ;;  %v7328_v39 = vmul.f32 0.03125, %v7304_v13 }
0x13ac   : > { %v7339_v31 = vadd.f32 1e-05, %v7329_v9 }
0x13ad   : > { %v7338_v38 = vadd.f32 1e-05, %v7328_v39  ;;  %v7313_v2 = vpop.xlane.xlu1 %7312 }
0x13ae   : > { %10706 = vrsqrt.f32 %v7339_v31  ;;  %v7331_v51 = vmul.f32 0.03125, %v7313_v2  ;;  %v7310_v15 = vpop.xlane.xlu0 %7309 }
0x13af   : > { %10708 = vrsqrt.f32 %v7338_v38  ;;  %v7330_v28 = vmul.f32 0.03125, %v7310_v15 }
0x13b0   : > { %v7341_v42 = vadd.f32 1e-05, %v7331_v51 }
0x13b1   : > { %v7340_v35 = vadd.f32 1e-05, %v7330_v28  ;;  %v7319_v52 = vpop.xlane.xlu1 %7318 }
0x13b2   : > { %10710 = vrsqrt.f32 %v7341_v42  ;;  %v7333_v17 = vmul.f32 0.03125, %v7319_v52  ;;  %v7316_v34 = vpop.xlane.xlu0 %7315 }
0x13b3   : > { %10712 = vrsqrt.f32 %v7340_v35  ;;  %v7332_v8 = vmul.f32 0.03125, %v7316_v34 }
0x13b4   : > { %v10703_v61 = vpop.eup %10702  ;;  %v7343_v14 = vadd.f32 1e-05, %v7333_v17 }
0x13b5   : > { %v10705_v11 = vpop.eup %10704  ;;  %v7357_v12 = vmul.f32 %v10703_v61, %v13920_v53  ;;  %v7342_v3 = vadd.f32 1e-05, %v7332_v8  ;;  %v7325_v41 = vpop.xlane.xlu1 %7324 }
0x13b6   : > { %v7356_v37 = vmul.f32 %v10705_v11, %v13922_v22  ;;  %10714 = vrsqrt.f32 %v7343_v14  ;;  %v7335_v23 = vmul.f32 0.03125, %v7325_v41  ;;  %v7322_v32 = vpop.xlane.xlu0 %7321 }
0x13b7   : > { %10716 = vrsqrt.f32 %v7342_v3  ;;  %v7334_v43 = vmul.f32 0.03125, %v7322_v32  ;;  %v7371_v59 = vmul.f32 %v8168_v5, %v7357_v12 }
0x13b8   : > { %v10707_v33 = vpop.eup %10706  ;;  %v7345_v16 = vadd.f32 1e-05, %v7335_v23  ;;  %v7370_v54 = vmul.f32 %v8168_v5, %v7356_v37 }
0x13b9   : > { %v10709_v46 = vpop.eup %10708  ;;  %v7359_v53 = vmul.f32 %v10707_v33, %v13928_v24  ;;  %v7344_v18 = vadd.f32 1e-05, %v7334_v43  ;;  %v7385_v26 = vadd.f32 %v8169_v60, %v7371_v59 }
0x13ba   : > { %v7358_v22 = vmul.f32 %v10709_v46, %v13931_v45  ;;  %10718 = vrsqrt.f32 %v7345_v16  ;;  %v7384_v6 = vadd.f32 %v8169_v60, %v7370_v54 }
0x13bb   : > { %10720 = vrsqrt.f32 %v7344_v18  ;;  %v7373_v1 = vmul.f32 %v8168_v5, %v7359_v53 }
0x13bc   : > { %v10711_v0 = vpop.eup %10710  ;;  %v10214_v7 = vpack.c.bf16 %v7385_v26, %v7384_v6  ;;  %v7372_v56 = vmul.f32 %v8168_v5, %v7358_v22 }
0x13bd   : > { %v10713_v47 = vpop.eup %10712  ;;  %v7361_v44 = vmul.f32 %v10711_v0, %v13938_v36  ;;  %v7387_v58 = vadd.f32 %v8169_v60, %v7373_v1 }
0x13be   : > { %v7360_v25 = vmul.f32 %v10713_v47, %v13941_v30  ;;  %10215 = vmatpush3.bf16.msra.mxu0 %v10214_v7  ;;  %v7386_v48 = vadd.f32 %v8169_v60, %v7372_v56 }
0x13bf   : > { %10216 = vmatprep.subr.bf16.mxu0 %v14224_v29  ;;  %v7375_v24 = vmul.f32 %v8168_v5, %v7361_v44 }
0x13c0   : > { %v10715_v4 = vpop.eup %10714  ;;  %v10217_v45 = vpack.c.bf16 %v7387_v58, %v7386_v48  ;;  %v7374_v27 = vmul.f32 %v8168_v5, %v7360_v25 }
0x13c1   : > { %v10717_v62 = vpop.eup %10716  ;;  %v7363_v21 = vmul.f32 %v10715_v4, %v13948_v10  ;;  %v7389_v57 = vadd.f32 %v8169_v60, %v7375_v24 }
0x13c2   : > { %v7362_v19 = vmul.f32 %v10717_v62, %v13951_v49  ;;  %10218 = vmatpush3.bf16.msra.mxu0 %v10217_v45  ;;  %v7388_v40 = vadd.f32 %v8169_v60, %v7374_v27 }
0x13c3   : > { %10219 = vmatprep.subr.bf16.mxu0 %v14224_v29  ;;  %v7377_v36 = vmul.f32 %v8168_v5, %v7363_v21 }
0x13c4   : > { %v10719_v30 = vpop.eup %10718  ;;  %v10220_v9 = vpack.c.bf16 %v7389_v57, %v7388_v40  ;;  %v7376_v13 = vmul.f32 %v8168_v5, %v7362_v19 }
0x13c5   : > { %v10721_v39 = vpop.eup %10720  ;;  %v7365_v31 = vmul.f32 %v10719_v30, %v13958_v20  ;;  %v7391_v38 = vadd.f32 %v8169_v60, %v7377_v36  ;;  %v7479_v20 = vld [vmem:[%s14037_s18] sm:$0xff] }
0x13c6   : > { %v7364_v2 = vmul.f32 %v10721_v39, %v13961_v55  ;;  %10221 = vmatpush3.bf16.msra.mxu0 %v10220_v9  ;;  %v7390_v51 = vadd.f32 %v8169_v60, %v7376_v13  ;;  %v7471_v55 = vpop.xlane.xlu0 %7470 }
0x13c7   : > { %10222 = vmatprep.subr.bf16.mxu0 %v14224_v29  ;;  %v7379_v10 = vmul.f32 %v8168_v5, %v7365_v31  ;;  %10722 = vrcp.f32 %v7471_v55 }
0x13c8   : > { %v10223_v49 = vpack.c.bf16 %v7391_v38, %v7390_v51  ;;  %v7378_v15 = vmul.f32 %v8168_v5, %v7364_v2 }
0x13c9   : > { %v7393_v28 = vadd.f32 %v8169_v60, %v7379_v10 }
0x13ca   : > { %10224 = vmatpush3.bf16.msra.mxu0 %v10223_v49  ;;  %v7392_v42 = vadd.f32 %v8169_v60, %v7378_v15 }
0x13cb   : > { %10225 = vmatprep.subr.bf16.mxu0 %v14224_v29 }
0x13cc   : > { %v10226_v35 = vpack.c.bf16 %v7393_v28, %v7392_v42 }
0x13ce   : > { %10227 = vmatpush3.bf16.msra.mxu0 %v10226_v35 }
0x13cf   : > { %9624 = vmatprep.subr.mxu0 %v14225_v50 }
0x13d1   : > { %9622 = vmatmul.mubr.msk.f32.vlgmr.msra.gmra.mrb[118].mxu0 %vm1821_vm1, %v13974_v63  ;;  %v10723_v29 = vpop.eup %10722 }
0x13d2   : > { %9626 = vmatprep.mubr.msk.f32.mxu0 %vm10736_vm4, %v14225_v50  ;;  %v8171_v50 = vld [vmem:[%s14038_s19] ss:$0 sm:$0xff]  ;;  %vm7563_vm4 = vcmask 64512  }
0x13d7   : > { %9625 = vmatpush3.xpose.msk.msra.mxu0 %vm1196_vm5, %v7479_v20 }
0x14a4   : > { %v7465_v52 = vpop.f32.mrb[118].mxu0 }
0x14a5   : > { %v7473_v17 = vmul.f32 %v10723_v29, %v7465_v52  ;;  %v9623_v34 = vpop.f32.mrb[119].mxu0 }
0x14a7   : > { %v7475_v8 = vmul.f32 0.70710677, %v7473_v17  ;;  %v7474_v63 = vmul.f32 0.5, %v7473_v17 }
0x14a9   : > { %10724 = verf.f32 %v7475_v8 }
0x14b3   : > { %v10725_v61 = vpop.eup %10724 }
0x14b4   : > { %v7477_v14 = vadd.f32 1.0, %v10725_v61 }
0x14b6   : > { %v7478_v5 = vmul.f32 %v7477_v14, %v7474_v63 }
0x14b8   : > { %9627 = vmatmul.mubr.msk.f32.vlgmr.msra.gmra.mrb[120].mxu0 %vm1196_vm5, %v7478_v5 }
0x158b   : > { %v7559_v11 = vpop.f32.mrb[120].mxu0 }
0x158c   : > { %v7560_v12 = vadd.f32 %v8171_v50, %v7559_v11  ;;  %v9628_v3 = vpop.f32.mrb[121].mxu0 }
0x158e   : > { %7564 = vst.msk [vmem:[%s682_s30] sm:$0xff] %vm7563_vm4, %v7560_v12 }
0x158f PF: > { %s30_s1 = sadd.s32 1, %s10733_s1  }
0x1590   : > { %p27_p5 = scmp.ge.s32.totalorder %s30_s1, 4  }
0x1592   :  { %29 = sbr.rel (!%p27_p5) target bundleno = 6 (0x6), region = 147 }

</bundles_post_ra>
